<compile_context>
chip_gen: v5e
topology: v5e:2x2
jax: 0.10.0
libtpu: 0.0.40
codegen_flags: <defaults>
</compile_context>

<pallas_src>
import numpy as np
import jax
import jax.numpy as jnp
from jax import lax
from jax.experimental import pallas as pl
from jax.experimental.pallas import tpu as pltpu


PARAM_NAMES = [
    "w_ih_g", "w_hh_g", "b_ih_g", "b_hh_g",
    "w_ih_p", "w_hh_p", "b_ih_p", "b_hh_p",
    "w_ih_e", "w_hh_e", "b_ih_e", "b_hh_e",
    "w_att",
    "w_lin", "b_lin",
    "w_cls", "b_cls",
]


def _gru_gates(gi, gh, h, hdim):
    """PyTorch nn.GRUCell gate math (gate order r, z, n) given precomputed gi/gh."""
    r = jax.nn.sigmoid(gi[:, :hdim] + gh[:, :hdim])
    z = jax.nn.sigmoid(gi[:, hdim:2 * hdim] + gh[:, hdim:2 * hdim])
    n = jnp.tanh(gi[:, 2 * hdim:] + r * gh[:, 2 * hdim:])
    return (1.0 - z) * n + z * h


# --------------------- kernel 1: sequential recurrence ------------------------

def recurrent_kernel(feat_ref, mask_ref, mflat_ref,
                     w_ih_g_f, w_ih_g_s, w_hh_g, b_ih_g, b_hh_g,
                     w_ih_p_f, w_ih_p_c, w_hh_p, b_ih_p, b_hh_p,
                     w_att,
                     parties_ref,                       # output (T, B, S)
                     hist_ref, spk_ref, gprev_ref, selmat_ref):  # VMEM scratch
    T, B, _ = feat_ref.shape
    P = mask_ref.shape[2]
    BP = mflat_ref.shape[1]
    G = w_hh_g.shape[0]
    S = w_hh_p.shape[0]

    # ---- init carried state ----
    hist_ref[...] = jnp.zeros_like(hist_ref)
    spk_ref[...] = jnp.zeros_like(spk_ref)
    gprev_ref[...] = jnp.zeros_like(gprev_ref)

    # ---- batched (over T) precompute of the party-selection matrices ----
    # select_parties == one-hot of first argmax(speaker_mask, dim=-1)
    mask_all = mask_ref[...]                                          # (T, B, P)
    col = lax.broadcasted_iota(jnp.int32, (T, B, P), 2)
    mx = jnp.max(mask_all, axis=2, keepdims=True)
    idx = jnp.min(jnp.where(mask_all == mx, col, P), axis=2, keepdims=True)  # (T,B,1)
    jcol = lax.broadcasted_iota(jnp.int32, (T, B, BP), 2)
    brow = lax.broadcasted_iota(jnp.int32, (T, B, BP), 1)
    selmat_ref[...] = (jcol == brow * P + idx).astype(jnp.float32)    # (T, B, B*P)

    # replication matrix: row j of (rep @ x) = x[j // P]  (broadcast context per party)
    rrow = lax.broadcasted_iota(jnp.int32, (BP, B), 0)
    rcol = lax.broadcasted_iota(jnp.int32, (BP, B), 1)
    rep_mat = jnp.logical_and(rrow >= rcol * P, rrow < rcol * P + P).astype(jnp.float32)

    # hoist weight loads out of the loop
    Wg_f = w_ih_g_f[...]; Wg_s = w_ih_g_s[...]; Wg_h = w_hh_g[...]
    bg_i = b_ih_g[...]; bg_h = b_hh_g[...]
    Wp_f = w_ih_p_f[...]; Wp_c = w_ih_p_c[...]; Wp_h = w_hh_p[...]
    bp_i = b_ih_p[...]; bp_h = b_hh_p[...]
    Wa = w_att[...]

    def step(t, carry):
        feat = feat_ref[t]                                            # (B, F)
        selmat = selmat_ref[t]                                        # (B, B*P)
        m_flat = mflat_ref[t]                                         # (B*P, 1)
        spk = spk_ref[...]                                            # (B*P, S)
        g_prev = gprev_ref[...]                                       # (B, G)

        # ---- global GRU cell (input = [feature, selected speaker state]) ----
        spk_sel = jnp.dot(selmat, spk, preferred_element_type=jnp.float32)     # (B, S)
        gi_g = (jnp.dot(feat, Wg_f, preferred_element_type=jnp.float32)
                + jnp.dot(spk_sel, Wg_s, preferred_element_type=jnp.float32)
                + bg_i)
        gh_g = jnp.dot(g_prev, Wg_h, preferred_element_type=jnp.float32) + bg_h
        g_state = _gru_gates(gi_g, gh_g, g_prev, G)                   # (B, G)

        # ---- attention over global history [0, t) ----
        hist = hist_ref[...]                                          # (T, B, G)
        x_tr = jnp.dot(feat, Wa, preferred_element_type=jnp.float32)  # (B, G)
        scores = jnp.sum(x_tr[None, :, :] * hist, axis=2)             # (T, B)
        step_iota = lax.broadcasted_iota(jnp.int32, (T, B), 0)
        valid = step_iota < t
        scores = jnp.where(valid, scores, -1e30)
        smax = jnp.max(scores, axis=0, keepdims=True)
        ex = jnp.exp(scores - smax) * valid.astype(jnp.float32)
        denom = jnp.sum(ex, axis=0, keepdims=True)
        denom = jnp.where(denom == 0.0, 1.0, denom)
        alpha = ex / denom                                            # (T, B)
        context = jnp.sum(alpha[:, :, None] * hist, axis=0)           # (B, G)

        # append current global state / carry it for the next step
        hist_ref[t] = g_state
        gprev_ref[...] = g_state

        # ---- party GRU cell, batched over all (b, p) pairs ----
        gi_p = (jnp.dot(feat, Wp_f, preferred_element_type=jnp.float32)
                + jnp.dot(context, Wp_c, preferred_element_type=jnp.float32)
                + bp_i)                                               # (B, 3S)
        gi_pf = jnp.dot(rep_mat, gi_p, preferred_element_type=jnp.float32)      # (B*P, 3S)
        gh_pf = jnp.dot(spk, Wp_h, preferred_element_type=jnp.float32) + bp_h   # (B*P, 3S)
        ps = _gru_gates(gi_pf, gh_pf, spk, S)                         # (B*P, S)

        # masked merge (listener keeps old state, speaker takes new state)
        spk_new = spk * (1.0 - m_flat) + ps * m_flat
        spk_ref[...] = spk_new

        # selected party state fed to the (non-recurrent) emotion cell later
        parties_ref[t] = jnp.dot(selmat, spk_new, preferred_element_type=jnp.float32)
        return carry

    lax.fori_loop(0, T, step, 0, unroll=True)


# --------------- kernel 2: batched emotion cell + classifier head -------------

def head_kernel(parties_ref, w_ih_e, b_ih_e, b_hh_e,
                w_lin, b_lin, w_cls, b_cls, out_ref):
    E = w_ih_e.shape[1] // 3
    x = parties_ref[...]                                              # (T*B, S)

    # emotion GRUCell with hidden state == 0 (the module always passes zeros)
    gi = jnp.dot(x, w_ih_e[...], preferred_element_type=jnp.float32) + b_ih_e[...]
    gh = b_hh_e[...]                                                  # (1, 3E)
    r = jax.nn.sigmoid(gi[:, :E] + gh[:, :E])
    z = jax.nn.sigmoid(gi[:, E:2 * E] + gh[:, E:2 * E])
    n = jnp.tanh(gi[:, 2 * E:] + r * gh[:, 2 * E:])
    emotion = (1.0 - z) * n                                           # (T*B, E)

    hidden = jax.nn.relu(
        jnp.dot(emotion, w_lin[...], preferred_element_type=jnp.float32) + b_lin[...])
    logits = jnp.dot(hidden, w_cls[...], preferred_element_type=jnp.float32) + b_cls[...]
    lmax = jnp.max(logits, axis=1, keepdims=True)
    lse = jnp.log(jnp.sum(jnp.exp(logits - lmax), axis=1, keepdims=True)) + lmax
    out_ref[...] = logits - lse                                       # one-shot store


# ----------------------------------- wrapper ----------------------------------

def rnn_model_forward(params, feature_concat, speaker_mask):
    T, B, F = feature_concat.shape
    P = speaker_mask.shape[2]
    G = params["w_hh_g"].shape[0]
    S = params["w_hh_p"].shape[0]
    C = params["w_cls"].shape[1]
    BP = B * P

    # layout plumbing (free in XLA): flat (b-major) per-party mask, split GRU input weights
    mask_flat = speaker_mask.reshape(T, BP, 1)
    w_ih_g_f, w_ih_g_s = params["w_ih_g"][:F], params["w_ih_g"][F:]
    w_ih_p_f, w_ih_p_c = params["w_ih_p"][:F], params["w_ih_p"][F:]

    rec_inputs = [feature_concat, speaker_mask, mask_flat,
                  w_ih_g_f, w_ih_g_s, params["w_hh_g"], params["b_ih_g"], params["b_hh_g"],
                  w_ih_p_f, w_ih_p_c, params["w_hh_p"], params["b_ih_p"], params["b_hh_p"],
                  params["w_att"]]

    parties = pl.pallas_call(
        recurrent_kernel,
        out_shape=jax.ShapeDtypeStruct((T, B, S), jnp.float32),
        in_specs=[pl.BlockSpec(memory_space=pltpu.MemorySpace.VMEM)
                  for _ in rec_inputs],
        out_specs=pl.BlockSpec(memory_space=pltpu.MemorySpace.VMEM),
        scratch_shapes=[pltpu.VMEM((T, B, G), jnp.float32),     # attention history
                        pltpu.VMEM((BP, S), jnp.float32),       # speaker state (flat)
                        pltpu.VMEM((B, G), jnp.float32),        # previous global state
                        pltpu.VMEM((T, B, BP), jnp.float32)],   # party-selection matrices
    )(*rec_inputs)

    head_inputs = [parties.reshape(T * B, S),
                   params["w_ih_e"], params["b_ih_e"], params["b_hh_e"],
                   params["w_lin"], params["b_lin"], params["w_cls"], params["b_cls"]]

    log_prob = pl.pallas_call(
        head_kernel,
        out_shape=jax.ShapeDtypeStruct((T * B, C), jnp.float32),
        in_specs=[pl.BlockSpec(memory_space=pltpu.MemorySpace.VMEM)
                  for _ in head_inputs],
        out_specs=pl.BlockSpec(memory_space=pltpu.MemorySpace.VMEM),
    )(*head_inputs)

    return log_prob.reshape(T, B, C)


# --------------------------- params + pure-JAX reference ----------------------

def init_params(key, F, G, S, E, H, C):
    keys = iter(jax.random.split(key, 32))

    def u(shape, fan_in):
        b = 1.0 / np.sqrt(fan_in)
        return jax.random.uniform(next(keys), shape, jnp.float32, -b, b)

    p = {}
    p["w_ih_g"] = u((F + S, 3 * G), G); p["w_hh_g"] = u((G, 3 * G), G)
    p["b_ih_g"] = u((1, 3 * G), G);     p["b_hh_g"] = u((1, 3 * G), G)
    p["w_ih_p"] = u((F + G, 3 * S), S); p["w_hh_p"] = u((S, 3 * S), S)
    p["b_ih_p"] = u((1, 3 * S), S);     p["b_hh_p"] = u((1, 3 * S), S)
    p["w_ih_e"] = u((S, 3 * E), E);     p["w_hh_e"] = u((E, 3 * E), E)
    p["b_ih_e"] = u((1, 3 * E), E);     p["b_hh_e"] = u((1, 3 * E), E)
    p["w_att"] = u((F, G), F)
    p["w_lin"] = u((E, H), E);          p["b_lin"] = u((1, H), E)
    p["w_cls"] = u((H, C), H);          p["b_cls"] = u((1, C), H)
    return p


def _gru_ref(x, h, w_ih, w_hh, b_ih, b_hh):
    hdim = h.shape[-1]
    gi = x @ w_ih + b_ih
    gh = h @ w_hh + b_hh
    r = jax.nn.sigmoid(gi[:, :hdim] + gh[:, :hdim])
    z = jax.nn.sigmoid(gi[:, hdim:2 * hdim] + gh[:, hdim:2 * hdim])
    n = jnp.tanh(gi[:, 2 * hdim:] + r * gh[:, 2 * hdim:])
    return (1.0 - z) * n + z * h


def reference_forward(params, feats, masks):
    """Plain-JAX mirror of the PyTorch forward (eval mode)."""
    T, B, F = feats.shape
    P = masks.shape[2]
    G = params["w_hh_g"].shape[0]
    S = params["w_hh_p"].shape[0]
    E = params["w_hh_e"].shape[0]
    speaker = jnp.zeros((B, P, S), jnp.float32)
    hist, emotions = [], []
    rows = jnp.arange(B)
    for t in range(T):
        f, m = feats[t], masks[t]
        idx = jnp.argmax(m, axis=1)
        sel = speaker[rows, idx]
        fs = jnp.concatenate([f, sel], axis=1)
        gprev = hist[-1] if hist else jnp.zeros((B, G), jnp.float32)
        gstate = _gru_ref(fs, gprev, params["w_ih_g"], params["w_hh_g"],
                          params["b_ih_g"], params["b_hh_g"])
        if hist:
            M = jnp.stack(hist, axis=0)
            x_tr = f @ params["w_att"]
            sc = jnp.einsum("bg,tbg->bt", x_tr, M)
            alpha = jax.nn.softmax(sc, axis=1)
            context = jnp.einsum("bt,tbg->bg", alpha, M)
        else:
            context = jnp.zeros((B, G), jnp.float32)
        fc = jnp.concatenate([f, context], axis=1)
        fc_rep = jnp.broadcast_to(fc[:, None, :], (B, P, fc.shape[1])).reshape(B * P, -1)
        ps = _gru_ref(fc_rep, speaker.reshape(B * P, S), params["w_ih_p"],
                      params["w_hh_p"], params["b_ih_p"], params["b_hh_p"]).reshape(B, P, S)
        m3 = m[:, :, None]
        speaker = speaker * (1.0 - m3) + ps * m3
        parties = speaker[rows, idx]
        emo = _gru_ref(parties, jnp.zeros((B, E), jnp.float32), params["w_ih_e"],
                       params["w_hh_e"], params["b_ih_e"], params["b_hh_e"])
        hist.append(gstate)
        emotions.append(emo)
    emotions = jnp.stack(emotions, axis=0)                       # (T, B, E)
    hidden = jax.nn.relu(emotions @ params["w_lin"] + params["b_lin"])
    logits = hidden @ params["w_cls"] + params["b_cls"]
    return jax.nn.log_softmax(logits, axis=2)


# ------------------------------------- main ------------------------------------

if __name__ == "__main__":
    # small shapes consistent with the module
    F, G, S, E, H, C = 16, 16, 16, 16, 32, 8     # feature / global / speaker / emotion / hidden / classes
    T, B, P = 8, 4, 2                            # seq_len / batch / parties

    key = jax.random.PRNGKey(0)
    kp, kf, km = jax.random.split(key, 3)
    params = init_params(kp, F, G, S, E, H, C)

    feature_concat = jax.random.normal(kf, (T, B, F), jnp.float32)
    spk_idx = jax.random.randint(km, (T, B), 0, P)
    speaker_mask = jax.nn.one_hot(spk_idx, P, dtype=jnp.float32)

    fwd = jax.jit(rnn_model_forward)
    log_prob = fwd(params, feature_concat, speaker_mask)
    log_prob = jax.block_until_ready(log_prob)

    ref = reference_forward(params, feature_concat, speaker_mask)
    np.testing.assert_allclose(np.asarray(log_prob), np.asarray(ref),
                               atol=2e-4, rtol=2e-4)
    print("KERNEL_OK")
</pallas_src>

<mosaic_0001>
module attributes {stable_mosaic.version = 11 : i64} {
  func.func @recurrent_kernel(%arg0: memref<8x4x16xf32, #tpu.memory_space<vmem>>, %arg1: memref<8x4x2xf32, #tpu.memory_space<vmem>>, %arg2: memref<8x8x1xf32, #tpu.memory_space<vmem>>, %arg3: memref<16x48xf32, #tpu.memory_space<vmem>>, %arg4: memref<16x48xf32, #tpu.memory_space<vmem>>, %arg5: memref<16x48xf32, #tpu.memory_space<vmem>>, %arg6: memref<1x48xf32, #tpu.memory_space<vmem>>, %arg7: memref<1x48xf32, #tpu.memory_space<vmem>>, %arg8: memref<16x48xf32, #tpu.memory_space<vmem>>, %arg9: memref<16x48xf32, #tpu.memory_space<vmem>>, %arg10: memref<16x48xf32, #tpu.memory_space<vmem>>, %arg11: memref<1x48xf32, #tpu.memory_space<vmem>>, %arg12: memref<1x48xf32, #tpu.memory_space<vmem>>, %arg13: memref<16x16xf32, #tpu.memory_space<vmem>>, %arg14: memref<8x4x16xf32, #tpu.memory_space<vmem>>, %arg15: memref<8x4x16xf32, #tpu.memory_space<vmem>>, %arg16: memref<8x16xf32, #tpu.memory_space<vmem>>, %arg17: memref<4x16xf32, #tpu.memory_space<vmem>>, %arg18: memref<8x4x8xf32, #tpu.memory_space<vmem>>) attributes {dimension_semantics = [], scalar_prefetch = 0 : i64, scratch_operands = 4 : i64, tpu.core_type = #tpu.core_type<tc>} {
    %cst = arith.constant 0.000000e+00 : f32
    %0 = vector.broadcast %cst : f32 to vector<8x4x16xf32>
    %c0 = arith.constant 0 : index
    %c0_0 = arith.constant 0 : index
    %c0_1 = arith.constant 0 : index
    %1 = vector.load %arg15[%c0, %c0_0, %c0_1] : memref<8x4x16xf32, #tpu.memory_space<vmem>>, vector<8x4x16xf32>
    tpu.vector_store %arg15[%c0, %c0_0, %c0_1], %0 {strides = array<i32>} : memref<8x4x16xf32, #tpu.memory_space<vmem>>, vector<8x4x16xf32>,
    %cst_2 = arith.constant 0.000000e+00 : f32
    %2 = vector.broadcast %cst_2 : f32 to vector<8x16xf32>
    %c0_3 = arith.constant 0 : index
    %c0_4 = arith.constant 0 : index
    %3 = vector.load %arg16[%c0_3, %c0_4] : memref<8x16xf32, #tpu.memory_space<vmem>>, vector<8x16xf32>
    tpu.vector_store %arg16[%c0_3, %c0_4], %2 {strides = array<i32>} : memref<8x16xf32, #tpu.memory_space<vmem>>, vector<8x16xf32>,
    %cst_5 = arith.constant 0.000000e+00 : f32
    %4 = vector.broadcast %cst_5 : f32 to vector<4x16xf32>
    %c0_6 = arith.constant 0 : index
    %c0_7 = arith.constant 0 : index
    %5 = vector.load %arg17[%c0_6, %c0_7] : memref<4x16xf32, #tpu.memory_space<vmem>>, vector<4x16xf32>
    tpu.vector_store %arg17[%c0_6, %c0_7], %4 {strides = array<i32>} : memref<4x16xf32, #tpu.memory_space<vmem>>, vector<4x16xf32>,
    %c0_8 = arith.constant 0 : index
    %c0_9 = arith.constant 0 : index
    %c0_10 = arith.constant 0 : index
    %6 = vector.load %arg1[%c0_8, %c0_9, %c0_10] : memref<8x4x2xf32, #tpu.memory_space<vmem>>, vector<8x4x2xf32>
    %7 = tpu.iota {dimensions = array<i32: 2>} : vector<8x4x2xi32>
    %cst_11 = arith.constant dense<0xFF800000> : vector<8x4xf32>
    %8 = vector.multi_reduction <maximumf>, %6, %cst_11 [2] : vector<8x4x2xf32> to vector<8x4xf32>
    %9 = vector.shape_cast %8 : vector<8x4xf32> to vector<8x4x1xf32>
    %10 = vector.broadcast %9 : vector<8x4x1xf32> to vector<8x4x2xf32>
    %11 = arith.cmpf oeq, %6, %10 : vector<8x4x2xf32>
    %c2_i32 = arith.constant 2 : i32
    %12 = vector.broadcast %c2_i32 : i32 to vector<8x4x2xi32>
    %13 = arith.select %11, %7, %12 : vector<8x4x2xi1>, vector<8x4x2xi32>
    %cst_12 = arith.constant dense<2147483647> : vector<8x4xi32>
    %14 = vector.multi_reduction <minsi>, %13, %cst_12 [2] : vector<8x4x2xi32> to vector<8x4xi32>
    %15 = vector.shape_cast %14 : vector<8x4xi32> to vector<8x4x1xi32>
    %16 = tpu.iota {dimensions = array<i32: 2>} : vector<8x4x8xi32>
    %17 = tpu.iota {dimensions = array<i32: 1>} : vector<8x4x8xi32>
    %c2_i32_13 = arith.constant 2 : i32
    %18 = vector.broadcast %c2_i32_13 : i32 to vector<8x4x8xi32>
    %19 = arith.muli %17, %18 : vector<8x4x8xi32>
    %20 = vector.broadcast %15 : vector<8x4x1xi32> to vector<8x4x8xi32>
    %21 = arith.addi %19, %20 : vector<8x4x8xi32>
    %22 = arith.cmpi eq, %16, %21 : vector<8x4x8xi32>
    %23 = arith.extui %22 : vector<8x4x8xi1> to vector<8x4x8xi32>
    %24 = arith.sitofp %23 : vector<8x4x8xi32> to vector<8x4x8xf32>
    %c0_14 = arith.constant 0 : index
    %c0_15 = arith.constant 0 : index
    %c0_16 = arith.constant 0 : index
    %25 = vector.load %arg18[%c0_14, %c0_15, %c0_16] : memref<8x4x8xf32, #tpu.memory_space<vmem>>, vector<8x4x8xf32>
    tpu.vector_store %arg18[%c0_14, %c0_15, %c0_16], %24 {strides = array<i32>} : memref<8x4x8xf32, #tpu.memory_space<vmem>>, vector<8x4x8xf32>,
    %26 = tpu.iota {dimensions = array<i32: 0>} : vector<8x4xi32>
    %27 = tpu.iota {dimensions = array<i32: 1>} : vector<8x4xi32>
    %c2_i32_17 = arith.constant 2 : i32
    %28 = vector.broadcast %c2_i32_17 : i32 to vector<8x4xi32>
    %29 = arith.muli %27, %28 : vector<8x4xi32>
    %30 = arith.cmpi sge, %26, %29 : vector<8x4xi32>
    %c2_i32_18 = arith.constant 2 : i32
    %31 = vector.broadcast %c2_i32_18 : i32 to vector<8x4xi32>
    %32 = arith.muli %27, %31 : vector<8x4xi32>
    %c2_i32_19 = arith.constant 2 : i32
    %33 = vector.broadcast %c2_i32_19 : i32 to vector<8x4xi32>
    %34 = arith.addi %32, %33 : vector<8x4xi32>
    %35 = arith.cmpi slt, %26, %34 : vector<8x4xi32>
    %36 = arith.andi %30, %35 : vector<8x4xi1>
    %37 = arith.extui %36 : vector<8x4xi1> to vector<8x4xi32>
    %38 = arith.sitofp %37 : vector<8x4xi32> to vector<8x4xf32>
    %c0_20 = arith.constant 0 : index
    %c0_21 = arith.constant 0 : index
    %39 = vector.load %arg3[%c0_20, %c0_21] : memref<16x48xf32, #tpu.memory_space<vmem>>, vector<16x48xf32>
    %c0_22 = arith.constant 0 : index
    %c0_23 = arith.constant 0 : index
    %40 = vector.load %arg4[%c0_22, %c0_23] : memref<16x48xf32, #tpu.memory_space<vmem>>, vector<16x48xf32>
    %c0_24 = arith.constant 0 : index
    %c0_25 = arith.constant 0 : index
    %41 = vector.load %arg5[%c0_24, %c0_25] : memref<16x48xf32, #tpu.memory_space<vmem>>, vector<16x48xf32>
    %c0_26 = arith.constant 0 : index
    %c0_27 = arith.constant 0 : index
    %42 = vector.load %arg6[%c0_26, %c0_27] : memref<1x48xf32, #tpu.memory_space<vmem>>, vector<1x48xf32>
    %c0_28 = arith.constant 0 : index
    %c0_29 = arith.constant 0 : index
    %43 = vector.load %arg7[%c0_28, %c0_29] : memref<1x48xf32, #tpu.memory_space<vmem>>, vector<1x48xf32>
    %c0_30 = arith.constant 0 : index
    %c0_31 = arith.constant 0 : index
    %44 = vector.load %arg8[%c0_30, %c0_31] : memref<16x48xf32, #tpu.memory_space<vmem>>, vector<16x48xf32>
    %c0_32 = arith.constant 0 : index
    %c0_33 = arith.constant 0 : index
    %45 = vector.load %arg9[%c0_32, %c0_33] : memref<16x48xf32, #tpu.memory_space<vmem>>, vector<16x48xf32>
    %c0_34 = arith.constant 0 : index
    %c0_35 = arith.constant 0 : index
    %46 = vector.load %arg10[%c0_34, %c0_35] : memref<16x48xf32, #tpu.memory_space<vmem>>, vector<16x48xf32>
    %c0_36 = arith.constant 0 : index
    %c0_37 = arith.constant 0 : index
    %47 = vector.load %arg11[%c0_36, %c0_37] : memref<1x48xf32, #tpu.memory_space<vmem>>, vector<1x48xf32>
    %c0_38 = arith.constant 0 : index
    %c0_39 = arith.constant 0 : index
    %48 = vector.load %arg12[%c0_38, %c0_39] : memref<1x48xf32, #tpu.memory_space<vmem>>, vector<1x48xf32>
    %c0_40 = arith.constant 0 : index
    %c0_41 = arith.constant 0 : index
    %49 = vector.load %arg13[%c0_40, %c0_41] : memref<16x16xf32, #tpu.memory_space<vmem>>, vector<16x16xf32>
    %c0_i32 = arith.constant 0 : i32
    %50 = arith.index_cast %c0_i32 : i32 to index
    %c0_42 = arith.constant 0 : index
    %c0_43 = arith.constant 0 : index
    %51 = vector.load %arg0[%50, %c0_42, %c0_43] : memref<8x4x16xf32, #tpu.memory_space<vmem>>, vector<1x4x16xf32>
    %52 = vector.shape_cast %51 : vector<1x4x16xf32> to vector<4x16xf32>
    %53 = arith.index_cast %c0_i32 : i32 to index
    %c0_44 = arith.constant 0 : index
    %c0_45 = arith.constant 0 : index
    %54 = vector.load %arg18[%53, %c0_44, %c0_45] : memref<8x4x8xf32, #tpu.memory_space<vmem>>, vector<1x4x8xf32>
    %55 = vector.shape_cast %54 : vector<1x4x8xf32> to vector<4x8xf32>
    %56 = arith.index_cast %c0_i32 : i32 to index
    %c0_46 = arith.constant 0 : index
    %c0_47 = arith.constant 0 : index
    %57 = vector.load %arg2[%56, %c0_46, %c0_47] : memref<8x8x1xf32, #tpu.memory_space<vmem>>, vector<1x8x1xf32>
    %58 = vector.shape_cast %57 : vector<1x8x1xf32> to vector<8x1xf32>
    %c0_48 = arith.constant 0 : index
    %c0_49 = arith.constant 0 : index
    %59 = vector.load %arg16[%c0_48, %c0_49] : memref<8x16xf32, #tpu.memory_space<vmem>>, vector<8x16xf32>
    %c0_50 = arith.constant 0 : index
    %c0_51 = arith.constant 0 : index
    %60 = vector.load %arg17[%c0_50, %c0_51] : memref<4x16xf32, #tpu.memory_space<vmem>>, vector<4x16xf32>
    %cst_52 = arith.constant dense<0.000000e+00> : vector<4x16xf32>
    %61 = tpu.matmul %55, %59, %cst_52 {dimension_numbers = #tpu.dot_dimension_numbers<[1], [0], [0], [1], [0, 0, 1, 1], [], []>} : vector<4x8xf32>, vector<8x16xf32>, vector<4x16xf32> -> vector<4x16xf32>
    %cst_53 = arith.constant dense<0.000000e+00> : vector<4x48xf32>
    %62 = tpu.matmul %52, %39, %cst_53 {dimension_numbers = #tpu.dot_dimension_numbers<[1], [0], [0], [1], [0, 0, 1, 1], [], []>} : vector<4x16xf32>, vector<16x48xf32>, vector<4x48xf32> -> vector<4x48xf32>
    %cst_54 = arith.constant dense<0.000000e+00> : vector<4x48xf32>
    %63 = tpu.matmul %61, %40, %cst_54 {dimension_numbers = #tpu.dot_dimension_numbers<[1], [0], [0], [1], [0, 0, 1, 1], [], []>} : vector<4x16xf32>, vector<16x48xf32>, vector<4x48xf32> -> vector<4x48xf32>
    %64 = arith.addf %62, %63 : vector<4x48xf32>
    %65 = vector.broadcast %42 : vector<1x48xf32> to vector<4x48xf32>
    %66 = arith.addf %64, %65 : vector<4x48xf32>
    %cst_55 = arith.constant dense<0.000000e+00> : vector<4x48xf32>
    %67 = tpu.matmul %60, %41, %cst_55 {dimension_numbers = #tpu.dot_dimension_numbers<[1], [0], [0], [1], [0, 0, 1, 1], [], []>} : vector<4x16xf32>, vector<16x48xf32>, vector<4x48xf32> -> vector<4x48xf32>
    %68 = vector.broadcast %43 : vector<1x48xf32> to vector<4x48xf32>
    %69 = arith.addf %67, %68 : vector<4x48xf32>
    %70 = vector.extract_strided_slice %66 {offsets = [0, 0], sizes = [4, 16], strides = [1, 1]} : vector<4x48xf32> to vector<4x16xf32>
    %71 = vector.extract_strided_slice %69 {offsets = [0, 0], sizes = [4, 16], strides = [1, 1]} : vector<4x48xf32> to vector<4x16xf32>
    %72 = arith.addf %70, %71 : vector<4x16xf32>
    %73 = arith.negf %72 : vector<4x16xf32>
    %74 = math.exp %73 : vector<4x16xf32>
    %cst_56 = arith.constant 1.000000e+00 : f32
    %75 = vector.broadcast %cst_56 : f32 to vector<4x16xf32>
    %76 = arith.addf %75, %74 : vector<4x16xf32>
    %77 = arith.divf %75, %76 : vector<4x16xf32>
    %78 = vector.extract_strided_slice %66 {offsets = [0, 16], sizes = [4, 16], strides = [1, 1]} : vector<4x48xf32> to vector<4x16xf32>
    %79 = vector.extract_strided_slice %69 {offsets = [0, 16], sizes = [4, 16], strides = [1, 1]} : vector<4x48xf32> to vector<4x16xf32>
    %80 = arith.addf %78, %79 : vector<4x16xf32>
    %81 = arith.negf %80 : vector<4x16xf32>
    %82 = math.exp %81 : vector<4x16xf32>
    %cst_57 = arith.constant 1.000000e+00 : f32
    %83 = vector.broadcast %cst_57 : f32 to vector<4x16xf32>
    %84 = arith.addf %83, %82 : vector<4x16xf32>
    %85 = arith.divf %83, %84 : vector<4x16xf32>
    %86 = vector.extract_strided_slice %66 {offsets = [0, 32], sizes = [4, 16], strides = [1, 1]} : vector<4x48xf32> to vector<4x16xf32>
    %87 = vector.extract_strided_slice %69 {offsets = [0, 32], sizes = [4, 16], strides = [1, 1]} : vector<4x48xf32> to vector<4x16xf32>
    %88 = arith.mulf %77, %87 : vector<4x16xf32>
    %89 = arith.addf %86, %88 : vector<4x16xf32>
    %90 = math.tanh %89 : vector<4x16xf32>
    %cst_58 = arith.constant 1.000000e+00 : f32
    %91 = vector.broadcast %cst_58 : f32 to vector<4x16xf32>
    %92 = arith.subf %91, %85 : vector<4x16xf32>
    %93 = arith.mulf %92, %90 : vector<4x16xf32>
    %94 = arith.mulf %85, %60 : vector<4x16xf32>
    %95 = arith.addf %93, %94 : vector<4x16xf32>
    %c0_59 = arith.constant 0 : index
    %c0_60 = arith.constant 0 : index
    %c0_61 = arith.constant 0 : index
    %96 = vector.load %arg15[%c0_59, %c0_60, %c0_61] : memref<8x4x16xf32, #tpu.memory_space<vmem>>, vector<8x4x16xf32>
    %cst_62 = arith.constant dense<0.000000e+00> : vector<4x16xf32>
    %97 = tpu.matmul %52, %49, %cst_62 {dimension_numbers = #tpu.dot_dimension_numbers<[1], [0], [0], [1], [0, 0, 1, 1], [], []>} : vector<4x16xf32>, vector<16x16xf32>, vector<4x16xf32> -> vector<4x16xf32>
    %98 = vector.shape_cast %97 : vector<4x16xf32> to vector<1x4x16xf32>
    %99 = vector.broadcast %98 : vector<1x4x16xf32> to vector<8x4x16xf32>
    %100 = arith.mulf %99, %96 : vector<8x4x16xf32>
    %cst_63 = arith.constant dense<0.000000e+00> : vector<8x4xf32>
    %101 = vector.multi_reduction <add>, %100, %cst_63 [2] : vector<8x4x16xf32> to vector<8x4xf32>
    %102 = tpu.iota {dimensions = array<i32: 0>} : vector<8x4xi32>
    %103 = vector.broadcast %c0_i32 : i32 to vector<8x4xi32>
    %104 = arith.cmpi slt, %102, %103 : vector<8x4xi32>
    %cst_64 = arith.constant -1.000000e+30 : f32
    %105 = vector.broadcast %cst_64 : f32 to vector<8x4xf32>
    %106 = arith.select %104, %101, %105 : vector<8x4xi1>, vector<8x4xf32>
    %cst_65 = arith.constant dense<0xFF800000> : vector<4xf32>
    %107 = vector.multi_reduction <maximumf>, %106, %cst_65 [0] : vector<8x4xf32> to vector<4xf32>
    %108 = vector.shape_cast %107 : vector<4xf32> to vector<1x4xf32>
    %109 = vector.broadcast %108 : vector<1x4xf32> to vector<8x4xf32>
    %110 = arith.subf %106, %109 : vector<8x4xf32>
    %111 = math.exp %110 : vector<8x4xf32>
    %112 = arith.extui %104 : vector<8x4xi1> to vector<8x4xi32>
    %113 = arith.sitofp %112 : vector<8x4xi32> to vector<8x4xf32>
    %114 = arith.mulf %111, %113 : vector<8x4xf32>
    %cst_66 = arith.constant dense<0.000000e+00> : vector<4xf32>
    %115 = vector.multi_reduction <add>, %114, %cst_66 [0] : vector<8x4xf32> to vector<4xf32>
    %116 = vector.shape_cast %115 : vector<4xf32> to vector<1x4xf32>
    %cst_67 = arith.constant 0.000000e+00 : f32
    %117 = vector.broadcast %cst_67 : f32 to vector<1x4xf32>
    %118 = arith.cmpf oeq, %116, %117 : vector<1x4xf32>
    %cst_68 = arith.constant 1.000000e+00 : f32
    %119 = vector.broadcast %cst_68 : f32 to vector<1x4xf32>
    %120 = arith.select %118, %119, %116 : vector<1x4xi1>, vector<1x4xf32>
    %121 = vector.broadcast %120 : vector<1x4xf32> to vector<8x4xf32>
    %122 = arith.divf %114, %121 : vector<8x4xf32>
    %123 = vector.shape_cast %122 : vector<8x4xf32> to vector<8x4x1xf32>
    %124 = vector.broadcast %123 : vector<8x4x1xf32> to vector<8x4x16xf32>
    %125 = arith.mulf %124, %96 : vector<8x4x16xf32>
    %cst_69 = arith.constant dense<0.000000e+00> : vector<4x16xf32>
    %126 = vector.multi_reduction <add>, %125, %cst_69 [0] : vector<8x4x16xf32> to vector<4x16xf32>
    %127 = arith.index_cast %c0_i32 : i32 to index
    %c0_70 = arith.constant 0 : index
    %c0_71 = arith.constant 0 : index
    %128 = vector.load %arg15[%127, %c0_70, %c0_71] : memref<8x4x16xf32, #tpu.memory_space<vmem>>, vector<1x4x16xf32>
    %129 = vector.shape_cast %128 : vector<1x4x16xf32> to vector<4x16xf32>
    %130 = vector.shape_cast %95 : vector<4x16xf32> to vector<1x4x16xf32>
    tpu.vector_store %arg15[%127, %c0_70, %c0_71], %130 {strides = array<i32>} : memref<8x4x16xf32, #tpu.memory_space<vmem>>, vector<1x4x16xf32>,
    %c0_72 = arith.constant 0 : index
    %c0_73 = arith.constant 0 : index
    %131 = vector.load %arg17[%c0_72, %c0_73] : memref<4x16xf32, #tpu.memory_space<vmem>>, vector<4x16xf32>
    tpu.vector_store %arg17[%c0_72, %c0_73], %95 {strides = array<i32>} : memref<4x16xf32, #tpu.memory_space<vmem>>, vector<4x16xf32>,
    %cst_74 = arith.constant dense<0.000000e+00> : vector<4x48xf32>
    %132 = tpu.matmul %52, %44, %cst_74 {dimension_numbers = #tpu.dot_dimension_numbers<[1], [0], [0], [1], [0, 0, 1, 1], [], []>} : vector<4x16xf32>, vector<16x48xf32>, vector<4x48xf32> -> vector<4x48xf32>
    %cst_75 = arith.constant dense<0.000000e+00> : vector<4x48xf32>
    %133 = tpu.matmul %126, %45, %cst_75 {dimension_numbers = #tpu.dot_dimension_numbers<[1], [0], [0], [1], [0, 0, 1, 1], [], []>} : vector<4x16xf32>, vector<16x48xf32>, vector<4x48xf32> -> vector<4x48xf32>
    %134 = arith.addf %132, %133 : vector<4x48xf32>
    %135 = vector.broadcast %47 : vector<1x48xf32> to vector<4x48xf32>
    %136 = arith.addf %134, %135 : vector<4x48xf32>
    %cst_76 = arith.constant dense<0.000000e+00> : vector<8x48xf32>
    %137 = tpu.matmul %38, %136, %cst_76 {dimension_numbers = #tpu.dot_dimension_numbers<[1], [0], [0], [1], [0, 0, 1, 1], [], []>} : vector<8x4xf32>, vector<4x48xf32>, vector<8x48xf32> -> vector<8x48xf32>
    %cst_77 = arith.constant dense<0.000000e+00> : vector<8x48xf32>
    %138 = tpu.matmul %59, %46, %cst_77 {dimension_numbers = #tpu.dot_dimension_numbers<[1], [0], [0], [1], [0, 0, 1, 1], [], []>} : vector<8x16xf32>, vector<16x48xf32>, vector<8x48xf32> -> vector<8x48xf32>
    %139 = vector.broadcast %48 : vector<1x48xf32> to vector<8x48xf32>
    %140 = arith.addf %138, %139 : vector<8x48xf32>
    %141 = vector.extract_strided_slice %137 {offsets = [0, 0], sizes = [8, 16], strides = [1, 1]} : vector<8x48xf32> to vector<8x16xf32>
    %142 = vector.extract_strided_slice %140 {offsets = [0, 0], sizes = [8, 16], strides = [1, 1]} : vector<8x48xf32> to vector<8x16xf32>
    %143 = arith.addf %141, %142 : vector<8x16xf32>
    %144 = arith.negf %143 : vector<8x16xf32>
    %145 = math.exp %144 : vector<8x16xf32>
    %cst_78 = arith.constant 1.000000e+00 : f32
    %146 = vector.broadcast %cst_78 : f32 to vector<8x16xf32>
    %147 = arith.addf %146, %145 : vector<8x16xf32>
    %148 = arith.divf %146, %147 : vector<8x16xf32>
    %149 = vector.extract_strided_slice %137 {offsets = [0, 16], sizes = [8, 16], strides = [1, 1]} : vector<8x48xf32> to vector<8x16xf32>
    %150 = vector.extract_strided_slice %140 {offsets = [0, 16], sizes = [8, 16], strides = [1, 1]} : vector<8x48xf32> to vector<8x16xf32>
    %151 = arith.addf %149, %150 : vector<8x16xf32>
    %152 = arith.negf %151 : vector<8x16xf32>
    %153 = math.exp %152 : vector<8x16xf32>
    %cst_79 = arith.constant 1.000000e+00 : f32
    %154 = vector.broadcast %cst_79 : f32 to vector<8x16xf32>
    %155 = arith.addf %154, %153 : vector<8x16xf32>
    %156 = arith.divf %154, %155 : vector<8x16xf32>
    %157 = vector.extract_strided_slice %137 {offsets = [0, 32], sizes = [8, 16], strides = [1, 1]} : vector<8x48xf32> to vector<8x16xf32>
    %158 = vector.extract_strided_slice %140 {offsets = [0, 32], sizes = [8, 16], strides = [1, 1]} : vector<8x48xf32> to vector<8x16xf32>
    %159 = arith.mulf %148, %158 : vector<8x16xf32>
    %160 = arith.addf %157, %159 : vector<8x16xf32>
    %161 = math.tanh %160 : vector<8x16xf32>
    %cst_80 = arith.constant 1.000000e+00 : f32
    %162 = vector.broadcast %cst_80 : f32 to vector<8x16xf32>
    %163 = arith.subf %162, %156 : vector<8x16xf32>
    %164 = arith.mulf %163, %161 : vector<8x16xf32>
    %165 = arith.mulf %156, %59 : vector<8x16xf32>
    %166 = arith.addf %164, %165 : vector<8x16xf32>
    %cst_81 = arith.constant 1.000000e+00 : f32
    %167 = vector.broadcast %cst_81 : f32 to vector<8x1xf32>
    %168 = arith.subf %167, %58 : vector<8x1xf32>
    %169 = vector.broadcast %168 : vector<8x1xf32> to vector<8x16xf32>
    %170 = arith.mulf %59, %169 : vector<8x16xf32>
    %171 = vector.broadcast %58 : vector<8x1xf32> to vector<8x16xf32>
    %172 = arith.mulf %166, %171 : vector<8x16xf32>
    %173 = arith.addf %170, %172 : vector<8x16xf32>
    %c0_82 = arith.constant 0 : index
    %c0_83 = arith.constant 0 : index
    %174 = vector.load %arg16[%c0_82, %c0_83] : memref<8x16xf32, #tpu.memory_space<vmem>>, vector<8x16xf32>
    tpu.vector_store %arg16[%c0_82, %c0_83], %173 {strides = array<i32>} : memref<8x16xf32, #tpu.memory_space<vmem>>, vector<8x16xf32>,
    %cst_84 = arith.constant dense<0.000000e+00> : vector<4x16xf32>
    %175 = tpu.matmul %55, %173, %cst_84 {dimension_numbers = #tpu.dot_dimension_numbers<[1], [0], [0], [1], [0, 0, 1, 1], [], []>} : vector<4x8xf32>, vector<8x16xf32>, vector<4x16xf32> -> vector<4x16xf32>
    %176 = arith.index_cast %c0_i32 : i32 to index
    %c0_85 = arith.constant 0 : index
    %c0_86 = arith.constant 0 : index
    %177 = vector.load %arg14[%176, %c0_85, %c0_86] : memref<8x4x16xf32, #tpu.memory_space<vmem>>, vector<1x4x16xf32>
    %178 = vector.shape_cast %177 : vector<1x4x16xf32> to vector<4x16xf32>
    %179 = vector.shape_cast %175 : vector<4x16xf32> to vector<1x4x16xf32>
    tpu.vector_store %arg14[%176, %c0_85, %c0_86], %179 {strides = array<i32>} : memref<8x4x16xf32, #tpu.memory_space<vmem>>, vector<1x4x16xf32>,
    %c1_i32 = arith.constant 1 : i32
    %180 = arith.index_cast %c1_i32 : i32 to index
    %c0_87 = arith.constant 0 : index
    %c0_88 = arith.constant 0 : index
    %181 = vector.load %arg0[%180, %c0_87, %c0_88] : memref<8x4x16xf32, #tpu.memory_space<vmem>>, vector<1x4x16xf32>
    %182 = vector.shape_cast %181 : vector<1x4x16xf32> to vector<4x16xf32>
    %183 = arith.index_cast %c1_i32 : i32 to index
    %c0_89 = arith.constant 0 : index
    %c0_90 = arith.constant 0 : index
    %184 = vector.load %arg18[%183, %c0_89, %c0_90] : memref<8x4x8xf32, #tpu.memory_space<vmem>>, vector<1x4x8xf32>
    %185 = vector.shape_cast %184 : vector<1x4x8xf32> to vector<4x8xf32>
    %186 = arith.index_cast %c1_i32 : i32 to index
    %c0_91 = arith.constant 0 : index
    %c0_92 = arith.constant 0 : index
    %187 = vector.load %arg2[%186, %c0_91, %c0_92] : memref<8x8x1xf32, #tpu.memory_space<vmem>>, vector<1x8x1xf32>
    %188 = vector.shape_cast %187 : vector<1x8x1xf32> to vector<8x1xf32>
    %c0_93 = arith.constant 0 : index
    %c0_94 = arith.constant 0 : index
    %189 = vector.load %arg16[%c0_93, %c0_94] : memref<8x16xf32, #tpu.memory_space<vmem>>, vector<8x16xf32>
    %c0_95 = arith.constant 0 : index
    %c0_96 = arith.constant 0 : index
    %190 = vector.load %arg17[%c0_95, %c0_96] : memref<4x16xf32, #tpu.memory_space<vmem>>, vector<4x16xf32>
    %cst_97 = arith.constant dense<0.000000e+00> : vector<4x16xf32>
    %191 = tpu.matmul %185, %189, %cst_97 {dimension_numbers = #tpu.dot_dimension_numbers<[1], [0], [0], [1], [0, 0, 1, 1], [], []>} : vector<4x8xf32>, vector<8x16xf32>, vector<4x16xf32> -> vector<4x16xf32>
    %cst_98 = arith.constant dense<0.000000e+00> : vector<4x48xf32>
    %192 = tpu.matmul %182, %39, %cst_98 {dimension_numbers = #tpu.dot_dimension_numbers<[1], [0], [0], [1], [0, 0, 1, 1], [], []>} : vector<4x16xf32>, vector<16x48xf32>, vector<4x48xf32> -> vector<4x48xf32>
    %cst_99 = arith.constant dense<0.000000e+00> : vector<4x48xf32>
    %193 = tpu.matmul %191, %40, %cst_99 {dimension_numbers = #tpu.dot_dimension_numbers<[1], [0], [0], [1], [0, 0, 1, 1], [], []>} : vector<4x16xf32>, vector<16x48xf32>, vector<4x48xf32> -> vector<4x48xf32>
    %194 = arith.addf %192, %193 : vector<4x48xf32>
    %195 = vector.broadcast %42 : vector<1x48xf32> to vector<4x48xf32>
    %196 = arith.addf %194, %195 : vector<4x48xf32>
    %cst_100 = arith.constant dense<0.000000e+00> : vector<4x48xf32>
    %197 = tpu.matmul %190, %41, %cst_100 {dimension_numbers = #tpu.dot_dimension_numbers<[1], [0], [0], [1], [0, 0, 1, 1], [], []>} : vector<4x16xf32>, vector<16x48xf32>, vector<4x48xf32> -> vector<4x48xf32>
    %198 = vector.broadcast %43 : vector<1x48xf32> to vector<4x48xf32>
    %199 = arith.addf %197, %198 : vector<4x48xf32>
    %200 = vector.extract_strided_slice %196 {offsets = [0, 0], sizes = [4, 16], strides = [1, 1]} : vector<4x48xf32> to vector<4x16xf32>
    %201 = vector.extract_strided_slice %199 {offsets = [0, 0], sizes = [4, 16], strides = [1, 1]} : vector<4x48xf32> to vector<4x16xf32>
    %202 = arith.addf %200, %201 : vector<4x16xf32>
    %203 = arith.negf %202 : vector<4x16xf32>
    %204 = math.exp %203 : vector<4x16xf32>
    %cst_101 = arith.constant 1.000000e+00 : f32
    %205 = vector.broadcast %cst_101 : f32 to vector<4x16xf32>
    %206 = arith.addf %205, %204 : vector<4x16xf32>
    %207 = arith.divf %205, %206 : vector<4x16xf32>
    %208 = vector.extract_strided_slice %196 {offsets = [0, 16], sizes = [4, 16], strides = [1, 1]} : vector<4x48xf32> to vector<4x16xf32>
    %209 = vector.extract_strided_slice %199 {offsets = [0, 16], sizes = [4, 16], strides = [1, 1]} : vector<4x48xf32> to vector<4x16xf32>
    %210 = arith.addf %208, %209 : vector<4x16xf32>
    %211 = arith.negf %210 : vector<4x16xf32>
    %212 = math.exp %211 : vector<4x16xf32>
    %cst_102 = arith.constant 1.000000e+00 : f32
    %213 = vector.broadcast %cst_102 : f32 to vector<4x16xf32>
    %214 = arith.addf %213, %212 : vector<4x16xf32>
    %215 = arith.divf %213, %214 : vector<4x16xf32>
    %216 = vector.extract_strided_slice %196 {offsets = [0, 32], sizes = [4, 16], strides = [1, 1]} : vector<4x48xf32> to vector<4x16xf32>
    %217 = vector.extract_strided_slice %199 {offsets = [0, 32], sizes = [4, 16], strides = [1, 1]} : vector<4x48xf32> to vector<4x16xf32>
    %218 = arith.mulf %207, %217 : vector<4x16xf32>
    %219 = arith.addf %216, %218 : vector<4x16xf32>
    %220 = math.tanh %219 : vector<4x16xf32>
    %cst_103 = arith.constant 1.000000e+00 : f32
    %221 = vector.broadcast %cst_103 : f32 to vector<4x16xf32>
    %222 = arith.subf %221, %215 : vector<4x16xf32>
    %223 = arith.mulf %222, %220 : vector<4x16xf32>
    %224 = arith.mulf %215, %190 : vector<4x16xf32>
    %225 = arith.addf %223, %224 : vector<4x16xf32>
    %c0_104 = arith.constant 0 : index
    %c0_105 = arith.constant 0 : index
    %c0_106 = arith.constant 0 : index
    %226 = vector.load %arg15[%c0_104, %c0_105, %c0_106] : memref<8x4x16xf32, #tpu.memory_space<vmem>>, vector<8x4x16xf32>
    %cst_107 = arith.constant dense<0.000000e+00> : vector<4x16xf32>
    %227 = tpu.matmul %182, %49, %cst_107 {dimension_numbers = #tpu.dot_dimension_numbers<[1], [0], [0], [1], [0, 0, 1, 1], [], []>} : vector<4x16xf32>, vector<16x16xf32>, vector<4x16xf32> -> vector<4x16xf32>
    %228 = vector.shape_cast %227 : vector<4x16xf32> to vector<1x4x16xf32>
    %229 = vector.broadcast %228 : vector<1x4x16xf32> to vector<8x4x16xf32>
    %230 = arith.mulf %229, %226 : vector<8x4x16xf32>
    %cst_108 = arith.constant dense<0.000000e+00> : vector<8x4xf32>
    %231 = vector.multi_reduction <add>, %230, %cst_108 [2] : vector<8x4x16xf32> to vector<8x4xf32>
    %232 = tpu.iota {dimensions = array<i32: 0>} : vector<8x4xi32>
    %233 = vector.broadcast %c1_i32 : i32 to vector<8x4xi32>
    %234 = arith.cmpi slt, %232, %233 : vector<8x4xi32>
    %cst_109 = arith.constant -1.000000e+30 : f32
    %235 = vector.broadcast %cst_109 : f32 to vector<8x4xf32>
    %236 = arith.select %234, %231, %235 : vector<8x4xi1>, vector<8x4xf32>
    %cst_110 = arith.constant dense<0xFF800000> : vector<4xf32>
    %237 = vector.multi_reduction <maximumf>, %236, %cst_110 [0] : vector<8x4xf32> to vector<4xf32>
    %238 = vector.shape_cast %237 : vector<4xf32> to vector<1x4xf32>
    %239 = vector.broadcast %238 : vector<1x4xf32> to vector<8x4xf32>
    %240 = arith.subf %236, %239 : vector<8x4xf32>
    %241 = math.exp %240 : vector<8x4xf32>
    %242 = arith.extui %234 : vector<8x4xi1> to vector<8x4xi32>
    %243 = arith.sitofp %242 : vector<8x4xi32> to vector<8x4xf32>
    %244 = arith.mulf %241, %243 : vector<8x4xf32>
    %cst_111 = arith.constant dense<0.000000e+00> : vector<4xf32>
    %245 = vector.multi_reduction <add>, %244, %cst_111 [0] : vector<8x4xf32> to vector<4xf32>
    %246 = vector.shape_cast %245 : vector<4xf32> to vector<1x4xf32>
    %cst_112 = arith.constant 0.000000e+00 : f32
    %247 = vector.broadcast %cst_112 : f32 to vector<1x4xf32>
    %248 = arith.cmpf oeq, %246, %247 : vector<1x4xf32>
    %cst_113 = arith.constant 1.000000e+00 : f32
    %249 = vector.broadcast %cst_113 : f32 to vector<1x4xf32>
    %250 = arith.select %248, %249, %246 : vector<1x4xi1>, vector<1x4xf32>
    %251 = vector.broadcast %250 : vector<1x4xf32> to vector<8x4xf32>
    %252 = arith.divf %244, %251 : vector<8x4xf32>
    %253 = vector.shape_cast %252 : vector<8x4xf32> to vector<8x4x1xf32>
    %254 = vector.broadcast %253 : vector<8x4x1xf32> to vector<8x4x16xf32>
    %255 = arith.mulf %254, %226 : vector<8x4x16xf32>
    %cst_114 = arith.constant dense<0.000000e+00> : vector<4x16xf32>
    %256 = vector.multi_reduction <add>, %255, %cst_114 [0] : vector<8x4x16xf32> to vector<4x16xf32>
    %257 = arith.index_cast %c1_i32 : i32 to index
    %c0_115 = arith.constant 0 : index
    %c0_116 = arith.constant 0 : index
    %258 = vector.load %arg15[%257, %c0_115, %c0_116] : memref<8x4x16xf32, #tpu.memory_space<vmem>>, vector<1x4x16xf32>
    %259 = vector.shape_cast %258 : vector<1x4x16xf32> to vector<4x16xf32>
    %260 = vector.shape_cast %225 : vector<4x16xf32> to vector<1x4x16xf32>
    tpu.vector_store %arg15[%257, %c0_115, %c0_116], %260 {strides = array<i32>} : memref<8x4x16xf32, #tpu.memory_space<vmem>>, vector<1x4x16xf32>,
    %c0_117 = arith.constant 0 : index
    %c0_118 = arith.constant 0 : index
    %261 = vector.load %arg17[%c0_117, %c0_118] : memref<4x16xf32, #tpu.memory_space<vmem>>, vector<4x16xf32>
    tpu.vector_store %arg17[%c0_117, %c0_118], %225 {strides = array<i32>} : memref<4x16xf32, #tpu.memory_space<vmem>>, vector<4x16xf32>,
    %cst_119 = arith.constant dense<0.000000e+00> : vector<4x48xf32>
    %262 = tpu.matmul %182, %44, %cst_119 {dimension_numbers = #tpu.dot_dimension_numbers<[1], [0], [0], [1], [0, 0, 1, 1], [], []>} : vector<4x16xf32>, vector<16x48xf32>, vector<4x48xf32> -> vector<4x48xf32>
    %cst_120 = arith.constant dense<0.000000e+00> : vector<4x48xf32>
    %263 = tpu.matmul %256, %45, %cst_120 {dimension_numbers = #tpu.dot_dimension_numbers<[1], [0], [0], [1], [0, 0, 1, 1], [], []>} : vector<4x16xf32>, vector<16x48xf32>, vector<4x48xf32> -> vector<4x48xf32>
    %264 = arith.addf %262, %263 : vector<4x48xf32>
    %265 = vector.broadcast %47 : vector<1x48xf32> to vector<4x48xf32>
    %266 = arith.addf %264, %265 : vector<4x48xf32>
    %cst_121 = arith.constant dense<0.000000e+00> : vector<8x48xf32>
    %267 = tpu.matmul %38, %266, %cst_121 {dimension_numbers = #tpu.dot_dimension_numbers<[1], [0], [0], [1], [0, 0, 1, 1], [], []>} : vector<8x4xf32>, vector<4x48xf32>, vector<8x48xf32> -> vector<8x48xf32>
    %cst_122 = arith.constant dense<0.000000e+00> : vector<8x48xf32>
    %268 = tpu.matmul %189, %46, %cst_122 {dimension_numbers = #tpu.dot_dimension_numbers<[1], [0], [0], [1], [0, 0, 1, 1], [], []>} : vector<8x16xf32>, vector<16x48xf32>, vector<8x48xf32> -> vector<8x48xf32>
    %269 = vector.broadcast %48 : vector<1x48xf32> to vector<8x48xf32>
    %270 = arith.addf %268, %269 : vector<8x48xf32>
    %271 = vector.extract_strided_slice %267 {offsets = [0, 0], sizes = [8, 16], strides = [1, 1]} : vector<8x48xf32> to vector<8x16xf32>
    %272 = vector.extract_strided_slice %270 {offsets = [0, 0], sizes = [8, 16], strides = [1, 1]} : vector<8x48xf32> to vector<8x16xf32>
    %273 = arith.addf %271, %272 : vector<8x16xf32>
    %274 = arith.negf %273 : vector<8x16xf32>
    %275 = math.exp %274 : vector<8x16xf32>
    %cst_123 = arith.constant 1.000000e+00 : f32
    %276 = vector.broadcast %cst_123 : f32 to vector<8x16xf32>
    %277 = arith.addf %276, %275 : vector<8x16xf32>
    %278 = arith.divf %276, %277 : vector<8x16xf32>
    %279 = vector.extract_strided_slice %267 {offsets = [0, 16], sizes = [8, 16], strides = [1, 1]} : vector<8x48xf32> to vector<8x16xf32>
    %280 = vector.extract_strided_slice %270 {offsets = [0, 16], sizes = [8, 16], strides = [1, 1]} : vector<8x48xf32> to vector<8x16xf32>
    %281 = arith.addf %279, %280 : vector<8x16xf32>
    %282 = arith.negf %281 : vector<8x16xf32>
    %283 = math.exp %282 : vector<8x16xf32>
    %cst_124 = arith.constant 1.000000e+00 : f32
    %284 = vector.broadcast %cst_124 : f32 to vector<8x16xf32>
    %285 = arith.addf %284, %283 : vector<8x16xf32>
    %286 = arith.divf %284, %285 : vector<8x16xf32>
    %287 = vector.extract_strided_slice %267 {offsets = [0, 32], sizes = [8, 16], strides = [1, 1]} : vector<8x48xf32> to vector<8x16xf32>
    %288 = vector.extract_strided_slice %270 {offsets = [0, 32], sizes = [8, 16], strides = [1, 1]} : vector<8x48xf32> to vector<8x16xf32>
    %289 = arith.mulf %278, %288 : vector<8x16xf32>
    %290 = arith.addf %287, %289 : vector<8x16xf32>
    %291 = math.tanh %290 : vector<8x16xf32>
    %cst_125 = arith.constant 1.000000e+00 : f32
    %292 = vector.broadcast %cst_125 : f32 to vector<8x16xf32>
    %293 = arith.subf %292, %286 : vector<8x16xf32>
    %294 = arith.mulf %293, %291 : vector<8x16xf32>
    %295 = arith.mulf %286, %189 : vector<8x16xf32>
    %296 = arith.addf %294, %295 : vector<8x16xf32>
    %cst_126 = arith.constant 1.000000e+00 : f32
    %297 = vector.broadcast %cst_126 : f32 to vector<8x1xf32>
    %298 = arith.subf %297, %188 : vector<8x1xf32>
    %299 = vector.broadcast %298 : vector<8x1xf32> to vector<8x16xf32>
    %300 = arith.mulf %189, %299 : vector<8x16xf32>
    %301 = vector.broadcast %188 : vector<8x1xf32> to vector<8x16xf32>
    %302 = arith.mulf %296, %301 : vector<8x16xf32>
    %303 = arith.addf %300, %302 : vector<8x16xf32>
    %c0_127 = arith.constant 0 : index
    %c0_128 = arith.constant 0 : index
    %304 = vector.load %arg16[%c0_127, %c0_128] : memref<8x16xf32, #tpu.memory_space<vmem>>, vector<8x16xf32>
    tpu.vector_store %arg16[%c0_127, %c0_128], %303 {strides = array<i32>} : memref<8x16xf32, #tpu.memory_space<vmem>>, vector<8x16xf32>,
    %cst_129 = arith.constant dense<0.000000e+00> : vector<4x16xf32>
    %305 = tpu.matmul %185, %303, %cst_129 {dimension_numbers = #tpu.dot_dimension_numbers<[1], [0], [0], [1], [0, 0, 1, 1], [], []>} : vector<4x8xf32>, vector<8x16xf32>, vector<4x16xf32> -> vector<4x16xf32>
    %306 = arith.index_cast %c1_i32 : i32 to index
    %c0_130 = arith.constant 0 : index
    %c0_131 = arith.constant 0 : index
    %307 = vector.load %arg14[%306, %c0_130, %c0_131] : memref<8x4x16xf32, #tpu.memory_space<vmem>>, vector<1x4x16xf32>
    %308 = vector.shape_cast %307 : vector<1x4x16xf32> to vector<4x16xf32>
    %309 = vector.shape_cast %305 : vector<4x16xf32> to vector<1x4x16xf32>
    tpu.vector_store %arg14[%306, %c0_130, %c0_131], %309 {strides = array<i32>} : memref<8x4x16xf32, #tpu.memory_space<vmem>>, vector<1x4x16xf32>,
    %c2_i32_132 = arith.constant 2 : i32
    %310 = arith.index_cast %c2_i32_132 : i32 to index
    %c0_133 = arith.constant 0 : index
    %c0_134 = arith.constant 0 : index
    %311 = vector.load %arg0[%310, %c0_133, %c0_134] : memref<8x4x16xf32, #tpu.memory_space<vmem>>, vector<1x4x16xf32>
    %312 = vector.shape_cast %311 : vector<1x4x16xf32> to vector<4x16xf32>
    %313 = arith.index_cast %c2_i32_132 : i32 to index
    %c0_135 = arith.constant 0 : index
    %c0_136 = arith.constant 0 : index
    %314 = vector.load %arg18[%313, %c0_135, %c0_136] : memref<8x4x8xf32, #tpu.memory_space<vmem>>, vector<1x4x8xf32>
    %315 = vector.shape_cast %314 : vector<1x4x8xf32> to vector<4x8xf32>
    %316 = arith.index_cast %c2_i32_132 : i32 to index
    %c0_137 = arith.constant 0 : index
    %c0_138 = arith.constant 0 : index
    %317 = vector.load %arg2[%316, %c0_137, %c0_138] : memref<8x8x1xf32, #tpu.memory_space<vmem>>, vector<1x8x1xf32>
    %318 = vector.shape_cast %317 : vector<1x8x1xf32> to vector<8x1xf32>
    %c0_139 = arith.constant 0 : index
    %c0_140 = arith.constant 0 : index
    %319 = vector.load %arg16[%c0_139, %c0_140] : memref<8x16xf32, #tpu.memory_space<vmem>>, vector<8x16xf32>
    %c0_141 = arith.constant 0 : index
    %c0_142 = arith.constant 0 : index
    %320 = vector.load %arg17[%c0_141, %c0_142] : memref<4x16xf32, #tpu.memory_space<vmem>>, vector<4x16xf32>
    %cst_143 = arith.constant dense<0.000000e+00> : vector<4x16xf32>
    %321 = tpu.matmul %315, %319, %cst_143 {dimension_numbers = #tpu.dot_dimension_numbers<[1], [0], [0], [1], [0, 0, 1, 1], [], []>} : vector<4x8xf32>, vector<8x16xf32>, vector<4x16xf32> -> vector<4x16xf32>
    %cst_144 = arith.constant dense<0.000000e+00> : vector<4x48xf32>
    %322 = tpu.matmul %312, %39, %cst_144 {dimension_numbers = #tpu.dot_dimension_numbers<[1], [0], [0], [1], [0, 0, 1, 1], [], []>} : vector<4x16xf32>, vector<16x48xf32>, vector<4x48xf32> -> vector<4x48xf32>
    %cst_145 = arith.constant dense<0.000000e+00> : vector<4x48xf32>
    %323 = tpu.matmul %321, %40, %cst_145 {dimension_numbers = #tpu.dot_dimension_numbers<[1], [0], [0], [1], [0, 0, 1, 1], [], []>} : vector<4x16xf32>, vector<16x48xf32>, vector<4x48xf32> -> vector<4x48xf32>
    %324 = arith.addf %322, %323 : vector<4x48xf32>
    %325 = vector.broadcast %42 : vector<1x48xf32> to vector<4x48xf32>
    %326 = arith.addf %324, %325 : vector<4x48xf32>
    %cst_146 = arith.constant dense<0.000000e+00> : vector<4x48xf32>
    %327 = tpu.matmul %320, %41, %cst_146 {dimension_numbers = #tpu.dot_dimension_numbers<[1], [0], [0], [1], [0, 0, 1, 1], [], []>} : vector<4x16xf32>, vector<16x48xf32>, vector<4x48xf32> -> vector<4x48xf32>
    %328 = vector.broadcast %43 : vector<1x48xf32> to vector<4x48xf32>
    %329 = arith.addf %327, %328 : vector<4x48xf32>
    %330 = vector.extract_strided_slice %326 {offsets = [0, 0], sizes = [4, 16], strides = [1, 1]} : vector<4x48xf32> to vector<4x16xf32>
    %331 = vector.extract_strided_slice %329 {offsets = [0, 0], sizes = [4, 16], strides = [1, 1]} : vector<4x48xf32> to vector<4x16xf32>
    %332 = arith.addf %330, %331 : vector<4x16xf32>
    %333 = arith.negf %332 : vector<4x16xf32>
    %334 = math.exp %333 : vector<4x16xf32>
    %cst_147 = arith.constant 1.000000e+00 : f32
    %335 = vector.broadcast %cst_147 : f32 to vector<4x16xf32>
    %336 = arith.addf %335, %334 : vector<4x16xf32>
    %337 = arith.divf %335, %336 : vector<4x16xf32>
    %338 = vector.extract_strided_slice %326 {offsets = [0, 16], sizes = [4, 16], strides = [1, 1]} : vector<4x48xf32> to vector<4x16xf32>
    %339 = vector.extract_strided_slice %329 {offsets = [0, 16], sizes = [4, 16], strides = [1, 1]} : vector<4x48xf32> to vector<4x16xf32>
    %340 = arith.addf %338, %339 : vector<4x16xf32>
    %341 = arith.negf %340 : vector<4x16xf32>
    %342 = math.exp %341 : vector<4x16xf32>
    %cst_148 = arith.constant 1.000000e+00 : f32
    %343 = vector.broadcast %cst_148 : f32 to vector<4x16xf32>
    %344 = arith.addf %343, %342 : vector<4x16xf32>
    %345 = arith.divf %343, %344 : vector<4x16xf32>
    %346 = vector.extract_strided_slice %326 {offsets = [0, 32], sizes = [4, 16], strides = [1, 1]} : vector<4x48xf32> to vector<4x16xf32>
    %347 = vector.extract_strided_slice %329 {offsets = [0, 32], sizes = [4, 16], strides = [1, 1]} : vector<4x48xf32> to vector<4x16xf32>
    %348 = arith.mulf %337, %347 : vector<4x16xf32>
    %349 = arith.addf %346, %348 : vector<4x16xf32>
    %350 = math.tanh %349 : vector<4x16xf32>
    %cst_149 = arith.constant 1.000000e+00 : f32
    %351 = vector.broadcast %cst_149 : f32 to vector<4x16xf32>
    %352 = arith.subf %351, %345 : vector<4x16xf32>
    %353 = arith.mulf %352, %350 : vector<4x16xf32>
    %354 = arith.mulf %345, %320 : vector<4x16xf32>
    %355 = arith.addf %353, %354 : vector<4x16xf32>
    %c0_150 = arith.constant 0 : index
    %c0_151 = arith.constant 0 : index
    %c0_152 = arith.constant 0 : index
    %356 = vector.load %arg15[%c0_150, %c0_151, %c0_152] : memref<8x4x16xf32, #tpu.memory_space<vmem>>, vector<8x4x16xf32>
    %cst_153 = arith.constant dense<0.000000e+00> : vector<4x16xf32>
    %357 = tpu.matmul %312, %49, %cst_153 {dimension_numbers = #tpu.dot_dimension_numbers<[1], [0], [0], [1], [0, 0, 1, 1], [], []>} : vector<4x16xf32>, vector<16x16xf32>, vector<4x16xf32> -> vector<4x16xf32>
    %358 = vector.shape_cast %357 : vector<4x16xf32> to vector<1x4x16xf32>
    %359 = vector.broadcast %358 : vector<1x4x16xf32> to vector<8x4x16xf32>
    %360 = arith.mulf %359, %356 : vector<8x4x16xf32>
    %cst_154 = arith.constant dense<0.000000e+00> : vector<8x4xf32>
    %361 = vector.multi_reduction <add>, %360, %cst_154 [2] : vector<8x4x16xf32> to vector<8x4xf32>
    %362 = tpu.iota {dimensions = array<i32: 0>} : vector<8x4xi32>
    %363 = vector.broadcast %c2_i32_132 : i32 to vector<8x4xi32>
    %364 = arith.cmpi slt, %362, %363 : vector<8x4xi32>
    %cst_155 = arith.constant -1.000000e+30 : f32
    %365 = vector.broadcast %cst_155 : f32 to vector<8x4xf32>
    %366 = arith.select %364, %361, %365 : vector<8x4xi1>, vector<8x4xf32>
    %cst_156 = arith.constant dense<0xFF800000> : vector<4xf32>
    %367 = vector.multi_reduction <maximumf>, %366, %cst_156 [0] : vector<8x4xf32> to vector<4xf32>
    %368 = vector.shape_cast %367 : vector<4xf32> to vector<1x4xf32>
    %369 = vector.broadcast %368 : vector<1x4xf32> to vector<8x4xf32>
    %370 = arith.subf %366, %369 : vector<8x4xf32>
    %371 = math.exp %370 : vector<8x4xf32>
    %372 = arith.extui %364 : vector<8x4xi1> to vector<8x4xi32>
    %373 = arith.sitofp %372 : vector<8x4xi32> to vector<8x4xf32>
    %374 = arith.mulf %371, %373 : vector<8x4xf32>
    %cst_157 = arith.constant dense<0.000000e+00> : vector<4xf32>
    %375 = vector.multi_reduction <add>, %374, %cst_157 [0] : vector<8x4xf32> to vector<4xf32>
    %376 = vector.shape_cast %375 : vector<4xf32> to vector<1x4xf32>
    %cst_158 = arith.constant 0.000000e+00 : f32
    %377 = vector.broadcast %cst_158 : f32 to vector<1x4xf32>
    %378 = arith.cmpf oeq, %376, %377 : vector<1x4xf32>
    %cst_159 = arith.constant 1.000000e+00 : f32
    %379 = vector.broadcast %cst_159 : f32 to vector<1x4xf32>
    %380 = arith.select %378, %379, %376 : vector<1x4xi1>, vector<1x4xf32>
    %381 = vector.broadcast %380 : vector<1x4xf32> to vector<8x4xf32>
    %382 = arith.divf %374, %381 : vector<8x4xf32>
    %383 = vector.shape_cast %382 : vector<8x4xf32> to vector<8x4x1xf32>
    %384 = vector.broadcast %383 : vector<8x4x1xf32> to vector<8x4x16xf32>
    %385 = arith.mulf %384, %356 : vector<8x4x16xf32>
    %cst_160 = arith.constant dense<0.000000e+00> : vector<4x16xf32>
    %386 = vector.multi_reduction <add>, %385, %cst_160 [0] : vector<8x4x16xf32> to vector<4x16xf32>
    %387 = arith.index_cast %c2_i32_132 : i32 to index
    %c0_161 = arith.constant 0 : index
    %c0_162 = arith.constant 0 : index
    %388 = vector.load %arg15[%387, %c0_161, %c0_162] : memref<8x4x16xf32, #tpu.memory_space<vmem>>, vector<1x4x16xf32>
    %389 = vector.shape_cast %388 : vector<1x4x16xf32> to vector<4x16xf32>
    %390 = vector.shape_cast %355 : vector<4x16xf32> to vector<1x4x16xf32>
    tpu.vector_store %arg15[%387, %c0_161, %c0_162], %390 {strides = array<i32>} : memref<8x4x16xf32, #tpu.memory_space<vmem>>, vector<1x4x16xf32>,
    %c0_163 = arith.constant 0 : index
    %c0_164 = arith.constant 0 : index
    %391 = vector.load %arg17[%c0_163, %c0_164] : memref<4x16xf32, #tpu.memory_space<vmem>>, vector<4x16xf32>
    tpu.vector_store %arg17[%c0_163, %c0_164], %355 {strides = array<i32>} : memref<4x16xf32, #tpu.memory_space<vmem>>, vector<4x16xf32>,
    %cst_165 = arith.constant dense<0.000000e+00> : vector<4x48xf32>
    %392 = tpu.matmul %312, %44, %cst_165 {dimension_numbers = #tpu.dot_dimension_numbers<[1], [0], [0], [1], [0, 0, 1, 1], [], []>} : vector<4x16xf32>, vector<16x48xf32>, vector<4x48xf32> -> vector<4x48xf32>
    %cst_166 = arith.constant dense<0.000000e+00> : vector<4x48xf32>
    %393 = tpu.matmul %386, %45, %cst_166 {dimension_numbers = #tpu.dot_dimension_numbers<[1], [0], [0], [1], [0, 0, 1, 1], [], []>} : vector<4x16xf32>, vector<16x48xf32>, vector<4x48xf32> -> vector<4x48xf32>
    %394 = arith.addf %392, %393 : vector<4x48xf32>
    %395 = vector.broadcast %47 : vector<1x48xf32> to vector<4x48xf32>
    %396 = arith.addf %394, %395 : vector<4x48xf32>
    %cst_167 = arith.constant dense<0.000000e+00> : vector<8x48xf32>
    %397 = tpu.matmul %38, %396, %cst_167 {dimension_numbers = #tpu.dot_dimension_numbers<[1], [0], [0], [1], [0, 0, 1, 1], [], []>} : vector<8x4xf32>, vector<4x48xf32>, vector<8x48xf32> -> vector<8x48xf32>
    %cst_168 = arith.constant dense<0.000000e+00> : vector<8x48xf32>
    %398 = tpu.matmul %319, %46, %cst_168 {dimension_numbers = #tpu.dot_dimension_numbers<[1], [0], [0], [1], [0, 0, 1, 1], [], []>} : vector<8x16xf32>, vector<16x48xf32>, vector<8x48xf32> -> vector<8x48xf32>
    %399 = vector.broadcast %48 : vector<1x48xf32> to vector<8x48xf32>
    %400 = arith.addf %398, %399 : vector<8x48xf32>
    %401 = vector.extract_strided_slice %397 {offsets = [0, 0], sizes = [8, 16], strides = [1, 1]} : vector<8x48xf32> to vector<8x16xf32>
    %402 = vector.extract_strided_slice %400 {offsets = [0, 0], sizes = [8, 16], strides = [1, 1]} : vector<8x48xf32> to vector<8x16xf32>
    %403 = arith.addf %401, %402 : vector<8x16xf32>
    %404 = arith.negf %403 : vector<8x16xf32>
    %405 = math.exp %404 : vector<8x16xf32>
    %cst_169 = arith.constant 1.000000e+00 : f32
    %406 = vector.broadcast %cst_169 : f32 to vector<8x16xf32>
    %407 = arith.addf %406, %405 : vector<8x16xf32>
    %408 = arith.divf %406, %407 : vector<8x16xf32>
    %409 = vector.extract_strided_slice %397 {offsets = [0, 16], sizes = [8, 16], strides = [1, 1]} : vector<8x48xf32> to vector<8x16xf32>
    %410 = vector.extract_strided_slice %400 {offsets = [0, 16], sizes = [8, 16], strides = [1, 1]} : vector<8x48xf32> to vector<8x16xf32>
    %411 = arith.addf %409, %410 : vector<8x16xf32>
    %412 = arith.negf %411 : vector<8x16xf32>
    %413 = math.exp %412 : vector<8x16xf32>
    %cst_170 = arith.constant 1.000000e+00 : f32
    %414 = vector.broadcast %cst_170 : f32 to vector<8x16xf32>
    %415 = arith.addf %414, %413 : vector<8x16xf32>
    %416 = arith.divf %414, %415 : vector<8x16xf32>
    %417 = vector.extract_strided_slice %397 {offsets = [0, 32], sizes = [8, 16], strides = [1, 1]} : vector<8x48xf32> to vector<8x16xf32>
    %418 = vector.extract_strided_slice %400 {offsets = [0, 32], sizes = [8, 16], strides = [1, 1]} : vector<8x48xf32> to vector<8x16xf32>
    %419 = arith.mulf %408, %418 : vector<8x16xf32>
    %420 = arith.addf %417, %419 : vector<8x16xf32>
    %421 = math.tanh %420 : vector<8x16xf32>
    %cst_171 = arith.constant 1.000000e+00 : f32
    %422 = vector.broadcast %cst_171 : f32 to vector<8x16xf32>
    %423 = arith.subf %422, %416 : vector<8x16xf32>
    %424 = arith.mulf %423, %421 : vector<8x16xf32>
    %425 = arith.mulf %416, %319 : vector<8x16xf32>
    %426 = arith.addf %424, %425 : vector<8x16xf32>
    %cst_172 = arith.constant 1.000000e+00 : f32
    %427 = vector.broadcast %cst_172 : f32 to vector<8x1xf32>
    %428 = arith.subf %427, %318 : vector<8x1xf32>
    %429 = vector.broadcast %428 : vector<8x1xf32> to vector<8x16xf32>
    %430 = arith.mulf %319, %429 : vector<8x16xf32>
    %431 = vector.broadcast %318 : vector<8x1xf32> to vector<8x16xf32>
    %432 = arith.mulf %426, %431 : vector<8x16xf32>
    %433 = arith.addf %430, %432 : vector<8x16xf32>
    %c0_173 = arith.constant 0 : index
    %c0_174 = arith.constant 0 : index
    %434 = vector.load %arg16[%c0_173, %c0_174] : memref<8x16xf32, #tpu.memory_space<vmem>>, vector<8x16xf32>
    tpu.vector_store %arg16[%c0_173, %c0_174], %433 {strides = array<i32>} : memref<8x16xf32, #tpu.memory_space<vmem>>, vector<8x16xf32>,
    %cst_175 = arith.constant dense<0.000000e+00> : vector<4x16xf32>
    %435 = tpu.matmul %315, %433, %cst_175 {dimension_numbers = #tpu.dot_dimension_numbers<[1], [0], [0], [1], [0, 0, 1, 1], [], []>} : vector<4x8xf32>, vector<8x16xf32>, vector<4x16xf32> -> vector<4x16xf32>
    %436 = arith.index_cast %c2_i32_132 : i32 to index
    %c0_176 = arith.constant 0 : index
    %c0_177 = arith.constant 0 : index
    %437 = vector.load %arg14[%436, %c0_176, %c0_177] : memref<8x4x16xf32, #tpu.memory_space<vmem>>, vector<1x4x16xf32>
    %438 = vector.shape_cast %437 : vector<1x4x16xf32> to vector<4x16xf32>
    %439 = vector.shape_cast %435 : vector<4x16xf32> to vector<1x4x16xf32>
    tpu.vector_store %arg14[%436, %c0_176, %c0_177], %439 {strides = array<i32>} : memref<8x4x16xf32, #tpu.memory_space<vmem>>, vector<1x4x16xf32>,
    %c3_i32 = arith.constant 3 : i32
    %440 = arith.index_cast %c3_i32 : i32 to index
    %c0_178 = arith.constant 0 : index
    %c0_179 = arith.constant 0 : index
    %441 = vector.load %arg0[%440, %c0_178, %c0_179] : memref<8x4x16xf32, #tpu.memory_space<vmem>>, vector<1x4x16xf32>
    %442 = vector.shape_cast %441 : vector<1x4x16xf32> to vector<4x16xf32>
    %443 = arith.index_cast %c3_i32 : i32 to index
    %c0_180 = arith.constant 0 : index
    %c0_181 = arith.constant 0 : index
    %444 = vector.load %arg18[%443, %c0_180, %c0_181] : memref<8x4x8xf32, #tpu.memory_space<vmem>>, vector<1x4x8xf32>
    %445 = vector.shape_cast %444 : vector<1x4x8xf32> to vector<4x8xf32>
    %446 = arith.index_cast %c3_i32 : i32 to index
    %c0_182 = arith.constant 0 : index
    %c0_183 = arith.constant 0 : index
    %447 = vector.load %arg2[%446, %c0_182, %c0_183] : memref<8x8x1xf32, #tpu.memory_space<vmem>>, vector<1x8x1xf32>
    %448 = vector.shape_cast %447 : vector<1x8x1xf32> to vector<8x1xf32>
    %c0_184 = arith.constant 0 : index
    %c0_185 = arith.constant 0 : index
    %449 = vector.load %arg16[%c0_184, %c0_185] : memref<8x16xf32, #tpu.memory_space<vmem>>, vector<8x16xf32>
    %c0_186 = arith.constant 0 : index
    %c0_187 = arith.constant 0 : index
    %450 = vector.load %arg17[%c0_186, %c0_187] : memref<4x16xf32, #tpu.memory_space<vmem>>, vector<4x16xf32>
    %cst_188 = arith.constant dense<0.000000e+00> : vector<4x16xf32>
    %451 = tpu.matmul %445, %449, %cst_188 {dimension_numbers = #tpu.dot_dimension_numbers<[1], [0], [0], [1], [0, 0, 1, 1], [], []>} : vector<4x8xf32>, vector<8x16xf32>, vector<4x16xf32> -> vector<4x16xf32>
    %cst_189 = arith.constant dense<0.000000e+00> : vector<4x48xf32>
    %452 = tpu.matmul %442, %39, %cst_189 {dimension_numbers = #tpu.dot_dimension_numbers<[1], [0], [0], [1], [0, 0, 1, 1], [], []>} : vector<4x16xf32>, vector<16x48xf32>, vector<4x48xf32> -> vector<4x48xf32>
    %cst_190 = arith.constant dense<0.000000e+00> : vector<4x48xf32>
    %453 = tpu.matmul %451, %40, %cst_190 {dimension_numbers = #tpu.dot_dimension_numbers<[1], [0], [0], [1], [0, 0, 1, 1], [], []>} : vector<4x16xf32>, vector<16x48xf32>, vector<4x48xf32> -> vector<4x48xf32>
    %454 = arith.addf %452, %453 : vector<4x48xf32>
    %455 = vector.broadcast %42 : vector<1x48xf32> to vector<4x48xf32>
    %456 = arith.addf %454, %455 : vector<4x48xf32>
    %cst_191 = arith.constant dense<0.000000e+00> : vector<4x48xf32>
    %457 = tpu.matmul %450, %41, %cst_191 {dimension_numbers = #tpu.dot_dimension_numbers<[1], [0], [0], [1], [0, 0, 1, 1], [], []>} : vector<4x16xf32>, vector<16x48xf32>, vector<4x48xf32> -> vector<4x48xf32>
    %458 = vector.broadcast %43 : vector<1x48xf32> to vector<4x48xf32>
    %459 = arith.addf %457, %458 : vector<4x48xf32>
    %460 = vector.extract_strided_slice %456 {offsets = [0, 0], sizes = [4, 16], strides = [1, 1]} : vector<4x48xf32> to vector<4x16xf32>
    %461 = vector.extract_strided_slice %459 {offsets = [0, 0], sizes = [4, 16], strides = [1, 1]} : vector<4x48xf32> to vector<4x16xf32>
    %462 = arith.addf %460, %461 : vector<4x16xf32>
    %463 = arith.negf %462 : vector<4x16xf32>
    %464 = math.exp %463 : vector<4x16xf32>
    %cst_192 = arith.constant 1.000000e+00 : f32
    %465 = vector.broadcast %cst_192 : f32 to vector<4x16xf32>
    %466 = arith.addf %465, %464 : vector<4x16xf32>
    %467 = arith.divf %465, %466 : vector<4x16xf32>
    %468 = vector.extract_strided_slice %456 {offsets = [0, 16], sizes = [4, 16], strides = [1, 1]} : vector<4x48xf32> to vector<4x16xf32>
    %469 = vector.extract_strided_slice %459 {offsets = [0, 16], sizes = [4, 16], strides = [1, 1]} : vector<4x48xf32> to vector<4x16xf32>
    %470 = arith.addf %468, %469 : vector<4x16xf32>
    %471 = arith.negf %470 : vector<4x16xf32>
    %472 = math.exp %471 : vector<4x16xf32>
    %cst_193 = arith.constant 1.000000e+00 : f32
    %473 = vector.broadcast %cst_193 : f32 to vector<4x16xf32>
    %474 = arith.addf %473, %472 : vector<4x16xf32>
    %475 = arith.divf %473, %474 : vector<4x16xf32>
    %476 = vector.extract_strided_slice %456 {offsets = [0, 32], sizes = [4, 16], strides = [1, 1]} : vector<4x48xf32> to vector<4x16xf32>
    %477 = vector.extract_strided_slice %459 {offsets = [0, 32], sizes = [4, 16], strides = [1, 1]} : vector<4x48xf32> to vector<4x16xf32>
    %478 = arith.mulf %467, %477 : vector<4x16xf32>
    %479 = arith.addf %476, %478 : vector<4x16xf32>
    %480 = math.tanh %479 : vector<4x16xf32>
    %cst_194 = arith.constant 1.000000e+00 : f32
    %481 = vector.broadcast %cst_194 : f32 to vector<4x16xf32>
    %482 = arith.subf %481, %475 : vector<4x16xf32>
    %483 = arith.mulf %482, %480 : vector<4x16xf32>
    %484 = arith.mulf %475, %450 : vector<4x16xf32>
    %485 = arith.addf %483, %484 : vector<4x16xf32>
    %c0_195 = arith.constant 0 : index
    %c0_196 = arith.constant 0 : index
    %c0_197 = arith.constant 0 : index
    %486 = vector.load %arg15[%c0_195, %c0_196, %c0_197] : memref<8x4x16xf32, #tpu.memory_space<vmem>>, vector<8x4x16xf32>
    %cst_198 = arith.constant dense<0.000000e+00> : vector<4x16xf32>
    %487 = tpu.matmul %442, %49, %cst_198 {dimension_numbers = #tpu.dot_dimension_numbers<[1], [0], [0], [1], [0, 0, 1, 1], [], []>} : vector<4x16xf32>, vector<16x16xf32>, vector<4x16xf32> -> vector<4x16xf32>
    %488 = vector.shape_cast %487 : vector<4x16xf32> to vector<1x4x16xf32>
    %489 = vector.broadcast %488 : vector<1x4x16xf32> to vector<8x4x16xf32>
    %490 = arith.mulf %489, %486 : vector<8x4x16xf32>
    %cst_199 = arith.constant dense<0.000000e+00> : vector<8x4xf32>
    %491 = vector.multi_reduction <add>, %490, %cst_199 [2] : vector<8x4x16xf32> to vector<8x4xf32>
    %492 = tpu.iota {dimensions = array<i32: 0>} : vector<8x4xi32>
    %493 = vector.broadcast %c3_i32 : i32 to vector<8x4xi32>
    %494 = arith.cmpi slt, %492, %493 : vector<8x4xi32>
    %cst_200 = arith.constant -1.000000e+30 : f32
    %495 = vector.broadcast %cst_200 : f32 to vector<8x4xf32>
    %496 = arith.select %494, %491, %495 : vector<8x4xi1>, vector<8x4xf32>
    %cst_201 = arith.constant dense<0xFF800000> : vector<4xf32>
    %497 = vector.multi_reduction <maximumf>, %496, %cst_201 [0] : vector<8x4xf32> to vector<4xf32>
    %498 = vector.shape_cast %497 : vector<4xf32> to vector<1x4xf32>
    %499 = vector.broadcast %498 : vector<1x4xf32> to vector<8x4xf32>
    %500 = arith.subf %496, %499 : vector<8x4xf32>
    %501 = math.exp %500 : vector<8x4xf32>
    %502 = arith.extui %494 : vector<8x4xi1> to vector<8x4xi32>
    %503 = arith.sitofp %502 : vector<8x4xi32> to vector<8x4xf32>
    %504 = arith.mulf %501, %503 : vector<8x4xf32>
    %cst_202 = arith.constant dense<0.000000e+00> : vector<4xf32>
    %505 = vector.multi_reduction <add>, %504, %cst_202 [0] : vector<8x4xf32> to vector<4xf32>
    %506 = vector.shape_cast %505 : vector<4xf32> to vector<1x4xf32>
    %cst_203 = arith.constant 0.000000e+00 : f32
    %507 = vector.broadcast %cst_203 : f32 to vector<1x4xf32>
    %508 = arith.cmpf oeq, %506, %507 : vector<1x4xf32>
    %cst_204 = arith.constant 1.000000e+00 : f32
    %509 = vector.broadcast %cst_204 : f32 to vector<1x4xf32>
    %510 = arith.select %508, %509, %506 : vector<1x4xi1>, vector<1x4xf32>
    %511 = vector.broadcast %510 : vector<1x4xf32> to vector<8x4xf32>
    %512 = arith.divf %504, %511 : vector<8x4xf32>
    %513 = vector.shape_cast %512 : vector<8x4xf32> to vector<8x4x1xf32>
    %514 = vector.broadcast %513 : vector<8x4x1xf32> to vector<8x4x16xf32>
    %515 = arith.mulf %514, %486 : vector<8x4x16xf32>
    %cst_205 = arith.constant dense<0.000000e+00> : vector<4x16xf32>
    %516 = vector.multi_reduction <add>, %515, %cst_205 [0] : vector<8x4x16xf32> to vector<4x16xf32>
    %517 = arith.index_cast %c3_i32 : i32 to index
    %c0_206 = arith.constant 0 : index
    %c0_207 = arith.constant 0 : index
    %518 = vector.load %arg15[%517, %c0_206, %c0_207] : memref<8x4x16xf32, #tpu.memory_space<vmem>>, vector<1x4x16xf32>
    %519 = vector.shape_cast %518 : vector<1x4x16xf32> to vector<4x16xf32>
    %520 = vector.shape_cast %485 : vector<4x16xf32> to vector<1x4x16xf32>
    tpu.vector_store %arg15[%517, %c0_206, %c0_207], %520 {strides = array<i32>} : memref<8x4x16xf32, #tpu.memory_space<vmem>>, vector<1x4x16xf32>,
    %c0_208 = arith.constant 0 : index
    %c0_209 = arith.constant 0 : index
    %521 = vector.load %arg17[%c0_208, %c0_209] : memref<4x16xf32, #tpu.memory_space<vmem>>, vector<4x16xf32>
    tpu.vector_store %arg17[%c0_208, %c0_209], %485 {strides = array<i32>} : memref<4x16xf32, #tpu.memory_space<vmem>>, vector<4x16xf32>,
    %cst_210 = arith.constant dense<0.000000e+00> : vector<4x48xf32>
    %522 = tpu.matmul %442, %44, %cst_210 {dimension_numbers = #tpu.dot_dimension_numbers<[1], [0], [0], [1], [0, 0, 1, 1], [], []>} : vector<4x16xf32>, vector<16x48xf32>, vector<4x48xf32> -> vector<4x48xf32>
    %cst_211 = arith.constant dense<0.000000e+00> : vector<4x48xf32>
    %523 = tpu.matmul %516, %45, %cst_211 {dimension_numbers = #tpu.dot_dimension_numbers<[1], [0], [0], [1], [0, 0, 1, 1], [], []>} : vector<4x16xf32>, vector<16x48xf32>, vector<4x48xf32> -> vector<4x48xf32>
    %524 = arith.addf %522, %523 : vector<4x48xf32>
    %525 = vector.broadcast %47 : vector<1x48xf32> to vector<4x48xf32>
    %526 = arith.addf %524, %525 : vector<4x48xf32>
    %cst_212 = arith.constant dense<0.000000e+00> : vector<8x48xf32>
    %527 = tpu.matmul %38, %526, %cst_212 {dimension_numbers = #tpu.dot_dimension_numbers<[1], [0], [0], [1], [0, 0, 1, 1], [], []>} : vector<8x4xf32>, vector<4x48xf32>, vector<8x48xf32> -> vector<8x48xf32>
    %cst_213 = arith.constant dense<0.000000e+00> : vector<8x48xf32>
    %528 = tpu.matmul %449, %46, %cst_213 {dimension_numbers = #tpu.dot_dimension_numbers<[1], [0], [0], [1], [0, 0, 1, 1], [], []>} : vector<8x16xf32>, vector<16x48xf32>, vector<8x48xf32> -> vector<8x48xf32>
    %529 = vector.broadcast %48 : vector<1x48xf32> to vector<8x48xf32>
    %530 = arith.addf %528, %529 : vector<8x48xf32>
    %531 = vector.extract_strided_slice %527 {offsets = [0, 0], sizes = [8, 16], strides = [1, 1]} : vector<8x48xf32> to vector<8x16xf32>
    %532 = vector.extract_strided_slice %530 {offsets = [0, 0], sizes = [8, 16], strides = [1, 1]} : vector<8x48xf32> to vector<8x16xf32>
    %533 = arith.addf %531, %532 : vector<8x16xf32>
    %534 = arith.negf %533 : vector<8x16xf32>
    %535 = math.exp %534 : vector<8x16xf32>
    %cst_214 = arith.constant 1.000000e+00 : f32
    %536 = vector.broadcast %cst_214 : f32 to vector<8x16xf32>
    %537 = arith.addf %536, %535 : vector<8x16xf32>
    %538 = arith.divf %536, %537 : vector<8x16xf32>
    %539 = vector.extract_strided_slice %527 {offsets = [0, 16], sizes = [8, 16], strides = [1, 1]} : vector<8x48xf32> to vector<8x16xf32>
    %540 = vector.extract_strided_slice %530 {offsets = [0, 16], sizes = [8, 16], strides = [1, 1]} : vector<8x48xf32> to vector<8x16xf32>
    %541 = arith.addf %539, %540 : vector<8x16xf32>
    %542 = arith.negf %541 : vector<8x16xf32>
    %543 = math.exp %542 : vector<8x16xf32>
    %cst_215 = arith.constant 1.000000e+00 : f32
    %544 = vector.broadcast %cst_215 : f32 to vector<8x16xf32>
    %545 = arith.addf %544, %543 : vector<8x16xf32>
    %546 = arith.divf %544, %545 : vector<8x16xf32>
    %547 = vector.extract_strided_slice %527 {offsets = [0, 32], sizes = [8, 16], strides = [1, 1]} : vector<8x48xf32> to vector<8x16xf32>
    %548 = vector.extract_strided_slice %530 {offsets = [0, 32], sizes = [8, 16], strides = [1, 1]} : vector<8x48xf32> to vector<8x16xf32>
    %549 = arith.mulf %538, %548 : vector<8x16xf32>
    %550 = arith.addf %547, %549 : vector<8x16xf32>
    %551 = math.tanh %550 : vector<8x16xf32>
    %cst_216 = arith.constant 1.000000e+00 : f32
    %552 = vector.broadcast %cst_216 : f32 to vector<8x16xf32>
    %553 = arith.subf %552, %546 : vector<8x16xf32>
    %554 = arith.mulf %553, %551 : vector<8x16xf32>
    %555 = arith.mulf %546, %449 : vector<8x16xf32>
    %556 = arith.addf %554, %555 : vector<8x16xf32>
    %cst_217 = arith.constant 1.000000e+00 : f32
    %557 = vector.broadcast %cst_217 : f32 to vector<8x1xf32>
    %558 = arith.subf %557, %448 : vector<8x1xf32>
    %559 = vector.broadcast %558 : vector<8x1xf32> to vector<8x16xf32>
    %560 = arith.mulf %449, %559 : vector<8x16xf32>
    %561 = vector.broadcast %448 : vector<8x1xf32> to vector<8x16xf32>
    %562 = arith.mulf %556, %561 : vector<8x16xf32>
    %563 = arith.addf %560, %562 : vector<8x16xf32>
    %c0_218 = arith.constant 0 : index
    %c0_219 = arith.constant 0 : index
    %564 = vector.load %arg16[%c0_218, %c0_219] : memref<8x16xf32, #tpu.memory_space<vmem>>, vector<8x16xf32>
    tpu.vector_store %arg16[%c0_218, %c0_219], %563 {strides = array<i32>} : memref<8x16xf32, #tpu.memory_space<vmem>>, vector<8x16xf32>,
    %cst_220 = arith.constant dense<0.000000e+00> : vector<4x16xf32>
    %565 = tpu.matmul %445, %563, %cst_220 {dimension_numbers = #tpu.dot_dimension_numbers<[1], [0], [0], [1], [0, 0, 1, 1], [], []>} : vector<4x8xf32>, vector<8x16xf32>, vector<4x16xf32> -> vector<4x16xf32>
    %566 = arith.index_cast %c3_i32 : i32 to index
    %c0_221 = arith.constant 0 : index
    %c0_222 = arith.constant 0 : index
    %567 = vector.load %arg14[%566, %c0_221, %c0_222] : memref<8x4x16xf32, #tpu.memory_space<vmem>>, vector<1x4x16xf32>
    %568 = vector.shape_cast %567 : vector<1x4x16xf32> to vector<4x16xf32>
    %569 = vector.shape_cast %565 : vector<4x16xf32> to vector<1x4x16xf32>
    tpu.vector_store %arg14[%566, %c0_221, %c0_222], %569 {strides = array<i32>} : memref<8x4x16xf32, #tpu.memory_space<vmem>>, vector<1x4x16xf32>,
    %c4_i32 = arith.constant 4 : i32
    %570 = arith.index_cast %c4_i32 : i32 to index
    %c0_223 = arith.constant 0 : index
    %c0_224 = arith.constant 0 : index
    %571 = vector.load %arg0[%570, %c0_223, %c0_224] : memref<8x4x16xf32, #tpu.memory_space<vmem>>, vector<1x4x16xf32>
    %572 = vector.shape_cast %571 : vector<1x4x16xf32> to vector<4x16xf32>
    %573 = arith.index_cast %c4_i32 : i32 to index
    %c0_225 = arith.constant 0 : index
    %c0_226 = arith.constant 0 : index
    %574 = vector.load %arg18[%573, %c0_225, %c0_226] : memref<8x4x8xf32, #tpu.memory_space<vmem>>, vector<1x4x8xf32>
    %575 = vector.shape_cast %574 : vector<1x4x8xf32> to vector<4x8xf32>
    %576 = arith.index_cast %c4_i32 : i32 to index
    %c0_227 = arith.constant 0 : index
    %c0_228 = arith.constant 0 : index
    %577 = vector.load %arg2[%576, %c0_227, %c0_228] : memref<8x8x1xf32, #tpu.memory_space<vmem>>, vector<1x8x1xf32>
    %578 = vector.shape_cast %577 : vector<1x8x1xf32> to vector<8x1xf32>
    %c0_229 = arith.constant 0 : index
    %c0_230 = arith.constant 0 : index
    %579 = vector.load %arg16[%c0_229, %c0_230] : memref<8x16xf32, #tpu.memory_space<vmem>>, vector<8x16xf32>
    %c0_231 = arith.constant 0 : index
    %c0_232 = arith.constant 0 : index
    %580 = vector.load %arg17[%c0_231, %c0_232] : memref<4x16xf32, #tpu.memory_space<vmem>>, vector<4x16xf32>
    %cst_233 = arith.constant dense<0.000000e+00> : vector<4x16xf32>
    %581 = tpu.matmul %575, %579, %cst_233 {dimension_numbers = #tpu.dot_dimension_numbers<[1], [0], [0], [1], [0, 0, 1, 1], [], []>} : vector<4x8xf32>, vector<8x16xf32>, vector<4x16xf32> -> vector<4x16xf32>
    %cst_234 = arith.constant dense<0.000000e+00> : vector<4x48xf32>
    %582 = tpu.matmul %572, %39, %cst_234 {dimension_numbers = #tpu.dot_dimension_numbers<[1], [0], [0], [1], [0, 0, 1, 1], [], []>} : vector<4x16xf32>, vector<16x48xf32>, vector<4x48xf32> -> vector<4x48xf32>
    %cst_235 = arith.constant dense<0.000000e+00> : vector<4x48xf32>
    %583 = tpu.matmul %581, %40, %cst_235 {dimension_numbers = #tpu.dot_dimension_numbers<[1], [0], [0], [1], [0, 0, 1, 1], [], []>} : vector<4x16xf32>, vector<16x48xf32>, vector<4x48xf32> -> vector<4x48xf32>
    %584 = arith.addf %582, %583 : vector<4x48xf32>
    %585 = vector.broadcast %42 : vector<1x48xf32> to vector<4x48xf32>
    %586 = arith.addf %584, %585 : vector<4x48xf32>
    %cst_236 = arith.constant dense<0.000000e+00> : vector<4x48xf32>
    %587 = tpu.matmul %580, %41, %cst_236 {dimension_numbers = #tpu.dot_dimension_numbers<[1], [0], [0], [1], [0, 0, 1, 1], [], []>} : vector<4x16xf32>, vector<16x48xf32>, vector<4x48xf32> -> vector<4x48xf32>
    %588 = vector.broadcast %43 : vector<1x48xf32> to vector<4x48xf32>
    %589 = arith.addf %587, %588 : vector<4x48xf32>
    %590 = vector.extract_strided_slice %586 {offsets = [0, 0], sizes = [4, 16], strides = [1, 1]} : vector<4x48xf32> to vector<4x16xf32>
    %591 = vector.extract_strided_slice %589 {offsets = [0, 0], sizes = [4, 16], strides = [1, 1]} : vector<4x48xf32> to vector<4x16xf32>
    %592 = arith.addf %590, %591 : vector<4x16xf32>
    %593 = arith.negf %592 : vector<4x16xf32>
    %594 = math.exp %593 : vector<4x16xf32>
    %cst_237 = arith.constant 1.000000e+00 : f32
    %595 = vector.broadcast %cst_237 : f32 to vector<4x16xf32>
    %596 = arith.addf %595, %594 : vector<4x16xf32>
    %597 = arith.divf %595, %596 : vector<4x16xf32>
    %598 = vector.extract_strided_slice %586 {offsets = [0, 16], sizes = [4, 16], strides = [1, 1]} : vector<4x48xf32> to vector<4x16xf32>
    %599 = vector.extract_strided_slice %589 {offsets = [0, 16], sizes = [4, 16], strides = [1, 1]} : vector<4x48xf32> to vector<4x16xf32>
    %600 = arith.addf %598, %599 : vector<4x16xf32>
    %601 = arith.negf %600 : vector<4x16xf32>
    %602 = math.exp %601 : vector<4x16xf32>
    %cst_238 = arith.constant 1.000000e+00 : f32
    %603 = vector.broadcast %cst_238 : f32 to vector<4x16xf32>
    %604 = arith.addf %603, %602 : vector<4x16xf32>
    %605 = arith.divf %603, %604 : vector<4x16xf32>
    %606 = vector.extract_strided_slice %586 {offsets = [0, 32], sizes = [4, 16], strides = [1, 1]} : vector<4x48xf32> to vector<4x16xf32>
    %607 = vector.extract_strided_slice %589 {offsets = [0, 32], sizes = [4, 16], strides = [1, 1]} : vector<4x48xf32> to vector<4x16xf32>
    %608 = arith.mulf %597, %607 : vector<4x16xf32>
    %609 = arith.addf %606, %608 : vector<4x16xf32>
    %610 = math.tanh %609 : vector<4x16xf32>
    %cst_239 = arith.constant 1.000000e+00 : f32
    %611 = vector.broadcast %cst_239 : f32 to vector<4x16xf32>
    %612 = arith.subf %611, %605 : vector<4x16xf32>
    %613 = arith.mulf %612, %610 : vector<4x16xf32>
    %614 = arith.mulf %605, %580 : vector<4x16xf32>
    %615 = arith.addf %613, %614 : vector<4x16xf32>
    %c0_240 = arith.constant 0 : index
    %c0_241 = arith.constant 0 : index
    %c0_242 = arith.constant 0 : index
    %616 = vector.load %arg15[%c0_240, %c0_241, %c0_242] : memref<8x4x16xf32, #tpu.memory_space<vmem>>, vector<8x4x16xf32>
    %cst_243 = arith.constant dense<0.000000e+00> : vector<4x16xf32>
    %617 = tpu.matmul %572, %49, %cst_243 {dimension_numbers = #tpu.dot_dimension_numbers<[1], [0], [0], [1], [0, 0, 1, 1], [], []>} : vector<4x16xf32>, vector<16x16xf32>, vector<4x16xf32> -> vector<4x16xf32>
    %618 = vector.shape_cast %617 : vector<4x16xf32> to vector<1x4x16xf32>
    %619 = vector.broadcast %618 : vector<1x4x16xf32> to vector<8x4x16xf32>
    %620 = arith.mulf %619, %616 : vector<8x4x16xf32>
    %cst_244 = arith.constant dense<0.000000e+00> : vector<8x4xf32>
    %621 = vector.multi_reduction <add>, %620, %cst_244 [2] : vector<8x4x16xf32> to vector<8x4xf32>
    %622 = tpu.iota {dimensions = array<i32: 0>} : vector<8x4xi32>
    %623 = vector.broadcast %c4_i32 : i32 to vector<8x4xi32>
    %624 = arith.cmpi slt, %622, %623 : vector<8x4xi32>
    %cst_245 = arith.constant -1.000000e+30 : f32
    %625 = vector.broadcast %cst_245 : f32 to vector<8x4xf32>
    %626 = arith.select %624, %621, %625 : vector<8x4xi1>, vector<8x4xf32>
    %cst_246 = arith.constant dense<0xFF800000> : vector<4xf32>
    %627 = vector.multi_reduction <maximumf>, %626, %cst_246 [0] : vector<8x4xf32> to vector<4xf32>
    %628 = vector.shape_cast %627 : vector<4xf32> to vector<1x4xf32>
    %629 = vector.broadcast %628 : vector<1x4xf32> to vector<8x4xf32>
    %630 = arith.subf %626, %629 : vector<8x4xf32>
    %631 = math.exp %630 : vector<8x4xf32>
    %632 = arith.extui %624 : vector<8x4xi1> to vector<8x4xi32>
    %633 = arith.sitofp %632 : vector<8x4xi32> to vector<8x4xf32>
    %634 = arith.mulf %631, %633 : vector<8x4xf32>
    %cst_247 = arith.constant dense<0.000000e+00> : vector<4xf32>
    %635 = vector.multi_reduction <add>, %634, %cst_247 [0] : vector<8x4xf32> to vector<4xf32>
    %636 = vector.shape_cast %635 : vector<4xf32> to vector<1x4xf32>
    %cst_248 = arith.constant 0.000000e+00 : f32
    %637 = vector.broadcast %cst_248 : f32 to vector<1x4xf32>
    %638 = arith.cmpf oeq, %636, %637 : vector<1x4xf32>
    %cst_249 = arith.constant 1.000000e+00 : f32
    %639 = vector.broadcast %cst_249 : f32 to vector<1x4xf32>
    %640 = arith.select %638, %639, %636 : vector<1x4xi1>, vector<1x4xf32>
    %641 = vector.broadcast %640 : vector<1x4xf32> to vector<8x4xf32>
    %642 = arith.divf %634, %641 : vector<8x4xf32>
    %643 = vector.shape_cast %642 : vector<8x4xf32> to vector<8x4x1xf32>
    %644 = vector.broadcast %643 : vector<8x4x1xf32> to vector<8x4x16xf32>
    %645 = arith.mulf %644, %616 : vector<8x4x16xf32>
    %cst_250 = arith.constant dense<0.000000e+00> : vector<4x16xf32>
    %646 = vector.multi_reduction <add>, %645, %cst_250 [0] : vector<8x4x16xf32> to vector<4x16xf32>
    %647 = arith.index_cast %c4_i32 : i32 to index
    %c0_251 = arith.constant 0 : index
    %c0_252 = arith.constant 0 : index
    %648 = vector.load %arg15[%647, %c0_251, %c0_252] : memref<8x4x16xf32, #tpu.memory_space<vmem>>, vector<1x4x16xf32>
    %649 = vector.shape_cast %648 : vector<1x4x16xf32> to vector<4x16xf32>
    %650 = vector.shape_cast %615 : vector<4x16xf32> to vector<1x4x16xf32>
    tpu.vector_store %arg15[%647, %c0_251, %c0_252], %650 {strides = array<i32>} : memref<8x4x16xf32, #tpu.memory_space<vmem>>, vector<1x4x16xf32>,
    %c0_253 = arith.constant 0 : index
    %c0_254 = arith.constant 0 : index
    %651 = vector.load %arg17[%c0_253, %c0_254] : memref<4x16xf32, #tpu.memory_space<vmem>>, vector<4x16xf32>
    tpu.vector_store %arg17[%c0_253, %c0_254], %615 {strides = array<i32>} : memref<4x16xf32, #tpu.memory_space<vmem>>, vector<4x16xf32>,
    %cst_255 = arith.constant dense<0.000000e+00> : vector<4x48xf32>
    %652 = tpu.matmul %572, %44, %cst_255 {dimension_numbers = #tpu.dot_dimension_numbers<[1], [0], [0], [1], [0, 0, 1, 1], [], []>} : vector<4x16xf32>, vector<16x48xf32>, vector<4x48xf32> -> vector<4x48xf32>
    %cst_256 = arith.constant dense<0.000000e+00> : vector<4x48xf32>
    %653 = tpu.matmul %646, %45, %cst_256 {dimension_numbers = #tpu.dot_dimension_numbers<[1], [0], [0], [1], [0, 0, 1, 1], [], []>} : vector<4x16xf32>, vector<16x48xf32>, vector<4x48xf32> -> vector<4x48xf32>
    %654 = arith.addf %652, %653 : vector<4x48xf32>
    %655 = vector.broadcast %47 : vector<1x48xf32> to vector<4x48xf32>
    %656 = arith.addf %654, %655 : vector<4x48xf32>
    %cst_257 = arith.constant dense<0.000000e+00> : vector<8x48xf32>
    %657 = tpu.matmul %38, %656, %cst_257 {dimension_numbers = #tpu.dot_dimension_numbers<[1], [0], [0], [1], [0, 0, 1, 1], [], []>} : vector<8x4xf32>, vector<4x48xf32>, vector<8x48xf32> -> vector<8x48xf32>
    %cst_258 = arith.constant dense<0.000000e+00> : vector<8x48xf32>
    %658 = tpu.matmul %579, %46, %cst_258 {dimension_numbers = #tpu.dot_dimension_numbers<[1], [0], [0], [1], [0, 0, 1, 1], [], []>} : vector<8x16xf32>, vector<16x48xf32>, vector<8x48xf32> -> vector<8x48xf32>
    %659 = vector.broadcast %48 : vector<1x48xf32> to vector<8x48xf32>
    %660 = arith.addf %658, %659 : vector<8x48xf32>
    %661 = vector.extract_strided_slice %657 {offsets = [0, 0], sizes = [8, 16], strides = [1, 1]} : vector<8x48xf32> to vector<8x16xf32>
    %662 = vector.extract_strided_slice %660 {offsets = [0, 0], sizes = [8, 16], strides = [1, 1]} : vector<8x48xf32> to vector<8x16xf32>
    %663 = arith.addf %661, %662 : vector<8x16xf32>
    %664 = arith.negf %663 : vector<8x16xf32>
    %665 = math.exp %664 : vector<8x16xf32>
    %cst_259 = arith.constant 1.000000e+00 : f32
    %666 = vector.broadcast %cst_259 : f32 to vector<8x16xf32>
    %667 = arith.addf %666, %665 : vector<8x16xf32>
    %668 = arith.divf %666, %667 : vector<8x16xf32>
    %669 = vector.extract_strided_slice %657 {offsets = [0, 16], sizes = [8, 16], strides = [1, 1]} : vector<8x48xf32> to vector<8x16xf32>
    %670 = vector.extract_strided_slice %660 {offsets = [0, 16], sizes = [8, 16], strides = [1, 1]} : vector<8x48xf32> to vector<8x16xf32>
    %671 = arith.addf %669, %670 : vector<8x16xf32>
    %672 = arith.negf %671 : vector<8x16xf32>
    %673 = math.exp %672 : vector<8x16xf32>
    %cst_260 = arith.constant 1.000000e+00 : f32
    %674 = vector.broadcast %cst_260 : f32 to vector<8x16xf32>
    %675 = arith.addf %674, %673 : vector<8x16xf32>
    %676 = arith.divf %674, %675 : vector<8x16xf32>
    %677 = vector.extract_strided_slice %657 {offsets = [0, 32], sizes = [8, 16], strides = [1, 1]} : vector<8x48xf32> to vector<8x16xf32>
    %678 = vector.extract_strided_slice %660 {offsets = [0, 32], sizes = [8, 16], strides = [1, 1]} : vector<8x48xf32> to vector<8x16xf32>
    %679 = arith.mulf %668, %678 : vector<8x16xf32>
    %680 = arith.addf %677, %679 : vector<8x16xf32>
    %681 = math.tanh %680 : vector<8x16xf32>
    %cst_261 = arith.constant 1.000000e+00 : f32
    %682 = vector.broadcast %cst_261 : f32 to vector<8x16xf32>
    %683 = arith.subf %682, %676 : vector<8x16xf32>
    %684 = arith.mulf %683, %681 : vector<8x16xf32>
    %685 = arith.mulf %676, %579 : vector<8x16xf32>
    %686 = arith.addf %684, %685 : vector<8x16xf32>
    %cst_262 = arith.constant 1.000000e+00 : f32
    %687 = vector.broadcast %cst_262 : f32 to vector<8x1xf32>
    %688 = arith.subf %687, %578 : vector<8x1xf32>
    %689 = vector.broadcast %688 : vector<8x1xf32> to vector<8x16xf32>
    %690 = arith.mulf %579, %689 : vector<8x16xf32>
    %691 = vector.broadcast %578 : vector<8x1xf32> to vector<8x16xf32>
    %692 = arith.mulf %686, %691 : vector<8x16xf32>
    %693 = arith.addf %690, %692 : vector<8x16xf32>
    %c0_263 = arith.constant 0 : index
    %c0_264 = arith.constant 0 : index
    %694 = vector.load %arg16[%c0_263, %c0_264] : memref<8x16xf32, #tpu.memory_space<vmem>>, vector<8x16xf32>
    tpu.vector_store %arg16[%c0_263, %c0_264], %693 {strides = array<i32>} : memref<8x16xf32, #tpu.memory_space<vmem>>, vector<8x16xf32>,
    %cst_265 = arith.constant dense<0.000000e+00> : vector<4x16xf32>
    %695 = tpu.matmul %575, %693, %cst_265 {dimension_numbers = #tpu.dot_dimension_numbers<[1], [0], [0], [1], [0, 0, 1, 1], [], []>} : vector<4x8xf32>, vector<8x16xf32>, vector<4x16xf32> -> vector<4x16xf32>
    %696 = arith.index_cast %c4_i32 : i32 to index
    %c0_266 = arith.constant 0 : index
    %c0_267 = arith.constant 0 : index
    %697 = vector.load %arg14[%696, %c0_266, %c0_267] : memref<8x4x16xf32, #tpu.memory_space<vmem>>, vector<1x4x16xf32>
    %698 = vector.shape_cast %697 : vector<1x4x16xf32> to vector<4x16xf32>
    %699 = vector.shape_cast %695 : vector<4x16xf32> to vector<1x4x16xf32>
    tpu.vector_store %arg14[%696, %c0_266, %c0_267], %699 {strides = array<i32>} : memref<8x4x16xf32, #tpu.memory_space<vmem>>, vector<1x4x16xf32>,
    %c5_i32 = arith.constant 5 : i32
    %700 = arith.index_cast %c5_i32 : i32 to index
    %c0_268 = arith.constant 0 : index
    %c0_269 = arith.constant 0 : index
    %701 = vector.load %arg0[%700, %c0_268, %c0_269] : memref<8x4x16xf32, #tpu.memory_space<vmem>>, vector<1x4x16xf32>
    %702 = vector.shape_cast %701 : vector<1x4x16xf32> to vector<4x16xf32>
    %703 = arith.index_cast %c5_i32 : i32 to index
    %c0_270 = arith.constant 0 : index
    %c0_271 = arith.constant 0 : index
    %704 = vector.load %arg18[%703, %c0_270, %c0_271] : memref<8x4x8xf32, #tpu.memory_space<vmem>>, vector<1x4x8xf32>
    %705 = vector.shape_cast %704 : vector<1x4x8xf32> to vector<4x8xf32>
    %706 = arith.index_cast %c5_i32 : i32 to index
    %c0_272 = arith.constant 0 : index
    %c0_273 = arith.constant 0 : index
    %707 = vector.load %arg2[%706, %c0_272, %c0_273] : memref<8x8x1xf32, #tpu.memory_space<vmem>>, vector<1x8x1xf32>
    %708 = vector.shape_cast %707 : vector<1x8x1xf32> to vector<8x1xf32>
    %c0_274 = arith.constant 0 : index
    %c0_275 = arith.constant 0 : index
    %709 = vector.load %arg16[%c0_274, %c0_275] : memref<8x16xf32, #tpu.memory_space<vmem>>, vector<8x16xf32>
    %c0_276 = arith.constant 0 : index
    %c0_277 = arith.constant 0 : index
    %710 = vector.load %arg17[%c0_276, %c0_277] : memref<4x16xf32, #tpu.memory_space<vmem>>, vector<4x16xf32>
    %cst_278 = arith.constant dense<0.000000e+00> : vector<4x16xf32>
    %711 = tpu.matmul %705, %709, %cst_278 {dimension_numbers = #tpu.dot_dimension_numbers<[1], [0], [0], [1], [0, 0, 1, 1], [], []>} : vector<4x8xf32>, vector<8x16xf32>, vector<4x16xf32> -> vector<4x16xf32>
    %cst_279 = arith.constant dense<0.000000e+00> : vector<4x48xf32>
    %712 = tpu.matmul %702, %39, %cst_279 {dimension_numbers = #tpu.dot_dimension_numbers<[1], [0], [0], [1], [0, 0, 1, 1], [], []>} : vector<4x16xf32>, vector<16x48xf32>, vector<4x48xf32> -> vector<4x48xf32>
    %cst_280 = arith.constant dense<0.000000e+00> : vector<4x48xf32>
    %713 = tpu.matmul %711, %40, %cst_280 {dimension_numbers = #tpu.dot_dimension_numbers<[1], [0], [0], [1], [0, 0, 1, 1], [], []>} : vector<4x16xf32>, vector<16x48xf32>, vector<4x48xf32> -> vector<4x48xf32>
    %714 = arith.addf %712, %713 : vector<4x48xf32>
    %715 = vector.broadcast %42 : vector<1x48xf32> to vector<4x48xf32>
    %716 = arith.addf %714, %715 : vector<4x48xf32>
    %cst_281 = arith.constant dense<0.000000e+00> : vector<4x48xf32>
    %717 = tpu.matmul %710, %41, %cst_281 {dimension_numbers = #tpu.dot_dimension_numbers<[1], [0], [0], [1], [0, 0, 1, 1], [], []>} : vector<4x16xf32>, vector<16x48xf32>, vector<4x48xf32> -> vector<4x48xf32>
    %718 = vector.broadcast %43 : vector<1x48xf32> to vector<4x48xf32>
    %719 = arith.addf %717, %718 : vector<4x48xf32>
    %720 = vector.extract_strided_slice %716 {offsets = [0, 0], sizes = [4, 16], strides = [1, 1]} : vector<4x48xf32> to vector<4x16xf32>
    %721 = vector.extract_strided_slice %719 {offsets = [0, 0], sizes = [4, 16], strides = [1, 1]} : vector<4x48xf32> to vector<4x16xf32>
    %722 = arith.addf %720, %721 : vector<4x16xf32>
    %723 = arith.negf %722 : vector<4x16xf32>
    %724 = math.exp %723 : vector<4x16xf32>
    %cst_282 = arith.constant 1.000000e+00 : f32
    %725 = vector.broadcast %cst_282 : f32 to vector<4x16xf32>
    %726 = arith.addf %725, %724 : vector<4x16xf32>
    %727 = arith.divf %725, %726 : vector<4x16xf32>
    %728 = vector.extract_strided_slice %716 {offsets = [0, 16], sizes = [4, 16], strides = [1, 1]} : vector<4x48xf32> to vector<4x16xf32>
    %729 = vector.extract_strided_slice %719 {offsets = [0, 16], sizes = [4, 16], strides = [1, 1]} : vector<4x48xf32> to vector<4x16xf32>
    %730 = arith.addf %728, %729 : vector<4x16xf32>
    %731 = arith.negf %730 : vector<4x16xf32>
    %732 = math.exp %731 : vector<4x16xf32>
    %cst_283 = arith.constant 1.000000e+00 : f32
    %733 = vector.broadcast %cst_283 : f32 to vector<4x16xf32>
    %734 = arith.addf %733, %732 : vector<4x16xf32>
    %735 = arith.divf %733, %734 : vector<4x16xf32>
    %736 = vector.extract_strided_slice %716 {offsets = [0, 32], sizes = [4, 16], strides = [1, 1]} : vector<4x48xf32> to vector<4x16xf32>
    %737 = vector.extract_strided_slice %719 {offsets = [0, 32], sizes = [4, 16], strides = [1, 1]} : vector<4x48xf32> to vector<4x16xf32>
    %738 = arith.mulf %727, %737 : vector<4x16xf32>
    %739 = arith.addf %736, %738 : vector<4x16xf32>
    %740 = math.tanh %739 : vector<4x16xf32>
    %cst_284 = arith.constant 1.000000e+00 : f32
    %741 = vector.broadcast %cst_284 : f32 to vector<4x16xf32>
    %742 = arith.subf %741, %735 : vector<4x16xf32>
    %743 = arith.mulf %742, %740 : vector<4x16xf32>
    %744 = arith.mulf %735, %710 : vector<4x16xf32>
    %745 = arith.addf %743, %744 : vector<4x16xf32>
    %c0_285 = arith.constant 0 : index
    %c0_286 = arith.constant 0 : index
    %c0_287 = arith.constant 0 : index
    %746 = vector.load %arg15[%c0_285, %c0_286, %c0_287] : memref<8x4x16xf32, #tpu.memory_space<vmem>>, vector<8x4x16xf32>
    %cst_288 = arith.constant dense<0.000000e+00> : vector<4x16xf32>
    %747 = tpu.matmul %702, %49, %cst_288 {dimension_numbers = #tpu.dot_dimension_numbers<[1], [0], [0], [1], [0, 0, 1, 1], [], []>} : vector<4x16xf32>, vector<16x16xf32>, vector<4x16xf32> -> vector<4x16xf32>
    %748 = vector.shape_cast %747 : vector<4x16xf32> to vector<1x4x16xf32>
    %749 = vector.broadcast %748 : vector<1x4x16xf32> to vector<8x4x16xf32>
    %750 = arith.mulf %749, %746 : vector<8x4x16xf32>
    %cst_289 = arith.constant dense<0.000000e+00> : vector<8x4xf32>
    %751 = vector.multi_reduction <add>, %750, %cst_289 [2] : vector<8x4x16xf32> to vector<8x4xf32>
    %752 = tpu.iota {dimensions = array<i32: 0>} : vector<8x4xi32>
    %753 = vector.broadcast %c5_i32 : i32 to vector<8x4xi32>
    %754 = arith.cmpi slt, %752, %753 : vector<8x4xi32>
    %cst_290 = arith.constant -1.000000e+30 : f32
    %755 = vector.broadcast %cst_290 : f32 to vector<8x4xf32>
    %756 = arith.select %754, %751, %755 : vector<8x4xi1>, vector<8x4xf32>
    %cst_291 = arith.constant dense<0xFF800000> : vector<4xf32>
    %757 = vector.multi_reduction <maximumf>, %756, %cst_291 [0] : vector<8x4xf32> to vector<4xf32>
    %758 = vector.shape_cast %757 : vector<4xf32> to vector<1x4xf32>
    %759 = vector.broadcast %758 : vector<1x4xf32> to vector<8x4xf32>
    %760 = arith.subf %756, %759 : vector<8x4xf32>
    %761 = math.exp %760 : vector<8x4xf32>
    %762 = arith.extui %754 : vector<8x4xi1> to vector<8x4xi32>
    %763 = arith.sitofp %762 : vector<8x4xi32> to vector<8x4xf32>
    %764 = arith.mulf %761, %763 : vector<8x4xf32>
    %cst_292 = arith.constant dense<0.000000e+00> : vector<4xf32>
    %765 = vector.multi_reduction <add>, %764, %cst_292 [0] : vector<8x4xf32> to vector<4xf32>
    %766 = vector.shape_cast %765 : vector<4xf32> to vector<1x4xf32>
    %cst_293 = arith.constant 0.000000e+00 : f32
    %767 = vector.broadcast %cst_293 : f32 to vector<1x4xf32>
    %768 = arith.cmpf oeq, %766, %767 : vector<1x4xf32>
    %cst_294 = arith.constant 1.000000e+00 : f32
    %769 = vector.broadcast %cst_294 : f32 to vector<1x4xf32>
    %770 = arith.select %768, %769, %766 : vector<1x4xi1>, vector<1x4xf32>
    %771 = vector.broadcast %770 : vector<1x4xf32> to vector<8x4xf32>
    %772 = arith.divf %764, %771 : vector<8x4xf32>
    %773 = vector.shape_cast %772 : vector<8x4xf32> to vector<8x4x1xf32>
    %774 = vector.broadcast %773 : vector<8x4x1xf32> to vector<8x4x16xf32>
    %775 = arith.mulf %774, %746 : vector<8x4x16xf32>
    %cst_295 = arith.constant dense<0.000000e+00> : vector<4x16xf32>
    %776 = vector.multi_reduction <add>, %775, %cst_295 [0] : vector<8x4x16xf32> to vector<4x16xf32>
    %777 = arith.index_cast %c5_i32 : i32 to index
    %c0_296 = arith.constant 0 : index
    %c0_297 = arith.constant 0 : index
    %778 = vector.load %arg15[%777, %c0_296, %c0_297] : memref<8x4x16xf32, #tpu.memory_space<vmem>>, vector<1x4x16xf32>
    %779 = vector.shape_cast %778 : vector<1x4x16xf32> to vector<4x16xf32>
    %780 = vector.shape_cast %745 : vector<4x16xf32> to vector<1x4x16xf32>
    tpu.vector_store %arg15[%777, %c0_296, %c0_297], %780 {strides = array<i32>} : memref<8x4x16xf32, #tpu.memory_space<vmem>>, vector<1x4x16xf32>,
    %c0_298 = arith.constant 0 : index
    %c0_299 = arith.constant 0 : index
    %781 = vector.load %arg17[%c0_298, %c0_299] : memref<4x16xf32, #tpu.memory_space<vmem>>, vector<4x16xf32>
    tpu.vector_store %arg17[%c0_298, %c0_299], %745 {strides = array<i32>} : memref<4x16xf32, #tpu.memory_space<vmem>>, vector<4x16xf32>,
    %cst_300 = arith.constant dense<0.000000e+00> : vector<4x48xf32>
    %782 = tpu.matmul %702, %44, %cst_300 {dimension_numbers = #tpu.dot_dimension_numbers<[1], [0], [0], [1], [0, 0, 1, 1], [], []>} : vector<4x16xf32>, vector<16x48xf32>, vector<4x48xf32> -> vector<4x48xf32>
    %cst_301 = arith.constant dense<0.000000e+00> : vector<4x48xf32>
    %783 = tpu.matmul %776, %45, %cst_301 {dimension_numbers = #tpu.dot_dimension_numbers<[1], [0], [0], [1], [0, 0, 1, 1], [], []>} : vector<4x16xf32>, vector<16x48xf32>, vector<4x48xf32> -> vector<4x48xf32>
    %784 = arith.addf %782, %783 : vector<4x48xf32>
    %785 = vector.broadcast %47 : vector<1x48xf32> to vector<4x48xf32>
    %786 = arith.addf %784, %785 : vector<4x48xf32>
    %cst_302 = arith.constant dense<0.000000e+00> : vector<8x48xf32>
    %787 = tpu.matmul %38, %786, %cst_302 {dimension_numbers = #tpu.dot_dimension_numbers<[1], [0], [0], [1], [0, 0, 1, 1], [], []>} : vector<8x4xf32>, vector<4x48xf32>, vector<8x48xf32> -> vector<8x48xf32>
    %cst_303 = arith.constant dense<0.000000e+00> : vector<8x48xf32>
    %788 = tpu.matmul %709, %46, %cst_303 {dimension_numbers = #tpu.dot_dimension_numbers<[1], [0], [0], [1], [0, 0, 1, 1], [], []>} : vector<8x16xf32>, vector<16x48xf32>, vector<8x48xf32> -> vector<8x48xf32>
    %789 = vector.broadcast %48 : vector<1x48xf32> to vector<8x48xf32>
    %790 = arith.addf %788, %789 : vector<8x48xf32>
    %791 = vector.extract_strided_slice %787 {offsets = [0, 0], sizes = [8, 16], strides = [1, 1]} : vector<8x48xf32> to vector<8x16xf32>
    %792 = vector.extract_strided_slice %790 {offsets = [0, 0], sizes = [8, 16], strides = [1, 1]} : vector<8x48xf32> to vector<8x16xf32>
    %793 = arith.addf %791, %792 : vector<8x16xf32>
    %794 = arith.negf %793 : vector<8x16xf32>
    %795 = math.exp %794 : vector<8x16xf32>
    %cst_304 = arith.constant 1.000000e+00 : f32
    %796 = vector.broadcast %cst_304 : f32 to vector<8x16xf32>
    %797 = arith.addf %796, %795 : vector<8x16xf32>
    %798 = arith.divf %796, %797 : vector<8x16xf32>
    %799 = vector.extract_strided_slice %787 {offsets = [0, 16], sizes = [8, 16], strides = [1, 1]} : vector<8x48xf32> to vector<8x16xf32>
    %800 = vector.extract_strided_slice %790 {offsets = [0, 16], sizes = [8, 16], strides = [1, 1]} : vector<8x48xf32> to vector<8x16xf32>
    %801 = arith.addf %799, %800 : vector<8x16xf32>
    %802 = arith.negf %801 : vector<8x16xf32>
    %803 = math.exp %802 : vector<8x16xf32>
    %cst_305 = arith.constant 1.000000e+00 : f32
    %804 = vector.broadcast %cst_305 : f32 to vector<8x16xf32>
    %805 = arith.addf %804, %803 : vector<8x16xf32>
    %806 = arith.divf %804, %805 : vector<8x16xf32>
    %807 = vector.extract_strided_slice %787 {offsets = [0, 32], sizes = [8, 16], strides = [1, 1]} : vector<8x48xf32> to vector<8x16xf32>
    %808 = vector.extract_strided_slice %790 {offsets = [0, 32], sizes = [8, 16], strides = [1, 1]} : vector<8x48xf32> to vector<8x16xf32>
    %809 = arith.mulf %798, %808 : vector<8x16xf32>
    %810 = arith.addf %807, %809 : vector<8x16xf32>
    %811 = math.tanh %810 : vector<8x16xf32>
    %cst_306 = arith.constant 1.000000e+00 : f32
    %812 = vector.broadcast %cst_306 : f32 to vector<8x16xf32>
    %813 = arith.subf %812, %806 : vector<8x16xf32>
    %814 = arith.mulf %813, %811 : vector<8x16xf32>
    %815 = arith.mulf %806, %709 : vector<8x16xf32>
    %816 = arith.addf %814, %815 : vector<8x16xf32>
    %cst_307 = arith.constant 1.000000e+00 : f32
    %817 = vector.broadcast %cst_307 : f32 to vector<8x1xf32>
    %818 = arith.subf %817, %708 : vector<8x1xf32>
    %819 = vector.broadcast %818 : vector<8x1xf32> to vector<8x16xf32>
    %820 = arith.mulf %709, %819 : vector<8x16xf32>
    %821 = vector.broadcast %708 : vector<8x1xf32> to vector<8x16xf32>
    %822 = arith.mulf %816, %821 : vector<8x16xf32>
    %823 = arith.addf %820, %822 : vector<8x16xf32>
    %c0_308 = arith.constant 0 : index
    %c0_309 = arith.constant 0 : index
    %824 = vector.load %arg16[%c0_308, %c0_309] : memref<8x16xf32, #tpu.memory_space<vmem>>, vector<8x16xf32>
    tpu.vector_store %arg16[%c0_308, %c0_309], %823 {strides = array<i32>} : memref<8x16xf32, #tpu.memory_space<vmem>>, vector<8x16xf32>,
    %cst_310 = arith.constant dense<0.000000e+00> : vector<4x16xf32>
    %825 = tpu.matmul %705, %823, %cst_310 {dimension_numbers = #tpu.dot_dimension_numbers<[1], [0], [0], [1], [0, 0, 1, 1], [], []>} : vector<4x8xf32>, vector<8x16xf32>, vector<4x16xf32> -> vector<4x16xf32>
    %826 = arith.index_cast %c5_i32 : i32 to index
    %c0_311 = arith.constant 0 : index
    %c0_312 = arith.constant 0 : index
    %827 = vector.load %arg14[%826, %c0_311, %c0_312] : memref<8x4x16xf32, #tpu.memory_space<vmem>>, vector<1x4x16xf32>
    %828 = vector.shape_cast %827 : vector<1x4x16xf32> to vector<4x16xf32>
    %829 = vector.shape_cast %825 : vector<4x16xf32> to vector<1x4x16xf32>
    tpu.vector_store %arg14[%826, %c0_311, %c0_312], %829 {strides = array<i32>} : memref<8x4x16xf32, #tpu.memory_space<vmem>>, vector<1x4x16xf32>,
    %c6_i32 = arith.constant 6 : i32
    %830 = arith.index_cast %c6_i32 : i32 to index
    %c0_313 = arith.constant 0 : index
    %c0_314 = arith.constant 0 : index
    %831 = vector.load %arg0[%830, %c0_313, %c0_314] : memref<8x4x16xf32, #tpu.memory_space<vmem>>, vector<1x4x16xf32>
    %832 = vector.shape_cast %831 : vector<1x4x16xf32> to vector<4x16xf32>
    %833 = arith.index_cast %c6_i32 : i32 to index
    %c0_315 = arith.constant 0 : index
    %c0_316 = arith.constant 0 : index
    %834 = vector.load %arg18[%833, %c0_315, %c0_316] : memref<8x4x8xf32, #tpu.memory_space<vmem>>, vector<1x4x8xf32>
    %835 = vector.shape_cast %834 : vector<1x4x8xf32> to vector<4x8xf32>
    %836 = arith.index_cast %c6_i32 : i32 to index
    %c0_317 = arith.constant 0 : index
    %c0_318 = arith.constant 0 : index
    %837 = vector.load %arg2[%836, %c0_317, %c0_318] : memref<8x8x1xf32, #tpu.memory_space<vmem>>, vector<1x8x1xf32>
    %838 = vector.shape_cast %837 : vector<1x8x1xf32> to vector<8x1xf32>
    %c0_319 = arith.constant 0 : index
    %c0_320 = arith.constant 0 : index
    %839 = vector.load %arg16[%c0_319, %c0_320] : memref<8x16xf32, #tpu.memory_space<vmem>>, vector<8x16xf32>
    %c0_321 = arith.constant 0 : index
    %c0_322 = arith.constant 0 : index
    %840 = vector.load %arg17[%c0_321, %c0_322] : memref<4x16xf32, #tpu.memory_space<vmem>>, vector<4x16xf32>
    %cst_323 = arith.constant dense<0.000000e+00> : vector<4x16xf32>
    %841 = tpu.matmul %835, %839, %cst_323 {dimension_numbers = #tpu.dot_dimension_numbers<[1], [0], [0], [1], [0, 0, 1, 1], [], []>} : vector<4x8xf32>, vector<8x16xf32>, vector<4x16xf32> -> vector<4x16xf32>
    %cst_324 = arith.constant dense<0.000000e+00> : vector<4x48xf32>
    %842 = tpu.matmul %832, %39, %cst_324 {dimension_numbers = #tpu.dot_dimension_numbers<[1], [0], [0], [1], [0, 0, 1, 1], [], []>} : vector<4x16xf32>, vector<16x48xf32>, vector<4x48xf32> -> vector<4x48xf32>
    %cst_325 = arith.constant dense<0.000000e+00> : vector<4x48xf32>
    %843 = tpu.matmul %841, %40, %cst_325 {dimension_numbers = #tpu.dot_dimension_numbers<[1], [0], [0], [1], [0, 0, 1, 1], [], []>} : vector<4x16xf32>, vector<16x48xf32>, vector<4x48xf32> -> vector<4x48xf32>
    %844 = arith.addf %842, %843 : vector<4x48xf32>
    %845 = vector.broadcast %42 : vector<1x48xf32> to vector<4x48xf32>
    %846 = arith.addf %844, %845 : vector<4x48xf32>
    %cst_326 = arith.constant dense<0.000000e+00> : vector<4x48xf32>
    %847 = tpu.matmul %840, %41, %cst_326 {dimension_numbers = #tpu.dot_dimension_numbers<[1], [0], [0], [1], [0, 0, 1, 1], [], []>} : vector<4x16xf32>, vector<16x48xf32>, vector<4x48xf32> -> vector<4x48xf32>
    %848 = vector.broadcast %43 : vector<1x48xf32> to vector<4x48xf32>
    %849 = arith.addf %847, %848 : vector<4x48xf32>
    %850 = vector.extract_strided_slice %846 {offsets = [0, 0], sizes = [4, 16], strides = [1, 1]} : vector<4x48xf32> to vector<4x16xf32>
    %851 = vector.extract_strided_slice %849 {offsets = [0, 0], sizes = [4, 16], strides = [1, 1]} : vector<4x48xf32> to vector<4x16xf32>
    %852 = arith.addf %850, %851 : vector<4x16xf32>
    %853 = arith.negf %852 : vector<4x16xf32>
    %854 = math.exp %853 : vector<4x16xf32>
    %cst_327 = arith.constant 1.000000e+00 : f32
    %855 = vector.broadcast %cst_327 : f32 to vector<4x16xf32>
    %856 = arith.addf %855, %854 : vector<4x16xf32>
    %857 = arith.divf %855, %856 : vector<4x16xf32>
    %858 = vector.extract_strided_slice %846 {offsets = [0, 16], sizes = [4, 16], strides = [1, 1]} : vector<4x48xf32> to vector<4x16xf32>
    %859 = vector.extract_strided_slice %849 {offsets = [0, 16], sizes = [4, 16], strides = [1, 1]} : vector<4x48xf32> to vector<4x16xf32>
    %860 = arith.addf %858, %859 : vector<4x16xf32>
    %861 = arith.negf %860 : vector<4x16xf32>
    %862 = math.exp %861 : vector<4x16xf32>
    %cst_328 = arith.constant 1.000000e+00 : f32
    %863 = vector.broadcast %cst_328 : f32 to vector<4x16xf32>
    %864 = arith.addf %863, %862 : vector<4x16xf32>
    %865 = arith.divf %863, %864 : vector<4x16xf32>
    %866 = vector.extract_strided_slice %846 {offsets = [0, 32], sizes = [4, 16], strides = [1, 1]} : vector<4x48xf32> to vector<4x16xf32>
    %867 = vector.extract_strided_slice %849 {offsets = [0, 32], sizes = [4, 16], strides = [1, 1]} : vector<4x48xf32> to vector<4x16xf32>
    %868 = arith.mulf %857, %867 : vector<4x16xf32>
    %869 = arith.addf %866, %868 : vector<4x16xf32>
    %870 = math.tanh %869 : vector<4x16xf32>
    %cst_329 = arith.constant 1.000000e+00 : f32
    %871 = vector.broadcast %cst_329 : f32 to vector<4x16xf32>
    %872 = arith.subf %871, %865 : vector<4x16xf32>
    %873 = arith.mulf %872, %870 : vector<4x16xf32>
    %874 = arith.mulf %865, %840 : vector<4x16xf32>
    %875 = arith.addf %873, %874 : vector<4x16xf32>
    %c0_330 = arith.constant 0 : index
    %c0_331 = arith.constant 0 : index
    %c0_332 = arith.constant 0 : index
    %876 = vector.load %arg15[%c0_330, %c0_331, %c0_332] : memref<8x4x16xf32, #tpu.memory_space<vmem>>, vector<8x4x16xf32>
    %cst_333 = arith.constant dense<0.000000e+00> : vector<4x16xf32>
    %877 = tpu.matmul %832, %49, %cst_333 {dimension_numbers = #tpu.dot_dimension_numbers<[1], [0], [0], [1], [0, 0, 1, 1], [], []>} : vector<4x16xf32>, vector<16x16xf32>, vector<4x16xf32> -> vector<4x16xf32>
    %878 = vector.shape_cast %877 : vector<4x16xf32> to vector<1x4x16xf32>
    %879 = vector.broadcast %878 : vector<1x4x16xf32> to vector<8x4x16xf32>
    %880 = arith.mulf %879, %876 : vector<8x4x16xf32>
    %cst_334 = arith.constant dense<0.000000e+00> : vector<8x4xf32>
    %881 = vector.multi_reduction <add>, %880, %cst_334 [2] : vector<8x4x16xf32> to vector<8x4xf32>
    %882 = tpu.iota {dimensions = array<i32: 0>} : vector<8x4xi32>
    %883 = vector.broadcast %c6_i32 : i32 to vector<8x4xi32>
    %884 = arith.cmpi slt, %882, %883 : vector<8x4xi32>
    %cst_335 = arith.constant -1.000000e+30 : f32
    %885 = vector.broadcast %cst_335 : f32 to vector<8x4xf32>
    %886 = arith.select %884, %881, %885 : vector<8x4xi1>, vector<8x4xf32>
    %cst_336 = arith.constant dense<0xFF800000> : vector<4xf32>
    %887 = vector.multi_reduction <maximumf>, %886, %cst_336 [0] : vector<8x4xf32> to vector<4xf32>
    %888 = vector.shape_cast %887 : vector<4xf32> to vector<1x4xf32>
    %889 = vector.broadcast %888 : vector<1x4xf32> to vector<8x4xf32>
    %890 = arith.subf %886, %889 : vector<8x4xf32>
    %891 = math.exp %890 : vector<8x4xf32>
    %892 = arith.extui %884 : vector<8x4xi1> to vector<8x4xi32>
    %893 = arith.sitofp %892 : vector<8x4xi32> to vector<8x4xf32>
    %894 = arith.mulf %891, %893 : vector<8x4xf32>
    %cst_337 = arith.constant dense<0.000000e+00> : vector<4xf32>
    %895 = vector.multi_reduction <add>, %894, %cst_337 [0] : vector<8x4xf32> to vector<4xf32>
    %896 = vector.shape_cast %895 : vector<4xf32> to vector<1x4xf32>
    %cst_338 = arith.constant 0.000000e+00 : f32
    %897 = vector.broadcast %cst_338 : f32 to vector<1x4xf32>
    %898 = arith.cmpf oeq, %896, %897 : vector<1x4xf32>
    %cst_339 = arith.constant 1.000000e+00 : f32
    %899 = vector.broadcast %cst_339 : f32 to vector<1x4xf32>
    %900 = arith.select %898, %899, %896 : vector<1x4xi1>, vector<1x4xf32>
    %901 = vector.broadcast %900 : vector<1x4xf32> to vector<8x4xf32>
    %902 = arith.divf %894, %901 : vector<8x4xf32>
    %903 = vector.shape_cast %902 : vector<8x4xf32> to vector<8x4x1xf32>
    %904 = vector.broadcast %903 : vector<8x4x1xf32> to vector<8x4x16xf32>
    %905 = arith.mulf %904, %876 : vector<8x4x16xf32>
    %cst_340 = arith.constant dense<0.000000e+00> : vector<4x16xf32>
    %906 = vector.multi_reduction <add>, %905, %cst_340 [0] : vector<8x4x16xf32> to vector<4x16xf32>
    %907 = arith.index_cast %c6_i32 : i32 to index
    %c0_341 = arith.constant 0 : index
    %c0_342 = arith.constant 0 : index
    %908 = vector.load %arg15[%907, %c0_341, %c0_342] : memref<8x4x16xf32, #tpu.memory_space<vmem>>, vector<1x4x16xf32>
    %909 = vector.shape_cast %908 : vector<1x4x16xf32> to vector<4x16xf32>
    %910 = vector.shape_cast %875 : vector<4x16xf32> to vector<1x4x16xf32>
    tpu.vector_store %arg15[%907, %c0_341, %c0_342], %910 {strides = array<i32>} : memref<8x4x16xf32, #tpu.memory_space<vmem>>, vector<1x4x16xf32>,
    %c0_343 = arith.constant 0 : index
    %c0_344 = arith.constant 0 : index
    %911 = vector.load %arg17[%c0_343, %c0_344] : memref<4x16xf32, #tpu.memory_space<vmem>>, vector<4x16xf32>
    tpu.vector_store %arg17[%c0_343, %c0_344], %875 {strides = array<i32>} : memref<4x16xf32, #tpu.memory_space<vmem>>, vector<4x16xf32>,
    %cst_345 = arith.constant dense<0.000000e+00> : vector<4x48xf32>
    %912 = tpu.matmul %832, %44, %cst_345 {dimension_numbers = #tpu.dot_dimension_numbers<[1], [0], [0], [1], [0, 0, 1, 1], [], []>} : vector<4x16xf32>, vector<16x48xf32>, vector<4x48xf32> -> vector<4x48xf32>
    %cst_346 = arith.constant dense<0.000000e+00> : vector<4x48xf32>
    %913 = tpu.matmul %906, %45, %cst_346 {dimension_numbers = #tpu.dot_dimension_numbers<[1], [0], [0], [1], [0, 0, 1, 1], [], []>} : vector<4x16xf32>, vector<16x48xf32>, vector<4x48xf32> -> vector<4x48xf32>
    %914 = arith.addf %912, %913 : vector<4x48xf32>
    %915 = vector.broadcast %47 : vector<1x48xf32> to vector<4x48xf32>
    %916 = arith.addf %914, %915 : vector<4x48xf32>
    %cst_347 = arith.constant dense<0.000000e+00> : vector<8x48xf32>
    %917 = tpu.matmul %38, %916, %cst_347 {dimension_numbers = #tpu.dot_dimension_numbers<[1], [0], [0], [1], [0, 0, 1, 1], [], []>} : vector<8x4xf32>, vector<4x48xf32>, vector<8x48xf32> -> vector<8x48xf32>
    %cst_348 = arith.constant dense<0.000000e+00> : vector<8x48xf32>
    %918 = tpu.matmul %839, %46, %cst_348 {dimension_numbers = #tpu.dot_dimension_numbers<[1], [0], [0], [1], [0, 0, 1, 1], [], []>} : vector<8x16xf32>, vector<16x48xf32>, vector<8x48xf32> -> vector<8x48xf32>
    %919 = vector.broadcast %48 : vector<1x48xf32> to vector<8x48xf32>
    %920 = arith.addf %918, %919 : vector<8x48xf32>
    %921 = vector.extract_strided_slice %917 {offsets = [0, 0], sizes = [8, 16], strides = [1, 1]} : vector<8x48xf32> to vector<8x16xf32>
    %922 = vector.extract_strided_slice %920 {offsets = [0, 0], sizes = [8, 16], strides = [1, 1]} : vector<8x48xf32> to vector<8x16xf32>
    %923 = arith.addf %921, %922 : vector<8x16xf32>
    %924 = arith.negf %923 : vector<8x16xf32>
    %925 = math.exp %924 : vector<8x16xf32>
    %cst_349 = arith.constant 1.000000e+00 : f32
    %926 = vector.broadcast %cst_349 : f32 to vector<8x16xf32>
    %927 = arith.addf %926, %925 : vector<8x16xf32>
    %928 = arith.divf %926, %927 : vector<8x16xf32>
    %929 = vector.extract_strided_slice %917 {offsets = [0, 16], sizes = [8, 16], strides = [1, 1]} : vector<8x48xf32> to vector<8x16xf32>
    %930 = vector.extract_strided_slice %920 {offsets = [0, 16], sizes = [8, 16], strides = [1, 1]} : vector<8x48xf32> to vector<8x16xf32>
    %931 = arith.addf %929, %930 : vector<8x16xf32>
    %932 = arith.negf %931 : vector<8x16xf32>
    %933 = math.exp %932 : vector<8x16xf32>
    %cst_350 = arith.constant 1.000000e+00 : f32
    %934 = vector.broadcast %cst_350 : f32 to vector<8x16xf32>
    %935 = arith.addf %934, %933 : vector<8x16xf32>
    %936 = arith.divf %934, %935 : vector<8x16xf32>
    %937 = vector.extract_strided_slice %917 {offsets = [0, 32], sizes = [8, 16], strides = [1, 1]} : vector<8x48xf32> to vector<8x16xf32>
    %938 = vector.extract_strided_slice %920 {offsets = [0, 32], sizes = [8, 16], strides = [1, 1]} : vector<8x48xf32> to vector<8x16xf32>
    %939 = arith.mulf %928, %938 : vector<8x16xf32>
    %940 = arith.addf %937, %939 : vector<8x16xf32>
    %941 = math.tanh %940 : vector<8x16xf32>
    %cst_351 = arith.constant 1.000000e+00 : f32
    %942 = vector.broadcast %cst_351 : f32 to vector<8x16xf32>
    %943 = arith.subf %942, %936 : vector<8x16xf32>
    %944 = arith.mulf %943, %941 : vector<8x16xf32>
    %945 = arith.mulf %936, %839 : vector<8x16xf32>
    %946 = arith.addf %944, %945 : vector<8x16xf32>
    %cst_352 = arith.constant 1.000000e+00 : f32
    %947 = vector.broadcast %cst_352 : f32 to vector<8x1xf32>
    %948 = arith.subf %947, %838 : vector<8x1xf32>
    %949 = vector.broadcast %948 : vector<8x1xf32> to vector<8x16xf32>
    %950 = arith.mulf %839, %949 : vector<8x16xf32>
    %951 = vector.broadcast %838 : vector<8x1xf32> to vector<8x16xf32>
    %952 = arith.mulf %946, %951 : vector<8x16xf32>
    %953 = arith.addf %950, %952 : vector<8x16xf32>
    %c0_353 = arith.constant 0 : index
    %c0_354 = arith.constant 0 : index
    %954 = vector.load %arg16[%c0_353, %c0_354] : memref<8x16xf32, #tpu.memory_space<vmem>>, vector<8x16xf32>
    tpu.vector_store %arg16[%c0_353, %c0_354], %953 {strides = array<i32>} : memref<8x16xf32, #tpu.memory_space<vmem>>, vector<8x16xf32>,
    %cst_355 = arith.constant dense<0.000000e+00> : vector<4x16xf32>
    %955 = tpu.matmul %835, %953, %cst_355 {dimension_numbers = #tpu.dot_dimension_numbers<[1], [0], [0], [1], [0, 0, 1, 1], [], []>} : vector<4x8xf32>, vector<8x16xf32>, vector<4x16xf32> -> vector<4x16xf32>
    %956 = arith.index_cast %c6_i32 : i32 to index
    %c0_356 = arith.constant 0 : index
    %c0_357 = arith.constant 0 : index
    %957 = vector.load %arg14[%956, %c0_356, %c0_357] : memref<8x4x16xf32, #tpu.memory_space<vmem>>, vector<1x4x16xf32>
    %958 = vector.shape_cast %957 : vector<1x4x16xf32> to vector<4x16xf32>
    %959 = vector.shape_cast %955 : vector<4x16xf32> to vector<1x4x16xf32>
    tpu.vector_store %arg14[%956, %c0_356, %c0_357], %959 {strides = array<i32>} : memref<8x4x16xf32, #tpu.memory_space<vmem>>, vector<1x4x16xf32>,
    %c7_i32 = arith.constant 7 : i32
    %960 = arith.index_cast %c7_i32 : i32 to index
    %c0_358 = arith.constant 0 : index
    %c0_359 = arith.constant 0 : index
    %961 = vector.load %arg0[%960, %c0_358, %c0_359] : memref<8x4x16xf32, #tpu.memory_space<vmem>>, vector<1x4x16xf32>
    %962 = vector.shape_cast %961 : vector<1x4x16xf32> to vector<4x16xf32>
    %963 = arith.index_cast %c7_i32 : i32 to index
    %c0_360 = arith.constant 0 : index
    %c0_361 = arith.constant 0 : index
    %964 = vector.load %arg18[%963, %c0_360, %c0_361] : memref<8x4x8xf32, #tpu.memory_space<vmem>>, vector<1x4x8xf32>
    %965 = vector.shape_cast %964 : vector<1x4x8xf32> to vector<4x8xf32>
    %966 = arith.index_cast %c7_i32 : i32 to index
    %c0_362 = arith.constant 0 : index
    %c0_363 = arith.constant 0 : index
    %967 = vector.load %arg2[%966, %c0_362, %c0_363] : memref<8x8x1xf32, #tpu.memory_space<vmem>>, vector<1x8x1xf32>
    %968 = vector.shape_cast %967 : vector<1x8x1xf32> to vector<8x1xf32>
    %c0_364 = arith.constant 0 : index
    %c0_365 = arith.constant 0 : index
    %969 = vector.load %arg16[%c0_364, %c0_365] : memref<8x16xf32, #tpu.memory_space<vmem>>, vector<8x16xf32>
    %c0_366 = arith.constant 0 : index
    %c0_367 = arith.constant 0 : index
    %970 = vector.load %arg17[%c0_366, %c0_367] : memref<4x16xf32, #tpu.memory_space<vmem>>, vector<4x16xf32>
    %cst_368 = arith.constant dense<0.000000e+00> : vector<4x16xf32>
    %971 = tpu.matmul %965, %969, %cst_368 {dimension_numbers = #tpu.dot_dimension_numbers<[1], [0], [0], [1], [0, 0, 1, 1], [], []>} : vector<4x8xf32>, vector<8x16xf32>, vector<4x16xf32> -> vector<4x16xf32>
    %cst_369 = arith.constant dense<0.000000e+00> : vector<4x48xf32>
    %972 = tpu.matmul %962, %39, %cst_369 {dimension_numbers = #tpu.dot_dimension_numbers<[1], [0], [0], [1], [0, 0, 1, 1], [], []>} : vector<4x16xf32>, vector<16x48xf32>, vector<4x48xf32> -> vector<4x48xf32>
    %cst_370 = arith.constant dense<0.000000e+00> : vector<4x48xf32>
    %973 = tpu.matmul %971, %40, %cst_370 {dimension_numbers = #tpu.dot_dimension_numbers<[1], [0], [0], [1], [0, 0, 1, 1], [], []>} : vector<4x16xf32>, vector<16x48xf32>, vector<4x48xf32> -> vector<4x48xf32>
    %974 = arith.addf %972, %973 : vector<4x48xf32>
    %975 = vector.broadcast %42 : vector<1x48xf32> to vector<4x48xf32>
    %976 = arith.addf %974, %975 : vector<4x48xf32>
    %cst_371 = arith.constant dense<0.000000e+00> : vector<4x48xf32>
    %977 = tpu.matmul %970, %41, %cst_371 {dimension_numbers = #tpu.dot_dimension_numbers<[1], [0], [0], [1], [0, 0, 1, 1], [], []>} : vector<4x16xf32>, vector<16x48xf32>, vector<4x48xf32> -> vector<4x48xf32>
    %978 = vector.broadcast %43 : vector<1x48xf32> to vector<4x48xf32>
    %979 = arith.addf %977, %978 : vector<4x48xf32>
    %980 = vector.extract_strided_slice %976 {offsets = [0, 0], sizes = [4, 16], strides = [1, 1]} : vector<4x48xf32> to vector<4x16xf32>
    %981 = vector.extract_strided_slice %979 {offsets = [0, 0], sizes = [4, 16], strides = [1, 1]} : vector<4x48xf32> to vector<4x16xf32>
    %982 = arith.addf %980, %981 : vector<4x16xf32>
    %983 = arith.negf %982 : vector<4x16xf32>
    %984 = math.exp %983 : vector<4x16xf32>
    %cst_372 = arith.constant 1.000000e+00 : f32
    %985 = vector.broadcast %cst_372 : f32 to vector<4x16xf32>
    %986 = arith.addf %985, %984 : vector<4x16xf32>
    %987 = arith.divf %985, %986 : vector<4x16xf32>
    %988 = vector.extract_strided_slice %976 {offsets = [0, 16], sizes = [4, 16], strides = [1, 1]} : vector<4x48xf32> to vector<4x16xf32>
    %989 = vector.extract_strided_slice %979 {offsets = [0, 16], sizes = [4, 16], strides = [1, 1]} : vector<4x48xf32> to vector<4x16xf32>
    %990 = arith.addf %988, %989 : vector<4x16xf32>
    %991 = arith.negf %990 : vector<4x16xf32>
    %992 = math.exp %991 : vector<4x16xf32>
    %cst_373 = arith.constant 1.000000e+00 : f32
    %993 = vector.broadcast %cst_373 : f32 to vector<4x16xf32>
    %994 = arith.addf %993, %992 : vector<4x16xf32>
    %995 = arith.divf %993, %994 : vector<4x16xf32>
    %996 = vector.extract_strided_slice %976 {offsets = [0, 32], sizes = [4, 16], strides = [1, 1]} : vector<4x48xf32> to vector<4x16xf32>
    %997 = vector.extract_strided_slice %979 {offsets = [0, 32], sizes = [4, 16], strides = [1, 1]} : vector<4x48xf32> to vector<4x16xf32>
    %998 = arith.mulf %987, %997 : vector<4x16xf32>
    %999 = arith.addf %996, %998 : vector<4x16xf32>
    %1000 = math.tanh %999 : vector<4x16xf32>
    %cst_374 = arith.constant 1.000000e+00 : f32
    %1001 = vector.broadcast %cst_374 : f32 to vector<4x16xf32>
    %1002 = arith.subf %1001, %995 : vector<4x16xf32>
    %1003 = arith.mulf %1002, %1000 : vector<4x16xf32>
    %1004 = arith.mulf %995, %970 : vector<4x16xf32>
    %1005 = arith.addf %1003, %1004 : vector<4x16xf32>
    %c0_375 = arith.constant 0 : index
    %c0_376 = arith.constant 0 : index
    %c0_377 = arith.constant 0 : index
    %1006 = vector.load %arg15[%c0_375, %c0_376, %c0_377] : memref<8x4x16xf32, #tpu.memory_space<vmem>>, vector<8x4x16xf32>
    %cst_378 = arith.constant dense<0.000000e+00> : vector<4x16xf32>
    %1007 = tpu.matmul %962, %49, %cst_378 {dimension_numbers = #tpu.dot_dimension_numbers<[1], [0], [0], [1], [0, 0, 1, 1], [], []>} : vector<4x16xf32>, vector<16x16xf32>, vector<4x16xf32> -> vector<4x16xf32>
    %1008 = vector.shape_cast %1007 : vector<4x16xf32> to vector<1x4x16xf32>
    %1009 = vector.broadcast %1008 : vector<1x4x16xf32> to vector<8x4x16xf32>
    %1010 = arith.mulf %1009, %1006 : vector<8x4x16xf32>
    %cst_379 = arith.constant dense<0.000000e+00> : vector<8x4xf32>
    %1011 = vector.multi_reduction <add>, %1010, %cst_379 [2] : vector<8x4x16xf32> to vector<8x4xf32>
    %1012 = tpu.iota {dimensions = array<i32: 0>} : vector<8x4xi32>
    %1013 = vector.broadcast %c7_i32 : i32 to vector<8x4xi32>
    %1014 = arith.cmpi slt, %1012, %1013 : vector<8x4xi32>
    %cst_380 = arith.constant -1.000000e+30 : f32
    %1015 = vector.broadcast %cst_380 : f32 to vector<8x4xf32>
    %1016 = arith.select %1014, %1011, %1015 : vector<8x4xi1>, vector<8x4xf32>
    %cst_381 = arith.constant dense<0xFF800000> : vector<4xf32>
    %1017 = vector.multi_reduction <maximumf>, %1016, %cst_381 [0] : vector<8x4xf32> to vector<4xf32>
    %1018 = vector.shape_cast %1017 : vector<4xf32> to vector<1x4xf32>
    %1019 = vector.broadcast %1018 : vector<1x4xf32> to vector<8x4xf32>
    %1020 = arith.subf %1016, %1019 : vector<8x4xf32>
    %1021 = math.exp %1020 : vector<8x4xf32>
    %1022 = arith.extui %1014 : vector<8x4xi1> to vector<8x4xi32>
    %1023 = arith.sitofp %1022 : vector<8x4xi32> to vector<8x4xf32>
    %1024 = arith.mulf %1021, %1023 : vector<8x4xf32>
    %cst_382 = arith.constant dense<0.000000e+00> : vector<4xf32>
    %1025 = vector.multi_reduction <add>, %1024, %cst_382 [0] : vector<8x4xf32> to vector<4xf32>
    %1026 = vector.shape_cast %1025 : vector<4xf32> to vector<1x4xf32>
    %cst_383 = arith.constant 0.000000e+00 : f32
    %1027 = vector.broadcast %cst_383 : f32 to vector<1x4xf32>
    %1028 = arith.cmpf oeq, %1026, %1027 : vector<1x4xf32>
    %cst_384 = arith.constant 1.000000e+00 : f32
    %1029 = vector.broadcast %cst_384 : f32 to vector<1x4xf32>
    %1030 = arith.select %1028, %1029, %1026 : vector<1x4xi1>, vector<1x4xf32>
    %1031 = vector.broadcast %1030 : vector<1x4xf32> to vector<8x4xf32>
    %1032 = arith.divf %1024, %1031 : vector<8x4xf32>
    %1033 = vector.shape_cast %1032 : vector<8x4xf32> to vector<8x4x1xf32>
    %1034 = vector.broadcast %1033 : vector<8x4x1xf32> to vector<8x4x16xf32>
    %1035 = arith.mulf %1034, %1006 : vector<8x4x16xf32>
    %cst_385 = arith.constant dense<0.000000e+00> : vector<4x16xf32>
    %1036 = vector.multi_reduction <add>, %1035, %cst_385 [0] : vector<8x4x16xf32> to vector<4x16xf32>
    %1037 = arith.index_cast %c7_i32 : i32 to index
    %c0_386 = arith.constant 0 : index
    %c0_387 = arith.constant 0 : index
    %1038 = vector.load %arg15[%1037, %c0_386, %c0_387] : memref<8x4x16xf32, #tpu.memory_space<vmem>>, vector<1x4x16xf32>
    %1039 = vector.shape_cast %1038 : vector<1x4x16xf32> to vector<4x16xf32>
    %1040 = vector.shape_cast %1005 : vector<4x16xf32> to vector<1x4x16xf32>
    tpu.vector_store %arg15[%1037, %c0_386, %c0_387], %1040 {strides = array<i32>} : memref<8x4x16xf32, #tpu.memory_space<vmem>>, vector<1x4x16xf32>,
    %c0_388 = arith.constant 0 : index
    %c0_389 = arith.constant 0 : index
    %1041 = vector.load %arg17[%c0_388, %c0_389] : memref<4x16xf32, #tpu.memory_space<vmem>>, vector<4x16xf32>
    tpu.vector_store %arg17[%c0_388, %c0_389], %1005 {strides = array<i32>} : memref<4x16xf32, #tpu.memory_space<vmem>>, vector<4x16xf32>,
    %cst_390 = arith.constant dense<0.000000e+00> : vector<4x48xf32>
    %1042 = tpu.matmul %962, %44, %cst_390 {dimension_numbers = #tpu.dot_dimension_numbers<[1], [0], [0], [1], [0, 0, 1, 1], [], []>} : vector<4x16xf32>, vector<16x48xf32>, vector<4x48xf32> -> vector<4x48xf32>
    %cst_391 = arith.constant dense<0.000000e+00> : vector<4x48xf32>
    %1043 = tpu.matmul %1036, %45, %cst_391 {dimension_numbers = #tpu.dot_dimension_numbers<[1], [0], [0], [1], [0, 0, 1, 1], [], []>} : vector<4x16xf32>, vector<16x48xf32>, vector<4x48xf32> -> vector<4x48xf32>
    %1044 = arith.addf %1042, %1043 : vector<4x48xf32>
    %1045 = vector.broadcast %47 : vector<1x48xf32> to vector<4x48xf32>
    %1046 = arith.addf %1044, %1045 : vector<4x48xf32>
    %cst_392 = arith.constant dense<0.000000e+00> : vector<8x48xf32>
    %1047 = tpu.matmul %38, %1046, %cst_392 {dimension_numbers = #tpu.dot_dimension_numbers<[1], [0], [0], [1], [0, 0, 1, 1], [], []>} : vector<8x4xf32>, vector<4x48xf32>, vector<8x48xf32> -> vector<8x48xf32>
    %cst_393 = arith.constant dense<0.000000e+00> : vector<8x48xf32>
    %1048 = tpu.matmul %969, %46, %cst_393 {dimension_numbers = #tpu.dot_dimension_numbers<[1], [0], [0], [1], [0, 0, 1, 1], [], []>} : vector<8x16xf32>, vector<16x48xf32>, vector<8x48xf32> -> vector<8x48xf32>
    %1049 = vector.broadcast %48 : vector<1x48xf32> to vector<8x48xf32>
    %1050 = arith.addf %1048, %1049 : vector<8x48xf32>
    %1051 = vector.extract_strided_slice %1047 {offsets = [0, 0], sizes = [8, 16], strides = [1, 1]} : vector<8x48xf32> to vector<8x16xf32>
    %1052 = vector.extract_strided_slice %1050 {offsets = [0, 0], sizes = [8, 16], strides = [1, 1]} : vector<8x48xf32> to vector<8x16xf32>
    %1053 = arith.addf %1051, %1052 : vector<8x16xf32>
    %1054 = arith.negf %1053 : vector<8x16xf32>
    %1055 = math.exp %1054 : vector<8x16xf32>
    %cst_394 = arith.constant 1.000000e+00 : f32
    %1056 = vector.broadcast %cst_394 : f32 to vector<8x16xf32>
    %1057 = arith.addf %1056, %1055 : vector<8x16xf32>
    %1058 = arith.divf %1056, %1057 : vector<8x16xf32>
    %1059 = vector.extract_strided_slice %1047 {offsets = [0, 16], sizes = [8, 16], strides = [1, 1]} : vector<8x48xf32> to vector<8x16xf32>
    %1060 = vector.extract_strided_slice %1050 {offsets = [0, 16], sizes = [8, 16], strides = [1, 1]} : vector<8x48xf32> to vector<8x16xf32>
    %1061 = arith.addf %1059, %1060 : vector<8x16xf32>
    %1062 = arith.negf %1061 : vector<8x16xf32>
    %1063 = math.exp %1062 : vector<8x16xf32>
    %cst_395 = arith.constant 1.000000e+00 : f32
    %1064 = vector.broadcast %cst_395 : f32 to vector<8x16xf32>
    %1065 = arith.addf %1064, %1063 : vector<8x16xf32>
    %1066 = arith.divf %1064, %1065 : vector<8x16xf32>
    %1067 = vector.extract_strided_slice %1047 {offsets = [0, 32], sizes = [8, 16], strides = [1, 1]} : vector<8x48xf32> to vector<8x16xf32>
    %1068 = vector.extract_strided_slice %1050 {offsets = [0, 32], sizes = [8, 16], strides = [1, 1]} : vector<8x48xf32> to vector<8x16xf32>
    %1069 = arith.mulf %1058, %1068 : vector<8x16xf32>
    %1070 = arith.addf %1067, %1069 : vector<8x16xf32>
    %1071 = math.tanh %1070 : vector<8x16xf32>
    %cst_396 = arith.constant 1.000000e+00 : f32
    %1072 = vector.broadcast %cst_396 : f32 to vector<8x16xf32>
    %1073 = arith.subf %1072, %1066 : vector<8x16xf32>
    %1074 = arith.mulf %1073, %1071 : vector<8x16xf32>
    %1075 = arith.mulf %1066, %969 : vector<8x16xf32>
    %1076 = arith.addf %1074, %1075 : vector<8x16xf32>
    %cst_397 = arith.constant 1.000000e+00 : f32
    %1077 = vector.broadcast %cst_397 : f32 to vector<8x1xf32>
    %1078 = arith.subf %1077, %968 : vector<8x1xf32>
    %1079 = vector.broadcast %1078 : vector<8x1xf32> to vector<8x16xf32>
    %1080 = arith.mulf %969, %1079 : vector<8x16xf32>
    %1081 = vector.broadcast %968 : vector<8x1xf32> to vector<8x16xf32>
    %1082 = arith.mulf %1076, %1081 : vector<8x16xf32>
    %1083 = arith.addf %1080, %1082 : vector<8x16xf32>
    %c0_398 = arith.constant 0 : index
    %c0_399 = arith.constant 0 : index
    %1084 = vector.load %arg16[%c0_398, %c0_399] : memref<8x16xf32, #tpu.memory_space<vmem>>, vector<8x16xf32>
    tpu.vector_store %arg16[%c0_398, %c0_399], %1083 {strides = array<i32>} : memref<8x16xf32, #tpu.memory_space<vmem>>, vector<8x16xf32>,
    %cst_400 = arith.constant dense<0.000000e+00> : vector<4x16xf32>
    %1085 = tpu.matmul %965, %1083, %cst_400 {dimension_numbers = #tpu.dot_dimension_numbers<[1], [0], [0], [1], [0, 0, 1, 1], [], []>} : vector<4x8xf32>, vector<8x16xf32>, vector<4x16xf32> -> vector<4x16xf32>
    %1086 = arith.index_cast %c7_i32 : i32 to index
    %c0_401 = arith.constant 0 : index
    %c0_402 = arith.constant 0 : index
    %1087 = vector.load %arg14[%1086, %c0_401, %c0_402] : memref<8x4x16xf32, #tpu.memory_space<vmem>>, vector<1x4x16xf32>
    %1088 = vector.shape_cast %1087 : vector<1x4x16xf32> to vector<4x16xf32>
    %1089 = vector.shape_cast %1085 : vector<4x16xf32> to vector<1x4x16xf32>
    tpu.vector_store %arg14[%1086, %c0_401, %c0_402], %1089 {strides = array<i32>} : memref<8x4x16xf32, #tpu.memory_space<vmem>>, vector<1x4x16xf32>,
    %c8_i32 = arith.constant 8 : i32
    return
  }
}

module attributes {stable_mosaic.version = 11 : i64} {
  func.func @head_kernel(%arg0: memref<32x16xf32, #tpu.memory_space<vmem>>, %arg1: memref<16x48xf32, #tpu.memory_space<vmem>>, %arg2: memref<1x48xf32, #tpu.memory_space<vmem>>, %arg3: memref<1x48xf32, #tpu.memory_space<vmem>>, %arg4: memref<16x32xf32, #tpu.memory_space<vmem>>, %arg5: memref<1x32xf32, #tpu.memory_space<vmem>>, %arg6: memref<32x8xf32, #tpu.memory_space<vmem>>, %arg7: memref<1x8xf32, #tpu.memory_space<vmem>>, %arg8: memref<32x8xf32, #tpu.memory_space<vmem>>) attributes {dimension_semantics = [], scalar_prefetch = 0 : i64, scratch_operands = 0 : i64, tpu.core_type = #tpu.core_type<tc>} {
    %c0 = arith.constant 0 : index
    %c0_0 = arith.constant 0 : index
    %0 = vector.load %arg0[%c0, %c0_0] : memref<32x16xf32, #tpu.memory_space<vmem>>, vector<32x16xf32>
    %c0_1 = arith.constant 0 : index
    %c0_2 = arith.constant 0 : index
    %1 = vector.load %arg1[%c0_1, %c0_2] : memref<16x48xf32, #tpu.memory_space<vmem>>, vector<16x48xf32>
    %cst = arith.constant dense<0.000000e+00> : vector<32x48xf32>
    %2 = tpu.matmul %0, %1, %cst {dimension_numbers = #tpu.dot_dimension_numbers<[1], [0], [0], [1], [0, 0, 1, 1], [], []>} : vector<32x16xf32>, vector<16x48xf32>, vector<32x48xf32> -> vector<32x48xf32>
    %c0_3 = arith.constant 0 : index
    %c0_4 = arith.constant 0 : index
    %3 = vector.load %arg2[%c0_3, %c0_4] : memref<1x48xf32, #tpu.memory_space<vmem>>, vector<1x48xf32>
    %4 = vector.broadcast %3 : vector<1x48xf32> to vector<32x48xf32>
    %5 = arith.addf %2, %4 : vector<32x48xf32>
    %c0_5 = arith.constant 0 : index
    %c0_6 = arith.constant 0 : index
    %6 = vector.load %arg3[%c0_5, %c0_6] : memref<1x48xf32, #tpu.memory_space<vmem>>, vector<1x48xf32>
    %7 = vector.extract_strided_slice %5 {offsets = [0, 0], sizes = [32, 16], strides = [1, 1]} : vector<32x48xf32> to vector<32x16xf32>
    %8 = vector.extract_strided_slice %6 {offsets = [0, 0], sizes = [1, 16], strides = [1, 1]} : vector<1x48xf32> to vector<1x16xf32>
    %9 = vector.broadcast %8 : vector<1x16xf32> to vector<32x16xf32>
    %10 = arith.addf %7, %9 : vector<32x16xf32>
    %11 = arith.negf %10 : vector<32x16xf32>
    %12 = math.exp %11 : vector<32x16xf32>
    %cst_7 = arith.constant 1.000000e+00 : f32
    %13 = vector.broadcast %cst_7 : f32 to vector<32x16xf32>
    %14 = arith.addf %13, %12 : vector<32x16xf32>
    %15 = arith.divf %13, %14 : vector<32x16xf32>
    %16 = vector.extract_strided_slice %5 {offsets = [0, 16], sizes = [32, 16], strides = [1, 1]} : vector<32x48xf32> to vector<32x16xf32>
    %17 = vector.extract_strided_slice %6 {offsets = [0, 16], sizes = [1, 16], strides = [1, 1]} : vector<1x48xf32> to vector<1x16xf32>
    %18 = vector.broadcast %17 : vector<1x16xf32> to vector<32x16xf32>
    %19 = arith.addf %16, %18 : vector<32x16xf32>
    %20 = arith.negf %19 : vector<32x16xf32>
    %21 = math.exp %20 : vector<32x16xf32>
    %cst_8 = arith.constant 1.000000e+00 : f32
    %22 = vector.broadcast %cst_8 : f32 to vector<32x16xf32>
    %23 = arith.addf %22, %21 : vector<32x16xf32>
    %24 = arith.divf %22, %23 : vector<32x16xf32>
    %25 = vector.extract_strided_slice %5 {offsets = [0, 32], sizes = [32, 16], strides = [1, 1]} : vector<32x48xf32> to vector<32x16xf32>
    %26 = vector.extract_strided_slice %6 {offsets = [0, 32], sizes = [1, 16], strides = [1, 1]} : vector<1x48xf32> to vector<1x16xf32>
    %27 = vector.broadcast %26 : vector<1x16xf32> to vector<32x16xf32>
    %28 = arith.mulf %15, %27 : vector<32x16xf32>
    %29 = arith.addf %25, %28 : vector<32x16xf32>
    %30 = math.tanh %29 : vector<32x16xf32>
    %cst_9 = arith.constant 1.000000e+00 : f32
    %31 = vector.broadcast %cst_9 : f32 to vector<32x16xf32>
    %32 = arith.subf %31, %24 : vector<32x16xf32>
    %33 = arith.mulf %32, %30 : vector<32x16xf32>
    %c0_10 = arith.constant 0 : index
    %c0_11 = arith.constant 0 : index
    %34 = vector.load %arg4[%c0_10, %c0_11] : memref<16x32xf32, #tpu.memory_space<vmem>>, vector<16x32xf32>
    %cst_12 = arith.constant dense<0.000000e+00> : vector<32x32xf32>
    %35 = tpu.matmul %33, %34, %cst_12 {dimension_numbers = #tpu.dot_dimension_numbers<[1], [0], [0], [1], [0, 0, 1, 1], [], []>} : vector<32x16xf32>, vector<16x32xf32>, vector<32x32xf32> -> vector<32x32xf32>
    %c0_13 = arith.constant 0 : index
    %c0_14 = arith.constant 0 : index
    %36 = vector.load %arg5[%c0_13, %c0_14] : memref<1x32xf32, #tpu.memory_space<vmem>>, vector<1x32xf32>
    %37 = vector.broadcast %36 : vector<1x32xf32> to vector<32x32xf32>
    %38 = arith.addf %35, %37 : vector<32x32xf32>
    %cst_15 = arith.constant 0.000000e+00 : f32
    %39 = vector.broadcast %cst_15 : f32 to vector<32x32xf32>
    %40 = arith.maximumf %38, %39 : vector<32x32xf32>
    %c0_16 = arith.constant 0 : index
    %c0_17 = arith.constant 0 : index
    %41 = vector.load %arg6[%c0_16, %c0_17] : memref<32x8xf32, #tpu.memory_space<vmem>>, vector<32x8xf32>
    %cst_18 = arith.constant dense<0.000000e+00> : vector<32x8xf32>
    %42 = tpu.matmul %40, %41, %cst_18 {dimension_numbers = #tpu.dot_dimension_numbers<[1], [0], [0], [1], [0, 0, 1, 1], [], []>} : vector<32x32xf32>, vector<32x8xf32>, vector<32x8xf32> -> vector<32x8xf32>
    %c0_19 = arith.constant 0 : index
    %c0_20 = arith.constant 0 : index
    %43 = vector.load %arg7[%c0_19, %c0_20] : memref<1x8xf32, #tpu.memory_space<vmem>>, vector<1x8xf32>
    %44 = vector.broadcast %43 : vector<1x8xf32> to vector<32x8xf32>
    %45 = arith.addf %42, %44 : vector<32x8xf32>
    %cst_21 = arith.constant dense<0xFF800000> : vector<32xf32>
    %46 = vector.multi_reduction <maximumf>, %45, %cst_21 [1] : vector<32x8xf32> to vector<32xf32>
    %47 = vector.shape_cast %46 : vector<32xf32> to vector<32x1xf32>
    %48 = vector.broadcast %47 : vector<32x1xf32> to vector<32x8xf32>
    %49 = arith.subf %45, %48 : vector<32x8xf32>
    %50 = math.exp %49 : vector<32x8xf32>
    %cst_22 = arith.constant dense<0.000000e+00> : vector<32xf32>
    %51 = vector.multi_reduction <add>, %50, %cst_22 [1] : vector<32x8xf32> to vector<32xf32>
    %52 = vector.shape_cast %51 : vector<32xf32> to vector<32x1xf32>
    %53 = math.log %52 : vector<32x1xf32>
    %54 = arith.addf %53, %47 : vector<32x1xf32>
    %55 = vector.broadcast %54 : vector<32x1xf32> to vector<32x8xf32>
    %56 = arith.subf %45, %55 : vector<32x8xf32>
    %c0_23 = arith.constant 0 : index
    %c0_24 = arith.constant 0 : index
    %57 = vector.load %arg8[%c0_23, %c0_24] : memref<32x8xf32, #tpu.memory_space<vmem>>, vector<32x8xf32>
    tpu.vector_store %arg8[%c0_23, %c0_24], %56 {strides = array<i32>} : memref<32x8xf32, #tpu.memory_space<vmem>>, vector<32x8xf32>,
    return
  }
}

</mosaic_0001>

<bundles_post_ra>
// kernel: rnn_model_forward.3
= control target key start
LH: loop header
LB: loop body
LE: loop exit
PB: predicated region body
PF: predicated region fallthrough
CT: control target
= control target key end

     0   :  { %vm40_vm0 = vcmask 130048   ;;  %s501_s13 = smov 96   ;;  %s664_s0 = inlined_call_operand.vmem [shape: f32[32,16], index: 0, kind: input, shape index: {}]   ;;  %s665_s1 = inlined_call_operand.vmem [shape: f32[16,48], index: 1, kind: input, shape index: {}]   ;;  %s666_s2 = inlined_call_operand.vmem [shape: f32[1,48], index: 2, kind: input, shape index: {}]   ;;  %s667_s3 = inlined_call_operand.vmem [shape: f32[1,48], index: 3, kind: input, shape index: {}]   ;;  %s668_s4 = inlined_call_operand.vmem [shape: f32[16,32], index: 4, kind: input, shape index: {}]   ;;  %s669_s5 = inlined_call_operand.vmem [shape: f32[1,32], index: 5, kind: input, shape index: {}]   ;;  %s670_s6 = inlined_call_operand.vmem [shape: f32[32,8], index: 6, kind: input, shape index: {}]   ;;  %s671_s7 = inlined_call_operand.vmem [shape: f32[1,8], index: 7, kind: input, shape index: {}]   ;;  %s672_s8 = inlined_call_operand.hbm [shape: f32[32,8], index: 8, kind: output, shape index: {}]  }
   0x1   :  { %v35_v0 = vld [vmem:[%s665_s1 + $0x8] sm:$0xff]  ;;  %v34_v1 = vld [vmem:[%s665_s1] sm:$0xff] }
   0x2   :  { %67 = vmatpush.msra.mxu0 %v35_v0  ;;  %v30_v2 = vld [vmem:[%s664_s0] sm:$0xff] }
   0x3   :  { %v431_v3 = vld [vmem:[%s667_s3] ss:$0 sm:$0xff] }
   0x4   :  { %68 = vmatpush.msra.mxu0 %v34_v1  ;;  %166 = vrot.lane.b32.xlu0 %v431_v3, %s501_s13 }
   0x5   :  { %405 = vmatmul.msk.f32.vlgmr.msra.gmra.mxu0 %vm40_vm0, %v30_v2 }
   0x6   :  { %13 = vsyncpa [#allocation3], 0  ;;  %v31_v4 = vld [vmem:[%s664_s0 + $0x8] sm:$0xff]  ;;  %v32_v5 = vld [vmem:[%s664_s0 + $0x10] sm:$0xff]  ;;  %s393_s14 = sshll.u32 %s672_s8, 4  ;;  %s505_s15 = smov 128   ;;  %s394_s14 = int_to_ptr.hbm [resolvable:$true] %s393_s14 }
   0x7   :  { %v33_v6 = vld [vmem:[%s664_s0 + $0x18] sm:$0xff]  ;;  %v432_v7 = vld [vmem:[%s666_s2] ss:$0 sm:$0xff]  ;;  %s502_s0 = smov 32   ;;  %s503_s2 = smov 112  }
   0x8   :  { %s506_s1 = smov 8  }
   0xd   :  { %406 = vmatmul.msk.f32.gmra.mxu0 %vm40_vm0, %v31_v4 }
  0x15   :  { %407 = vmatmul.msk.f32.gmra.mxu0 %vm40_vm0, %v32_v5 }
  0x1d   :  { %408 = vmatmul.msk.f32.gmra.mxu0 %vm40_vm0, %v33_v6 }
  0x76   :  { %v167_v38 = vpop.permute.xlu0 %166 }
  0x82   :  { %v70_v8 = vpop.f32.mrf.mxu0 }
  0x83   :  { %v580_v9 = vadd.f32 %v432_v7, %v70_v8 }
  0x85   :  { %v86_v10 = vadd.f32 %v431_v3, %v580_v9 }
  0x87   :  { %v409_v11 = vmul.f32 -1.442695, %v86_v10 }
  0x89   :  { %435 = vpow2.f32 %v409_v11 }
  0x8a   :  { %v73_v12 = vpop.f32.mrf.mxu0 }
  0x8b   :  { %v583_v13 = vadd.f32 %v432_v7, %v73_v12 }
  0x8d   :  { %v87_v14 = vadd.f32 %v431_v3, %v583_v13 }
  0x8f   :  { %v436_v15 = vpop.eup %435  ;;  %v410_v16 = vmul.f32 -1.442695, %v87_v14 }
  0x90   :  { %v102_v17 = vadd.f32 1.0, %v436_v15 }
  0x91   :  { %437 = vpow2.f32 %v410_v16 }
  0x92   :  { %439 = vrcp.f32 %v102_v17  ;;  %v76_v18 = vpop.f32.mrf.mxu0  ;;  %v117_v29 = vand.u32 2147483648, %v102_v17  ;;  %v115_v32 = vand.u32 2147483647, %v102_v17  ;;  %vm111_vm2 = vweird.f32 %v102_v17 }
  0x93   :  { %v586_v19 = vadd.f32 %v432_v7, %v76_v18 }
  0x94   :  { %v118_v39 = vor.u32 1.1754944e-38, %v117_v29  ;;  %vm116_vm4 = vcmp.eq.f32.partialorder %v115_v32, 8.507059e+37  ;;  %v221_v32 = vld [vmem:[%s668_s4] sm:$0xff] }
  0x95   :  { %v88_v20 = vadd.f32 %v431_v3, %v586_v19 }
  0x97   :  { %v438_v21 = vpop.eup %437  ;;  %v411_v22 = vmul.f32 -1.442695, %v88_v20 }
  0x98   :  { %v440_v23 = vpop.eup %439  ;;  %v103_v24 = vadd.f32 1.0, %v438_v21 }
  0x99   :  { %441 = vpow2.f32 %v411_v22  ;;  %v107_v25 = vmul.f32 %v440_v23, %v102_v17  ;;  %vm112_vm1 = vweird.f32 %v440_v23 }
  0x9a   :  { %443 = vrcp.f32 %v103_v24  ;;  %v79_v26 = vpop.f32.mrf.mxu0  ;;  %vm113_vm3 = vmor %vm111_vm2, %vm112_vm1  ;;  %v132_v45 = vand.u32 2147483648, %v103_v24  ;;  %v130_v47 = vand.u32 2147483647, %v103_v24  ;;  %vm126_vm6 = vweird.f32 %v103_v24 }
  0x9b   :  { %v589_v27 = vadd.f32 %v432_v7, %v79_v26  ;;  %v108_v28 = vsub.f32 1.0, %v107_v25  ;;  %vm330_vm2 = vcmask 64512  }
  0x9c   :  { %v133_v52 = vor.u32 1.1754944e-38, %v132_v45  ;;  %vm131_vm8 = vcmp.eq.f32.partialorder %v130_v47, 8.507059e+37  ;;  %v281_v45 = vld [vmem:[%s670_s6 + $0x8] sm:$0xff]  ;;  %v433_v47 = vld [vmem:[%s669_s5] ss:$0 sm:$0xff]  ;;  %s504_s5 = smov [#allocation2]  }
  0x9d   :  { %v89_v30 = vadd.f32 %v431_v3, %v589_v27  ;;  %v109_v31 = vmul.f32 %v440_v23, %v108_v28 }
  0x9f   :  { %v442_v33 = vpop.eup %441  ;;  %v412_v34 = vmul.f32 -1.442695, %v89_v30  ;;  %v110_v35 = vadd.f32 %v440_v23, %v109_v31 }
  0xa0   :  { %v444_v36 = vpop.eup %443  ;;  %v104_v37 = vadd.f32 1.0, %v442_v33 }
  0xa1   :  { %445 = vpow2.f32 %v412_v34  ;;  %v114_v40 = vsel %vm113_vm3, %v440_v23, %v110_v35  ;;  %v122_v41 = vmul.f32 %v444_v36, %v103_v24  ;;  %vm127_vm5 = vweird.f32 %v444_v36 }
  0xa2   :  { %447 = vrcp.f32 %v104_v37  ;;  %v592_v42 = vsel %vm116_vm4, %v118_v39, %v114_v40  ;;  %vm128_vm7 = vmor %vm126_vm6, %vm127_vm5  ;;  %vm141_vm9 = vweird.f32 %v104_v37  ;;  %v147_v56 = vand.u32 2147483648, %v104_v37  ;;  %v283_v40 = vld [vmem:[%s670_s6 + $0x18] sm:$0xff] }
  0xa3   :  { %v169_v43 = vmul.f32 %v167_v38, %v592_v42  ;;  %v123_v44 = vsub.f32 1.0, %v122_v41  ;;  %v145_v59 = vand.u32 2147483647, %v104_v37  ;;  %313 = vmatpush.msra.mxu2 %v283_v40  ;;  %421 = vmatpush.msra.mxu3 %v283_v40 }
  0xa4   :  { %v148_v61 = vor.u32 1.1754944e-38, %v147_v56 }
  0xa5   :  { %177 = vrot.lane.b32.xlu0 %v169_v43, %s502_s0  ;;  %v124_v46 = vmul.f32 %v444_v36, %v123_v44  ;;  %vm146_vm12 = vcmp.eq.f32.partialorder %v145_v59, 8.507059e+37  ;;  %v282_v44 = vld [vmem:[%s670_s6 + $0x10] sm:$0xff] }
  0xa6   :  { %314 = vmatpush.msra.mxu2 %v282_v44  ;;  %422 = vmatpush.msra.mxu3 %v282_v44 }
  0xa7   :  { %v446_v48 = vpop.eup %445  ;;  %v125_v49 = vadd.f32 %v444_v36, %v124_v46  ;;  %v280_v46 = vld [vmem:[%s670_s6] sm:$0xff] }
  0xa8   :  { %v448_v50 = vpop.eup %447  ;;  %v105_v51 = vadd.f32 1.0, %v446_v48  ;;  %315 = vmatpush.msra.mxu2 %v281_v45  ;;  %423 = vmatpush.msra.mxu3 %v281_v45 }
  0xa9   :  { %v129_v53 = vsel %vm128_vm7, %v444_v36, %v125_v49  ;;  %v137_v54 = vmul.f32 %v448_v50, %v104_v37  ;;  %vm142_vm10 = vweird.f32 %v448_v50 }
  0xaa   :  { %449 = vrcp.f32 %v105_v51  ;;  %v596_v55 = vsel %vm131_vm8, %v133_v52, %v129_v53  ;;  %vm143_vm11 = vmor %vm141_vm9, %vm142_vm10  ;;  %vm156_vm13 = vweird.f32 %v105_v51  ;;  %v162_v3 = vand.u32 2147483648, %v105_v51  ;;  %316 = vmatpush.msra.mxu2 %v280_v46  ;;  %424 = vmatpush.msra.mxu3 %v280_v46 }
  0xab   :  { %v170_v57 = vmul.f32 %v167_v38, %v596_v55  ;;  %v138_v58 = vsub.f32 1.0, %v137_v54  ;;  %v160_v6 = vand.u32 2147483647, %v105_v51  ;;  %v198_v33 = vsub.f32 1.0, %v596_v55 }
  0xac   :  { %v163_v8 = vor.u32 1.1754944e-38, %v162_v3 }
  0xad   :  { %179 = vrot.lane.b32.xlu1 %v170_v57, %s502_s0  ;;  %v139_v60 = vmul.f32 %v448_v50, %v138_v58  ;;  %vm161_vm1 = vcmp.eq.f32.partialorder %v160_v6, 8.507059e+37 }
  0xaf   :  { %v140_v62 = vadd.f32 %v448_v50, %v139_v60  ;;  %v434_v60 = vld [vmem:[%s671_s7] ss:$0 sm:$0xff]  ;;  %s391_s7 = sshll.u32 %s504_s5, 4  ;;  %s392_s7 = int_to_ptr.vmem [resolvable:$true] %s391_s7 }
  0xb0   :  { %v450_v63 = vpop.eup %449 }
  0xb1   :  { %v144_v0 = vsel %vm143_vm11, %v448_v50, %v140_v62  ;;  %v152_v1 = vmul.f32 %v450_v63, %v105_v51  ;;  %vm157_vm14 = vweird.f32 %v450_v63 }
  0xb2   :  { %v149_v2 = vsel %vm146_vm12, %v148_v61, %v144_v0  ;;  %vm158_vm15 = vmor %vm156_vm13, %vm157_vm14 }
  0xb3   :  { %v171_v4 = vmul.f32 %v167_v38, %v149_v2  ;;  %v153_v5 = vsub.f32 1.0, %v152_v1  ;;  %v199_v36 = vsub.f32 1.0, %v149_v2 }
  0xb5   :  { %181 = vrot.lane.b32.xlu1 %v171_v4, %s502_s0  ;;  %v154_v7 = vmul.f32 %v450_v63, %v153_v5 }
  0xb7   :  { %v155_v10 = vadd.f32 %v450_v63, %v154_v7 }
  0xb9   :  { %v159_v11 = vsel %vm158_vm15, %v450_v63, %v155_v10 }
  0xba   :  { %v164_v12 = vsel %vm161_vm1, %v163_v8, %v159_v11 }
  0xbb   :  { %v172_v14 = vmul.f32 %v167_v38, %v164_v12  ;;  %v200_v29 = vsub.f32 1.0, %v164_v12 }
  0xbd   :  { %183 = vrot.lane.b32.xlu2 %v172_v14, %s502_s0 }
 0x117   :  { %v178_v15 = vpop.permute.xlu0 %177  ;;  %v184_v17 = vpop.permute.xlu2 %183 }
 0x118   :  { %v189_v16 = vadd.f32 %v178_v15, %v580_v9  ;;  %v192_v18 = vadd.f32 %v184_v17, %v589_v27 }
 0x11a   :  { %451 = vtanh.f32 %v189_v16 }
 0x11f   :  { %v180_v20 = vpop.permute.xlu1 %179 }
 0x120   :  { %v190_v21 = vadd.f32 %v180_v20, %v583_v13  ;;  %v452_v22 = vpop.eup %451  ;;  %v197_v13 = vsub.f32 1.0, %v592_v42 }
 0x121   :  { %205 = vrot.lane.b32.xlu2 %v452_v22, %s503_s2 }
 0x122   :  { %453 = vtanh.f32 %v190_v21 }
 0x123   :  { %455 = vtanh.f32 %v192_v18 }
 0x127   :  { %v182_v23 = vpop.permute.xlu1 %181 }
 0x128   :  { %v454_v24 = vpop.eup %453  ;;  %v191_v25 = vadd.f32 %v182_v23, %v586_v19  ;;  %v222_v19 = vld [vmem:[%s668_s4 + $0x8] sm:$0xff] }
 0x129   :  { %v456_v26 = vpop.eup %455  ;;  %207 = vrot.lane.b32.xlu0 %v454_v24, %s503_s2  ;;  %261 = vmatpush.msra.mxu1 %v222_v19 }
 0x12a   :  { %457 = vtanh.f32 %v191_v25  ;;  %211 = vrot.lane.b32.xlu2 %v456_v26, %s503_s2 }
 0x12b   :  { %262 = vmatpush.msra.mxu1 %v221_v32 }
 0x130   :  { %v458_v9 = vpop.eup %457 }
 0x131   :  { %209 = vrot.lane.b32.xlu1 %v458_v9, %s503_s2 }
 0x17b   :  { %v206_v27 = vpop.permute.xlu2 %205 }
 0x17c   :  { %v217_v28 = vmul.f32 %v206_v27, %v197_v13 }
 0x17e   :  { %231 = vrot.lane.b32.xlu0 %v217_v28, %s503_s2 }
 0x184   :  { %v212_v30 = vpop.permute.xlu2 %211 }
 0x185   :  { %v220_v31 = vmul.f32 %v212_v30, %v200_v29 }
 0x187   :  { %237 = vrot.lane.b32.xlu0 %v220_v31, %s503_s2 }
 0x19b   :  { %v208_v34 = vpop.permute.xlu0 %207 }
 0x19c   :  { %v218_v35 = vmul.f32 %v208_v34, %v198_v33 }
 0x19e   :  { %233 = vrot.lane.b32.xlu1 %v218_v35, %s503_s2 }
 0x1a3   :  { %v210_v37 = vpop.permute.xlu1 %209 }
 0x1a4   :  { %v219_v38 = vmul.f32 %v210_v37, %v199_v36 }
 0x1a6   :  { %235 = vrot.lane.b32.xlu2 %v219_v38, %s503_s2 }
 0x1f0   :  { %v232_v39 = vpop.permute.xlu0 %231 }
 0x1f1   :  { %413 = vmatmul.msk.f32.vlgmr.msra.gmra.mxu1 %vm40_vm0, %v232_v39 }
 0x1f9   :  { %v238_v43 = vpop.permute.xlu0 %237 }
 0x200   :  { %v236_v42 = vpop.permute.xlu2 %235 }
 0x210   :  { %v234_v41 = vpop.permute.xlu1 %233 }
 0x211   :  { %414 = vmatmul.msk.f32.gmra.mxu1 %vm40_vm0, %v234_v41 }
 0x219   :  { %415 = vmatmul.msk.f32.gmra.mxu1 %vm40_vm0, %v236_v42 }
 0x221   :  { %416 = vmatmul.msk.f32.gmra.mxu1 %vm40_vm0, %v238_v43  ;;  %vm288_vm0 = vcmask 261120  }
 0x26e   :  { %v264_v48 = vpop.f32.mrf.mxu1 }
 0x26f   :  { %v265_v49 = vadd.f32 %v433_v47, %v264_v48 }
 0x271   :  { %v276_v50 = vmax.f32 %v265_v49, 0.0 }
 0x273   :  { %417 = vmatmul.msk.f32.vlgmr.msra.gmra.mxu2 %vm288_vm0, %v276_v50 }
 0x28e   :  { %v267_v51 = vpop.f32.mrf.mxu1 }
 0x28f   :  { %v268_v52 = vadd.f32 %v433_v47, %v267_v51 }
 0x291   :  { %v277_v53 = vmax.f32 %v268_v52, 0.0 }
 0x293   :  { %418 = vmatmul.msk.f32.vlgmr.msra.gmra.mxu3 %vm288_vm0, %v277_v53 }
 0x296   :  { %v270_v54 = vpop.f32.mrf.mxu1 }
 0x297   :  { %v271_v55 = vadd.f32 %v433_v47, %v270_v54 }
 0x299   :  { %v278_v56 = vmax.f32 %v271_v55, 0.0 }
 0x29b   :  { %419 = vmatmul.msk.f32.gmra.mxu3 %vm288_vm0, %v278_v56 }
 0x29e   :  { %v273_v57 = vpop.f32.mrf.mxu1 }
 0x29f   :  { %v274_v58 = vadd.f32 %v433_v47, %v273_v57 }
 0x2a1   :  { %v279_v59 = vmax.f32 %v274_v58, 0.0 }
 0x2a3   :  { %420 = vmatmul.msk.f32.gmra.mxu3 %vm288_vm0, %v279_v59 }
 0x2f6   :  { %v318_v61 = vpop.f32.mrf.mxu2 }
 0x2f7   :  { %v319_v62 = vadd.f32 %v434_v60, %v318_v61 }
 0x2f9   :  { %v331_v63 = vsel %vm330_vm2, %v319_v62, -inf }
 0x2fa   :  { %332 = vmax.xlane.f32.xlu1 %v331_v63 }
 0x316   :  { %v321_v0 = vpop.f32.mrf.mxu3 }
 0x317   :  { %v322_v1 = vadd.f32 %v434_v60, %v321_v0 }
 0x319   :  { %v334_v2 = vsel %vm330_vm2, %v322_v1, -inf }
 0x31a   :  { %335 = vmax.xlane.f32.xlu2 %v334_v2 }
 0x31e   :  { %v324_v3 = vpop.f32.mrf.mxu3 }
 0x31f   :  { %v325_v4 = vadd.f32 %v434_v60, %v324_v3 }
 0x321   :  { %v337_v5 = vsel %vm330_vm2, %v325_v4, -inf }
 0x322   :  { %338 = vmax.xlane.f32.xlu0 %v337_v5 }
 0x326   :  { %v327_v6 = vpop.f32.mrf.mxu3 }
 0x327   :  { %v647_v7 = vadd.f32 %v434_v60, %v327_v6 }
 0x329   :  { %v340_v8 = vsel %vm330_vm2, %v647_v7, -inf }
 0x32a   :  { %341 = vmax.xlane.f32.xlu2 %v340_v8 }
 0x36d   :  { %v333_v10 = vpop.xlane.xlu1 %332 }
 0x36e   :  { %v343_v11 = vsub.f32 %v319_v62, %v333_v10 }
 0x370   :  { %v347_v12 = vmul.f32 1.442695, %v343_v11 }
 0x372   :  { %459 = vpow2.f32 %v347_v12 }
 0x378   :  { %v460_v14 = vpop.eup %459 }
 0x379   :  { %v355_v15 = vsel %vm330_vm2, %v460_v14, 0.0 }
 0x37a   :  { %356 = vadd.xlane.f32.xlu1 %v355_v15 }
 0x38d   :  { %v336_v16 = vpop.xlane.xlu2 %335 }
 0x38e   :  { %v344_v17 = vsub.f32 %v322_v1, %v336_v16 }
 0x390   :  { %v349_v18 = vmul.f32 1.442695, %v344_v17 }
 0x392   :  { %461 = vpow2.f32 %v349_v18 }
 0x395   :  { %v339_v20 = vpop.xlane.xlu0 %338 }
 0x396   :  { %v345_v21 = vsub.f32 %v325_v4, %v339_v20 }
 0x398   :  { %v462_v22 = vpop.eup %461  ;;  %v351_v23 = vmul.f32 1.442695, %v345_v21 }
 0x399   :  { %v358_v24 = vsel %vm330_vm2, %v462_v22, 0.0 }
 0x39a   :  { %463 = vpow2.f32 %v351_v23  ;;  %359 = vadd.xlane.f32.xlu2 %v358_v24 }
 0x39d   :  { %v342_v25 = vpop.xlane.xlu2 %341 }
 0x39e   :  { %v346_v26 = vsub.f32 %v647_v7, %v342_v25 }
 0x3a0   :  { %v464_v9 = vpop.eup %463  ;;  %v353_v13 = vmul.f32 1.442695, %v346_v26 }
 0x3a1   :  { %v361_v27 = vsel %vm330_vm2, %v464_v9, 0.0 }
 0x3a2   :  { %465 = vpow2.f32 %v353_v13  ;;  %362 = vadd.xlane.f32.xlu0 %v361_v27 }
 0x3a8   :  { %v466_v28 = vpop.eup %465 }
 0x3a9   :  { %v364_v29 = vsel %vm330_vm2, %v466_v28, 0.0 }
 0x3aa   :  { %365 = vadd.xlane.f32.xlu1 %v364_v29 }
 0x3ed   :  { %v357_v30 = vpop.xlane.xlu1 %356 }
 0x3ee   :  { %467 = vlog2.f32 %v357_v30 }
 0x3f4   :  { %v468_v31 = vpop.eup %467 }
 0x3f5   :  { %v368_v19 = vmul.f32 0.6931472, %v468_v31 }
 0x3f7   :  { %v375_v32 = vadd.f32 %v368_v19, %v333_v10 }
 0x3f9   :  { %v379_v33 = vsub.f32 %v319_v62, %v375_v32 }
 0x3fb   :  { %383 = vst.msk [vmem:[#allocation2] sm:$0xff] %vm330_vm2, %v379_v33 }
 0x40d   :  { %v360_v34 = vpop.xlane.xlu2 %359 }
 0x40e   :  { %469 = vlog2.f32 %v360_v34 }
 0x414   :  { %v470_v35 = vpop.eup %469 }
 0x415   :  { %v370_v36 = vmul.f32 0.6931472, %v470_v35  ;;  %v363_v37 = vpop.xlane.xlu0 %362 }
 0x416   :  { %471 = vlog2.f32 %v363_v37 }
 0x417   :  { %v376_v38 = vadd.f32 %v370_v36, %v336_v16 }
 0x419   :  { %v380_v39 = vsub.f32 %v322_v1, %v376_v38 }
 0x41b   :  { %384 = vst.msk [vmem:[#allocation2 + $0x8] sm:$0xff] %vm330_vm2, %v380_v39 }
 0x41c   :  { %v472_v40 = vpop.eup %471 }
 0x41d   :  { %v372_v41 = vmul.f32 0.6931472, %v472_v40  ;;  %v366_v42 = vpop.xlane.xlu1 %365 }
 0x41e   :  { %473 = vlog2.f32 %v366_v42 }
 0x41f   :  { %v377_v43 = vadd.f32 %v372_v41, %v339_v20 }
 0x421   :  { %v381_v44 = vsub.f32 %v325_v4, %v377_v43 }
 0x423   :  { %385 = vst.msk [vmem:[#allocation2 + $0x10] sm:$0xff] %vm330_vm2, %v381_v44 }
 0x424   :  { %v474_v45 = vpop.eup %473 }
 0x425   :  { %v374_v46 = vmul.f32 0.6931472, %v474_v45 }
 0x427   :  { %v378_v47 = vadd.f32 %v374_v46, %v342_v25 }
 0x429   :  { %v382_v48 = vsub.f32 %v647_v7, %v378_v47 }
 0x42b   :  { %386 = vst.msk [vmem:[#allocation2 + $0x18] sm:$0xff] %vm330_vm2, %v382_v48 }
 0x42c   :  { %399 = dma.vmem_to_hbm [thread:$0]  %s392_s7, 512, %s394_s14, [#allocation3], %s505_s15, %s505_s15, %s506_s1  }
 0x42d   :  { %499 = dma.done.wait [#allocation3], 512  }
 0x42e   :  { %500 = vsyncadd [#allocation3], 4294966784 }
 0x42f   :  { %404 = vsyncpa [#allocation3], 1 }

// kernel: rnn_model_forward.2
= control target key start
LH: loop header
LB: loop body
LE: loop exit
PB: predicated region body
PF: predicated region fallthrough
CT: control target
= control target key end

     0   :  { %vm69_vm0 = vcmask 11264   ;;  %v67_v2 = vlaneseq  ;;  %vm539_vm2 = vcmask 31744   ;;  %v4887_v10 = vmov -inf   ;;  %s4890_s19 = smov 96   ;;  %s4891_s26 = smov 32   ;;  %s6545_s1 = inlined_call_operand.vmem [shape: f32[8,4,2], index: 1, kind: input, shape index: {}]   ;;  %s6546_s5 = inlined_call_operand.vmem [shape: f32[16,48], index: 5, kind: input, shape index: {}]   ;;  %s6547_s7 = inlined_call_operand.vmem [shape: f32[1,48], index: 7, kind: input, shape index: {}]   ;;  %s6548_s3 = inlined_call_operand.vmem [shape: f32[16,48], index: 3, kind: input, shape index: {}]   ;;  %s6549_s0 = inlined_call_operand.vmem [shape: f32[8,4,16], index: 0, kind: input, shape index: {}]   ;;  %s6550_s4 = inlined_call_operand.vmem [shape: f32[16,48], index: 4, kind: input, shape index: {}]   ;;  %s6551_s8 = inlined_call_operand.vmem [shape: f32[16,48], index: 8, kind: input, shape index: {}]   ;;  %s6552_s9 = inlined_call_operand.vmem [shape: f32[16,48], index: 9, kind: input, shape index: {}]   ;;  %s6553_s13 = inlined_call_operand.vmem [shape: f32[16,16], index: 13, kind: input, shape index: {}]   ;;  %s6554_s10 = inlined_call_operand.vmem [shape: f32[16,48], index: 10, kind: input, shape index: {}]   ;;  %s6555_s2 = inlined_call_operand.vmem [shape: f32[8,8,1], index: 2, kind: input, shape index: {}]   ;;  %s6556_s6 = inlined_call_operand.vmem [shape: f32[1,48], index: 6, kind: input, shape index: {}]   ;;  %s6557_s11 = inlined_call_operand.vmem [shape: f32[1,48], index: 11, kind: input, shape index: {}]   ;;  %s6558_s12 = inlined_call_operand.vmem [shape: f32[1,48], index: 12, kind: input, shape index: {}]   ;;  %s6559_s14 = inlined_call_operand.vmem [shape: f32[8,4,16], index: 14, kind: output, shape index: {}]  }
   0x1   :  { %v59_v0 = vld [vmem:[%s6545_s1] sm:$0xf]  ;;  %v540_v11 = vsel %vm539_vm2, -1e+30, %v4887_v10  ;;  %vm56_vm9 = vcmask 130048   ;;  %v4888_v51 = vmov 0.0  }
   0x2   :  { %v70_v1 = vsel %vm69_vm0, %v59_v0, -inf  ;;  %v4973_v3 = vand.u32 127, %v67_v2  ;;  %v4977_v9 = vshrl.u32 %v67_v2, 7  ;;  %v541_v12 = vrot.slane %v540_v11, 4  ;;  %57 = vst.msk [vmem:[#allocation3] sm:$0xff] %vm56_vm9, %v4888_v51  ;;  %v4995_v55 = vld [vmem:[%s6546_s5 + $0x8] sm:$0xff] }
   0x3   :  { %71 = vmax.xlane.f32.xlu0 %v70_v1  ;;  %v5000_v56 = vld [vmem:[%s6546_s5] sm:$0xff]  ;;  %vm47_vm10 = vcmask 125952   ;;  %398 = vmatpush.msra.mxu3 %v4995_v55  ;;  %vm265_vm11 = vcmask 60416   ;;  %vm304_vm13 = vcmask 64512   ;;  %s4892_s27 = smov 16   ;;  %s4893_s28 = smov 112  }
   0x4   :  { %4671 = vset.pattern.permute.xlu1 %v4977_v9  ;;  %4672 = vset.pattern.permute.xlu2 %v4977_v9  ;;  %v542_v13 = vmax.f32 %v540_v11, %v541_v12  ;;  %58 = vst.msk [vmem:[#allocation4] sm:$0xf] %vm47_vm10, %v4888_v51  ;;  %v5028_v61 = vmul.u32 2, %v4977_v9  ;;  %v5063_v11 = vld [vmem:[%s6550_s4] sm:$0xff]  ;;  %v5068_v12 = vld [vmem:[%s6551_s8 + $0x8] sm:$0xff] }
   0x5   :  { %4673 = vset.pattern.permute.xlu0 %v4977_v9  ;;  %48 = vst.msk [vmem:[#allocation2] sm:$0xf] %vm47_vm10, %v4888_v51  ;;  %399 = vmatpush.msra.mxu3 %v5000_v56 }
   0x6   :  { %v543_v14 = vrot.slane %v542_v13, 2  ;;  %49 = vst.msk [vmem:[#allocation2 + $0x4] sm:$0xf] %vm47_vm10, %v4888_v51 }
   0x7   :  { %50 = vst.msk [vmem:[#allocation2 + $0x8] sm:$0xf] %vm47_vm10, %v4888_v51 }
   0x8   :  { %v544_v15 = vmax.f32 %v542_v13, %v543_v14  ;;  %51 = vst.msk [vmem:[#allocation2 + $0xc] sm:$0xf] %vm47_vm10, %v4888_v51  ;;  %v5075_v13 = vld [vmem:[%s6551_s8] sm:$0xff]  ;;  %v5080_v14 = vld [vmem:[%s6552_s9 + $0x8] sm:$0xff] }
   0x9   :  { %v4989_v53 = vld [vmem:[#allocation3] sm:$0xff]  ;;  %52 = vst.msk [vmem:[#allocation2 + $0x10] sm:$0xf] %vm47_vm10, %v4888_v51 }
   0xa   :  { %v545_v16 = vrot.slane %v544_v15, 1  ;;  %323 = vmatpush.msra.mxu0 %v4989_v53  ;;  %53 = vst.msk [vmem:[#allocation2 + $0x14] sm:$0xf] %vm47_vm10, %v4888_v51 }
   0xb   :  { %v5018_v57 = vld [vmem:[#allocation4] sm:$0xf]  ;;  %54 = vst.msk [vmem:[#allocation2 + $0x18] sm:$0xf] %vm47_vm10, %v4888_v51 }
   0xc   :  { %v546_v17 = vmax.f32 %v544_v15, %v545_v16  ;;  %4535 = vmatmul.msk.f32.vlgmr.msra.gmra.mxu3 %vm56_vm9, %v5018_v57  ;;  %55 = vst.msk [vmem:[#allocation2 + $0x1c] sm:$0xf] %vm47_vm10, %v4888_v51  ;;  %v5085_v15 = vld [vmem:[%s6552_s9] sm:$0xff] }
   0xd   :  { %v447_v16 = vld [vmem:[#allocation2 + $0x4] sm:$0xf] }
   0xe   :  { %v547_v18 = vsub.f32 -1e+30, %v546_v17 }
  0x10   :  { %v548_v19 = vmul.f32 1.442695, %v547_v18  ;;  %v446_v18 = vld [vmem:[#allocation2] sm:$0xf] }
  0x12   :  { %4705 = vpow2.f32 %v548_v19 }
  0x18   :  { %v4706_v20 = vpop.eup %4705 }
  0x19   :  { %v552_v22 = vmul.f32 0.0, %v4706_v20 }
  0x1b   :  { %v553_v23 = vsel %vm539_vm2, %v552_v22, 0.0 }
  0x1c   :  { %v554_v24 = vrot.slane %v553_v23, 4 }
  0x1e   :  { %v555_v27 = vadd.f32 %v554_v24, %v553_v23  ;;  %v5094_v23 = vld [vmem:[%s6545_s1 + $0x4] sm:$0xf] }
  0x1f   :  { %v73_v24 = vsel %vm69_vm0, %v5094_v23, -inf }
  0x20   :  { %v556_v29 = vrot.slane %v555_v27, 2 }
  0x22   :  { %v557_v30 = vadd.f32 %v556_v29, %v555_v27  ;;  %v5105_v29 = vld [vmem:[%s6553_s13 + $0x8] sm:$0xff] }
  0x23   :  { %468 = vmatpush.msrb.mxu0 %v5105_v29 }
  0x24   :  { %v558_v31 = vrot.slane %v557_v30, 1 }
  0x26   :  { %v559_v32 = vadd.f32 %v558_v31, %v557_v30  ;;  %v5110_v30 = vld [vmem:[%s6553_s13] sm:$0xff]  ;;  %v449_v31 = vld [vmem:[#allocation2 + $0xc] sm:$0xf] }
  0x27   :  { %469 = vmatpush.msrb.mxu0 %v5110_v30 }
  0x28   :  { %vm560_vm4 = vcmp.eq.f32.partialorder %v559_v32, 0.0 }
  0x29   :  { %v561_v33 = vsel %vm560_vm4, 1.0, %v559_v32  ;;  %vm712_vm4 = vcmask 1043456  }
  0x2a   :  { %4707 = vrcp.f32 %v561_v33  ;;  %v573_v36 = vand.u32 2147483648, %v561_v33  ;;  %vm567_vm5 = vweird.f32 %v561_v33  ;;  %v571_v38 = vand.u32 2147483647, %v561_v33 }
  0x2c   :  { %v574_v40 = vor.u32 1.1754944e-38, %v573_v36  ;;  %vm572_vm8 = vcmp.eq.f32.partialorder %v571_v38, 8.507059e+37  ;;  %v5124_v38 = vld [vmem:[%s6554_s10] sm:$0xff] }
  0x30   :  { %v4708_v34 = vpop.eup %4707 }
  0x31   :  { %v563_v35 = vmul.f32 %v4708_v34, %v561_v33  ;;  %vm568_vm6 = vweird.f32 %v4708_v34  ;;  %v5116_v33 = vld [vmem:[%s6554_s10 + $0x8] sm:$0xff] }
  0x32   :  { %vm569_vm7 = vmor %vm567_vm5, %vm568_vm6 }
  0x33   :  { %v564_v37 = vsub.f32 1.0, %v563_v35 }
  0x35   :  { %v565_v39 = vmul.f32 %v4708_v34, %v564_v37 }
  0x37   :  { %v566_v41 = vadd.f32 %v4708_v34, %v565_v39  ;;  %v450_v39 = vld [vmem:[#allocation2 + $0x10] sm:$0xf] }
  0x39   :  { %v570_v42 = vsel %vm569_vm7, %v4708_v34, %v566_v41 }
  0x3a   :  { %v575_v43 = vsel %vm572_vm8, %v574_v40, %v570_v42 }
  0x3b   :  { %v576_v44 = vmul.f32 %v575_v43, %v552_v22  ;;  %v448_v22 = vld [vmem:[#allocation2 + $0x8] sm:$0xf]  ;;  %v451_v43 = vld [vmem:[#allocation2 + $0x14] sm:$0xf] }
  0x3d   :  { %v577_v45 = vperm.slane %v576_v44, 0  ;;  %v584_v46 = vperm.slane %v576_v44, 1  ;;  %v598_v47 = vperm.slane %v576_v44, 3  ;;  %v591_v48 = vperm.slane %v576_v44, 2 }
  0x3e   :  { %v626_v49 = vperm.slane %v576_v44, 7  ;;  %v605_v50 = vperm.slane %v576_v44, 4  ;;  %v612_v52 = vperm.slane %v576_v44, 5  ;;  %v619_v54 = vperm.slane %v576_v44, 6 }
  0x3f   :  { %589 = vperm.xlu2 %4672, %v584_v46  }
  0x47   :  { %596 = vperm.xlu2 %4672, %v591_v48   ;;  %v452_v48 = vld [vmem:[#allocation2 + $0x18] sm:$0xf] }
  0x4f   :  { %610 = vperm.xlu2 %4672, %v605_v50  }
  0x57   :  { %617 = vperm.xlu2 %4672, %v612_v52  }
  0x5f   :  { %624 = vperm.xlu2 %4672, %v619_v54   ;;  %v453_v54 = vld [vmem:[#allocation2 + $0x1c] sm:$0xf] }
  0x76   :  { %v72_v4 = vpop.xlane.xlu0 %71 }
  0x77   :  { %vm94_vm1 = vcmp.eq.f32.partialorder %v59_v0, %v72_v4  ;;  %v5041_v4 = vld [vmem:[%s6548_s3 + $0x8] sm:$0xff] }
  0x78   :  { %v102_v5 = vsel %vm94_vm1, %v4973_v3, 2  ;;  %368 = vmatpush.msra.mxu2 %v5041_v4 }
  0x79   :  { %v110_v6 = vsel %vm69_vm0, %v102_v5, 2147483647  ;;  %v5046_v5 = vld [vmem:[%s6548_s3] sm:$0xff] }
  0x7a   :  { %v112_v7 = vshra.s32 %v110_v6, 16  ;;  %v111_v21 = vand.u32 65535, %v110_v6  ;;  %v299_v6 = vld [vmem:[%s6549_s0] sm:$0xf]  ;;  %369 = vmatpush.msra.mxu2 %v5046_v5 }
  0x7b   :  { %4534 = vmatmul.msk.f32.vlgmr.msra.gmra.mxu2 %vm56_vm9, %v299_v6 }
  0x7c   :  { %v114_v8 = vcvt.s32.f32 %v112_v7  ;;  %v113_v26 = vcvt.s32.f32 %v111_v21  ;;  %v5055_v7 = vld [vmem:[%s6550_s4 + $0x8] sm:$0xff]  ;;  %699 = vmatpush.msrb.mxu2 %v5068_v12 }
  0x7d   :  { %345 = vmatpush.msra.mxu1 %v5055_v7 }
  0x7e   :  { %115 = vmin.xlane.f32.xlu0 %v114_v8  ;;  %700 = vmatpush.msrb.mxu2 %v5075_v13 }
  0x7f   :  { %346 = vmatpush.msra.mxu1 %v5063_v11 }
  0x81   :  { %679 = vmatpush.msrb.mxu1 %v5080_v14 }
  0x83   :  { %4539 = vmatmul.msk.f32.vlgmr.msrb.gmra.mxu2 %vm56_vm9, %v299_v6  ;;  %680 = vmatpush.msrb.mxu1 %v5085_v15 }
  0x92   :  { %603 = vperm.xlu0 %4673, %v598_v47  }
  0xf1   :  { %v4984_v25 = vpop.xlane.xlu0 %115 }
  0xf2   :  { %vm117_vm3 = vcmp.eq.f32.partialorder %v114_v8, %v4984_v25  ;;  %v122_v58 = vcvt.f32.s32 %v4984_v25  ;;  %v590_v8 = vpop.permute.xlu2 %589  ;;  %v4889_v25 = vmov 0  }
  0xf3   :  { %v118_v28 = vsel %vm117_vm3, %v113_v26, inf  ;;  %v634_v20 = vmul.f32 %v590_v8, %v447_v16  ;;  %4674 = vset.pattern.permute.xlu2 %v4889_v25  ;;  %v401_v16 = vpop.f32.mrf.mxu3 }
  0xf4   :  { %119 = vmin.xlane.f32.xlu1 %v118_v28  ;;  %v123_v60 = vshll.u32 %v122_v58, 16 }
  0xf5   :  { %v642_v26 = vsel %vm47_vm10, %v634_v20, 0.0 }
  0xfa   :  { %v597_v10 = vpop.permute.xlu2 %596 }
  0xfb   :  { %v635_v27 = vmul.f32 %v597_v10, %v448_v22  ;;  %v5149_v10 = vld [vmem:[%s6547_s7] ss:$0 sm:$0xff] }
  0xfd   :  { %v644_v36 = vsel %vm47_vm10, %v635_v27, 0.0 }
  0xfe   :  { %v371_v20 = vpop.f32.mrf.mxu2 }
 0x102   :  { %v611_v17 = vpop.permute.xlu2 %610 }
 0x103   :  { %v637_v41 = vmul.f32 %v611_v17, %v450_v39 }
 0x104   :  { %v604_v32 = vpop.permute.xlu0 %603 }
 0x105   :  { %v636_v37 = vmul.f32 %v604_v32, %v449_v31 }
 0x107   :  { %v646_v42 = vsel %vm47_vm10, %v636_v37, 0.0  ;;  %v702_v37 = vpop.f32.mrf.mxu2 }
 0x10a   :  { %v618_v35 = vpop.permute.xlu2 %617 }
 0x10b   :  { %v638_v46 = vmul.f32 %v618_v35, %v451_v43  ;;  %v5172_v35 = vld [vmem:[%s6558_s12] ss:$0 sm:$0xff] }
 0x10d   :  { %582 = vperm.xlu1 %4671, %v577_v45   ;;  %v648_v45 = vsel %vm47_vm10, %v637_v41, 0.0  ;;  %v650_v50 = vsel %vm47_vm10, %v638_v46, 0.0  ;;  %v5181_v41 = vld [vmem:[%s6557_s11] ss:$0 sm:$0xff] }
 0x112   :  { %v625_v47 = vpop.permute.xlu2 %624 }
 0x113   :  { %v639_v52 = vmul.f32 %v625_v47, %v452_v48 }
 0x115   :  { %631 = vperm.xlu1 %4671, %v626_v49  }
 0x11d   :  { %4675 = vset.pattern.permute.xlu1 %v4889_v25 }
 0x13f   :  { %74 = vmax.xlane.f32.xlu1 %v73_v24  ;;  %v5159_v24 = vld [vmem:[%s6556_s6] ss:$0 sm:$0xff] }
 0x167   :  { %v120_v59 = vpop.xlane.xlu1 %119 }
 0x168   :  { %v121_v62 = vcvt.f32.s32 %v120_v59  ;;  %v5140_v59 = vld [vmem:[%s6555_s2] sm:$0xff] }
 0x16a   :  { %v124_v63 = vadd.s32 %v123_v60, %v121_v62  ;;  %v652_v62 = vsel %vm47_vm10, %v639_v52, 0.0 }
 0x16c   :  { %v233_v0 = vadd.s32 %v5028_v61, %v124_v63 }
 0x16e   :  { %vm241_vm12 = vcmp.eq.s32.totalorder %v4973_v3, %v233_v0 }
 0x16f   :  { %v4523_v1 = vsel %vm241_vm12, 1.0, %v4888_v51 }
 0x170   :  { %266 = vst.msk [vmem:[#allocation5] sm:$0xf] %vm265_vm11, %v4523_v1  ;;  %v804_v1 = vsub.f32 1.0, %v5140_v59 }
 0x172   :  { %807 = vperm.xlu1 %4675, %v804_v1  }
 0x177   :  { %v5034_v2 = vld [vmem:[#allocation5] sm:$0xf] }
 0x178   :  { %4532 = vmatmul.msk.f32.vlgmr.msra.gmra.mxu0 %vm304_vm13, %v5034_v2 }
 0x179   :  { %756 = vmatpush.msra.mxu0 %v5116_v33 }
 0x17a   :  { %4677 = vset.pattern.permute.xlu1 %v4977_v9 }
 0x17b   :  { %757 = vmatpush.msra.mxu0 %v5124_v38 }
 0x17f   :  { %v583_v19 = vpop.permute.xlu1 %582 }
 0x180   :  { %v633_v21 = vmul.f32 %v583_v19, %v446_v18  ;;  %4537 = vmatmul.msk.f32.vlgmr.msrb.gmra.mxu0 %vm56_vm9, %v299_v6  ;;  %v402_v18 = vadd.f32 %v5149_v10, %v401_v16 }
 0x181   :  { %915 = vmatpush.msrb.mxu0 %v5041_v4 }
 0x182   :  { %v641_v28 = vsel %vm47_vm10, %v633_v21, 0.0  ;;  %425 = vrot.lane.b32.xlu1 %v402_v18, %s4890_s19  ;;  %v274_v21 = vmul.u32 2, %v4973_v3 }
 0x183   :  { %v643_v34 = vadd.f32 %v642_v26, %v641_v28  ;;  %916 = vmatpush.msrb.mxu0 %v5046_v5 }
 0x184   :  { %v276_v28 = vadd.s32 2, %v274_v21  ;;  %vm275_vm15 = vcmp.ge.s32.totalorder %v4977_v9, %v274_v21 }
 0x185   :  { %v645_v40 = vadd.f32 %v644_v36, %v643_v34 }
 0x186   :  { %vm277_vm1 = vcmp.lt.s32.totalorder %v4977_v9, %v276_v28 }
 0x187   :  { %v647_v44 = vadd.f32 %v646_v42, %v645_v40  ;;  %v632_v58 = vpop.permute.xlu1 %631  ;;  %vm278_vm3 = vmand %vm275_vm15, %vm277_vm1 }
 0x188   :  { %4542 = vmatmul.msk.f32.vlgmr.msra.gmra.mxu0 %vm56_vm9, %v4989_v53  ;;  %v640_v63 = vmul.f32 %v632_v58, %v453_v54  ;;  %v5190_v47 = vsel %vm278_vm3, 1.0, %v4888_v51 }
 0x189   :  { %1233 = vmatpush.msra.mxu0 %v5068_v12  ;;  %v649_v49 = vadd.f32 %v648_v45, %v647_v44 }
 0x18a   :  { %v654_v8 = vsel %vm47_vm10, %v640_v63, 0.0 }
 0x18b   :  { %1234 = vmatpush.msra.mxu0 %v5075_v13  ;;  %v651_v60 = vadd.f32 %v650_v50, %v649_v49 }
 0x18d   :  { %v653_v6 = vadd.f32 %v652_v62, %v651_v60 }
 0x18f   :  { %v655_v17 = vadd.f32 %v654_v8, %v653_v6 }
 0x1b2   :  { %v75_v22 = vpop.xlane.xlu1 %74 }
 0x1b3   :  { %vm95_vm14 = vcmp.eq.f32.partialorder %v5094_v23, %v75_v22 }
 0x1b4   :  { %v103_v31 = vsel %vm95_vm14, %v4973_v3, 2 }
 0x1b5   :  { %v5175_v36 = vsel %vm69_vm0, %v103_v31, 2147483647 }
 0x1b6   :  { %v127_v39 = vshra.s32 %v5175_v36, 16 }
 0x1b8   :  { %v5184_v44 = vcvt.s32.f32 %v127_v39 }
 0x1ba   :  { %130 = vmin.xlane.f32.xlu0 %v5184_v44 }
 0x1e4   :  { %v5199_v50 = vpop.permute.xlu1 %807 }
 0x1f4   :  { %v426_v1 = vpop.permute.xlu1 %425 }
 0x1f5   :  { %v325_v0 = vpop.f32.mrf.mxu0 }
 0x1f6   :  { %4533 = vmatmul.msk.f32.vlgmr.msra.gmra.mxu1 %vm56_vm9, %v325_v0 }
 0x1fd   :  { %v471_v19 = vpop.f32.mrf.mxu0 }
 0x1fe   :  { %4538 = vmatmul.msk.f32.vlgmr.msrb.gmra.mxu1 %vm56_vm9, %v655_v17 }
 0x205   :  { %v759_v23 = vpop.f32.mrf.mxu0 }
 0x206   :  { %v760_v42 = vadd.f32 %v5172_v35, %v759_v23 }
 0x208   :  { %783 = vrot.lane.b32.xlu2 %v760_v42, %s4890_s19 }
 0x262   :  { %v784_v39 = vpop.permute.xlu2 %783 }
 0x273   :  { %v348_v26 = vpop.f32.mrf.mxu1 }
 0x274   :  { %v372_v27 = vadd.f32 %v371_v20, %v348_v26 }
 0x276   :  { %v5164_v32 = vadd.f32 %v5159_v24, %v372_v27 }
 0x278   :  { %v404_v34 = vadd.f32 %v402_v18, %v5164_v32 }
 0x27a   :  { %v4536_v40 = vmul.f32 -1.442695, %v404_v34 }
 0x27b   :  { %v682_v43 = vpop.f32.mrf.mxu1 }
 0x27c   :  { %4709 = vpow2.f32 %v4536_v40  ;;  %v703_v45 = vadd.f32 %v702_v37, %v682_v43 }
 0x27e   :  { %v708_v46 = vadd.f32 %v5181_v41, %v703_v45 }
 0x280   :  { %4540 = vmatpush.msk.msrb.mxu3 %vm712_vm4, %v708_v46 }
 0x281   :  { %4541 = vmatmul.msk.f32.vlgmr.msrb.gmra.mxu3 %vm539_vm2, %v5190_v47 }
 0x282   :  { %v4710_v48 = vpop.eup %4709  ;;  %892 = vmatpush.msra.mxu3 %v5055_v7 }
 0x283   :  { %v408_v49 = vadd.f32 1.0, %v4710_v48 }
 0x284   :  { %893 = vmatpush.msra.mxu3 %v5063_v11 }
 0x285   :  { %4711 = vrcp.f32 %v408_v49  ;;  %v420_v60 = vand.u32 2147483648, %v408_v49  ;;  %v418_v63 = vand.u32 2147483647, %v408_v49  ;;  %vm414_vm6 = vweird.f32 %v408_v49 }
 0x286   :  { %1213 = vmatpush.msrb.mxu3 %v5080_v14 }
 0x287   :  { %v421_v6 = vor.u32 1.1754944e-38, %v420_v60  ;;  %vm419_vm8 = vcmp.eq.f32.partialorder %v418_v63, 8.507059e+37 }
 0x288   :  { %1214 = vmatpush.msrb.mxu3 %v5085_v15 }
 0x28b   :  { %v4712_v52 = vpop.eup %4711 }
 0x28c   :  { %v410_v54 = vmul.f32 %v4712_v52, %v408_v49  ;;  %vm415_vm5 = vweird.f32 %v4712_v52 }
 0x28d   :  { %vm416_vm7 = vmor %vm414_vm6, %vm415_vm5  ;;  %vm523_vm6 = vcmask 1041409  }
 0x28e   :  { %v411_v58 = vsub.f32 1.0, %v410_v54  ;;  %v131_v54 = vpop.xlane.xlu0 %130 }
 0x28f   :  { %vm132_vm3 = vcmp.eq.f32.partialorder %v5184_v44, %v131_v54 }
 0x290   :  { %v412_v62 = vmul.f32 %v4712_v52, %v411_v58 }
 0x292   :  { %v413_v0 = vadd.f32 %v4712_v52, %v412_v62 }
 0x294   :  { %v417_v8 = vsel %vm416_vm7, %v4712_v52, %v413_v0  ;;  %v126_v52 = vand.u32 65535, %v5175_v36  ;;  %vm525_vm7 = vcmask 1042434  }
 0x295   :  { %v5201_v16 = vsel %vm419_vm8, %v421_v6, %v417_v8  ;;  %vm527_vm8 = vcmask 1043459  }
 0x296   :  { %v428_v17 = vmul.f32 %v426_v1, %v5201_v16  ;;  %v128_v58 = vcvt.s32.f32 %v126_v52  ;;  %v5278_v52 = vld [vmem:[#allocation2 + $0x10] sm:$0xf] }
 0x298   :  { %430 = vrot.lane.b32.xlu1 %v428_v17, %s4891_s26  ;;  %v133_v60 = vsel %vm132_vm3, %v128_v58, inf  ;;  %vm1047_vm3 = vcmp.lt.s32.totalorder %v4977_v9, 1 }
 0x304   :  { %v733_v18 = vpop.f32.mrf.mxu3 }
 0x305   :  { %v762_v19 = vadd.f32 %v760_v42, %v733_v18 }
 0x307   :  { %v4543_v20 = vmul.f32 -1.442695, %v762_v19  ;;  %v137_v19 = vcvt.f32.s32 %v131_v54  ;;  %v5280_v54 = vld [vmem:[#allocation2 + $0xc] sm:$0xf] }
 0x309   :  { %4713 = vpow2.f32 %v4543_v20 }
 0x30a   :  { %v431_v6 = vpop.permute.xlu1 %430 }
 0x30b   :  { %v433_v17 = vadd.f32 %v431_v6, %v5164_v32  ;;  %v4545_v32 = vld [vmem:[%s6549_s0 + $0x4] sm:$0xf] }
 0x30c   :  { %4549 = vmatmul.msk.f32.vlgmr.msrb.gmra.mxu0 %vm56_vm9, %v4545_v32 }
 0x30f   :  { %v4714_v21 = vpop.eup %4713 }
 0x310   :  { %v766_v22 = vadd.f32 1.0, %v4714_v21 }
 0x312   :  { %4715 = vrcp.f32 %v766_v22  ;;  %v778_v31 = vand.u32 2147483648, %v766_v22  ;;  %v776_v23 = vand.u32 2147483647, %v766_v22  ;;  %vm772_vm14 = vweird.f32 %v766_v22 }
 0x314   :  { %v779_v40 = vor.u32 1.1754944e-38, %v778_v31  ;;  %vm777_vm1 = vcmp.eq.f32.partialorder %v776_v23, 8.507059e+37  ;;  %4555 = vmatmul.msk.f32.vlgmr.msra.gmra.mxu0 %vm56_vm9, %v4545_v32 }
 0x318   :  { %v4716_v26 = vpop.eup %4715 }
 0x319   :  { %v768_v27 = vmul.f32 %v4716_v26, %v766_v22  ;;  %vm773_vm12 = vweird.f32 %v4716_v26 }
 0x31a   :  { %vm774_vm15 = vmor %vm772_vm14, %vm773_vm12  ;;  %vm529_vm12 = vcmask 1044484   ;;  %vm6562_vm14 = vcmask 1045509  }
 0x31b   :  { %v769_v28 = vsub.f32 1.0, %v768_v27 }
 0x31d   :  { %v770_v34 = vmul.f32 %v4716_v26, %v769_v28  ;;  %v810_v28 = vmul.f32 %v5199_v50, %v4989_v53 }
 0x31f   :  { %v771_v37 = vadd.f32 %v4716_v26, %v770_v34 }
 0x321   :  { %v775_v43 = vsel %vm774_vm15, %v4716_v26, %v771_v37  ;;  %v435_v37 = vsub.f32 1.0, %v5201_v16  ;;  %vm6561_vm15 = vcmask 1046534  }
 0x322   :  { %v780_v42 = vsel %vm777_vm1, %v779_v40, %v775_v43  ;;  %vm6560_vm1 = vcmask 1047559  }
 0x323   :  { %v786_v45 = vmul.f32 %v784_v39, %v780_v42  ;;  %v793_v0 = vsub.f32 1.0, %v780_v42 }
 0x325   :  { %788 = vrot.lane.b32.xlu2 %v786_v45, %s4891_s26 }
 0x32d   :  { %799 = vrot.lane.b32.xlu2 %v4989_v53, %s4892_s27 }
 0x37f   :  { %v789_v46 = vpop.permute.xlu2 %788 }
 0x380   :  { %v791_v48 = vadd.f32 %v789_v46, %v733_v18 }
 0x382   :  { %4717 = vtanh.f32 %v791_v48 }
 0x383   :  { %4719 = vtanh.f32 %v433_v17 }
 0x387   :  { %v800_v62 = vpop.permute.xlu2 %799 }
 0x388   :  { %v4718_v49 = vpop.eup %4717  ;;  %v802_v8 = vmul.f32 %v800_v62, %v780_v42 }
 0x389   :  { %795 = vrot.lane.b32.xlu2 %v4718_v49, %s4893_s28  ;;  %v4720_v44 = vpop.eup %4719 }
 0x391   :  { %813 = vperm.xlu2 %4674, %v5140_v59  }
 0x399   :  { %4676 = vset.pattern.permute.xlu2 %v4977_v9 }
 0x3ba   :  { %134 = vmin.xlane.f32.xlu2 %v133_v60 }
 0x3d2   :  { %441 = vrot.lane.b32.xlu2 %v5018_v57, %s4892_s27  ;;  %v138_v57 = vshll.u32 %v137_v19, 16 }
 0x3e3   :  { %v796_v63 = vpop.permute.xlu2 %795 }
 0x3e4   :  { %v798_v1 = vmul.f32 %v796_v63, %v793_v0  ;;  %v5286_v0 = vld [vmem:[#allocation2 + $0x18] sm:$0xf] }
 0x3e6   :  { %v803_v59 = vadd.f32 %v802_v8, %v798_v1  ;;  %v5288_v1 = vld [vmem:[#allocation2 + $0x14] sm:$0xf] }
 0x3eb   :  { %v814_v18 = vpop.permute.xlu2 %813 }
 0x3ec   :  { %v816_v36 = vmul.f32 %v814_v18, %v803_v59  ;;  %v5294_v18 = vld [vmem:[#allocation2 + $0x1c] sm:$0xf] }
 0x3ee   :  { %818 = vrot.lane.b32.xlu0 %v816_v36, %s4893_s28 }
 0x3f6   :  { %437 = vrot.lane.b32.xlu0 %v4720_v44, %s4893_s28 }
 0x42d   :  { %v135_v20 = vpop.xlane.xlu2 %134 }
 0x42e   :  { %v136_v21 = vcvt.f32.s32 %v135_v20 }
 0x430   :  { %v139_v22 = vadd.s32 %v138_v57, %v136_v21 }
 0x432   :  { %v234_v26 = vadd.s32 %v5028_v61, %v139_v22 }
 0x434   :  { %vm242_vm5 = vcmp.eq.s32.totalorder %v4973_v3, %v234_v26 }
 0x435   :  { %v4524_v27 = vsel %vm242_vm5, 1.0, %v4888_v51  ;;  %v442_v23 = vpop.permute.xlu2 %441 }
 0x436   :  { %267 = vst.msk [vmem:[#allocation5 + $0x4] sm:$0xf] %vm265_vm11, %v4524_v27  ;;  %v444_v40 = vmul.f32 %v442_v23, %v5201_v16 }
 0x43d   :  { %v5239_v42 = vld [vmem:[#allocation5 + $0x4] sm:$0xf] }
 0x460   :  { %v819_v31 = vpop.permute.xlu0 %818 }
 0x461   :  { %v821_v34 = vadd.f32 %v819_v31, %v810_v28 }
 0x463   :  { %822 = vst.msk [vmem:[#allocation3] sm:$0xff] %vm56_vm9, %v821_v34  ;;  %838 = vmatpush.msra.mxu1 %v821_v34 }
 0x464   :  { %4544 = vmatmul.msk.f32.vlgmr.msra.gmra.mxu1 %vm304_vm13, %v5034_v2 }
 0x465   :  { %939 = vmatpush.msrb.mxu1 %v4995_v55 }
 0x467   :  { %940 = vmatpush.msrb.mxu1 %v5000_v56 }
 0x468   :  { %v438_v39 = vpop.permute.xlu0 %437 }
 0x469   :  { %v440_v43 = vmul.f32 %v438_v39, %v435_v37 }
 0x46a   :  { %v5236_v53 = vld [vmem:[#allocation3] sm:$0xff] }
 0x46b   :  { %v445_v50 = vadd.f32 %v444_v40, %v440_v43  ;;  %870 = vmatpush.msra.mxu2 %v5236_v53 }
 0x46c   :  { %4547 = vmatmul.msk.f32.vlgmr.msra.gmra.mxu2 %vm304_vm13, %v5239_v42 }
 0x46d   :  { %657 = vrot.lane.b32.xlu1 %v445_v50, %s4893_s28  ;;  %1009 = vmatpush.msrb.mxu2 %v5105_v29 }
 0x46f   :  { %1010 = vmatpush.msrb.mxu2 %v5110_v30 }
 0x471   :  { %1280 = vmatpush.msra.mxu2 %v5116_v33 }
 0x473   :  { %1281 = vmatpush.msra.mxu2 %v5124_v38 }
 0x474   :  { %4552 = vmatmul.msk.f32.vlgmr.msrb.gmra.mxu2 %vm56_vm9, %v4545_v32 }
 0x475   :  { %1440 = vmatpush.msrb.mxu2 %v5041_v4 }
 0x477   :  { %1441 = vmatpush.msrb.mxu2 %v5046_v5  ;;  %v5266_v5 = vld [vmem:[#allocation2 + $0x8] sm:$0xf] }
 0x47c   :  { %4558 = vmatmul.msk.f32.vlgmr.msra.gmra.mxu2 %vm56_vm9, %v5236_v53 }
 0x47d   :  { %1758 = vmatpush.msra.mxu2 %v5068_v12  ;;  %v5268_v12 = vld [vmem:[#allocation2 + $0x4] sm:$0xf] }
 0x47f   :  { %1759 = vmatpush.msra.mxu2 %v5075_v13 }
 0x4df   :  { %v658_v55 = vpop.permute.xlu1 %657 }
 0x4e0   :  { %660 = vst.msk [vmem:[#allocation2] sm:$0xf] %vm47_vm10, %v658_v55 }
 0x4e1   :  { %661 = vst.msk [vmem:[#allocation4] sm:$0xf] %vm47_vm10, %v658_v55  ;;  %v840_v56 = vpop.f32.mrf.mxu1 }
 0x4e2   :  { %843 = vst.msk [vmem:[%s6559_s14] sm:$0xf] %vm47_vm10, %v840_v56 }
 0x4e7   :  { %v5270_v29 = vld [vmem:[#allocation2] sm:$0xf] }
 0x4e8   :  { %v5261_v2 = vld [vmem:[#allocation4] sm:$0xf] }
 0x4e9   :  { %4550 = vmatmul.msk.f32.vlgmr.msrb.gmra.mxu1 %vm56_vm9, %v5261_v2 }
 0x4ef   :  { %v872_v4 = vpop.f32.mrf.mxu2 }
 0x4f0   :  { %4548 = vmatmul.msk.f32.vlgmr.msra.gmra.mxu3 %vm56_vm9, %v872_v4 }
 0x4f7   :  { %v1012_v13 = vpop.f32.mrf.mxu2 }
 0x4f8   :  { %v1017_v30 = vmul.f32 %v1012_v13, %v5266_v5  ;;  %v1016_v16 = vmul.f32 %v1012_v13, %v5268_v12  ;;  %v1015_v45 = vmul.f32 %v1012_v13, %v5270_v29  ;;  %v1019_v58 = vmul.f32 %v1012_v13, %v5278_v52 }
 0x4f9   :  { %v1018_v60 = vmul.f32 %v1012_v13, %v5280_v54  ;;  %v1021_v6 = vmul.f32 %v1012_v13, %v5286_v0  ;;  %v1020_v8 = vmul.f32 %v1012_v13, %v5288_v1  ;;  %v1022_v36 = vmul.f32 %v1012_v13, %v5294_v18 }
 0x4fa   :  { %v1029_v46 = vsel %vm47_vm10, %v1017_v30, 0.0  ;;  %v1026_v48 = vsel %vm47_vm10, %v1016_v16, 0.0  ;;  %v1023_v49 = vsel %vm47_vm10, %v1015_v45, 0.0  ;;  %v1035_v62 = vsel %vm47_vm10, %v1019_v58, 0.0 }
 0x4fb   :  { %1030 = vadd.xlane.f32.xlu2 %v1029_v46  ;;  %1027 = vadd.xlane.f32.xlu1 %v1026_v48  ;;  %v1032_v63 = vsel %vm47_vm10, %v1018_v60, 0.0  ;;  %v1041_v59 = vsel %vm47_vm10, %v1021_v6, 0.0  ;;  %v1038_v17 = vsel %vm47_vm10, %v1020_v8, 0.0  ;;  %v1044_v44 = vsel %vm47_vm10, %v1022_v36, 0.0 }
 0x4fc   :  { %1024 = vadd.xlane.f32.xlu0 %v1023_v49 }
 0x503   :  { %1036 = vadd.xlane.f32.xlu1 %v1035_v62 }
 0x504   :  { %1033 = vadd.xlane.f32.xlu0 %v1032_v63 }
 0x50b   :  { %1042 = vadd.xlane.f32.xlu1 %v1041_v59  ;;  %v4553_v59 = vsel %vm1047_vm3, 1.0, %v4888_v51 }
 0x50c   :  { %1039 = vadd.xlane.f32.xlu0 %v1038_v17 }
 0x514   :  { %1045 = vadd.xlane.f32.xlu0 %v1044_v44 }
 0x56e   :  { %v1028_v19 = vpop.xlane.xlu1 %1027  ;;  %v1031_v22 = vpop.xlane.xlu2 %1030 }
 0x56f   :  { %v1025_v20 = vpop.xlane.xlu0 %1024  ;;  %v1057_v27 = vperm.slane %v1028_v19, %v4973_v3  ;;  %v1058_v32 = vperm.slane %v1031_v22, %v4973_v3 }
 0x570   :  { %v1056_v26 = vperm.slane %v1025_v20, %v4973_v3 }
 0x572   :  { %v1064_v28 = vsel %vm523_vm6, %v1057_v27, %v1056_v26 }
 0x573   :  { %v1065_v23 = vsel %vm525_vm7, %v1058_v32, %v1064_v28 }
 0x576   :  { %v1037_v21 = vpop.xlane.xlu1 %1036 }
 0x577   :  { %v1034_v57 = vpop.xlane.xlu0 %1033  ;;  %v1060_v37 = vperm.slane %v1037_v21, %v4973_v3 }
 0x578   :  { %v1059_v31 = vperm.slane %v1034_v57, %v4973_v3 }
 0x57a   :  { %v1066_v39 = vsel %vm527_vm8, %v1059_v31, %v1065_v23 }
 0x57b   :  { %v1067_v50 = vsel %vm529_vm12, %v1060_v37, %v1066_v39 }
 0x57e   :  { %v1043_v43 = vpop.xlane.xlu1 %1042 }
 0x57f   :  { %v1040_v34 = vpop.xlane.xlu0 %1039  ;;  %v1062_v55 = vperm.slane %v1043_v43, %v4973_v3 }
 0x580   :  { %v1061_v40 = vperm.slane %v1040_v34, %v4973_v3 }
 0x582   :  { %v1068_v56 = vsel %vm6562_vm14, %v1061_v40, %v1067_v50 }
 0x583   :  { %v1069_v30 = vsel %vm6561_vm15, %v1062_v55, %v1068_v56 }
 0x587   :  { %v1046_v4 = vpop.xlane.xlu0 %1045 }
 0x588   :  { %v1063_v13 = vperm.slane %v1046_v4, %v4973_v3 }
 0x58a   :  { %v1070_v16 = vsel %vm6560_vm1, %v1063_v13, %v1069_v30 }
 0x58b   :  { %v1072_v45 = vsel %vm1047_vm3, %v1070_v16, -1e+30 }
 0x58c   :  { %v1073_v46 = vsel %vm539_vm2, %v1072_v45, -inf }
 0x58d   :  { %v1074_v48 = vrot.slane %v1073_v46, 4 }
 0x58f   :  { %v1075_v49 = vmax.f32 %v1073_v46, %v1074_v48  ;;  %v1283_v46 = vpop.f32.mrf.mxu2 }
 0x590   :  { %v5318_v48 = vadd.f32 %v5172_v35, %v1283_v46 }
 0x591   :  { %v1076_v58 = vrot.slane %v1075_v49, 2 }
 0x593   :  { %v1077_v60 = vmax.f32 %v1075_v49, %v1076_v58 }
 0x595   :  { %v1078_v62 = vrot.slane %v1077_v60, 1 }
 0x597   :  { %v1079_v63 = vmax.f32 %v1077_v60, %v1078_v62  ;;  %v61_v60 = vld [vmem:[%s6545_s1 + $0x8] sm:$0xf] }
 0x598   :  { %v76_v62 = vsel %vm69_vm0, %v61_v60, -inf }
 0x599   :  { %v1080_v6 = vsub.f32 %v1072_v45, %v1079_v63 }
 0x59b   :  { %v1081_v8 = vmul.f32 1.442695, %v1080_v6 }
 0x59d   :  { %4721 = vpow2.f32 %v1081_v8 }
 0x5a3   :  { %v4722_v17 = vpop.eup %4721 }
 0x5a4   :  { %v1085_v36 = vmul.f32 %v4722_v17, %v4553_v59 }
 0x5a6   :  { %v1086_v44 = vsel %vm539_vm2, %v1085_v36, 0.0 }
 0x5a7   :  { %v1087_v19 = vrot.slane %v1086_v44, 4 }
 0x5a9   :  { %v1088_v20 = vadd.f32 %v1087_v19, %v1086_v44 }
 0x5ab   :  { %v1089_v57 = vrot.slane %v1088_v20, 2 }
 0x5ad   :  { %v1090_v21 = vadd.f32 %v1089_v57, %v1088_v20 }
 0x5af   :  { %v1091_v22 = vrot.slane %v1090_v21, 1 }
 0x5b1   :  { %v1092_v26 = vadd.f32 %v1091_v22, %v1090_v21 }
 0x5b3   :  { %vm1093_vm5 = vcmp.eq.f32.partialorder %v1092_v26, 0.0 }
 0x5b4   :  { %v1094_v27 = vsel %vm1093_vm5, 1.0, %v1092_v26 }
 0x5b5   :  { %4723 = vrcp.f32 %v1094_v27  ;;  %v1106_v34 = vand.u32 2147483648, %v1094_v27  ;;  %v1104_v37 = vand.u32 2147483647, %v1094_v27  ;;  %vm1100_vm3 = vweird.f32 %v1094_v27 }
 0x5b7   :  { %v1107_v40 = vor.u32 1.1754944e-38, %v1106_v34  ;;  %vm1105_vm14 = vcmp.eq.f32.partialorder %v1104_v37, 8.507059e+37 }
 0x5bb   :  { %v4724_v32 = vpop.eup %4723 }
 0x5bc   :  { %v1096_v28 = vmul.f32 %v4724_v32, %v1094_v27  ;;  %vm1101_vm1 = vweird.f32 %v4724_v32 }
 0x5bd   :  { %vm1102_vm15 = vmor %vm1100_vm3, %vm1101_vm1 }
 0x5be   :  { %v1097_v31 = vsub.f32 1.0, %v1096_v28 }
 0x5c0   :  { %v1098_v23 = vmul.f32 %v4724_v32, %v1097_v31 }
 0x5c2   :  { %v1099_v39 = vadd.f32 %v4724_v32, %v1098_v23 }
 0x5c4   :  { %v1103_v43 = vsel %vm1102_vm15, %v4724_v32, %v1099_v39 }
 0x5c5   :  { %v1108_v50 = vsel %vm1105_vm14, %v1107_v40, %v1103_v43 }
 0x5c6   :  { %v1109_v55 = vmul.f32 %v1108_v50, %v1085_v36 }
 0x5c8   :  { %v1124_v56 = vperm.slane %v1109_v55, 2  ;;  %v1117_v4 = vperm.slane %v1109_v55, 1  ;;  %v1110_v13 = vperm.slane %v1109_v55, 0  ;;  %v1138_v30 = vperm.slane %v1109_v55, 4 }
 0x5c9   :  { %v1145_v16 = vperm.slane %v1109_v55, 5  ;;  %v1131_v45 = vperm.slane %v1109_v55, 3  ;;  %v1159_v49 = vperm.slane %v1109_v55, 7  ;;  %v1152_v58 = vperm.slane %v1109_v55, 6 }
 0x5ca   :  { %1129 = vperm.xlu0 %4673, %v1124_v56   ;;  %1122 = vperm.xlu1 %4677, %v1117_v4  }
 0x5cb   :  { %1115 = vperm.xlu2 %4676, %v1110_v13  }
 0x5d2   :  { %1143 = vperm.xlu0 %4673, %v1138_v30   ;;  %1150 = vperm.xlu1 %4677, %v1145_v16   ;;  %v918_v30 = vpop.f32.mrf.mxu0  ;;  %v895_v16 = vpop.f32.mrf.mxu3 }
 0x5d3   :  { %1136 = vperm.xlu2 %4676, %v1131_v45  }
 0x5da   :  { %1164 = vperm.xlu0 %4673, %v1159_v49   ;;  %1307 = vrot.lane.b32.xlu1 %v5318_v48, %s4890_s19  ;;  %v1236_v45 = vpop.f32.mrf.mxu0 }
 0x5db   :  { %1157 = vperm.xlu2 %4676, %v1152_v58  }
 0x5e2   :  { %4678 = vset.pattern.permute.xlu0 %v4889_v25 }
 0x604   :  { %77 = vmax.xlane.f32.xlu2 %v76_v62 }
 0x625   :  { %v1116_v63 = vpop.permute.xlu2 %1115 }
 0x626   :  { %v1166_v35 = vmul.f32 %v1116_v63, %v5270_v29 }
 0x628   :  { %v1174_v44 = vsel %vm47_vm10, %v1166_v35, 0.0 }
 0x62d   :  { %v1137_v6 = vpop.permute.xlu2 %1136 }
 0x62e   :  { %v1169_v57 = vmul.f32 %v1137_v6, %v5280_v54 }
 0x630   :  { %v1179_v29 = vsel %vm47_vm10, %v1169_v57, 0.0 }
 0x635   :  { %v1158_v28 = vpop.permute.xlu2 %1157 }
 0x636   :  { %v1172_v23 = vmul.f32 %v1158_v28, %v5286_v0 }
 0x638   :  { %v1185_v40 = vsel %vm47_vm10, %v1172_v23, 0.0 }
 0x63c   :  { %v1130_v8 = vpop.permute.xlu0 %1129  ;;  %v1123_v59 = vpop.permute.xlu1 %1122 }
 0x63d   :  { %v1168_v17 = vmul.f32 %v1130_v8, %v5266_v5  ;;  %v1167_v36 = vmul.f32 %v1123_v59, %v5268_v12 }
 0x63f   :  { %v1175_v19 = vsel %vm47_vm10, %v1167_v36, 0.0  ;;  %v1177_v21 = vsel %vm47_vm10, %v1168_v17, 0.0 }
 0x640   :  { %v1176_v20 = vadd.f32 %v1175_v19, %v1174_v44 }
 0x642   :  { %v1178_v22 = vadd.f32 %v1177_v21, %v1176_v20 }
 0x644   :  { %v1144_v26 = vpop.permute.xlu0 %1143  ;;  %v1151_v27 = vpop.permute.xlu1 %1150  ;;  %v1180_v12 = vadd.f32 %v1179_v29, %v1178_v22 }
 0x645   :  { %v1170_v32 = vmul.f32 %v1144_v26, %v5278_v52  ;;  %v1171_v5 = vmul.f32 %v1151_v27, %v5288_v1 }
 0x647   :  { %v1181_v31 = vsel %vm47_vm10, %v1170_v32, 0.0  ;;  %v1183_v54 = vsel %vm47_vm10, %v1171_v5, 0.0 }
 0x648   :  { %v1182_v34 = vadd.f32 %v1181_v31, %v1180_v12  ;;  %v919_v31 = vadd.f32 %v918_v30, %v895_v16 }
 0x64a   :  { %v1184_v37 = vadd.f32 %v1183_v54, %v1182_v34  ;;  %v921_v34 = vadd.f32 %v5159_v24, %v919_v31 }
 0x64c   :  { %v1165_v39 = vpop.permute.xlu0 %1164  ;;  %v1186_v50 = vadd.f32 %v1185_v40, %v1184_v37  ;;  %v1308_v58 = vpop.permute.xlu1 %1307 }
 0x64d   :  { %v1173_v43 = vmul.f32 %v1165_v39, %v5294_v18 }
 0x64f   :  { %v1187_v52 = vsel %vm47_vm10, %v1173_v43, 0.0 }
 0x650   :  { %v1188_v55 = vadd.f32 %v1187_v52, %v1186_v50 }
 0x652   :  { %4554 = vmatmul.msk.f32.vlgmr.msrb.gmra.mxu3 %vm56_vm9, %v1188_v55 }
 0x677   :  { %v78_v1 = vpop.xlane.xlu2 %77 }
 0x678   :  { %vm96_vm14 = vcmp.eq.f32.partialorder %v61_v60, %v78_v1  ;;  %v4546_v1 = vld [vmem:[%s6555_s2 + $0x8] sm:$0xff] }
 0x679   :  { %v104_v56 = vsel %vm96_vm14, %v4973_v3, 2 }
 0x67a   :  { %v140_v0 = vsel %vm69_vm0, %v104_v56, 2147483647 }
 0x67b   :  { %v142_v4 = vshra.s32 %v140_v0, 16  ;;  %v141_v60 = vand.u32 65535, %v140_v0  ;;  %v1328_v0 = vsub.f32 1.0, %v4546_v1 }
 0x67d   :  { %v144_v13 = vcvt.s32.f32 %v142_v4  ;;  %v143_v62 = vcvt.s32.f32 %v141_v60 }
 0x67f   :  { %145 = vmin.xlane.f32.xlu1 %v144_v13 }
 0x6d5   :  { %v1216_v46 = vpop.f32.mrf.mxu3 }
 0x6d6   :  { %v1237_v18 = vadd.f32 %v1236_v45, %v1216_v46 }
 0x6d8   :  { %v1239_v49 = vadd.f32 %v5181_v41, %v1237_v18  ;;  %v942_v41 = vpop.f32.mrf.mxu1 }
 0x6d9   :  { %v943_v6 = vadd.f32 %v5149_v10, %v942_v41 }
 0x6da   :  { %4556 = vmatpush.msk.msra.mxu1 %vm712_vm4, %v1239_v49 }
 0x6db   :  { %4557 = vmatmul.msk.f32.vlgmr.msra.gmra.mxu1 %vm539_vm2, %v5190_v47  ;;  %v945_v23 = vadd.f32 %v943_v6, %v921_v34 }
 0x6dc   :  { %1417 = vmatpush.msrb.mxu1 %v5055_v7 }
 0x6dd   :  { %v4551_v54 = vmul.f32 -1.442695, %v945_v23 }
 0x6de   :  { %1418 = vmatpush.msrb.mxu1 %v5063_v11 }
 0x6e0   :  { %1738 = vmatpush.msra.mxu1 %v5080_v14 }
 0x6e2   :  { %1739 = vmatpush.msra.mxu1 %v5085_v15 }
 0x6f2   :  { %v146_v63 = vpop.xlane.xlu1 %145 }
 0x6f3   :  { %vm147_vm15 = vcmp.eq.f32.partialorder %v144_v13, %v146_v63  ;;  %v152_v59 = vcvt.f32.s32 %v146_v63 }
 0x6f4   :  { %v148_v35 = vsel %vm147_vm15, %v143_v62, inf }
 0x6f5   :  { %149 = vmin.xlane.f32.xlu2 %v148_v35  ;;  %v153_v17 = vshll.u32 %v152_v59, 16 }
 0x70d   :  { %966 = vrot.lane.b32.xlu2 %v943_v6, %s4890_s19 }
 0x758   :  { %v1260_v8 = vpop.f32.mrf.mxu1 }
 0x759   :  { %v1286_v7 = vadd.f32 %v5318_v48, %v1260_v8 }
 0x75b   :  { %v4559_v11 = vmul.f32 -1.442695, %v1286_v7 }
 0x75d   :  { %4725 = vpow2.f32 %v4559_v11 }
 0x763   :  { %v4726_v14 = vpop.eup %4725 }
 0x764   :  { %v1290_v15 = vadd.f32 1.0, %v4726_v14 }
 0x766   :  { %4727 = vrcp.f32 %v1290_v15  ;;  %v1302_v48 = vand.u32 2147483648, %v1290_v15  ;;  %v1300_v27 = vand.u32 2147483647, %v1290_v15  ;;  %vm1296_vm3 = vweird.f32 %v1290_v15 }
 0x767   :  { %4729 = vpow2.f32 %v4551_v54 }
 0x768   :  { %v150_v36 = vpop.xlane.xlu2 %149  ;;  %v1303_v32 = vor.u32 1.1754944e-38, %v1302_v48  ;;  %vm1301_vm15 = vcmp.eq.f32.partialorder %v1300_v27, 8.507059e+37 }
 0x769   :  { %v151_v44 = vcvt.f32.s32 %v150_v36 }
 0x76b   :  { %v154_v19 = vadd.s32 %v153_v17, %v151_v44 }
 0x76c   :  { %v4728_v20 = vpop.eup %4727 }
 0x76d   :  { %v1292_v57 = vmul.f32 %v4728_v20, %v1290_v15  ;;  %v235_v21 = vadd.s32 %v5028_v61, %v154_v19  ;;  %vm1297_vm5 = vweird.f32 %v4728_v20  ;;  %v4730_v37 = vpop.eup %4729  ;;  %v4562_v15 = vld [vmem:[%s6549_s0 + $0x8] sm:$0xf]  ;;  %v5393_v19 = vld [vmem:[%s6546_s5] sm:$0xff] }
 0x76e   :  { %vm1298_vm14 = vmor %vm1296_vm3, %vm1297_vm5  ;;  %v949_v39 = vadd.f32 1.0, %v4730_v37  ;;  %4566 = vmatmul.msk.f32.vlgmr.msrb.gmra.mxu2 %vm56_vm9, %v4562_v15  ;;  %v5456_v37 = vld [vmem:[#allocation2 + $0xc] sm:$0xf] }
 0x76f   :  { %vm243_vm1 = vcmp.eq.s32.totalorder %v4973_v3, %v235_v21  ;;  %v1293_v10 = vsub.f32 1.0, %v1292_v57  ;;  %v5412_v57 = vld [vmem:[%s6553_s13] sm:$0xff]  ;;  %v5421_v21 = vld [vmem:[%s6548_s3 + $0x8] sm:$0xff] }
 0x770   :  { %v4525_v22 = vsel %vm243_vm1, 1.0, %v4888_v51  ;;  %4731 = vrcp.f32 %v949_v39  ;;  %v961_v13 = vand.u32 2147483648, %v949_v39  ;;  %vm955_vm5 = vweird.f32 %v949_v39  ;;  %v967_v46 = vpop.permute.xlu2 %966 }
 0x771   :  { %268 = vst.msk [vmem:[#allocation5 + $0x8] sm:$0xf] %vm265_vm11, %v4525_v22  ;;  %v1294_v26 = vmul.f32 %v4728_v20, %v1293_v10  ;;  %v959_v30 = vand.u32 2147483647, %v949_v39  ;;  %v5427_v22 = vld [vmem:[%s6548_s3] sm:$0xff] }
 0x772   :  { %v962_v45 = vor.u32 1.1754944e-38, %v961_v13 }
 0x773   :  { %v1295_v29 = vadd.f32 %v4728_v20, %v1294_v26  ;;  %v5441_v26 = vld [vmem:[%s6551_s8] sm:$0xff] }
 0x775   :  { %v1299_v5 = vsel %vm1298_vm14, %v4728_v20, %v1295_v29  ;;  %vm960_vm14 = vcmp.eq.f32.partialorder %v959_v30, 8.507059e+37 }
 0x776   :  { %v1304_v28 = vsel %vm1301_vm15, %v1303_v32, %v1299_v5  ;;  %v4732_v50 = vpop.eup %4731  ;;  %4572 = vmatmul.msk.f32.vlgmr.msra.gmra.mxu2 %vm56_vm9, %v4562_v15  ;;  %vm6563_vm15 = vcmask 1045509  }
 0x777   :  { %v1310_v12 = vmul.f32 %v1308_v58, %v1304_v28  ;;  %v951_v55 = vmul.f32 %v4732_v50, %v949_v39  ;;  %vm956_vm1 = vweird.f32 %v4732_v50  ;;  %v1317_v62 = vsub.f32 1.0, %v1304_v28  ;;  %v5458_v39 = vld [vmem:[#allocation2 + $0x14] sm:$0xf] }
 0x778   :  { %vm957_vm3 = vmor %vm955_vm5, %vm956_vm1  ;;  %v5399_v20 = vld [vmem:[#allocation5 + $0x8] sm:$0xf]  ;;  %vm1572_vm1 = vcmp.lt.s32.totalorder %v4977_v9, 2  ;;  %vm6564_vm5 = vcmask 1046534  }
 0x779   :  { %1312 = vrot.lane.b32.xlu0 %v1310_v12, %s4891_s26  ;;  %v952_v56 = vsub.f32 1.0, %v951_v55  ;;  %v5450_v12 = vld [vmem:[#allocation2 + $0x8] sm:$0xf] }
 0x77b   :  { %v953_v24 = vmul.f32 %v4732_v50, %v952_v56 }
 0x77d   :  { %v954_v4 = vadd.f32 %v4732_v50, %v953_v24  ;;  %v5468_v24 = vld [vmem:[#allocation2 + $0x18] sm:$0xf] }
 0x77f   :  { %v958_v16 = vsel %vm957_vm3, %v4732_v50, %v954_v4  ;;  %vm6565_vm3 = vcmask 1047559  }
 0x780   :  { %v963_v18 = vsel %vm960_vm14, %v962_v45, %v958_v16  ;;  %v5479_v45 = vld [vmem:[#allocation2 + $0x10] sm:$0xf] }
 0x781   :  { %1323 = vrot.lane.b32.xlu0 %v5236_v53, %s4892_s27  ;;  %v969_v49 = vmul.f32 %v967_v46, %v963_v18 }
 0x7eb   :  { %v1313_v40 = vpop.permute.xlu0 %1312 }
 0x7ec   :  { %v1315_v43 = vadd.f32 %v1313_v40, %v1260_v8 }
 0x7ee   :  { %4733 = vtanh.f32 %v1315_v43 }
 0x7f3   :  { %v1324_v58 = vpop.permute.xlu0 %1323 }
 0x7f4   :  { %v4734_v52 = vpop.eup %4733  ;;  %v1326_v35 = vmul.f32 %v1324_v58, %v1304_v28  ;;  %v5484_v58 = vld [vmem:[#allocation2 + $0x1c] sm:$0xf] }
 0x7f5   :  { %1319 = vrot.lane.b32.xlu0 %v4734_v52, %s4893_s28 }
 0x7fd   :  { %1337 = vperm.xlu0 %4678, %v4546_v1  }
 0x805   :  { %1331 = vperm.xlu0 %4678, %v1328_v0  }
 0x80d   :  { %971 = vrot.lane.b32.xlu0 %v969_v49, %s4891_s26 }
 0x80e   :  { %4679 = vset.pattern.permute.xlu0 %v4977_v9 }
 0x867   :  { %v1320_v60 = vpop.permute.xlu0 %1319 }
 0x868   :  { %v1322_v63 = vmul.f32 %v1320_v60, %v1317_v62 }
 0x86a   :  { %v1327_v41 = vadd.f32 %v1326_v35, %v1322_v63 }
 0x86f   :  { %v1338_v6 = vpop.permute.xlu0 %1337 }
 0x870   :  { %v1340_v8 = vmul.f32 %v1338_v6, %v1327_v41 }
 0x872   :  { %1342 = vrot.lane.b32.xlu1 %v1340_v8, %s4893_s28 }
 0x877   :  { %v1332_v7 = vpop.permute.xlu0 %1331 }
 0x878   :  { %v1334_v17 = vmul.f32 %v1332_v7, %v5236_v53 }
 0x87f   :  { %v972_v11 = vpop.permute.xlu0 %971 }
 0x880   :  { %v974_v14 = vadd.f32 %v972_v11, %v921_v34  ;;  %v5452_v34 = vld [vmem:[#allocation2] sm:$0xf] }
 0x882   :  { %4735 = vtanh.f32 %v974_v14 }
 0x888   :  { %v4736_v59 = vpop.eup %4735 }
 0x889   :  { %978 = vrot.lane.b32.xlu0 %v4736_v59, %s4893_s28 }
 0x891   :  { %982 = vrot.lane.b32.xlu0 %v5261_v2, %s4892_s27  ;;  %v5387_v2 = vld [vmem:[%s6546_s5 + $0x8] sm:$0xff] }
 0x8e4   :  { %v1343_v36 = vpop.permute.xlu1 %1342 }
 0x8e5   :  { %v1345_v44 = vadd.f32 %v1343_v36, %v1334_v17 }
 0x8e7   :  { %1346 = vst.msk [vmem:[#allocation3] sm:$0xff] %vm56_vm9, %v1345_v44  ;;  %1362 = vmatpush.msra.mxu3 %v1345_v44 }
 0x8e8   :  { %4560 = vmatmul.msk.f32.vlgmr.msra.gmra.mxu3 %vm304_vm13, %v5239_v42  ;;  %v5406_v42 = vld [vmem:[%s6553_s13 + $0x8] sm:$0xff] }
 0x8e9   :  { %1464 = vmatpush.msrb.mxu3 %v5387_v2 }
 0x8eb   :  { %1465 = vmatpush.msrb.mxu3 %v5393_v19 }
 0x8ee   :  { %v5396_v53 = vld [vmem:[#allocation3] sm:$0xff] }
 0x8ef   :  { %1395 = vmatpush.msrb.mxu0 %v5396_v53 }
 0x8f0   :  { %4564 = vmatmul.msk.f32.vlgmr.msrb.gmra.mxu0 %vm304_vm13, %v5399_v20 }
 0x8f1   :  { %1534 = vmatpush.msra.mxu0 %v5406_v42 }
 0x8f3   :  { %1535 = vmatpush.msra.mxu0 %v5412_v57 }
 0x8f5   :  { %1805 = vmatpush.msrb.mxu0 %v5116_v33  ;;  %v5435_v33 = vld [vmem:[%s6551_s8 + $0x8] sm:$0xff] }
 0x8f7   :  { %1806 = vmatpush.msrb.mxu0 %v5124_v38  ;;  %v976_v38 = vsub.f32 1.0, %v963_v18 }
 0x8f8   :  { %4569 = vmatmul.msk.f32.vlgmr.msra.gmra.mxu0 %vm56_vm9, %v4562_v15 }
 0x8f9   :  { %1965 = vmatpush.msra.mxu0 %v5421_v21 }
 0x8fb   :  { %v979_v10 = vpop.permute.xlu0 %978  ;;  %1966 = vmatpush.msra.mxu0 %v5427_v22 }
 0x8fc   :  { %v981_v27 = vmul.f32 %v979_v10, %v976_v38 }
 0x900   :  { %4575 = vmatmul.msk.f32.vlgmr.msrb.gmra.mxu0 %vm56_vm9, %v5396_v53 }
 0x901   :  { %2283 = vmatpush.msrb.mxu0 %v5435_v33 }
 0x903   :  { %v983_v48 = vpop.permute.xlu0 %982  ;;  %2284 = vmatpush.msrb.mxu0 %v5441_v26 }
 0x904   :  { %v985_v29 = vmul.f32 %v983_v48, %v963_v18 }
 0x906   :  { %v986_v32 = vadd.f32 %v985_v29, %v981_v27 }
 0x908   :  { %1190 = vrot.lane.b32.xlu1 %v986_v32, %s4893_s28 }
 0x96b   :  { %v1364_v5 = vpop.f32.mrf.mxu3 }
 0x96c   :  { %4561 = vst.msk [vmem:[%s6559_s14 + $0x4] sm:$0xf] %vm47_vm10, %v1364_v5 }
 0x96d   :  { %v1397_v28 = vpop.f32.mrf.mxu0 }
 0x96e   :  { %4565 = vmatmul.msk.f32.vlgmr.msrb.gmra.mxu1 %vm56_vm9, %v1397_v28 }
 0x975   :  { %v1537_v31 = vpop.f32.mrf.mxu0 }
 0x976   :  { %v1540_v23 = vmul.f32 %v1537_v31, %v5452_v34  ;;  %v1542_v54 = vmul.f32 %v1537_v31, %v5450_v12  ;;  %v1543_v52 = vmul.f32 %v1537_v31, %v5456_v37  ;;  %v1545_v55 = vmul.f32 %v1537_v31, %v5458_v39 }
 0x977   :  { %v1546_v30 = vmul.f32 %v1537_v31, %v5468_v24  ;;  %v1544_v18 = vmul.f32 %v1537_v31, %v5479_v45  ;;  %v1547_v60 = vmul.f32 %v1537_v31, %v5484_v58 }
 0x978   :  { %v1548_v40 = vsel %vm47_vm10, %v1540_v23, 0.0  ;;  %v1554_v43 = vsel %vm47_vm10, %v1542_v54, 0.0  ;;  %v1557_v1 = vsel %vm47_vm10, %v1543_v52, 0.0  ;;  %v1563_v56 = vsel %vm47_vm10, %v1545_v55, 0.0 }
 0x979   :  { %1549 = vadd.xlane.f32.xlu2 %v1548_v40  ;;  %1555 = vadd.xlane.f32.xlu1 %v1554_v43  ;;  %v1566_v46 = vsel %vm47_vm10, %v1546_v30, 0.0  ;;  %v1560_v49 = vsel %vm47_vm10, %v1544_v18, 0.0  ;;  %v1569_v62 = vsel %vm47_vm10, %v1547_v60, 0.0 }
 0x97a   :  { %v1191_v50 = vpop.permute.xlu1 %1190 }
 0x97b   :  { %1194 = vst.msk [vmem:[#allocation2 + $0x4] sm:$0xf] %vm47_vm10, %v1191_v50 }
 0x97c   :  { %1195 = vst.msk [vmem:[#allocation4] sm:$0xf] %vm47_vm10, %v1191_v50 }
 0x981   :  { %1558 = vadd.xlane.f32.xlu2 %v1557_v1  ;;  %1564 = vadd.xlane.f32.xlu1 %v1563_v56 }
 0x982   :  { %v5470_v0 = vld [vmem:[#allocation2 + $0x4] sm:$0xf] }
 0x983   :  { %v5472_v4 = vld [vmem:[#allocation4] sm:$0xf]  ;;  %v1541_v13 = vmul.f32 %v1537_v31, %v5470_v0 }
 0x984   :  { %4567 = vmatmul.msk.f32.vlgmr.msrb.gmra.mxu3 %vm56_vm9, %v5472_v4 }
 0x985   :  { %v1551_v16 = vsel %vm47_vm10, %v1541_v13, 0.0 }
 0x986   :  { %1552 = vadd.xlane.f32.xlu0 %v1551_v16  ;;  %v4570_v16 = vsel %vm1572_vm1, 1.0, %v4888_v51 }
 0x989   :  { %1567 = vadd.xlane.f32.xlu2 %v1566_v46 }
 0x98e   :  { %1561 = vadd.xlane.f32.xlu0 %v1560_v49 }
 0x996   :  { %1570 = vadd.xlane.f32.xlu0 %v1569_v62 }
 0x9ec   :  { %v1550_v63 = vpop.xlane.xlu2 %1549  ;;  %v1556_v35 = vpop.xlane.xlu1 %1555 }
 0x9ed   :  { %v1581_v8 = vperm.slane %v1550_v63, %v4973_v3  ;;  %v1583_v14 = vperm.slane %v1556_v35, %v4973_v3 }
 0x9f4   :  { %v1559_v7 = vpop.xlane.xlu2 %1558  ;;  %v1565_v44 = vpop.xlane.xlu1 %1564 }
 0x9f5   :  { %v1584_v17 = vperm.slane %v1559_v7, %v4973_v3  ;;  %v1586_v48 = vperm.slane %v1565_v44, %v4973_v3 }
 0x9f9   :  { %v1553_v41 = vpop.xlane.xlu0 %1552 }
 0x9fa   :  { %v1582_v6 = vperm.slane %v1553_v41, %v4973_v3 }
 0x9fc   :  { %v1589_v11 = vsel %vm523_vm6, %v1582_v6, %v1581_v8  ;;  %v1568_v27 = vpop.xlane.xlu2 %1567 }
 0x9fd   :  { %v1590_v59 = vsel %vm525_vm7, %v1583_v14, %v1589_v11  ;;  %v1587_v32 = vperm.slane %v1568_v27, %v4973_v3 }
 0x9fe   :  { %v1591_v10 = vsel %vm527_vm8, %v1584_v17, %v1590_v59 }
 0xa01   :  { %v1562_v15 = vpop.xlane.xlu0 %1561 }
 0xa02   :  { %v1585_v36 = vperm.slane %v1562_v15, %v4973_v3 }
 0xa04   :  { %v1592_v38 = vsel %vm529_vm12, %v1585_v36, %v1591_v10 }
 0xa05   :  { %v1593_v29 = vsel %vm6563_vm15, %v1586_v48, %v1592_v38 }
 0xa06   :  { %v1594_v31 = vsel %vm6564_vm5, %v1587_v32, %v1593_v29 }
 0xa09   :  { %v1571_v5 = vpop.xlane.xlu0 %1570 }
 0xa0a   :  { %v1588_v28 = vperm.slane %v1571_v5, %v4973_v3 }
 0xa0c   :  { %v1595_v23 = vsel %vm6565_vm3, %v1588_v28, %v1594_v31 }
 0xa0d   :  { %v1597_v54 = vsel %vm1572_vm1, %v1595_v23, -1e+30 }
 0xa0e   :  { %v1598_v40 = vsel %vm539_vm2, %v1597_v54, -inf }
 0xa0f   :  { %v1599_v43 = vrot.slane %v1598_v40, 4 }
 0xa11   :  { %v1600_v50 = vmax.f32 %v1598_v40, %v1599_v43  ;;  %v5511_v43 = vld [vmem:[%s6558_s12] ss:$0 sm:$0xff] }
 0xa13   :  { %v1601_v52 = vrot.slane %v1600_v50, 2 }
 0xa15   :  { %v1602_v55 = vmax.f32 %v1600_v50, %v1601_v52  ;;  %v62_v52 = vld [vmem:[%s6545_s1 + $0xc] sm:$0xf] }
 0xa17   :  { %v1603_v1 = vrot.slane %v1602_v55, 1 }
 0xa19   :  { %v1604_v56 = vmax.f32 %v1602_v55, %v1603_v1  ;;  %v79_v55 = vsel %vm69_vm0, %v62_v52, -inf  ;;  %v5526_v1 = vld [vmem:[%s6555_s2 + $0x10] sm:$0xff] }
 0xa1b   :  { %v1605_v13 = vsub.f32 %v1597_v54, %v1604_v56  ;;  %v1808_v54 = vpop.f32.mrf.mxu0  ;;  %v1853_v56 = vsub.f32 1.0, %v5526_v1 }
 0xa1c   :  { %v5514_v50 = vadd.f32 %v5511_v43, %v1808_v54  ;;  %v5569_v54 = vld [vmem:[%s6550_s4] sm:$0xff] }
 0xa1d   :  { %v1606_v30 = vmul.f32 1.442695, %v1605_v13 }
 0xa1f   :  { %4737 = vpow2.f32 %v1606_v30 }
 0xa25   :  { %v4738_v46 = vpop.eup %4737 }
 0xa26   :  { %v1610_v18 = vmul.f32 %v4738_v46, %v4570_v16 }
 0xa28   :  { %v1611_v49 = vsel %vm539_vm2, %v1610_v18, 0.0 }
 0xa29   :  { %v1612_v60 = vrot.slane %v1611_v49, 4 }
 0xa2b   :  { %v1613_v62 = vadd.f32 %v1612_v60, %v1611_v49 }
 0xa2d   :  { %v1614_v63 = vrot.slane %v1613_v62, 2 }
 0xa2f   :  { %v1615_v35 = vadd.f32 %v1614_v63, %v1613_v62 }
 0xa31   :  { %v1616_v41 = vrot.slane %v1615_v35, 1 }
 0xa33   :  { %v1617_v6 = vadd.f32 %v1616_v41, %v1615_v35 }
 0xa35   :  { %vm1618_vm14 = vcmp.eq.f32.partialorder %v1617_v6, 0.0 }
 0xa36   :  { %v1619_v8 = vsel %vm1618_vm14, 1.0, %v1617_v6 }
 0xa37   :  { %4739 = vrcp.f32 %v1619_v8  ;;  %v1631_v59 = vand.u32 2147483648, %v1619_v8  ;;  %v1629_v17 = vand.u32 2147483647, %v1619_v8  ;;  %vm1625_vm1 = vweird.f32 %v1619_v8 }
 0xa39   :  { %v1632_v44 = vor.u32 1.1754944e-38, %v1631_v59  ;;  %vm1630_vm3 = vcmp.eq.f32.partialorder %v1629_v17, 8.507059e+37 }
 0xa3d   :  { %v4740_v7 = vpop.eup %4739 }
 0xa3e   :  { %v1621_v11 = vmul.f32 %v4740_v7, %v1619_v8  ;;  %vm1626_vm15 = vweird.f32 %v4740_v7 }
 0xa3f   :  { %vm1627_vm5 = vmor %vm1625_vm1, %vm1626_vm15 }
 0xa40   :  { %v1622_v14 = vsub.f32 1.0, %v1621_v11 }
 0xa42   :  { %v1623_v15 = vmul.f32 %v4740_v7, %v1622_v14 }
 0xa44   :  { %v1624_v36 = vadd.f32 %v4740_v7, %v1623_v15 }
 0xa46   :  { %v1628_v10 = vsel %vm1627_vm5, %v4740_v7, %v1624_v36 }
 0xa47   :  { %v1633_v38 = vsel %vm1630_vm3, %v1632_v44, %v1628_v10 }
 0xa48   :  { %v1634_v48 = vmul.f32 %v1633_v38, %v1610_v18 }
 0xa4a   :  { %v1649_v27 = vperm.slane %v1634_v48, 2  ;;  %v1642_v29 = vperm.slane %v1634_v48, 1  ;;  %v1635_v32 = vperm.slane %v1634_v48, 0  ;;  %v1656_v5 = vperm.slane %v1634_v48, 3 }
 0xa4b   :  { %v1663_v28 = vperm.slane %v1634_v48, 4  ;;  %v1670_v31 = vperm.slane %v1634_v48, 5  ;;  %v1677_v23 = vperm.slane %v1634_v48, 6  ;;  %v1684_v40 = vperm.slane %v1634_v48, 7 }
 0xa4c   :  { %1654 = vperm.xlu0 %4679, %v1649_v27   ;;  %1647 = vperm.xlu2 %4676, %v1642_v29  }
 0xa4d   :  { %1640 = vperm.xlu1 %4677, %v1635_v32   ;;  %v5547_v32 = vpop.f32.mrf.mxu2 }
 0xa54   :  { %1661 = vperm.xlu2 %4676, %v1656_v5   ;;  %4681 = vset.pattern.permute.xlu0 %v4889_v25 }
 0xa55   :  { %1668 = vperm.xlu1 %4677, %v1663_v28   ;;  %v1761_v5 = vpop.f32.mrf.mxu2 }
 0xa5c   :  { %1675 = vperm.xlu2 %4676, %v1670_v31  }
 0xa5d   :  { %1682 = vperm.xlu1 %4677, %v1677_v23   ;;  %v5563_v23 = vld [vmem:[%s6550_s4 + $0x8] sm:$0xff] }
 0xa64   :  { %1689 = vperm.xlu2 %4676, %v1684_v40   ;;  %v5575_v40 = vld [vmem:[%s6552_s9 + $0x8] sm:$0xff] }
 0xa65   :  { %1832 = vrot.lane.b32.xlu1 %v5514_v50, %s4890_s19 }
 0xa6c   :  { %4680 = vset.pattern.permute.xlu2 %v4889_v25 }
 0xa76   :  { %80 = vmax.xlane.f32.xlu0 %v79_v55  ;;  %v5581_v55 = vld [vmem:[%s6552_s9] sm:$0xff] }
 0xa8a   :  { %1856 = vperm.xlu0 %4681, %v1853_v56   ;;  %v1467_v56 = vpop.f32.mrf.mxu3 }
 0xa92   :  { %4683 = vset.pattern.permute.xlu0 %v4977_v9 }
 0xaa6   :  { %v1648_v13 = vpop.permute.xlu2 %1647 }
 0xaa7   :  { %v1692_v16 = vmul.f32 %v1648_v13, %v5470_v0 }
 0xaa9   :  { %v1700_v60 = vsel %vm47_vm10, %v1692_v16, 0.0 }
 0xaae   :  { %v1662_v30 = vpop.permute.xlu2 %1661 }
 0xaaf   :  { %v1694_v6 = vmul.f32 %v1662_v30, %v5456_v37 }
 0xab1   :  { %v1704_v14 = vsel %vm47_vm10, %v1694_v6, 0.0 }
 0xab6   :  { %v1676_v35 = vpop.permute.xlu2 %1675 }
 0xab7   :  { %v1696_v15 = vmul.f32 %v1676_v35, %v5458_v39  ;;  %v5549_v39 = vpop.f32.mrf.mxu1 }
 0xab9   :  { %v1708_v44 = vsel %vm47_vm10, %v1696_v15, 0.0 }
 0xabe   :  { %v1655_v46 = vpop.permute.xlu0 %1654 }
 0xabf   :  { %v1641_v18 = vpop.permute.xlu1 %1640  ;;  %v1693_v62 = vmul.f32 %v1655_v46, %v5450_v12  ;;  %v1690_v12 = vpop.permute.xlu2 %1689 }
 0xac0   :  { %v1691_v49 = vmul.f32 %v1641_v18, %v5452_v34  ;;  %v1698_v37 = vmul.f32 %v1690_v12, %v5484_v58 }
 0xac1   :  { %v1702_v8 = vsel %vm47_vm10, %v1693_v62, 0.0 }
 0xac2   :  { %v1699_v63 = vsel %vm47_vm10, %v1691_v49, 0.0  ;;  %v1712_v27 = vsel %vm47_vm10, %v1698_v37, 0.0 }
 0xac3   :  { %v1701_v41 = vadd.f32 %v1700_v60, %v1699_v63 }
 0xac5   :  { %v1703_v7 = vadd.f32 %v1702_v8, %v1701_v41 }
 0xac7   :  { %v1669_v11 = vpop.permute.xlu1 %1668  ;;  %v1705_v59 = vadd.f32 %v1704_v14, %v1703_v7 }
 0xac8   :  { %v1695_v0 = vmul.f32 %v1669_v11, %v5479_v45 }
 0xaca   :  { %v1706_v34 = vsel %vm47_vm10, %v1695_v0, 0.0 }
 0xacb   :  { %v1707_v17 = vadd.f32 %v1706_v34, %v1705_v59 }
 0xacd   :  { %v1709_v38 = vadd.f32 %v1708_v44, %v1707_v17 }
 0xacf   :  { %v1683_v36 = vpop.permute.xlu1 %1682 }
 0xad0   :  { %v1697_v10 = vmul.f32 %v1683_v36, %v5468_v24  ;;  %v5554_v24 = vld [vmem:[%s6557_s11] ss:$0 sm:$0xff] }
 0xad2   :  { %v1710_v48 = vsel %vm47_vm10, %v1697_v10, 0.0 }
 0xad3   :  { %v1711_v45 = vadd.f32 %v1710_v48, %v1709_v38 }
 0xad5   :  { %v1713_v29 = vadd.f32 %v1712_v27, %v1711_v45 }
 0xad7   :  { %4571 = vmatmul.msk.f32.vlgmr.msra.gmra.mxu1 %vm56_vm9, %v1713_v29  ;;  %v1833_v34 = vpop.permute.xlu1 %1832 }
 0xae9   :  { %v81_v13 = vpop.xlane.xlu0 %80 }
 0xaea   :  { %vm97_vm14 = vcmp.eq.f32.partialorder %v62_v52, %v81_v13 }
 0xaeb   :  { %v105_v46 = vsel %vm97_vm14, %v4973_v3, 2 }
 0xaec   :  { %v155_v49 = vsel %vm69_vm0, %v105_v46, 2147483647 }
 0xaed   :  { %v157_v60 = vshra.s32 %v155_v49, 16  ;;  %v156_v44 = vand.u32 65535, %v155_v49 }
 0xaef   :  { %v159_v63 = vcvt.s32.f32 %v157_v60  ;;  %v158_v10 = vcvt.s32.f32 %v156_v44  ;;  %v1444_v60 = vadd.f32 %v5547_v32, %v5549_v39  ;;  %v4579_v39 = vld [vmem:[%s6549_s0 + $0xc] sm:$0xf] }
 0xaf0   :  { %4583 = vmatmul.msk.f32.vlgmr.msra.gmra.mxu0 %vm56_vm9, %v4579_v39 }
 0xaf1   :  { %160 = vmin.xlane.f32.xlu1 %v159_v63 }
 0xaf8   :  { %4589 = vmatmul.msk.f32.vlgmr.msrb.gmra.mxu0 %vm56_vm9, %v4579_v39 }
 0xb54   :  { %v1741_v28 = vpop.f32.mrf.mxu1 }
 0xb55   :  { %v1762_v31 = vadd.f32 %v1761_v5, %v1741_v28 }
 0xb57   :  { %v1764_v58 = vadd.f32 %v5554_v24, %v1762_v31 }
 0xb59   :  { %4573 = vmatpush.msk.msra.mxu3 %vm712_vm4, %v1764_v58 }
 0xb5a   :  { %4574 = vmatmul.msk.f32.vlgmr.msra.gmra.mxu3 %vm539_vm2, %v5190_v47 }
 0xb5b   :  { %1942 = vmatpush.msrb.mxu3 %v5563_v23 }
 0xb5d   :  { %1943 = vmatpush.msrb.mxu3 %v5569_v54 }
 0xb5f   :  { %2263 = vmatpush.msra.mxu3 %v5575_v40 }
 0xb61   :  { %2264 = vmatpush.msra.mxu3 %v5581_v55 }
 0xb64   :  { %v161_v37 = vpop.xlane.xlu1 %160 }
 0xb65   :  { %vm162_vm14 = vcmp.eq.f32.partialorder %v159_v63, %v161_v37 }
 0xb66   :  { %v163_v38 = vsel %vm162_vm14, %v158_v10, inf }
 0xbdd   :  { %v1785_v30 = vpop.f32.mrf.mxu3 }
 0xbde   :  { %v1811_v16 = vadd.f32 %v5514_v50, %v1785_v30 }
 0xbe0   :  { %v4576_v18 = vmul.f32 -1.442695, %v1811_v16 }
 0xbe2   :  { %4741 = vpow2.f32 %v4576_v18 }
 0xbe8   :  { %v4742_v62 = vpop.eup %4741 }
 0xbe9   :  { %v1815_v35 = vadd.f32 1.0, %v4742_v62 }
 0xbeb   :  { %4743 = vrcp.f32 %v1815_v35  ;;  %v1827_v7 = vand.u32 2147483648, %v1815_v35  ;;  %v1825_v11 = vand.u32 2147483647, %v1815_v35  ;;  %vm1821_vm1 = vweird.f32 %v1815_v35 }
 0xbed   :  { %v1828_v0 = vor.u32 1.1754944e-38, %v1827_v7  ;;  %vm1826_vm3 = vcmp.eq.f32.partialorder %v1825_v11, 8.507059e+37  ;;  %v1857_v11 = vpop.permute.xlu0 %1856 }
 0xbf1   :  { %v4744_v41 = vpop.eup %4743 }
 0xbf2   :  { %v1817_v6 = vmul.f32 %v4744_v41, %v1815_v35  ;;  %vm1822_vm15 = vweird.f32 %v4744_v41 }
 0xbf3   :  { %vm1823_vm5 = vmor %vm1821_vm1, %vm1822_vm15 }
 0xbf4   :  { %v1818_v8 = vsub.f32 1.0, %v1817_v6 }
 0xbf6   :  { %v1819_v52 = vmul.f32 %v4744_v41, %v1818_v8 }
 0xbf8   :  { %v1820_v50 = vadd.f32 %v4744_v41, %v1819_v52 }
 0xbfa   :  { %v1824_v14 = vsel %vm1823_vm5, %v4744_v41, %v1820_v50 }
 0xbfb   :  { %v1829_v59 = vsel %vm1826_vm3, %v1828_v0, %v1824_v14  ;;  %v1859_v0 = vmul.f32 %v1857_v11, %v5396_v53 }
 0xbfc   :  { %v1835_v15 = vmul.f32 %v1833_v34, %v1829_v59  ;;  %v1842_v27 = vsub.f32 1.0, %v1829_v59 }
 0xbfe   :  { %1837 = vrot.lane.b32.xlu2 %v1835_v15, %s4891_s26 }
 0xc06   :  { %1848 = vrot.lane.b32.xlu2 %v5396_v53, %s4892_s27 }
 0xc58   :  { %v1838_v12 = vpop.permute.xlu2 %1837 }
 0xc59   :  { %v1840_v17 = vadd.f32 %v1838_v12, %v1785_v30  ;;  %v167_v30 = vcvt.f32.s32 %v161_v37 }
 0xc5b   :  { %4745 = vtanh.f32 %v1840_v17  ;;  %v168_v16 = vshll.u32 %v167_v30, 16 }
 0xc60   :  { %v1849_v48 = vpop.permute.xlu2 %1848 }
 0xc61   :  { %v4746_v36 = vpop.eup %4745  ;;  %v1851_v5 = vmul.f32 %v1849_v48, %v1829_v59 }
 0xc62   :  { %1844 = vrot.lane.b32.xlu2 %v4746_v36, %s4893_s28 }
 0xc6a   :  { %1862 = vperm.xlu2 %4680, %v5526_v1   ;;  %v5597_v1 = vld [vmem:[%s6547_s7] ss:$0 sm:$0xff] }
 0xc6b   :  { %v1468_v13 = vadd.f32 %v5597_v1, %v1467_v56  ;;  %v5610_v56 = vld [vmem:[%s6556_s6] ss:$0 sm:$0xff] }
 0xc6c   :  { %v1446_v63 = vadd.f32 %v5610_v56, %v1444_v60 }
 0xc6e   :  { %v1470_v35 = vadd.f32 %v1468_v13, %v1446_v63 }
 0xc70   :  { %v4568_v41 = vmul.f32 -1.442695, %v1470_v35  ;;  %v5680_v35 = vld [vmem:[#allocation2 + $0x1c] sm:$0xf] }
 0xc72   :  { %4682 = vset.pattern.permute.xlu2 %v4977_v9  ;;  %4747 = vpow2.f32 %v4568_v41 }
 0xc78   :  { %v4748_v6 = vpop.eup %4747 }
 0xc79   :  { %v1474_v32 = vadd.f32 1.0, %v4748_v6 }
 0xc7b   :  { %4749 = vrcp.f32 %v1474_v32  ;;  %v1486_v15 = vand.u32 2147483648, %v1474_v32  ;;  %vm1480_vm5 = vweird.f32 %v1474_v32  ;;  %v1484_v12 = vand.u32 2147483647, %v1474_v32 }
 0xc7d   :  { %v1487_v36 = vor.u32 1.1754944e-38, %v1486_v15  ;;  %vm1485_vm14 = vcmp.eq.f32.partialorder %v1484_v12, 8.507059e+37 }
 0xc81   :  { %v4750_v8 = vpop.eup %4749 }
 0xc82   :  { %v1476_v7 = vmul.f32 %v4750_v8, %v1474_v32  ;;  %vm1481_vm1 = vweird.f32 %v4750_v8 }
 0xc83   :  { %vm1482_vm3 = vmor %vm1480_vm5, %vm1481_vm1  ;;  %vm6566_vm1 = vcmask 1045509   ;;  %vm6567_vm5 = vcmask 1046534  }
 0xc84   :  { %v1477_v52 = vsub.f32 1.0, %v1476_v7 }
 0xc86   :  { %v1478_v50 = vmul.f32 %v4750_v8, %v1477_v52 }
 0xc88   :  { %v1479_v59 = vadd.f32 %v4750_v8, %v1478_v50 }
 0xc8a   :  { %v1483_v17 = vsel %vm1482_vm3, %v4750_v8, %v1479_v59  ;;  %vm6568_vm3 = vcmask 1047559  }
 0xc8b   :  { %v1488_v53 = vsel %vm1485_vm14, %v1487_v36, %v1483_v17 }
 0xc93   :  { %164 = vmin.xlane.f32.xlu2 %v163_v38 }
 0xcbc   :  { %v1845_v45 = vpop.permute.xlu2 %1844 }
 0xcbd   :  { %v1847_v29 = vmul.f32 %v1845_v45, %v1842_v27  ;;  %v5661_v45 = vld [vmem:[#allocation2] sm:$0xf] }
 0xcbf   :  { %v1852_v28 = vadd.f32 %v1851_v5, %v1847_v29  ;;  %v1501_v29 = vsub.f32 1.0, %v1488_v53 }
 0xcc4   :  { %v1863_v31 = vpop.permute.xlu2 %1862 }
 0xcc5   :  { %v1865_v58 = vmul.f32 %v1863_v31, %v1852_v28 }
 0xcc7   :  { %1867 = vrot.lane.b32.xlu1 %v1865_v58, %s4893_s28 }
 0xccf   :  { %1491 = vrot.lane.b32.xlu1 %v1468_v13, %s4890_s19  ;;  %v5666_v13 = vld [vmem:[#allocation2 + $0xc] sm:$0xf] }
 0xcd7   :  { %1507 = vrot.lane.b32.xlu1 %v5472_v4, %s4892_s27 }
 0xd06   :  { %v165_v46 = vpop.xlane.xlu2 %164 }
 0xd07   :  { %v166_v18 = vcvt.f32.s32 %v165_v46  ;;  %v5670_v46 = vld [vmem:[#allocation2 + $0x4] sm:$0xf] }
 0xd09   :  { %v169_v49 = vadd.s32 %v168_v16, %v166_v18 }
 0xd0b   :  { %v236_v62 = vadd.s32 %v5028_v61, %v169_v49  ;;  %v5673_v49 = vld [vmem:[#allocation2 + $0x10] sm:$0xf] }
 0xd0d   :  { %vm244_vm15 = vcmp.eq.s32.totalorder %v4973_v3, %v236_v62 }
 0xd0e   :  { %v4526_v4 = vsel %vm244_vm15, 1.0, %v4888_v51  ;;  %vm2097_vm15 = vcmp.lt.s32.totalorder %v4977_v9, 3 }
 0xd0f   :  { %269 = vst.msk [vmem:[#allocation5 + $0xc] sm:$0xf] %vm265_vm11, %v4526_v4  ;;  %v5678_v4 = vld [vmem:[#allocation2 + $0x14] sm:$0xf] }
 0xd16   :  { %v5630_v38 = vld [vmem:[#allocation5 + $0xc] sm:$0xf] }
 0xd39   :  { %v1868_v14 = vpop.permute.xlu1 %1867 }
 0xd3a   :  { %v1870_v34 = vadd.f32 %v1868_v14, %v1859_v0  ;;  %v5696_v0 = vld [vmem:[#allocation2 + $0x18] sm:$0xf] }
 0xd3c   :  { %1871 = vst.msk [vmem:[#allocation3] sm:$0xff] %vm56_vm9, %v1870_v34  ;;  %1887 = vmatpush.msrb.mxu1 %v1870_v34 }
 0xd3d   :  { %4577 = vmatmul.msk.f32.vlgmr.msrb.gmra.mxu1 %vm304_vm13, %v5399_v20 }
 0xd3e   :  { %1989 = vmatpush.msra.mxu1 %v5387_v2  ;;  %v5639_v2 = vld [vmem:[%s6554_s10 + $0x8] sm:$0xff] }
 0xd40   :  { %1990 = vmatpush.msra.mxu1 %v5393_v19  ;;  %v5645_v19 = vld [vmem:[%s6554_s10] sm:$0xff] }
 0xd41   :  { %v1492_v44 = vpop.permute.xlu1 %1491 }
 0xd42   :  { %v1494_v37 = vmul.f32 %v1492_v44, %v1488_v53 }
 0xd43   :  { %v5626_v10 = vld [vmem:[#allocation3] sm:$0xff] }
 0xd44   :  { %1920 = vmatpush.msrb.mxu2 %v5626_v10  ;;  %1496 = vrot.lane.b32.xlu2 %v1494_v37, %s4891_s26 }
 0xd45   :  { %4581 = vmatmul.msk.f32.vlgmr.msrb.gmra.mxu2 %vm304_vm13, %v5630_v38 }
 0xd46   :  { %2059 = vmatpush.msra.mxu2 %v5406_v42 }
 0xd48   :  { %2060 = vmatpush.msra.mxu2 %v5412_v57 }
 0xd49   :  { %v1508_v27 = vpop.permute.xlu1 %1507 }
 0xd4a   :  { %2330 = vmatpush.msrb.mxu2 %v5639_v2  ;;  %v1510_v28 = vmul.f32 %v1508_v27, %v1488_v53 }
 0xd4c   :  { %2331 = vmatpush.msrb.mxu2 %v5645_v19 }
 0xd4d   :  { %4586 = vmatmul.msk.f32.vlgmr.msra.gmra.mxu2 %vm56_vm9, %v4579_v39 }
 0xd4e   :  { %2490 = vmatpush.msra.mxu2 %v5421_v21 }
 0xd50   :  { %2491 = vmatpush.msra.mxu2 %v5427_v22 }
 0xd55   :  { %4592 = vmatmul.msk.f32.vlgmr.msrb.gmra.mxu2 %vm56_vm9, %v5626_v10 }
 0xd56   :  { %2808 = vmatpush.msrb.mxu2 %v5435_v33 }
 0xd58   :  { %2809 = vmatpush.msrb.mxu2 %v5441_v26 }
 0xd9e   :  { %v1497_v20 = vpop.permute.xlu2 %1496 }
 0xd9f   :  { %v1499_v42 = vadd.f32 %v1497_v20, %v1446_v63 }
 0xda1   :  { %4751 = vtanh.f32 %v1499_v42 }
 0xda7   :  { %v4752_v57 = vpop.eup %4751 }
 0xda8   :  { %1503 = vrot.lane.b32.xlu0 %v4752_v57, %s4893_s28 }
 0xdba   :  { %v1889_v48 = vpop.f32.mrf.mxu1 }
 0xdbb   :  { %4578 = vst.msk [vmem:[%s6559_s14 + $0x8] sm:$0xf] %vm47_vm10, %v1889_v48 }
 0xdc8   :  { %v1922_v21 = vpop.f32.mrf.mxu2 }
 0xdc9   :  { %4582 = vmatmul.msk.f32.vlgmr.msrb.gmra.mxu3 %vm56_vm9, %v1922_v21 }
 0xdd0   :  { %v2062_v22 = vpop.f32.mrf.mxu2 }
 0xdd1   :  { %v2065_v33 = vmul.f32 %v2062_v22, %v5661_v45  ;;  %v2068_v30 = vmul.f32 %v2062_v22, %v5666_v13  ;;  %v2066_v18 = vmul.f32 %v2062_v22, %v5670_v46  ;;  %v2069_v62 = vmul.f32 %v2062_v22, %v5673_v49 }
 0xdd2   :  { %v2070_v41 = vmul.f32 %v2062_v22, %v5678_v4  ;;  %v2072_v6 = vmul.f32 %v2062_v22, %v5680_v35  ;;  %v2071_v14 = vmul.f32 %v2062_v22, %v5696_v0 }
 0xdd3   :  { %v2073_v26 = vsel %vm47_vm10, %v2065_v33, 0.0  ;;  %v2082_v16 = vsel %vm47_vm10, %v2068_v30, 0.0  ;;  %v2076_v60 = vsel %vm47_vm10, %v2066_v18, 0.0  ;;  %v2085_v63 = vsel %vm47_vm10, %v2069_v62, 0.0 }
 0xdd4   :  { %2074 = vadd.xlane.f32.xlu1 %v2073_v26  ;;  %v2088_v32 = vsel %vm47_vm10, %v2070_v41, 0.0  ;;  %v2094_v39 = vsel %vm47_vm10, %v2072_v6, 0.0  ;;  %v2091_v34 = vsel %vm47_vm10, %v2071_v14, 0.0 }
 0xddc   :  { %2083 = vadd.xlane.f32.xlu1 %v2082_v16 }
 0xde4   :  { %2089 = vadd.xlane.f32.xlu1 %v2088_v32 }
 0xe1a   :  { %v1504_v5 = vpop.permute.xlu0 %1503 }
 0xe1b   :  { %v1506_v31 = vmul.f32 %v1504_v5, %v1501_v29 }
 0xe1d   :  { %v1511_v58 = vadd.f32 %v1510_v28, %v1506_v31 }
 0xe1f   :  { %1715 = vrot.lane.b32.xlu0 %v1511_v58, %s4893_s28 }
 0xe47   :  { %v2075_v59 = vpop.xlane.xlu1 %2074 }
 0xe48   :  { %v2106_v53 = vperm.slane %v2075_v59, %v4973_v3 }
 0xe49   :  { %2077 = vadd.xlane.f32.xlu0 %v2076_v60 }
 0xe4f   :  { %v2084_v12 = vpop.xlane.xlu1 %2083 }
 0xe50   :  { %v2109_v42 = vperm.slane %v2084_v12, %v4973_v3 }
 0xe51   :  { %2086 = vadd.xlane.f32.xlu0 %v2085_v63 }
 0xe59   :  { %2095 = vadd.xlane.f32.xlu0 %v2094_v39 }
 0xe91   :  { %v1716_v8 = vpop.permute.xlu0 %1715 }
 0xe92   :  { %1719 = vst.msk [vmem:[#allocation2 + $0x8] sm:$0xf] %vm47_vm10, %v1716_v8 }
 0xe93   :  { %1720 = vst.msk [vmem:[#allocation4] sm:$0xf] %vm47_vm10, %v1716_v8 }
 0xe99   :  { %v5688_v7 = vld [vmem:[#allocation2 + $0x8] sm:$0xf] }
 0xe9a   :  { %v5690_v52 = vld [vmem:[#allocation4] sm:$0xf]  ;;  %v2067_v11 = vmul.f32 %v2062_v22, %v5688_v7  ;;  %v2090_v22 = vpop.xlane.xlu1 %2089 }
 0xe9b   :  { %4584 = vmatmul.msk.f32.vlgmr.msra.gmra.mxu1 %vm56_vm9, %v5690_v52  ;;  %v2111_v27 = vperm.slane %v2090_v22, %v4973_v3 }
 0xe9c   :  { %v2079_v50 = vsel %vm47_vm10, %v2067_v11, 0.0  ;;  %v4587_v11 = vsel %vm2097_vm15, 1.0, %v4888_v51 }
 0xe9d   :  { %2080 = vadd.xlane.f32.xlu2 %v2079_v50 }
 0xea5   :  { %2092 = vadd.xlane.f32.xlu2 %v2091_v34 }
 0xebc   :  { %v2078_v15 = vpop.xlane.xlu0 %2077 }
 0xebd   :  { %v2107_v36 = vperm.slane %v2078_v15, %v4973_v3 }
 0xebf   :  { %v2114_v20 = vsel %vm523_vm6, %v2107_v36, %v2106_v53 }
 0xec4   :  { %v2087_v17 = vpop.xlane.xlu0 %2086 }
 0xec5   :  { %v2110_v21 = vperm.slane %v2087_v17, %v4973_v3 }
 0xecc   :  { %v2096_v33 = vpop.xlane.xlu0 %2095 }
 0xecd   :  { %v2113_v28 = vperm.slane %v2096_v33, %v4973_v3 }
 0xf10   :  { %v2081_v44 = vpop.xlane.xlu2 %2080 }
 0xf11   :  { %v2108_v37 = vperm.slane %v2081_v44, %v4973_v3 }
 0xf13   :  { %v2115_v57 = vsel %vm525_vm7, %v2108_v37, %v2114_v20 }
 0xf14   :  { %v2116_v48 = vsel %vm527_vm8, %v2109_v42, %v2115_v57 }
 0xf15   :  { %v2117_v26 = vsel %vm529_vm12, %v2110_v21, %v2116_v48 }
 0xf16   :  { %v2118_v31 = vsel %vm6566_vm1, %v2111_v27, %v2117_v26 }
 0xf18   :  { %v2093_v29 = vpop.xlane.xlu2 %2092 }
 0xf19   :  { %v2112_v5 = vperm.slane %v2093_v29, %v4973_v3 }
 0xf1b   :  { %v2119_v58 = vsel %vm6567_vm5, %v2112_v5, %v2118_v31 }
 0xf1c   :  { %v2120_v30 = vsel %vm6568_vm3, %v2113_v28, %v2119_v58 }
 0xf1d   :  { %v2122_v16 = vsel %vm2097_vm15, %v2120_v30, -1e+30 }
 0xf1e   :  { %v2123_v18 = vsel %vm539_vm2, %v2122_v16, -inf }
 0xf1f   :  { %v2124_v60 = vrot.slane %v2123_v18, 4 }
 0xf21   :  { %v2125_v62 = vmax.f32 %v2123_v18, %v2124_v60  ;;  %v2333_v60 = vpop.f32.mrf.mxu2 }
 0xf23   :  { %v2126_v63 = vrot.slane %v2125_v62, 2 }
 0xf25   :  { %v2127_v41 = vmax.f32 %v2125_v62, %v2126_v63  ;;  %v2334_v62 = vadd.f32 %v5511_v43, %v2333_v60 }
 0xf27   :  { %v2128_v6 = vrot.slane %v2127_v41, 1 }
 0xf29   :  { %v2129_v32 = vmax.f32 %v2127_v41, %v2128_v6  ;;  %v63_v41 = vld [vmem:[%s6545_s1 + $0x10] sm:$0xf] }
 0xf2a   :  { %v82_v6 = vsel %vm69_vm0, %v63_v41, -inf }
 0xf2b   :  { %v2130_v39 = vsub.f32 %v2122_v16, %v2129_v32  ;;  %v5730_v32 = vld [vmem:[%s6555_s2 + $0x18] sm:$0xff] }
 0xf2c   :  { %v2378_v43 = vsub.f32 1.0, %v5730_v32 }
 0xf2d   :  { %v2131_v8 = vmul.f32 1.442695, %v2130_v39 }
 0xf2f   :  { %4753 = vpow2.f32 %v2131_v8 }
 0xf35   :  { %v4754_v50 = vpop.eup %4753 }
 0xf36   :  { %v2135_v14 = vmul.f32 %v4754_v50, %v4587_v11 }
 0xf38   :  { %v2136_v34 = vsel %vm539_vm2, %v2135_v14, 0.0 }
 0xf39   :  { %v2137_v59 = vrot.slane %v2136_v34, 4 }
 0xf3b   :  { %v2138_v15 = vadd.f32 %v2137_v59, %v2136_v34 }
 0xf3d   :  { %v2139_v12 = vrot.slane %v2138_v15, 2 }
 0xf3f   :  { %v2140_v17 = vadd.f32 %v2139_v12, %v2138_v15 }
 0xf41   :  { %v2141_v36 = vrot.slane %v2140_v17, 1 }
 0xf43   :  { %v2142_v53 = vadd.f32 %v2141_v36, %v2140_v17 }
 0xf45   :  { %vm2143_vm14 = vcmp.eq.f32.partialorder %v2142_v53, 0.0 }
 0xf46   :  { %v2144_v44 = vsel %vm2143_vm14, 1.0, %v2142_v53 }
 0xf47   :  { %4755 = vrcp.f32 %v2144_v44  ;;  %v2156_v57 = vand.u32 2147483648, %v2144_v44  ;;  %v2154_v21 = vand.u32 2147483647, %v2144_v44  ;;  %vm2150_vm15 = vweird.f32 %v2144_v44 }
 0xf49   :  { %v2157_v33 = vor.u32 1.1754944e-38, %v2156_v57  ;;  %vm2155_vm3 = vcmp.eq.f32.partialorder %v2154_v21, 8.507059e+37 }
 0xf4d   :  { %v4756_v37 = vpop.eup %4755 }
 0xf4e   :  { %v2146_v20 = vmul.f32 %v4756_v37, %v2144_v44  ;;  %vm2151_vm1 = vweird.f32 %v4756_v37 }
 0xf4f   :  { %vm2152_vm5 = vmor %vm2150_vm15, %vm2151_vm1 }
 0xf50   :  { %v2147_v42 = vsub.f32 1.0, %v2146_v20 }
 0xf52   :  { %v2148_v48 = vmul.f32 %v4756_v37, %v2147_v42 }
 0xf54   :  { %v2149_v22 = vadd.f32 %v4756_v37, %v2148_v48 }
 0xf56   :  { %v2153_v26 = vsel %vm2152_vm5, %v4756_v37, %v2149_v22 }
 0xf57   :  { %v2158_v27 = vsel %vm2155_vm3, %v2157_v33, %v2153_v26 }
 0xf58   :  { %v2159_v29 = vmul.f32 %v2158_v27, %v2135_v14 }
 0xf5a   :  { %v2174_v5 = vperm.slane %v2159_v29, 2  ;;  %v2167_v28 = vperm.slane %v2159_v29, 1  ;;  %v2160_v31 = vperm.slane %v2159_v29, 0  ;;  %v2188_v58 = vperm.slane %v2159_v29, 4 }
 0xf5b   :  { %v2181_v30 = vperm.slane %v2159_v29, 3  ;;  %v2202_v16 = vperm.slane %v2159_v29, 6  ;;  %v2195_v18 = vperm.slane %v2159_v29, 5  ;;  %v2209_v63 = vperm.slane %v2159_v29, 7 }
 0xf5c   :  { %2179 = vperm.xlu0 %4683, %v2174_v5   ;;  %2172 = vperm.xlu2 %4682, %v2167_v28   ;;  %v5755_v28 = vpop.f32.mrf.mxu3 }
 0xf5d   :  { %2165 = vperm.xlu1 %4677, %v2160_v31  }
 0xf64   :  { %2193 = vperm.xlu2 %4682, %v2188_v58   ;;  %4685 = vset.pattern.permute.xlu0 %v4889_v25 }
 0xf65   :  { %2186 = vperm.xlu1 %4677, %v2181_v30  }
 0xf6c   :  { %2207 = vperm.xlu2 %4682, %v2202_v16  }
 0xf6d   :  { %2200 = vperm.xlu1 %4677, %v2195_v18  }
 0xf74   :  { %2357 = vrot.lane.b32.xlu2 %v2334_v62, %s4890_s19 }
 0xf75   :  { %2214 = vperm.xlu1 %4677, %v2209_v63  }
 0xf7d   :  { %4684 = vset.pattern.permute.xlu1 %v4889_v25 }
 0xf86   :  { %83 = vmax.xlane.f32.xlu0 %v82_v6 }
 0xf9a   :  { %2381 = vperm.xlu0 %4685, %v2378_v43  }
 0xfa2   :  { %2032 = vrot.lane.b32.xlu0 %v5690_v52, %s4892_s27 }
 0xfa3   :  { %4686 = vset.pattern.permute.xlu0 %v4977_v9 }
 0xfb6   :  { %v2173_v39 = vpop.permute.xlu2 %2172 }
 0xfb7   :  { %v2217_v50 = vmul.f32 %v2173_v39, %v5670_v46 }
 0xfb9   :  { %v2225_v12 = vsel %vm47_vm10, %v2217_v50, 0.0 }
 0xfbe   :  { %v2194_v59 = vpop.permute.xlu2 %2193 }
 0xfc6   :  { %v2208_v57 = vpop.permute.xlu2 %2207 }
 0xfce   :  { %v2180_v14 = vpop.permute.xlu0 %2179 }
 0xfcf   :  { %v2166_v8 = vpop.permute.xlu1 %2165  ;;  %v2218_v17 = vmul.f32 %v2180_v14, %v5688_v7 }
 0xfd0   :  { %v2216_v11 = vmul.f32 %v2166_v8, %v5661_v45  ;;  %v2220_v45 = vmul.f32 %v2194_v59, %v5673_v49  ;;  %v2358_v59 = vpop.permute.xlu2 %2357 }
 0xfd1   :  { %v2227_v53 = vsel %vm47_vm10, %v2218_v17, 0.0 }
 0xfd2   :  { %v2224_v34 = vsel %vm47_vm10, %v2216_v11, 0.0  ;;  %v2231_v48 = vsel %vm47_vm10, %v2220_v45, 0.0 }
 0xfd3   :  { %v2226_v52 = vadd.f32 %v2225_v12, %v2224_v34 }
 0xfd5   :  { %v2228_v37 = vadd.f32 %v2227_v53, %v2226_v52 }
 0xfd7   :  { %v2187_v15 = vpop.permute.xlu1 %2186 }
 0xfd8   :  { %v2219_v36 = vmul.f32 %v2187_v15, %v5666_v13  ;;  %v2222_v13 = vmul.f32 %v2208_v57, %v5696_v0 }
 0xfda   :  { %v2229_v44 = vsel %vm47_vm10, %v2219_v36, 0.0  ;;  %v2235_v26 = vsel %vm47_vm10, %v2222_v13, 0.0 }
 0xfdb   :  { %v2230_v46 = vadd.f32 %v2229_v44, %v2228_v37 }
 0xfdd   :  { %v2232_v7 = vadd.f32 %v2231_v48, %v2230_v46 }
 0xfdf   :  { %v2201_v20 = vpop.permute.xlu1 %2200 }
 0xfe0   :  { %v2221_v42 = vmul.f32 %v2201_v20, %v5678_v4  ;;  %v5753_v4 = vpop.f32.mrf.mxu0 }
 0xfe2   :  { %v2233_v21 = vsel %vm47_vm10, %v2221_v42, 0.0 }
 0xfe3   :  { %v2234_v22 = vadd.f32 %v2233_v21, %v2232_v7 }
 0xfe5   :  { %v2236_v29 = vadd.f32 %v2235_v26, %v2234_v22 }
 0xfe7   :  { %v2215_v33 = vpop.permute.xlu1 %2214 }
 0xfe8   :  { %v2223_v27 = vmul.f32 %v2215_v33, %v5680_v35  ;;  %v2286_v31 = vpop.f32.mrf.mxu0  ;;  %v1992_v35 = vpop.f32.mrf.mxu1 }
 0xfea   :  { %v2237_v49 = vsel %vm47_vm10, %v2223_v27, 0.0 }
 0xfeb   :  { %v2238_v5 = vadd.f32 %v2237_v49, %v2236_v29  ;;  %v1969_v29 = vadd.f32 %v5753_v4, %v5755_v28  ;;  %v4596_v4 = vld [vmem:[%s6549_s0 + $0x10] sm:$0xf] }
 0xfec   :  { %4600 = vmatmul.msk.f32.vlgmr.msra.gmra.mxu2 %vm56_vm9, %v4596_v4 }
 0xfed   :  { %4588 = vmatmul.msk.f32.vlgmr.msra.gmra.mxu3 %vm56_vm9, %v2238_v5 }
 0xff4   :  { %4606 = vmatmul.msk.f32.vlgmr.msrb.gmra.mxu2 %vm56_vm9, %v4596_v4 }
 0xff9   :  { %v84_v16 = vpop.xlane.xlu0 %83 }
 0xffa   :  { %vm98_vm14 = vcmp.eq.f32.partialorder %v63_v41, %v84_v16 }
0x1070   :  { %v2266_v58 = vpop.f32.mrf.mxu3 }
0x1071   :  { %v2287_v30 = vadd.f32 %v2286_v31, %v2266_v58  ;;  %v1971_v31 = vadd.f32 %v5610_v56, %v1969_v29 }
0x1073   :  { %v2289_v0 = vadd.f32 %v5554_v24, %v2287_v30  ;;  %v106_v24 = vsel %vm98_vm14, %v4973_v3, 2 }
0x1074   :  { %v170_v6 = vsel %vm69_vm0, %v106_v24, 2147483647 }
0x1075   :  { %4590 = vmatpush.msk.msrb.mxu1 %vm712_vm4, %v2289_v0  ;;  %v172_v43 = vshra.s32 %v170_v6, 16  ;;  %v171_v53 = vand.u32 65535, %v170_v6 }
0x1076   :  { %4591 = vmatmul.msk.f32.vlgmr.msrb.gmra.mxu1 %vm539_vm2, %v5190_v47 }
0x1077   :  { %2467 = vmatpush.msra.mxu1 %v5563_v23  ;;  %v174_v23 = vcvt.s32.f32 %v172_v43  ;;  %v173_v37 = vcvt.s32.f32 %v171_v53 }
0x1079   :  { %2468 = vmatpush.msra.mxu1 %v5569_v54  ;;  %175 = vmin.xlane.f32.xlu2 %v174_v23 }
0x107b   :  { %2788 = vmatpush.msrb.mxu1 %v5575_v40 }
0x107d   :  { %2789 = vmatpush.msrb.mxu1 %v5581_v55 }
0x10ec   :  { %v176_v44 = vpop.xlane.xlu2 %175 }
0x10ed   :  { %vm177_vm14 = vcmp.eq.f32.partialorder %v174_v23, %v176_v44  ;;  %v182_v22 = vcvt.f32.s32 %v176_v44  ;;  %v5859_v44 = vld [vmem:[#allocation2 + $0x8] sm:$0xf] }
0x10ee   :  { %v178_v45 = vsel %vm177_vm14, %v173_v37, inf  ;;  %v5861_v37 = vld [vmem:[#allocation2] sm:$0xf] }
0x10ef   :  { %v183_v33 = vshll.u32 %v182_v22, 16  ;;  %v5868_v22 = vld [vmem:[#allocation2 + $0x4] sm:$0xf] }
0x10f3   :  { %v2310_v18 = vpop.f32.mrf.mxu1 }
0x10f4   :  { %v2336_v60 = vadd.f32 %v2334_v62, %v2310_v18 }
0x10f6   :  { %v4593_v63 = vmul.f32 -1.442695, %v2336_v60 }
0x10f8   :  { %4757 = vpow2.f32 %v4593_v63 }
0x10fe   :  { %v4758_v39 = vpop.eup %4757 }
0x10ff   :  { %v2340_v8 = vadd.f32 1.0, %v4758_v39 }
0x1101   :  { %4759 = vrcp.f32 %v2340_v8  ;;  %v2352_v11 = vand.u32 2147483648, %v2340_v8  ;;  %v2350_v41 = vand.u32 2147483647, %v2340_v8  ;;  %vm2346_vm15 = vweird.f32 %v2340_v8 }
0x1103   :  { %v2353_v14 = vor.u32 1.1754944e-38, %v2352_v11  ;;  %vm2351_vm3 = vcmp.eq.f32.partialorder %v2350_v41, 8.507059e+37 }
0x1107   :  { %v4760_v54 = vpop.eup %4759 }
0x1108   :  { %v2342_v40 = vmul.f32 %v4760_v54, %v2340_v8  ;;  %vm2347_vm1 = vweird.f32 %v4760_v54 }
0x1109   :  { %vm2348_vm5 = vmor %vm2346_vm15, %vm2347_vm1 }
0x110a   :  { %v2343_v55 = vsub.f32 1.0, %v2342_v40  ;;  %v5801_v40 = vld [vmem:[%s6546_s5] sm:$0xff] }
0x110c   :  { %v2344_v50 = vmul.f32 %v4760_v54, %v2343_v55 }
0x110e   :  { %v2345_v62 = vadd.f32 %v4760_v54, %v2344_v50 }
0x1110   :  { %v2349_v34 = vsel %vm2348_vm5, %v4760_v54, %v2345_v62  ;;  %v5795_v54 = vld [vmem:[%s6546_s5 + $0x8] sm:$0xff] }
0x1111   :  { %v2354_v15 = vsel %vm2351_vm3, %v2353_v14, %v2349_v34  ;;  %v5815_v62 = vld [vmem:[%s6553_s13 + $0x8] sm:$0xff]  ;;  %v5821_v14 = vld [vmem:[%s6553_s13] sm:$0xff] }
0x1112   :  { %v2360_v12 = vmul.f32 %v2358_v59, %v2354_v15  ;;  %v2367_v42 = vsub.f32 1.0, %v2354_v15  ;;  %v5830_v34 = vld [vmem:[%s6548_s3 + $0x8] sm:$0xff]  ;;  %v5836_v59 = vld [vmem:[%s6548_s3] sm:$0xff] }
0x1114   :  { %2362 = vrot.lane.b32.xlu1 %v2360_v12, %s4891_s26 }
0x111c   :  { %2373 = vrot.lane.b32.xlu1 %v5626_v10, %s4892_s27 }
0x1186   :  { %v2363_v17 = vpop.permute.xlu1 %2362 }
0x1187   :  { %v2365_v36 = vadd.f32 %v2363_v17, %v2310_v18  ;;  %v2382_v18 = vpop.permute.xlu0 %2381 }
0x1188   :  { %v2384_v24 = vmul.f32 %v2382_v18, %v5626_v10  ;;  %v5894_v18 = vld [vmem:[#allocation2 + $0x14] sm:$0xf] }
0x1189   :  { %4761 = vtanh.f32 %v2365_v36 }
0x118e   :  { %v2374_v46 = vpop.permute.xlu1 %2373 }
0x118f   :  { %v4762_v52 = vpop.eup %4761  ;;  %v2376_v48 = vmul.f32 %v2374_v46, %v2354_v15 }
0x1190   :  { %2369 = vrot.lane.b32.xlu1 %v4762_v52, %s4893_s28 }
0x1198   :  { %2387 = vperm.xlu1 %4684, %v5730_v32   ;;  %v1993_v32 = vadd.f32 %v5597_v1, %v1992_v35 }
0x119a   :  { %v1995_v30 = vadd.f32 %v1993_v32, %v1971_v31 }
0x119c   :  { %v4585_v1 = vmul.f32 -1.442695, %v1995_v30 }
0x119e   :  { %4763 = vpow2.f32 %v4585_v1 }
0x11a0   :  { %4687 = vset.pattern.permute.xlu1 %v4977_v9 }
0x11a4   :  { %v4764_v0 = vpop.eup %4763 }
0x11a5   :  { %v1999_v35 = vadd.f32 1.0, %v4764_v0 }
0x11a7   :  { %4765 = vrcp.f32 %v1999_v35  ;;  %v2011_v39 = vand.u32 2147483648, %v1999_v35  ;;  %vm2005_vm5 = vweird.f32 %v1999_v35  ;;  %v2009_v23 = vand.u32 2147483647, %v1999_v35 }
0x11a9   :  { %v2012_v10 = vor.u32 1.1754944e-38, %v2011_v39  ;;  %vm2010_vm14 = vcmp.eq.f32.partialorder %v2009_v23, 8.507059e+37 }
0x11ad   :  { %v4766_v28 = vpop.eup %4765 }
0x11ae   :  { %v2001_v56 = vmul.f32 %v4766_v28, %v1999_v35  ;;  %vm2006_vm15 = vweird.f32 %v4766_v28 }
0x11af   :  { %vm2007_vm3 = vmor %vm2005_vm5, %vm2006_vm15  ;;  %vm6569_vm15 = vcmask 1045509   ;;  %vm6570_vm5 = vcmask 1046534  }
0x11b0   :  { %v2002_v16 = vsub.f32 1.0, %v2001_v56 }
0x11b2   :  { %v2003_v60 = vmul.f32 %v4766_v28, %v2002_v16 }
0x11b4   :  { %v2004_v6 = vadd.f32 %v4766_v28, %v2003_v60 }
0x11b6   :  { %v2008_v8 = vsel %vm2007_vm3, %v4766_v28, %v2004_v6  ;;  %vm6571_vm3 = vcmask 1047559  }
0x11b7   :  { %v2013_v55 = vsel %vm2010_vm14, %v2012_v10, %v2008_v8 }
0x11c2   :  { %179 = vmin.xlane.f32.xlu1 %v178_v45 }
0x1202   :  { %v2370_v20 = vpop.permute.xlu1 %2369 }
0x1203   :  { %v2372_v57 = vmul.f32 %v2370_v20, %v2367_v42 }
0x1205   :  { %v2377_v21 = vadd.f32 %v2376_v48, %v2372_v57  ;;  %v2033_v57 = vpop.permute.xlu0 %2032  ;;  %v2026_v48 = vsub.f32 1.0, %v2013_v55 }
0x120a   :  { %v2388_v7 = vpop.permute.xlu1 %2387 }
0x120b   :  { %v2390_v13 = vmul.f32 %v2388_v7, %v2377_v21  ;;  %v2035_v7 = vmul.f32 %v2033_v57, %v2013_v55 }
0x120d   :  { %2392 = vrot.lane.b32.xlu2 %v2390_v13, %s4893_s28 }
0x1215   :  { %2016 = vrot.lane.b32.xlu2 %v1993_v32, %s4890_s19 }
0x1235   :  { %v180_v26 = vpop.xlane.xlu1 %179 }
0x1236   :  { %v181_v27 = vcvt.f32.s32 %v180_v26  ;;  %v5871_v26 = vld [vmem:[#allocation2 + $0x10] sm:$0xf] }
0x1238   :  { %v184_v49 = vadd.s32 %v183_v33, %v181_v27 }
0x123a   :  { %v237_v5 = vadd.s32 %v5028_v61, %v184_v49 }
0x123c   :  { %vm245_vm1 = vcmp.eq.s32.totalorder %v4973_v3, %v237_v5  ;;  %v5876_v5 = vld [vmem:[#allocation2 + $0x18] sm:$0xf] }
0x123d   :  { %v4527_v58 = vsel %vm245_vm1, 1.0, %v4888_v51  ;;  %vm2622_vm1 = vcmp.lt.s32.totalorder %v4977_v9, 4 }
0x123e   :  { %270 = vst.msk [vmem:[#allocation5 + $0x10] sm:$0xf] %vm265_vm11, %v4527_v58 }
0x1245   :  { %v5808_v41 = vld [vmem:[#allocation5 + $0x10] sm:$0xf] }
0x1267   :  { %v2393_v63 = vpop.permute.xlu2 %2392 }
0x1268   :  { %v2395_v43 = vadd.f32 %v2393_v63, %v2384_v24 }
0x126a   :  { %2396 = vst.msk [vmem:[#allocation3] sm:$0xff] %vm56_vm9, %v2395_v43  ;;  %2412 = vmatpush.msrb.mxu3 %v2395_v43 }
0x126b   :  { %4594 = vmatmul.msk.f32.vlgmr.msrb.gmra.mxu3 %vm304_vm13, %v5630_v38 }
0x126c   :  { %2514 = vmatpush.msra.mxu3 %v5795_v54 }
0x126e   :  { %2515 = vmatpush.msra.mxu3 %v5801_v40 }
0x126f   :  { %v2017_v11 = vpop.permute.xlu2 %2016 }
0x1270   :  { %v2019_v38 = vmul.f32 %v2017_v11, %v2013_v55 }
0x1271   :  { %v5804_v50 = vld [vmem:[#allocation3] sm:$0xff] }
0x1272   :  { %2445 = vmatpush.msra.mxu0 %v5804_v50  ;;  %2021 = vrot.lane.b32.xlu1 %v2019_v38, %s4891_s26 }
0x1273   :  { %4598 = vmatmul.msk.f32.vlgmr.msra.gmra.mxu0 %vm304_vm13, %v5808_v41 }
0x1274   :  { %2584 = vmatpush.msrb.mxu0 %v5815_v62 }
0x1276   :  { %2585 = vmatpush.msrb.mxu0 %v5821_v14 }
0x1278   :  { %2855 = vmatpush.msra.mxu0 %v5639_v2  ;;  %v5844_v2 = vld [vmem:[%s6551_s8 + $0x8] sm:$0xff] }
0x127a   :  { %2856 = vmatpush.msra.mxu0 %v5645_v19  ;;  %v5850_v19 = vld [vmem:[%s6551_s8] sm:$0xff] }
0x127b   :  { %4603 = vmatmul.msk.f32.vlgmr.msrb.gmra.mxu0 %vm56_vm9, %v4596_v4 }
0x127c   :  { %3015 = vmatpush.msrb.mxu0 %v5830_v34 }
0x127e   :  { %3016 = vmatpush.msrb.mxu0 %v5836_v59 }
0x1283   :  { %4609 = vmatmul.msk.f32.vlgmr.msra.gmra.mxu0 %vm56_vm9, %v5804_v50 }
0x1284   :  { %3333 = vmatpush.msra.mxu0 %v5844_v2 }
0x1286   :  { %3334 = vmatpush.msra.mxu0 %v5850_v19 }
0x12e4   :  { %v2022_v15 = vpop.permute.xlu1 %2021 }
0x12e5   :  { %v2024_v12 = vadd.f32 %v2022_v15, %v1971_v31  ;;  %v5878_v31 = vld [vmem:[#allocation2 + $0x1c] sm:$0xf] }
0x12e7   :  { %4767 = vtanh.f32 %v2024_v12 }
0x12ed   :  { %v4768_v17 = vpop.eup %4767 }
0x12ee   :  { %v2414_v36 = vpop.f32.mrf.mxu3  ;;  %2028 = vrot.lane.b32.xlu2 %v4768_v17, %s4893_s28 }
0x12ef   :  { %4595 = vst.msk [vmem:[%s6559_s14 + $0xc] sm:$0xf] %vm47_vm10, %v2414_v36 }
0x12f0   :  { %v2447_v52 = vpop.f32.mrf.mxu0 }
0x12f1   :  { %4599 = vmatmul.msk.f32.vlgmr.msra.gmra.mxu1 %vm56_vm9, %v2447_v52 }
0x12f8   :  { %v2587_v53 = vpop.f32.mrf.mxu0 }
0x12f9   :  { %v2592_v45 = vmul.f32 %v2587_v53, %v5859_v44  ;;  %v2590_v46 = vmul.f32 %v2587_v53, %v5861_v37  ;;  %v2591_v33 = vmul.f32 %v2587_v53, %v5868_v22  ;;  %v2594_v29 = vmul.f32 %v2587_v53, %v5871_v26 }
0x12fa   :  { %v2596_v58 = vmul.f32 %v2587_v53, %v5876_v5  ;;  %v2597_v30 = vmul.f32 %v2587_v53, %v5878_v31  ;;  %v2595_v60 = vmul.f32 %v2587_v53, %v5894_v18 }
0x12fb   :  { %v2604_v20 = vsel %vm47_vm10, %v2592_v45, 0.0  ;;  %v2598_v42 = vsel %vm47_vm10, %v2590_v46, 0.0  ;;  %v2601_v27 = vsel %vm47_vm10, %v2591_v33, 0.0  ;;  %v2610_v49 = vsel %vm47_vm10, %v2594_v29, 0.0 }
0x12fc   :  { %2605 = vadd.xlane.f32.xlu1 %v2604_v20  ;;  %2599 = vadd.xlane.f32.xlu0 %v2598_v42  ;;  %v2616_v1 = vsel %vm47_vm10, %v2596_v58, 0.0  ;;  %v2619_v0 = vsel %vm47_vm10, %v2597_v30, 0.0  ;;  %v2613_v24 = vsel %vm47_vm10, %v2595_v60, 0.0 }
0x1304   :  { %2617 = vadd.xlane.f32.xlu1 %v2616_v1 }
0x1348   :  { %v2029_v21 = vpop.permute.xlu2 %2028 }
0x1349   :  { %v2031_v13 = vmul.f32 %v2029_v21, %v2026_v48 }
0x134b   :  { %v2036_v32 = vadd.f32 %v2035_v7, %v2031_v13 }
0x134d   :  { %2240 = vrot.lane.b32.xlu2 %v2036_v32, %s4893_s28 }
0x136f   :  { %v2600_v6 = vpop.xlane.xlu0 %2599  ;;  %v2606_v39 = vpop.xlane.xlu1 %2605 }
0x1370   :  { %v2631_v10 = vperm.slane %v2600_v6, %v4973_v3  ;;  %v2633_v38 = vperm.slane %v2606_v39, %v4973_v3 }
0x1376   :  { %2602 = vadd.xlane.f32.xlu2 %v2601_v27 }
0x1377   :  { %v2618_v12 = vpop.xlane.xlu1 %2617 }
0x1378   :  { %v2637_v46 = vperm.slane %v2618_v12, %v4973_v3 }
0x137e   :  { %2611 = vadd.xlane.f32.xlu2 %v2610_v49 }
0x1386   :  { %2620 = vadd.xlane.f32.xlu2 %v2619_v0  ;;  %v4604_v0 = vsel %vm2622_vm1, 1.0, %v4888_v51 }
0x13a7   :  { %v2241_v35 = vpop.permute.xlu2 %2240 }
0x13a8   :  { %2244 = vst.msk [vmem:[#allocation2 + $0xc] sm:$0xf] %vm47_vm10, %v2241_v35 }
0x13a9   :  { %2245 = vst.msk [vmem:[#allocation4] sm:$0xf] %vm47_vm10, %v2241_v35 }
0x13af   :  { %v5886_v4 = vld [vmem:[#allocation2 + $0xc] sm:$0xf] }
0x13b0   :  { %v5888_v28 = vld [vmem:[#allocation4] sm:$0xf]  ;;  %v2593_v56 = vmul.f32 %v2587_v53, %v5886_v4 }
0x13b1   :  { %4601 = vmatmul.msk.f32.vlgmr.msra.gmra.mxu3 %vm56_vm9, %v5888_v28 }
0x13b2   :  { %v2607_v16 = vsel %vm47_vm10, %v2593_v56, 0.0 }
0x13b3   :  { %2608 = vadd.xlane.f32.xlu0 %v2607_v16 }
0x13bb   :  { %2614 = vadd.xlane.f32.xlu0 %v2613_v24 }
0x13e9   :  { %v2603_v63 = vpop.xlane.xlu2 %2602 }
0x13ea   :  { %v2632_v23 = vperm.slane %v2603_v63, %v4973_v3 }
0x13ec   :  { %v2639_v55 = vsel %vm523_vm6, %v2632_v23, %v2631_v10 }
0x13ed   :  { %v2640_v15 = vsel %vm525_vm7, %v2633_v38, %v2639_v55 }
0x13f1   :  { %v2612_v43 = vpop.xlane.xlu2 %2611 }
0x13f2   :  { %v2635_v36 = vperm.slane %v2612_v43, %v4973_v3 }
0x13f9   :  { %v2621_v52 = vpop.xlane.xlu2 %2620 }
0x13fa   :  { %v2638_v42 = vperm.slane %v2621_v52, %v4973_v3 }
0x1426   :  { %v2609_v8 = vpop.xlane.xlu0 %2608 }
0x1427   :  { %v2634_v11 = vperm.slane %v2609_v8, %v4973_v3 }
0x1429   :  { %v2641_v17 = vsel %vm527_vm8, %v2634_v11, %v2640_v15 }
0x142a   :  { %v2642_v20 = vsel %vm529_vm12, %v2635_v36, %v2641_v17 }
0x142e   :  { %v2615_v53 = vpop.xlane.xlu0 %2614 }
0x142f   :  { %v2636_v45 = vperm.slane %v2615_v53, %v4973_v3 }
0x1431   :  { %v2643_v57 = vsel %vm6569_vm15, %v2636_v45, %v2642_v20 }
0x1432   :  { %v2644_v48 = vsel %vm6570_vm5, %v2637_v46, %v2643_v57 }
0x1433   :  { %v2645_v21 = vsel %vm6571_vm3, %v2638_v42, %v2644_v48 }
0x1434   :  { %v2647_v7 = vsel %vm2622_vm1, %v2645_v21, -1e+30 }
0x1435   :  { %v2648_v13 = vsel %vm539_vm2, %v2647_v7, -inf }
0x1436   :  { %v2649_v32 = vrot.slane %v2648_v13, 4 }
0x1438   :  { %v2650_v33 = vmax.f32 %v2648_v13, %v2649_v32  ;;  %v2858_v13 = vpop.f32.mrf.mxu0  ;;  %v5921_v32 = vld [vmem:[%s6558_s12] ss:$0 sm:$0xff] }
0x143a   :  { %v2651_v27 = vrot.slane %v2650_v33, 2 }
0x143c   :  { %v2652_v29 = vmax.f32 %v2650_v33, %v2651_v27  ;;  %v5924_v33 = vadd.f32 %v5921_v32, %v2858_v13  ;;  %v64_v27 = vld [vmem:[%s6545_s1 + $0x14] sm:$0xf] }
0x143e   :  { %v2653_v49 = vrot.slane %v2652_v29, 1 }
0x1440   :  { %v2654_v58 = vmax.f32 %v2652_v29, %v2653_v49  ;;  %v85_v29 = vsel %vm69_vm0, %v64_v27, -inf }
0x1442   :  { %v2655_v30 = vsub.f32 %v2647_v7, %v2654_v58 }
0x1444   :  { %v2656_v1 = vmul.f32 1.442695, %v2655_v30 }
0x1446   :  { %4769 = vpow2.f32 %v2656_v1 }
0x144c   :  { %v4770_v35 = vpop.eup %4769 }
0x144d   :  { %v2660_v56 = vmul.f32 %v4770_v35, %v4604_v0 }
0x144f   :  { %v2661_v16 = vsel %vm539_vm2, %v2660_v56, 0.0 }
0x1450   :  { %v2662_v60 = vrot.slane %v2661_v16, 4 }
0x1452   :  { %v2663_v24 = vadd.f32 %v2662_v60, %v2661_v16 }
0x1454   :  { %v2664_v63 = vrot.slane %v2663_v24, 2 }
0x1456   :  { %v2665_v6 = vadd.f32 %v2664_v63, %v2663_v24 }
0x1458   :  { %v2666_v43 = vrot.slane %v2665_v6, 1 }
0x145a   :  { %v2667_v39 = vadd.f32 %v2666_v43, %v2665_v6 }
0x145c   :  { %vm2668_vm14 = vcmp.eq.f32.partialorder %v2667_v39, 0.0 }
0x145d   :  { %v2669_v23 = vsel %vm2668_vm14, 1.0, %v2667_v39 }
0x145e   :  { %4771 = vrcp.f32 %v2669_v23  ;;  %v2681_v11 = vand.u32 2147483648, %v2669_v23  ;;  %v2679_v15 = vand.u32 2147483647, %v2669_v23  ;;  %vm2675_vm1 = vweird.f32 %v2669_v23 }
0x1460   :  { %v2682_v17 = vor.u32 1.1754944e-38, %v2681_v11  ;;  %vm2680_vm3 = vcmp.eq.f32.partialorder %v2679_v15, 8.507059e+37 }
0x1464   :  { %v4772_v8 = vpop.eup %4771 }
0x1465   :  { %v2671_v10 = vmul.f32 %v4772_v8, %v2669_v23  ;;  %vm2676_vm15 = vweird.f32 %v4772_v8 }
0x1466   :  { %vm2677_vm5 = vmor %vm2675_vm1, %vm2676_vm15 }
0x1467   :  { %v2672_v55 = vsub.f32 1.0, %v2671_v10 }
0x1469   :  { %v2673_v38 = vmul.f32 %v4772_v8, %v2672_v55 }
0x146b   :  { %v2674_v12 = vadd.f32 %v4772_v8, %v2673_v38 }
0x146d   :  { %v2678_v36 = vsel %vm2677_vm5, %v4772_v8, %v2674_v12 }
0x146e   :  { %v2683_v52 = vsel %vm2680_vm3, %v2682_v17, %v2678_v36 }
0x146f   :  { %v2684_v53 = vmul.f32 %v2683_v52, %v2660_v56 }
0x1471   :  { %v2699_v45 = vperm.slane %v2684_v53, 2  ;;  %v2692_v46 = vperm.slane %v2684_v53, 1  ;;  %v2685_v20 = vperm.slane %v2684_v53, 0  ;;  %v2706_v42 = vperm.slane %v2684_v53, 3 }
0x1472   :  { %v2713_v57 = vperm.slane %v2684_v53, 4  ;;  %v2734_v48 = vperm.slane %v2684_v53, 7  ;;  %v2720_v21 = vperm.slane %v2684_v53, 5  ;;  %v2727_v7 = vperm.slane %v2684_v53, 6 }
0x1473   :  { %2704 = vperm.xlu2 %4682, %v2699_v45   ;;  %2697 = vperm.xlu1 %4687, %v2692_v46  }
0x1474   :  { %2690 = vperm.xlu0 %4686, %v2685_v20  }
0x147b   :  { %2711 = vperm.xlu2 %4682, %v2706_v42   ;;  %2718 = vperm.xlu1 %4687, %v2713_v57  }
0x147c   :  { %2739 = vperm.xlu0 %4686, %v2734_v48  }
0x1483   :  { %2725 = vperm.xlu2 %4682, %v2720_v21   ;;  %2732 = vperm.xlu1 %4687, %v2727_v7   ;;  %v5954_v7 = vld [vmem:[%s6557_s11] ss:$0 sm:$0xff] }
0x1484   :  { %4688 = vset.pattern.permute.xlu0 %v4889_v25 }
0x148b   :  { %2882 = vrot.lane.b32.xlu2 %v5924_v33, %s4890_s19 }
0x14ad   :  { %86 = vmax.xlane.f32.xlu1 %v85_v29  ;;  %v5969_v29 = vld [vmem:[%s6550_s4] sm:$0xff] }
0x14cd   :  { %v2705_v49 = vpop.permute.xlu2 %2704 }
0x14ce   :  { %v2743_v56 = vmul.f32 %v2705_v49, %v5859_v44  ;;  %v5975_v49 = vld [vmem:[%s6552_s9 + $0x8] sm:$0xff] }
0x14d0   :  { %v2752_v63 = vsel %vm47_vm10, %v2743_v56, 0.0 }
0x14d5   :  { %v2712_v58 = vpop.permute.xlu2 %2711 }
0x14d6   :  { %v2744_v6 = vmul.f32 %v2712_v58, %v5886_v4  ;;  %v5981_v58 = vld [vmem:[%s6552_s9] sm:$0xff] }
0x14dd   :  { %v2726_v8 = vpop.permute.xlu2 %2725 }
0x14de   :  { %v2746_v44 = vmul.f32 %v2726_v8, %v5894_v18 }
0x14e0   :  { %v2758_v15 = vsel %vm47_vm10, %v2746_v44, 0.0 }
0x14e5   :  { %v2698_v30 = vpop.permute.xlu1 %2697 }
0x14e6   :  { %v2742_v1 = vmul.f32 %v2698_v30, %v5868_v22  ;;  %v2691_v0 = vpop.permute.xlu0 %2690  ;;  %v2754_v22 = vsel %vm47_vm10, %v2744_v6, 0.0  ;;  %v2883_v30 = vpop.permute.xlu2 %2882 }
0x14e7   :  { %v2741_v35 = vmul.f32 %v2691_v0, %v5861_v37 }
0x14e8   :  { %v2750_v16 = vsel %vm47_vm10, %v2742_v1, 0.0 }
0x14e9   :  { %v2749_v60 = vsel %vm47_vm10, %v2741_v35, 0.0 }
0x14ea   :  { %v2751_v24 = vadd.f32 %v2750_v16, %v2749_v60  ;;  %v2517_v16 = vpop.f32.mrf.mxu3  ;;  %v5987_v60 = vld [vmem:[%s6547_s7] ss:$0 sm:$0xff] }
0x14ec   :  { %v2753_v43 = vadd.f32 %v2752_v63, %v2751_v24  ;;  %v2518_v24 = vadd.f32 %v5987_v60, %v2517_v16 }
0x14ed   :  { %v2719_v39 = vpop.permute.xlu1 %2718 }
0x14ee   :  { %v2745_v23 = vmul.f32 %v2719_v39, %v5871_v26  ;;  %v2755_v10 = vadd.f32 %v2754_v22, %v2753_v43  ;;  %v2740_v11 = vpop.permute.xlu0 %2739 }
0x14ef   :  { %v2748_v12 = vmul.f32 %v2740_v11, %v5878_v31  ;;  %v2493_v31 = vpop.f32.mrf.mxu2 }
0x14f0   :  { %v2756_v37 = vsel %vm47_vm10, %v2745_v23, 0.0 }
0x14f1   :  { %v2757_v55 = vadd.f32 %v2756_v37, %v2755_v10  ;;  %v2762_v52 = vsel %vm47_vm10, %v2748_v12, 0.0 }
0x14f3   :  { %v2759_v17 = vadd.f32 %v2758_v15, %v2757_v55 }
0x14f5   :  { %v2733_v38 = vpop.permute.xlu1 %2732 }
0x14f6   :  { %v2747_v4 = vmul.f32 %v2733_v38, %v5876_v5  ;;  %v2470_v5 = vpop.f32.mrf.mxu1 }
0x14f7   :  { %v2811_v57 = vpop.f32.mrf.mxu2 }
0x14f8   :  { %v2760_v26 = vsel %vm47_vm10, %v2747_v4, 0.0 }
0x14f9   :  { %v2761_v36 = vadd.f32 %v2760_v26, %v2759_v17 }
0x14fb   :  { %v2763_v53 = vadd.f32 %v2762_v52, %v2761_v36 }
0x14fd   :  { %4605 = vmatmul.msk.f32.vlgmr.msrb.gmra.mxu1 %vm56_vm9, %v2763_v53 }
0x1520   :  { %v87_v45 = vpop.xlane.xlu1 %86 }
0x1521   :  { %vm99_vm14 = vcmp.eq.f32.partialorder %v64_v27, %v87_v45  ;;  %v5963_v27 = vld [vmem:[%s6550_s4 + $0x8] sm:$0xff] }
0x1522   :  { %v107_v18 = vsel %vm99_vm14, %v4973_v3, 2 }
0x1523   :  { %v185_v46 = vsel %vm69_vm0, %v107_v18, 2147483647  ;;  %v2494_v18 = vadd.f32 %v2493_v31, %v2470_v5  ;;  %v4597_v5 = vld [vmem:[%s6555_s2 + $0x20] sm:$0xff] }
0x1524   :  { %v187_v20 = vshra.s32 %v185_v46, 16  ;;  %v186_v1 = vand.u32 65535, %v185_v46  ;;  %v6002_v46 = vld [vmem:[%s6556_s6] ss:$0 sm:$0xff]  ;;  %v2903_v16 = vsub.f32 1.0, %v4597_v5 }
0x1526   :  { %v189_v42 = vcvt.s32.f32 %v187_v20  ;;  %v188_v0 = vcvt.s32.f32 %v186_v1  ;;  %v2496_v20 = vadd.f32 %v6002_v46, %v2494_v18 }
0x1528   :  { %190 = vmin.xlane.f32.xlu2 %v189_v42 }
0x157a   :  { %v2791_v48 = vpop.f32.mrf.mxu1 }
0x157b   :  { %v2812_v21 = vadd.f32 %v2811_v57, %v2791_v48 }
0x157d   :  { %v2814_v13 = vadd.f32 %v5954_v7, %v2812_v21 }
0x157f   :  { %4607 = vmatpush.msk.msrb.mxu3 %vm712_vm4, %v2814_v13 }
0x1580   :  { %4608 = vmatmul.msk.f32.vlgmr.msrb.gmra.mxu3 %vm539_vm2, %v5190_v47 }
0x1581   :  { %2992 = vmatpush.msra.mxu3 %v5963_v27 }
0x1583   :  { %2993 = vmatpush.msra.mxu3 %v5969_v29 }
0x1585   :  { %3313 = vmatpush.msrb.mxu3 %v5975_v49 }
0x1587   :  { %3314 = vmatpush.msrb.mxu3 %v5981_v58 }
0x159b   :  { %v191_v35 = vpop.xlane.xlu2 %190 }
0x159c   :  { %vm192_vm15 = vcmp.eq.f32.partialorder %v189_v42, %v191_v35  ;;  %v197_v39 = vcvt.f32.s32 %v191_v35  ;;  %v2520_v42 = vadd.f32 %v2518_v24, %v2496_v20 }
0x159d   :  { %v193_v56 = vsel %vm192_vm15, %v188_v0, inf }
0x159e   :  { %194 = vmin.xlane.f32.xlu1 %v193_v56  ;;  %v198_v22 = vshll.u32 %v197_v39, 16  ;;  %v4602_v57 = vmul.f32 -1.442695, %v2520_v42 }
0x15b7   :  { %2541 = vrot.lane.b32.xlu1 %v2518_v24, %s4890_s19 }
0x1603   :  { %v2835_v63 = vpop.f32.mrf.mxu3 }
0x1604   :  { %v2861_v6 = vadd.f32 %v5924_v33, %v2835_v63 }
0x1606   :  { %v4610_v43 = vmul.f32 -1.442695, %v2861_v6 }
0x1608   :  { %4773 = vpow2.f32 %v4610_v43 }
0x160e   :  { %v4774_v23 = vpop.eup %4773 }
0x160f   :  { %v2865_v8 = vadd.f32 1.0, %v4774_v23 }
0x1611   :  { %4775 = vrcp.f32 %v2865_v8  ;;  %v195_v37 = vpop.xlane.xlu1 %194  ;;  %v2877_v12 = vand.u32 2147483648, %v2865_v8  ;;  %v2875_v17 = vand.u32 2147483647, %v2865_v8  ;;  %vm2871_vm3 = vweird.f32 %v2865_v8 }
0x1612   :  { %v196_v10 = vcvt.f32.s32 %v195_v37  ;;  %4777 = vpow2.f32 %v4602_v57 }
0x1613   :  { %v2878_v36 = vor.u32 1.1754944e-38, %v2877_v12  ;;  %vm2876_vm15 = vcmp.eq.f32.partialorder %v2875_v17, 8.507059e+37 }
0x1614   :  { %v199_v44 = vadd.s32 %v198_v22, %v196_v10 }
0x1616   :  { %v238_v55 = vadd.s32 %v5028_v61, %v199_v44 }
0x1617   :  { %v4776_v11 = vpop.eup %4775 }
0x1618   :  { %v2867_v38 = vmul.f32 %v4776_v11, %v2865_v8  ;;  %vm246_vm1 = vcmp.eq.s32.totalorder %v4973_v3, %v238_v55  ;;  %vm2872_vm5 = vweird.f32 %v4776_v11  ;;  %v4778_v48 = vpop.eup %4777 }
0x1619   :  { %v4528_v15 = vsel %vm246_vm1, 1.0, %v4888_v51  ;;  %vm2873_vm14 = vmor %vm2871_vm3, %vm2872_vm5  ;;  %v2524_v21 = vadd.f32 1.0, %v4778_v48  ;;  %v6063_v48 = vld [vmem:[#allocation2 + $0x4] sm:$0xf] }
0x161a   :  { %271 = vst.msk [vmem:[#allocation5 + $0x14] sm:$0xf] %vm265_vm11, %v4528_v15  ;;  %v2868_v33 = vsub.f32 1.0, %v2867_v38 }
0x161b   :  { %4779 = vrcp.f32 %v2524_v21  ;;  %v2536_v6 = vand.u32 2147483648, %v2524_v21  ;;  %vm2530_vm5 = vweird.f32 %v2524_v21 }
0x161c   :  { %v2869_v4 = vmul.f32 %v4776_v11, %v2868_v33 }
0x161d   :  { %v2537_v39 = vor.u32 1.1754944e-38, %v2536_v6 }
0x161e   :  { %v2870_v26 = vadd.f32 %v4776_v11, %v2869_v4 }
0x1620   :  { %v2874_v52 = vsel %vm2873_vm14, %v4776_v11, %v2870_v26 }
0x1621   :  { %v2879_v53 = vsel %vm2876_vm15, %v2878_v36, %v2874_v52  ;;  %v4780_v1 = vpop.eup %4779  ;;  %v4613_v36 = vld [vmem:[%s6549_s0 + $0x14] sm:$0xf]  ;;  %v6029_v18 = vld [vmem:[#allocation5 + $0x14] sm:$0xf]  ;;  %vm6572_vm15 = vcmask 1045509  }
0x1622   :  { %v2885_v45 = vmul.f32 %v2883_v30, %v2879_v53  ;;  %v2526_v31 = vmul.f32 %v4780_v1, %v2524_v21  ;;  %vm2531_vm1 = vweird.f32 %v4780_v1  ;;  %v2892_v44 = vsub.f32 1.0, %v2879_v53  ;;  %4617 = vmatmul.msk.f32.vlgmr.msrb.gmra.mxu0 %vm56_vm9, %v4613_v36 }
0x1623   :  { %vm2532_vm3 = vmor %vm2530_vm5, %vm2531_vm1  ;;  %vm3147_vm1 = vcmp.lt.s32.totalorder %v4977_v9, 5  ;;  %vm6573_vm5 = vcmask 1046534  }
0x1624   :  { %2887 = vrot.lane.b32.xlu0 %v2885_v45, %s4891_s26  ;;  %v2527_v35 = vsub.f32 1.0, %v2526_v31 }
0x1626   :  { %v2528_v56 = vmul.f32 %v4780_v1, %v2527_v35  ;;  %v6074_v35 = vld [vmem:[#allocation2 + $0x14] sm:$0xf] }
0x1628   :  { %v2529_v24 = vadd.f32 %v4780_v1, %v2528_v56  ;;  %v6076_v56 = vld [vmem:[#allocation2 + $0xc] sm:$0xf] }
0x1629   :  { %v2542_v23 = vpop.permute.xlu1 %2541 }
0x162a   :  { %v2533_v43 = vsel %vm2532_vm3, %v4780_v1, %v2529_v24  ;;  %4623 = vmatmul.msk.f32.vlgmr.msra.gmra.mxu0 %vm56_vm9, %v4613_v36  ;;  %vm6574_vm3 = vcmask 1047559  }
0x162c   :  { %2898 = vrot.lane.b32.xlu0 %v5804_v50, %s4892_s27 }
0x1696   :  { %v2888_v13 = vpop.permute.xlu0 %2887 }
0x1697   :  { %v2890_v30 = vadd.f32 %v2888_v13, %v2835_v63  ;;  %v2534_v63 = vand.u32 2147483647, %v2524_v21  ;;  %v6065_v21 = vld [vmem:[#allocation2 + $0x8] sm:$0xf] }
0x1699   :  { %4781 = vtanh.f32 %v2890_v30  ;;  %vm2535_vm14 = vcmp.eq.f32.partialorder %v2534_v63, 8.507059e+37 }
0x169a   :  { %v2538_v8 = vsel %vm2535_vm14, %v2537_v39, %v2533_v43 }
0x169b   :  { %v2544_v22 = vmul.f32 %v2542_v23, %v2538_v8 }
0x169e   :  { %v2899_v37 = vpop.permute.xlu0 %2898 }
0x169f   :  { %v4782_v0 = vpop.eup %4781  ;;  %v2901_v11 = vmul.f32 %v2899_v37, %v2879_v53  ;;  %v6092_v37 = vld [vmem:[#allocation2 + $0x1c] sm:$0xf] }
0x16a0   :  { %2894 = vrot.lane.b32.xlu0 %v4782_v0, %s4893_s28 }
0x16a8   :  { %2912 = vperm.xlu0 %4688, %v4597_v5  }
0x16b0   :  { %2906 = vperm.xlu0 %4688, %v2903_v16  }
0x16b8   :  { %2546 = vrot.lane.b32.xlu0 %v2544_v22, %s4891_s26  ;;  %v6090_v22 = vld [vmem:[#allocation2 + $0x18] sm:$0xf] }
0x16b9   :  { %4689 = vset.pattern.permute.xlu0 %v4977_v9 }
0x1712   :  { %v2895_v10 = vpop.permute.xlu0 %2894 }
0x1713   :  { %v2897_v55 = vmul.f32 %v2895_v10, %v2892_v44 }
0x1715   :  { %v2902_v38 = vadd.f32 %v2901_v11, %v2897_v55 }
0x171a   :  { %v2913_v15 = vpop.permute.xlu0 %2912 }
0x171b   :  { %v2915_v33 = vmul.f32 %v2913_v15, %v2902_v38 }
0x171d   :  { %2917 = vrot.lane.b32.xlu2 %v2915_v33, %s4893_s28 }
0x1722   :  { %v2907_v12 = vpop.permute.xlu0 %2906 }
0x1723   :  { %v2909_v52 = vmul.f32 %v2907_v12, %v5804_v50  ;;  %v6038_v50 = vld [vmem:[%s6554_s10 + $0x8] sm:$0xff] }
0x172a   :  { %v2547_v4 = vpop.permute.xlu0 %2546 }
0x172b   :  { %v2549_v17 = vadd.f32 %v2547_v4, %v2496_v20 }
0x172d   :  { %4783 = vtanh.f32 %v2549_v17 }
0x1733   :  { %v4784_v26 = vpop.eup %4783 }
0x1734   :  { %2553 = vrot.lane.b32.xlu0 %v4784_v26, %s4893_s28 }
0x173c   :  { %2557 = vrot.lane.b32.xlu0 %v5888_v28, %s4892_s27 }
0x1777   :  { %v2918_v53 = vpop.permute.xlu2 %2917 }
0x1778   :  { %v2920_v45 = vadd.f32 %v2918_v53, %v2909_v52 }
0x177a   :  { %2921 = vst.msk [vmem:[#allocation3] sm:$0xff] %vm56_vm9, %v2920_v45  ;;  %2937 = vmatpush.msra.mxu1 %v2920_v45 }
0x177b   :  { %4611 = vmatmul.msk.f32.vlgmr.msra.gmra.mxu1 %vm304_vm13, %v5808_v41  ;;  %v2551_v41 = vsub.f32 1.0, %v2538_v8 }
0x177c   :  { %3039 = vmatpush.msrb.mxu1 %v5795_v54  ;;  %v6044_v54 = vld [vmem:[%s6554_s10] sm:$0xff] }
0x177e   :  { %3040 = vmatpush.msrb.mxu1 %v5801_v40 }
0x1781   :  { %v6026_v28 = vld [vmem:[#allocation3] sm:$0xff] }
0x1782   :  { %2970 = vmatpush.msra.mxu2 %v6026_v28 }
0x1783   :  { %4615 = vmatmul.msk.f32.vlgmr.msra.gmra.mxu2 %vm304_vm13, %v6029_v18 }
0x1784   :  { %3109 = vmatpush.msrb.mxu2 %v5815_v62 }
0x1786   :  { %3110 = vmatpush.msrb.mxu2 %v5821_v14 }
0x1788   :  { %3380 = vmatpush.msra.mxu2 %v6038_v50 }
0x178a   :  { %3381 = vmatpush.msra.mxu2 %v6044_v54 }
0x178b   :  { %4620 = vmatmul.msk.f32.vlgmr.msrb.gmra.mxu2 %vm56_vm9, %v4613_v36 }
0x178c   :  { %3540 = vmatpush.msrb.mxu2 %v5830_v34 }
0x178e   :  { %3541 = vmatpush.msrb.mxu2 %v5836_v59 }
0x1793   :  { %4626 = vmatmul.msk.f32.vlgmr.msra.gmra.mxu2 %vm56_vm9, %v6026_v28 }
0x1794   :  { %3858 = vmatpush.msra.mxu2 %v5844_v2  ;;  %v6060_v2 = vld [vmem:[#allocation2] sm:$0xf] }
0x1796   :  { %3859 = vmatpush.msra.mxu2 %v5850_v19 }
0x17a6   :  { %v2554_v40 = vpop.permute.xlu0 %2553 }
0x17a7   :  { %v2556_v14 = vmul.f32 %v2554_v40, %v2551_v41 }
0x17ae   :  { %v2558_v62 = vpop.permute.xlu0 %2557 }
0x17af   :  { %v2560_v20 = vmul.f32 %v2558_v62, %v2538_v8 }
0x17b1   :  { %v2561_v42 = vadd.f32 %v2560_v20, %v2556_v14 }
0x17b3   :  { %2765 = vrot.lane.b32.xlu2 %v2561_v42, %s4893_s28 }
0x17f8   :  { %v2939_v57 = vpop.f32.mrf.mxu1 }
0x17f9   :  { %4612 = vst.msk [vmem:[%s6559_s14 + $0x10] sm:$0xf] %vm47_vm10, %v2939_v57 }
0x1806   :  { %v2972_v34 = vpop.f32.mrf.mxu2 }
0x1807   :  { %4616 = vmatmul.msk.f32.vlgmr.msra.gmra.mxu3 %vm56_vm9, %v2972_v34 }
0x180d   :  { %v2766_v59 = vpop.permute.xlu2 %2765 }
0x180e   :  { %2769 = vst.msk [vmem:[#allocation2 + $0x10] sm:$0xf] %vm47_vm10, %v2766_v59  ;;  %v3112_v19 = vpop.f32.mrf.mxu2 }
0x180f   :  { %2770 = vst.msk [vmem:[#allocation4] sm:$0xf] %vm47_vm10, %v2766_v59  ;;  %v3115_v13 = vmul.f32 %v3112_v19, %v6060_v2  ;;  %v3116_v30 = vmul.f32 %v3112_v19, %v6063_v48  ;;  %v3117_v1 = vmul.f32 %v3112_v19, %v6065_v21  ;;  %v3118_v16 = vmul.f32 %v3112_v19, %v6076_v56 }
0x1810   :  { %v3120_v63 = vmul.f32 %v3112_v19, %v6074_v35  ;;  %v3121_v10 = vmul.f32 %v3112_v19, %v6090_v22  ;;  %v3122_v44 = vmul.f32 %v3112_v19, %v6092_v37 }
0x1811   :  { %v3123_v0 = vsel %vm47_vm10, %v3115_v13, 0.0  ;;  %v3126_v31 = vsel %vm47_vm10, %v3116_v30, 0.0  ;;  %v3129_v5 = vsel %vm47_vm10, %v3117_v1, 0.0  ;;  %v3132_v23 = vsel %vm47_vm10, %v3118_v16, 0.0 }
0x1812   :  { %3124 = vadd.xlane.f32.xlu1 %v3123_v0  ;;  %3127 = vadd.xlane.f32.xlu0 %v3126_v31  ;;  %v3138_v8 = vsel %vm47_vm10, %v3120_v63, 0.0  ;;  %v3141_v55 = vsel %vm47_vm10, %v3121_v10, 0.0  ;;  %v3144_v11 = vsel %vm47_vm10, %v3122_v44, 0.0  ;;  %v4621_v10 = vsel %vm3147_vm1, 1.0, %v4888_v51 }
0x1813   :  { %3130 = vadd.xlane.f32.xlu2 %v3129_v5 }
0x1815   :  { %v6079_v24 = vld [vmem:[#allocation2 + $0x10] sm:$0xf] }
0x1816   :  { %v6081_v6 = vld [vmem:[#allocation4] sm:$0xf]  ;;  %v3119_v43 = vmul.f32 %v3112_v19, %v6079_v24 }
0x1817   :  { %4618 = vmatmul.msk.f32.vlgmr.msrb.gmra.mxu1 %vm56_vm9, %v6081_v6 }
0x1818   :  { %v3135_v39 = vsel %vm47_vm10, %v3119_v43, 0.0 }
0x181a   :  { %3133 = vadd.xlane.f32.xlu1 %v3132_v23  ;;  %3136 = vadd.xlane.f32.xlu0 %v3135_v39 }
0x181b   :  { %3139 = vadd.xlane.f32.xlu2 %v3138_v8 }
0x1822   :  { %3142 = vadd.xlane.f32.xlu1 %v3141_v55  ;;  %3145 = vadd.xlane.f32.xlu0 %v3144_v11 }
0x1885   :  { %v3125_v38 = vpop.xlane.xlu1 %3124  ;;  %v3128_v15 = vpop.xlane.xlu0 %3127 }
0x1886   :  { %v3131_v33 = vpop.xlane.xlu2 %3130  ;;  %v3156_v12 = vperm.slane %v3125_v38, %v4973_v3  ;;  %v3157_v4 = vperm.slane %v3128_v15, %v4973_v3 }
0x1887   :  { %v3158_v17 = vperm.slane %v3131_v33, %v4973_v3 }
0x1888   :  { %v3164_v26 = vsel %vm523_vm6, %v3157_v4, %v3156_v12 }
0x1889   :  { %v3165_v45 = vsel %vm525_vm7, %v3158_v17, %v3164_v26 }
0x188d   :  { %v3134_v36 = vpop.xlane.xlu1 %3133  ;;  %v3137_v52 = vpop.xlane.xlu0 %3136 }
0x188e   :  { %v3159_v53 = vperm.slane %v3134_v36, %v4973_v3  ;;  %v3160_v40 = vperm.slane %v3137_v52, %v4973_v3  ;;  %v3140_v62 = vpop.xlane.xlu2 %3139 }
0x188f   :  { %v3161_v20 = vperm.slane %v3140_v62, %v4973_v3 }
0x1890   :  { %v3166_v41 = vsel %vm527_vm8, %v3159_v53, %v3165_v45 }
0x1891   :  { %v3167_v14 = vsel %vm529_vm12, %v3160_v40, %v3166_v41 }
0x1892   :  { %v3168_v19 = vsel %vm6572_vm15, %v3161_v20, %v3167_v14 }
0x1895   :  { %v3143_v42 = vpop.xlane.xlu1 %3142  ;;  %v3146_v57 = vpop.xlane.xlu0 %3145 }
0x1896   :  { %v3162_v34 = vperm.slane %v3143_v42, %v4973_v3  ;;  %v3163_v59 = vperm.slane %v3146_v57, %v4973_v3 }
0x1898   :  { %v3169_v13 = vsel %vm6573_vm5, %v3162_v34, %v3168_v19 }
0x1899   :  { %v3170_v30 = vsel %vm6574_vm3, %v3163_v59, %v3169_v13 }
0x189a   :  { %v3172_v1 = vsel %vm3147_vm1, %v3170_v30, -1e+30 }
0x189b   :  { %v3173_v0 = vsel %vm539_vm2, %v3172_v1, -inf }
0x189c   :  { %v3174_v31 = vrot.slane %v3173_v0, 4 }
0x189e   :  { %v3175_v5 = vmax.f32 %v3173_v0, %v3174_v31  ;;  %v3383_v31 = vpop.f32.mrf.mxu2 }
0x18a0   :  { %v3176_v16 = vrot.slane %v3175_v5, 2 }
0x18a2   :  { %v3177_v63 = vmax.f32 %v3175_v5, %v3176_v16  ;;  %v3384_v5 = vadd.f32 %v5921_v32, %v3383_v31 }
0x18a4   :  { %v3178_v43 = vrot.slane %v3177_v63, 1 }
0x18a6   :  { %v3179_v39 = vmax.f32 %v3177_v63, %v3178_v43  ;;  %v65_v63 = vld [vmem:[%s6545_s1 + $0x18] sm:$0xf] }
0x18a7   :  { %v88_v43 = vsel %vm69_vm0, %v65_v63, -inf }
0x18a8   :  { %v3180_v23 = vsub.f32 %v3172_v1, %v3179_v39  ;;  %v6128_v39 = vld [vmem:[%s6555_s2 + $0x28] sm:$0xff] }
0x18a9   :  { %v3428_v32 = vsub.f32 1.0, %v6128_v39 }
0x18aa   :  { %v3181_v8 = vmul.f32 1.442695, %v3180_v23 }
0x18ac   :  { %4785 = vpow2.f32 %v3181_v8 }
0x18b2   :  { %v4786_v44 = vpop.eup %4785 }
0x18b3   :  { %v3185_v55 = vmul.f32 %v4786_v44, %v4621_v10 }
0x18b5   :  { %v3186_v11 = vsel %vm539_vm2, %v3185_v55, 0.0 }
0x18b6   :  { %v3187_v38 = vrot.slane %v3186_v11, 4 }
0x18b8   :  { %v3188_v15 = vadd.f32 %v3187_v38, %v3186_v11 }
0x18ba   :  { %v3189_v33 = vrot.slane %v3188_v15, 2 }
0x18bc   :  { %v3190_v12 = vadd.f32 %v3189_v33, %v3188_v15 }
0x18be   :  { %v3191_v4 = vrot.slane %v3190_v12, 1 }
0x18c0   :  { %v3192_v17 = vadd.f32 %v3191_v4, %v3190_v12 }
0x18c2   :  { %vm3193_vm14 = vcmp.eq.f32.partialorder %v3192_v17, 0.0 }
0x18c3   :  { %v3194_v26 = vsel %vm3193_vm14, 1.0, %v3192_v17 }
0x18c4   :  { %4787 = vrcp.f32 %v3194_v26  ;;  %v3206_v45 = vand.u32 2147483648, %v3194_v26  ;;  %v3204_v41 = vand.u32 2147483647, %v3194_v26  ;;  %vm3200_vm1 = vweird.f32 %v3194_v26 }
0x18c6   :  { %v3207_v14 = vor.u32 1.1754944e-38, %v3206_v45  ;;  %vm3205_vm3 = vcmp.eq.f32.partialorder %v3204_v41, 8.507059e+37 }
0x18ca   :  { %v4788_v36 = vpop.eup %4787 }
0x18cb   :  { %v3196_v52 = vmul.f32 %v4788_v36, %v3194_v26  ;;  %vm3201_vm15 = vweird.f32 %v4788_v36 }
0x18cc   :  { %vm3202_vm5 = vmor %vm3200_vm1, %vm3201_vm15 }
0x18cd   :  { %v3197_v53 = vsub.f32 1.0, %v3196_v52 }
0x18cf   :  { %v3198_v40 = vmul.f32 %v4788_v36, %v3197_v53 }
0x18d1   :  { %v3199_v62 = vadd.f32 %v4788_v36, %v3198_v40 }
0x18d3   :  { %v3203_v20 = vsel %vm3202_vm5, %v4788_v36, %v3199_v62 }
0x18d4   :  { %v3208_v42 = vsel %vm3205_vm3, %v3207_v14, %v3203_v20 }
0x18d5   :  { %v3209_v57 = vmul.f32 %v3208_v42, %v3185_v55 }
0x18d7   :  { %v3224_v34 = vperm.slane %v3209_v57, 2  ;;  %v3217_v59 = vperm.slane %v3209_v57, 1  ;;  %v3210_v19 = vperm.slane %v3209_v57, 0  ;;  %v3238_v13 = vperm.slane %v3209_v57, 4 }
0x18d8   :  { %v3231_v30 = vperm.slane %v3209_v57, 3  ;;  %v3252_v1 = vperm.slane %v3209_v57, 6  ;;  %v3245_v0 = vperm.slane %v3209_v57, 5  ;;  %v3259_v16 = vperm.slane %v3209_v57, 7 }
0x18d9   :  { %3229 = vperm.xlu0 %4689, %v3224_v34   ;;  %3222 = vperm.xlu1 %4687, %v3217_v59  }
0x18da   :  { %3215 = vperm.xlu2 %4682, %v3210_v19   ;;  %v6149_v19 = vpop.f32.mrf.mxu0 }
0x18e1   :  { %3243 = vperm.xlu1 %4687, %v3238_v13   ;;  %4691 = vset.pattern.permute.xlu0 %v4889_v25 }
0x18e2   :  { %3236 = vperm.xlu2 %4682, %v3231_v30   ;;  %v3336_v13 = vpop.f32.mrf.mxu0 }
0x18e9   :  { %3257 = vperm.xlu1 %4687, %v3252_v1  }
0x18ea   :  { %3250 = vperm.xlu2 %4682, %v3245_v0  }
0x18f1   :  { %3407 = vrot.lane.b32.xlu1 %v3384_v5, %s4890_s19 }
0x18f2   :  { %3264 = vperm.xlu2 %4682, %v3259_v16  }
0x18fa   :  { %4690 = vset.pattern.permute.xlu2 %v4889_v25 }
0x1903   :  { %89 = vmax.xlane.f32.xlu0 %v88_v43 }
0x1917   :  { %3431 = vperm.xlu0 %4691, %v3428_v32  }
0x191f   :  { %4693 = vset.pattern.permute.xlu0 %v4977_v9 }
0x1934   :  { %v3216_v23 = vpop.permute.xlu2 %3215 }
0x1935   :  { %v3266_v10 = vmul.f32 %v3216_v23, %v6060_v2 }
0x1937   :  { %v3274_v38 = vsel %vm47_vm10, %v3266_v10, 0.0 }
0x193c   :  { %v3237_v8 = vpop.permute.xlu2 %3236 }
0x193d   :  { %v3269_v17 = vmul.f32 %v3237_v8, %v6076_v56 }
0x193f   :  { %v3279_v53 = vsel %vm47_vm10, %v3269_v17, 0.0 }
0x1944   :  { %v3251_v12 = vpop.permute.xlu2 %3250 }
0x1945   :  { %v3271_v40 = vmul.f32 %v3251_v12, %v6074_v35  ;;  %v6151_v35 = vpop.f32.mrf.mxu3 }
0x1947   :  { %v3283_v14 = vsel %vm47_vm10, %v3271_v40, 0.0 }
0x194b   :  { %v3230_v44 = vpop.permute.xlu0 %3229  ;;  %v3223_v55 = vpop.permute.xlu1 %3222 }
0x194c   :  { %v3267_v11 = vmul.f32 %v3223_v55, %v6063_v48  ;;  %v3268_v15 = vmul.f32 %v3230_v44, %v6065_v21  ;;  %v3265_v21 = vpop.permute.xlu2 %3264 }
0x194d   :  { %v3273_v56 = vmul.f32 %v3265_v21, %v6092_v37 }
0x194e   :  { %v3275_v33 = vsel %vm47_vm10, %v3267_v11, 0.0  ;;  %v3277_v26 = vsel %vm47_vm10, %v3268_v15, 0.0 }
0x194f   :  { %v3276_v4 = vadd.f32 %v3275_v33, %v3274_v38  ;;  %v3287_v34 = vsel %vm47_vm10, %v3273_v56, 0.0 }
0x1951   :  { %v3278_v36 = vadd.f32 %v3277_v26, %v3276_v4 }
0x1953   :  { %v3244_v52 = vpop.permute.xlu1 %3243  ;;  %v3280_v45 = vadd.f32 %v3279_v53, %v3278_v36 }
0x1954   :  { %v3270_v2 = vmul.f32 %v3244_v52, %v6079_v24 }
0x1956   :  { %v3281_v48 = vsel %vm47_vm10, %v3270_v2, 0.0 }
0x1957   :  { %v3282_v41 = vadd.f32 %v3281_v48, %v3280_v45 }
0x1959   :  { %v3284_v42 = vadd.f32 %v3283_v14, %v3282_v41 }
0x195b   :  { %v3258_v62 = vpop.permute.xlu1 %3257 }
0x195c   :  { %v3272_v20 = vmul.f32 %v3258_v62, %v6090_v22  ;;  %v3042_v22 = vpop.f32.mrf.mxu1 }
0x195e   :  { %v3285_v57 = vsel %vm47_vm10, %v3272_v20, 0.0 }
0x195f   :  { %v3286_v24 = vadd.f32 %v3285_v57, %v3284_v42 }
0x1961   :  { %v3288_v59 = vadd.f32 %v3287_v34, %v3286_v24 }
0x1963   :  { %4622 = vmatmul.msk.f32.vlgmr.msrb.gmra.mxu3 %vm56_vm9, %v3288_v59  ;;  %v3408_v15 = vpop.permute.xlu1 %3407  ;;  %v3019_v59 = vadd.f32 %v6149_v19, %v6151_v35  ;;  %v4630_v19 = vld [vmem:[%s6549_s0 + $0x18] sm:$0xf] }
0x1964   :  { %4634 = vmatmul.msk.f32.vlgmr.msrb.gmra.mxu2 %vm56_vm9, %v4630_v19 }
0x196c   :  { %4640 = vmatmul.msk.f32.vlgmr.msra.gmra.mxu2 %vm56_vm9, %v4630_v19 }
0x1976   :  { %v90_v0 = vpop.xlane.xlu0 %89 }
0x1977   :  { %vm100_vm14 = vcmp.eq.f32.partialorder %v65_v63, %v90_v0 }
0x1978   :  { %v108_v31 = vsel %vm100_vm14, %v4973_v3, 2 }
0x1979   :  { %v200_v43 = vsel %vm69_vm0, %v108_v31, 2147483647 }
0x197a   :  { %v202_v23 = vshra.s32 %v200_v43, 16  ;;  %v201_v36 = vand.u32 65535, %v200_v43 }
0x197c   :  { %v204_v8 = vcvt.s32.f32 %v202_v23  ;;  %v203_v2 = vcvt.s32.f32 %v201_v36 }
0x197e   :  { %205 = vmin.xlane.f32.xlu1 %v204_v8 }
0x19e6   :  { %v3316_v30 = vpop.f32.mrf.mxu3 }
0x19e7   :  { %v3337_v1 = vadd.f32 %v3336_v13, %v3316_v30  ;;  %v3021_v30 = vadd.f32 %v6002_v46, %v3019_v59  ;;  %v3432_v46 = vpop.permute.xlu0 %3431 }
0x19e9   :  { %v3339_v37 = vadd.f32 %v5954_v7, %v3337_v1 }
0x19eb   :  { %4624 = vmatpush.msk.msra.mxu1 %vm712_vm4, %v3339_v37 }
0x19ec   :  { %4625 = vmatmul.msk.f32.vlgmr.msra.gmra.mxu1 %vm539_vm2, %v5190_v47 }
0x19ed   :  { %3517 = vmatpush.msrb.mxu1 %v5963_v27 }
0x19ef   :  { %3518 = vmatpush.msrb.mxu1 %v5969_v29 }
0x19f1   :  { %3838 = vmatpush.msra.mxu1 %v5975_v49  ;;  %v206_v52 = vpop.xlane.xlu1 %205 }
0x19f2   :  { %vm207_vm14 = vcmp.eq.f32.partialorder %v204_v8, %v206_v52  ;;  %v212_v20 = vcvt.f32.s32 %v206_v52  ;;  %v6245_v52 = vld [vmem:[#allocation2 + $0x8] sm:$0xf] }
0x19f3   :  { %3839 = vmatpush.msra.mxu1 %v5981_v58  ;;  %v208_v53 = vsel %vm207_vm14, %v203_v2, inf  ;;  %v6247_v2 = vld [vmem:[#allocation2] sm:$0xf] }
0x19f4   :  { %v213_v42 = vshll.u32 %v212_v20, 16 }
0x1a69   :  { %v3360_v16 = vpop.f32.mrf.mxu1 }
0x1a6a   :  { %v3386_v7 = vadd.f32 %v3384_v5, %v3360_v16 }
0x1a6c   :  { %v4627_v32 = vmul.f32 -1.442695, %v3386_v7  ;;  %v3434_v7 = vmul.f32 %v3432_v46, %v6026_v28 }
0x1a6e   :  { %4789 = vpow2.f32 %v4627_v32 }
0x1a74   :  { %v4790_v27 = vpop.eup %4789 }
0x1a75   :  { %v3390_v29 = vadd.f32 1.0, %v4790_v27 }
0x1a77   :  { %4791 = vrcp.f32 %v3390_v29  ;;  %v3402_v44 = vand.u32 2147483648, %v3390_v29  ;;  %v3400_v63 = vand.u32 2147483647, %v3390_v29  ;;  %vm3396_vm1 = vweird.f32 %v3390_v29 }
0x1a79   :  { %v3403_v5 = vor.u32 1.1754944e-38, %v3402_v44  ;;  %vm3401_vm3 = vcmp.eq.f32.partialorder %v3400_v63, 8.507059e+37 }
0x1a7d   :  { %v4792_v49 = vpop.eup %4791 }
0x1a7e   :  { %v3392_v10 = vmul.f32 %v4792_v49, %v3390_v29  ;;  %vm3397_vm15 = vweird.f32 %v4792_v49 }
0x1a7f   :  { %vm3398_vm5 = vmor %vm3396_vm1, %vm3397_vm15 }
0x1a80   :  { %v3393_v58 = vsub.f32 1.0, %v3392_v10  ;;  %v6199_v10 = vld [vmem:[%s6546_s5] sm:$0xff] }
0x1a82   :  { %v3394_v55 = vmul.f32 %v4792_v49, %v3393_v58 }
0x1a84   :  { %v3395_v11 = vadd.f32 %v4792_v49, %v3394_v55 }
0x1a86   :  { %v3399_v38 = vsel %vm3398_vm5, %v4792_v49, %v3395_v11  ;;  %v6193_v49 = vld [vmem:[%s6546_s5 + $0x8] sm:$0xff] }
0x1a87   :  { %v3404_v33 = vsel %vm3401_vm3, %v3403_v5, %v3399_v38  ;;  %v6213_v11 = vld [vmem:[%s6553_s13 + $0x8] sm:$0xff]  ;;  %v6219_v5 = vld [vmem:[%s6553_s13] sm:$0xff] }
0x1a88   :  { %v3410_v12 = vmul.f32 %v3408_v15, %v3404_v33  ;;  %v3417_v40 = vsub.f32 1.0, %v3404_v33  ;;  %v4873_v38 = vld [vmem:[%s6548_s3 + $0x8] sm:$0xff]  ;;  %v4874_v15 = vld [vmem:[%s6548_s3] sm:$0xff] }
0x1a8a   :  { %3412 = vrot.lane.b32.xlu2 %v3410_v12, %s4891_s26 }
0x1a92   :  { %3423 = vrot.lane.b32.xlu2 %v6026_v28, %s4892_s27 }
0x1ae4   :  { %v3413_v4 = vpop.permute.xlu2 %3412 }
0x1ae5   :  { %v3415_v17 = vadd.f32 %v3413_v4, %v3360_v16 }
0x1ae7   :  { %4793 = vtanh.f32 %v3415_v17 }
0x1aec   :  { %v3424_v48 = vpop.permute.xlu2 %3423 }
0x1aed   :  { %v4794_v26 = vpop.eup %4793  ;;  %v3426_v41 = vmul.f32 %v3424_v48, %v3404_v33 }
0x1aee   :  { %3419 = vrot.lane.b32.xlu2 %v4794_v26, %s4893_s28 }
0x1af6   :  { %3437 = vperm.xlu2 %4690, %v6128_v39   ;;  %v3043_v39 = vadd.f32 %v5987_v60, %v3042_v22 }
0x1af8   :  { %v3045_v1 = vadd.f32 %v3043_v39, %v3021_v30 }
0x1afe   :  { %4692 = vset.pattern.permute.xlu2 %v4977_v9 }
0x1b1f   :  { %209 = vmin.xlane.f32.xlu2 %v208_v53 }
0x1b48   :  { %v3420_v45 = vpop.permute.xlu2 %3419 }
0x1b49   :  { %v3422_v21 = vmul.f32 %v3420_v45, %v3417_v40 }
0x1b4b   :  { %v3427_v62 = vadd.f32 %v3426_v41, %v3422_v21  ;;  %v6253_v21 = vld [vmem:[#allocation2 + $0xc] sm:$0xf] }
0x1b50   :  { %v3438_v14 = vpop.permute.xlu2 %3437 }
0x1b51   :  { %v3440_v56 = vmul.f32 %v3438_v14, %v3427_v62 }
0x1b53   :  { %3442 = vrot.lane.b32.xlu1 %v3440_v56, %s4893_s28 }
0x1b5b   :  { %3066 = vrot.lane.b32.xlu1 %v3043_v39, %s4890_s19 }
0x1b63   :  { %3082 = vrot.lane.b32.xlu1 %v6081_v6, %s4892_s27  ;;  %v4619_v6 = vmul.f32 -1.442695, %v3045_v1  ;;  %v6266_v1 = vld [vmem:[#allocation2 + $0x10] sm:$0xf] }
0x1b65   :  { %4795 = vpow2.f32 %v4619_v6 }
0x1b6b   :  { %v4796_v37 = vpop.eup %4795 }
0x1b6c   :  { %v3049_v22 = vadd.f32 1.0, %v4796_v37  ;;  %v6269_v37 = vld [vmem:[#allocation2 + $0x1c] sm:$0xf] }
0x1b6e   :  { %4797 = vrcp.f32 %v3049_v22  ;;  %v3061_v8 = vand.u32 2147483648, %v3049_v22  ;;  %vm3055_vm5 = vweird.f32 %v3049_v22  ;;  %v3059_v27 = vand.u32 2147483647, %v3049_v22 }
0x1b70   :  { %v3062_v28 = vor.u32 1.1754944e-38, %v3061_v8  ;;  %vm3060_vm14 = vcmp.eq.f32.partialorder %v3059_v27, 8.507059e+37 }
0x1b74   :  { %v4798_v35 = vpop.eup %4797 }
0x1b75   :  { %v3051_v0 = vmul.f32 %v4798_v35, %v3049_v22  ;;  %vm3056_vm1 = vweird.f32 %v4798_v35 }
0x1b76   :  { %vm3057_vm3 = vmor %vm3055_vm5, %vm3056_vm1  ;;  %vm6575_vm1 = vcmask 1045509   ;;  %vm6576_vm5 = vcmask 1046534  }
0x1b77   :  { %v3052_v31 = vsub.f32 1.0, %v3051_v0 }
0x1b79   :  { %v3053_v16 = vmul.f32 %v4798_v35, %v3052_v31 }
0x1b7b   :  { %v3054_v23 = vadd.f32 %v4798_v35, %v3053_v16 }
0x1b7d   :  { %v3058_v29 = vsel %vm3057_vm3, %v4798_v35, %v3054_v23  ;;  %vm6577_vm3 = vcmask 1047559  }
0x1b7e   :  { %v3063_v58 = vsel %vm3060_vm14, %v3062_v28, %v3058_v29 }
0x1b7f   :  { %v3076_v56 = vsub.f32 1.0, %v3063_v58 }
0x1b92   :  { %v210_v57 = vpop.xlane.xlu2 %209 }
0x1b93   :  { %v211_v24 = vcvt.f32.s32 %v210_v57 }
0x1b95   :  { %v214_v34 = vadd.s32 %v213_v42, %v211_v24  ;;  %v6258_v24 = vld [vmem:[#allocation2 + $0x18] sm:$0xf] }
0x1b97   :  { %v239_v13 = vadd.s32 %v5028_v61, %v214_v34 }
0x1b99   :  { %vm247_vm15 = vcmp.eq.s32.totalorder %v4973_v3, %v239_v13  ;;  %v6262_v13 = vld [vmem:[#allocation2 + $0x4] sm:$0xf] }
0x1b9a   :  { %v4529_v60 = vsel %vm247_vm15, 1.0, %v4888_v51  ;;  %vm3672_vm15 = vcmp.lt.s32.totalorder %v4977_v9, 6 }
0x1b9b   :  { %272 = vst.msk [vmem:[#allocation5 + $0x18] sm:$0xf] %vm265_vm11, %v4529_v60 }
0x1ba2   :  { %v6206_v63 = vld [vmem:[#allocation5 + $0x18] sm:$0xf] }
0x1bc5   :  { %v3443_v43 = vpop.permute.xlu1 %3442 }
0x1bc6   :  { %v3445_v32 = vadd.f32 %v3443_v43, %v3434_v7 }
0x1bc8   :  { %3446 = vst.msk [vmem:[#allocation3] sm:$0xff] %vm56_vm9, %v3445_v32  ;;  %3462 = vmatpush.msra.mxu3 %v3445_v32 }
0x1bc9   :  { %4628 = vmatmul.msk.f32.vlgmr.msra.gmra.mxu3 %vm304_vm13, %v6029_v18 }
0x1bca   :  { %3564 = vmatpush.msrb.mxu3 %v6193_v49 }
0x1bcc   :  { %3565 = vmatpush.msrb.mxu3 %v6199_v10 }
0x1bcd   :  { %v3067_v18 = vpop.permute.xlu1 %3066 }
0x1bce   :  { %v3069_v44 = vmul.f32 %v3067_v18, %v3063_v58 }
0x1bcf   :  { %v6202_v55 = vld [vmem:[#allocation3] sm:$0xff] }
0x1bd0   :  { %3495 = vmatpush.msrb.mxu0 %v6202_v55  ;;  %3071 = vrot.lane.b32.xlu2 %v3069_v44, %s4891_s26 }
0x1bd1   :  { %4632 = vmatmul.msk.f32.vlgmr.msrb.gmra.mxu0 %vm304_vm13, %v6206_v63 }
0x1bd2   :  { %3634 = vmatpush.msra.mxu0 %v6213_v11 }
0x1bd4   :  { %3635 = vmatpush.msra.mxu0 %v6219_v5 }
0x1bd5   :  { %v3083_v14 = vpop.permute.xlu1 %3082 }
0x1bd6   :  { %3905 = vmatpush.msrb.mxu0 %v6038_v50  ;;  %v4875_v50 = vld [vmem:[%s6551_s8 + $0x8] sm:$0xff]  ;;  %v3085_v20 = vmul.f32 %v3083_v14, %v3063_v58 }
0x1bd8   :  { %3906 = vmatpush.msrb.mxu0 %v6044_v54  ;;  %v4876_v54 = vld [vmem:[%s6551_s8] sm:$0xff] }
0x1bd9   :  { %4637 = vmatmul.msk.f32.vlgmr.msra.gmra.mxu0 %vm56_vm9, %v4630_v19 }
0x1bda   :  { %4065 = vmatpush.msra.mxu0 %v4873_v38 }
0x1bdc   :  { %4066 = vmatpush.msra.mxu0 %v4874_v15 }
0x1be1   :  { %4643 = vmatmul.msk.f32.vlgmr.msrb.gmra.mxu0 %vm56_vm9, %v6202_v55 }
0x1be2   :  { %4383 = vmatpush.msrb.mxu0 %v4875_v50 }
0x1be4   :  { %4384 = vmatpush.msrb.mxu0 %v4876_v54 }
0x1c2a   :  { %v3072_v33 = vpop.permute.xlu2 %3071 }
0x1c2b   :  { %v3074_v12 = vadd.f32 %v3072_v33, %v3021_v30 }
0x1c2d   :  { %4799 = vtanh.f32 %v3074_v12 }
0x1c33   :  { %v4800_v4 = vpop.eup %4799 }
0x1c34   :  { %3078 = vrot.lane.b32.xlu0 %v4800_v4, %s4893_s28 }
0x1c4c   :  { %v3464_v17 = vpop.f32.mrf.mxu3 }
0x1c4d   :  { %4629 = vst.msk [vmem:[%s6559_s14 + $0x14] sm:$0xf] %vm47_vm10, %v3464_v17 }
0x1c4e   :  { %v3497_v26 = vpop.f32.mrf.mxu0 }
0x1c4f   :  { %4633 = vmatmul.msk.f32.vlgmr.msrb.gmra.mxu1 %vm56_vm9, %v3497_v26 }
0x1c56   :  { %v3637_v36 = vpop.f32.mrf.mxu0 }
0x1c57   :  { %v3642_v53 = vmul.f32 %v3637_v36, %v6245_v52  ;;  %v3640_v48 = vmul.f32 %v3637_v36, %v6247_v2  ;;  %v3643_v41 = vmul.f32 %v3637_v36, %v6253_v21  ;;  %v3646_v34 = vmul.f32 %v3637_v36, %v6258_v24 }
0x1c58   :  { %v3641_v30 = vmul.f32 %v3637_v36, %v6262_v13  ;;  %v3644_v6 = vmul.f32 %v3637_v36, %v6266_v1  ;;  %v3647_v19 = vmul.f32 %v3637_v36, %v6269_v37 }
0x1c59   :  { %v3654_v45 = vsel %vm47_vm10, %v3642_v53, 0.0  ;;  %v3648_v40 = vsel %vm47_vm10, %v3640_v48, 0.0  ;;  %v3657_v62 = vsel %vm47_vm10, %v3643_v41, 0.0  ;;  %v3666_v59 = vsel %vm47_vm10, %v3646_v34, 0.0 }
0x1c5a   :  { %3655 = vadd.xlane.f32.xlu2 %v3654_v45  ;;  %3649 = vadd.xlane.f32.xlu1 %v3648_v40  ;;  %v3651_v60 = vsel %vm47_vm10, %v3641_v30, 0.0  ;;  %v3660_v22 = vsel %vm47_vm10, %v3644_v6, 0.0  ;;  %v3669_v35 = vsel %vm47_vm10, %v3647_v19, 0.0 }
0x1c62   :  { %3658 = vadd.xlane.f32.xlu1 %v3657_v62  ;;  %3667 = vadd.xlane.f32.xlu2 %v3666_v59  ;;  %v4638_v59 = vsel %vm3672_vm15, 1.0, %v4888_v51 }
0x1ca6   :  { %v3079_v39 = vpop.permute.xlu0 %3078 }
0x1ca7   :  { %v3081_v42 = vmul.f32 %v3079_v39, %v3076_v56 }
0x1ca9   :  { %v3086_v57 = vadd.f32 %v3085_v20, %v3081_v42 }
0x1cab   :  { %3290 = vrot.lane.b32.xlu0 %v3086_v57, %s4893_s28 }
0x1ccd   :  { %v3650_v43 = vpop.xlane.xlu1 %3649  ;;  %v3656_v23 = vpop.xlane.xlu2 %3655 }
0x1cce   :  { %v3681_v28 = vperm.slane %v3650_v43, %v4973_v3  ;;  %v3683_v18 = vperm.slane %v3656_v23, %v4973_v3 }
0x1cd5   :  { %3652 = vadd.xlane.f32.xlu0 %v3651_v60  ;;  %v3659_v27 = vpop.xlane.xlu1 %3658  ;;  %v3668_v50 = vpop.xlane.xlu2 %3667 }
0x1cd6   :  { %v3684_v15 = vperm.slane %v3659_v27, %v4973_v3  ;;  %v3687_v26 = vperm.slane %v3668_v50, %v4973_v3 }
0x1cdd   :  { %3661 = vadd.xlane.f32.xlu0 %v3660_v22 }
0x1ce5   :  { %3670 = vadd.xlane.f32.xlu0 %v3669_v35 }
0x1d1d   :  { %v3291_v0 = vpop.permute.xlu0 %3290 }
0x1d1e   :  { %3294 = vst.msk [vmem:[#allocation2 + $0x14] sm:$0xf] %vm47_vm10, %v3291_v0 }
0x1d1f   :  { %3295 = vst.msk [vmem:[#allocation4] sm:$0xf] %vm47_vm10, %v3291_v0 }
0x1d25   :  { %v6276_v31 = vld [vmem:[#allocation2 + $0x14] sm:$0xf] }
0x1d26   :  { %v6278_v46 = vld [vmem:[#allocation4] sm:$0xf]  ;;  %v3645_v16 = vmul.f32 %v3637_v36, %v6276_v31 }
0x1d27   :  { %4635 = vmatmul.msk.f32.vlgmr.msrb.gmra.mxu3 %vm56_vm9, %v6278_v46 }
0x1d28   :  { %v3663_v7 = vsel %vm47_vm10, %v3645_v16, 0.0 }
0x1d29   :  { %3664 = vadd.xlane.f32.xlu1 %v3663_v7 }
0x1d48   :  { %v3653_v32 = vpop.xlane.xlu0 %3652 }
0x1d49   :  { %v3682_v8 = vperm.slane %v3653_v32, %v4973_v3 }
0x1d4b   :  { %v3689_v58 = vsel %vm523_vm6, %v3682_v8, %v3681_v28 }
0x1d4c   :  { %v3690_v44 = vsel %vm525_vm7, %v3683_v18, %v3689_v58 }
0x1d4d   :  { %v3691_v12 = vsel %vm527_vm8, %v3684_v15, %v3690_v44 }
0x1d50   :  { %v3662_v29 = vpop.xlane.xlu0 %3661 }
0x1d51   :  { %v3685_v38 = vperm.slane %v3662_v29, %v4973_v3 }
0x1d53   :  { %v3692_v17 = vsel %vm529_vm12, %v3685_v38, %v3691_v12 }
0x1d58   :  { %v3671_v54 = vpop.xlane.xlu0 %3670 }
0x1d59   :  { %v3688_v36 = vperm.slane %v3671_v54, %v4973_v3 }
0x1d9c   :  { %v3665_v33 = vpop.xlane.xlu1 %3664 }
0x1d9d   :  { %v3686_v4 = vperm.slane %v3665_v33, %v4973_v3 }
0x1d9f   :  { %v3693_v53 = vsel %vm6575_vm1, %v3686_v4, %v3692_v17 }
0x1da0   :  { %v3694_v48 = vsel %vm6576_vm5, %v3687_v26, %v3693_v53 }
0x1da1   :  { %v3695_v45 = vsel %vm6577_vm3, %v3688_v36, %v3694_v48  ;;  %v3908_v36 = vpop.f32.mrf.mxu0  ;;  %v6307_v48 = vld [vmem:[%s6558_s12] ss:$0 sm:$0xff] }
0x1da2   :  { %v3697_v40 = vsel %vm3672_vm15, %v3695_v45, -1e+30  ;;  %v6310_v45 = vadd.f32 %v6307_v48, %v3908_v36 }
0x1da3   :  { %v3698_v41 = vsel %vm539_vm2, %v3697_v40, -inf }
0x1da4   :  { %v3699_v62 = vrot.slane %v3698_v41, 4 }
0x1da6   :  { %v3700_v14 = vmax.f32 %v3698_v41, %v3699_v62  ;;  %v6322_v62 = vld [vmem:[%s6555_s2 + $0x30] sm:$0xff] }
0x1da8   :  { %v3701_v56 = vrot.slane %v3700_v14, 2 }
0x1daa   :  { %v3702_v39 = vmax.f32 %v3700_v14, %v3701_v56  ;;  %v3953_v14 = vsub.f32 1.0, %v6322_v62 }
0x1dac   :  { %v3703_v20 = vrot.slane %v3702_v39, 1 }
0x1dae   :  { %v3704_v42 = vmax.f32 %v3702_v39, %v3703_v20 }
0x1db0   :  { %v3705_v57 = vsub.f32 %v3697_v40, %v3704_v42  ;;  %v66_v40 = vld [vmem:[%s6545_s1 + $0x1c] sm:$0xf] }
0x1db1   :  { %v91_v41 = vsel %vm69_vm0, %v66_v40, -inf }
0x1db2   :  { %v3706_v34 = vmul.f32 1.442695, %v3705_v57 }
0x1db4   :  { %4801 = vpow2.f32 %v3706_v34 }
0x1dba   :  { %v4802_v30 = vpop.eup %4801 }
0x1dbb   :  { %v3710_v60 = vmul.f32 %v4802_v30, %v4638_v59 }
0x1dbd   :  { %v3711_v6 = vsel %vm539_vm2, %v3710_v60, 0.0 }
0x1dbe   :  { %v3712_v22 = vrot.slane %v3711_v6, 4 }
0x1dc0   :  { %v3713_v19 = vadd.f32 %v3712_v22, %v3711_v6 }
0x1dc2   :  { %v3714_v35 = vrot.slane %v3713_v19, 2 }
0x1dc4   :  { %v3715_v0 = vadd.f32 %v3714_v35, %v3713_v19 }
0x1dc6   :  { %v3716_v16 = vrot.slane %v3715_v0, 1 }
0x1dc8   :  { %v3717_v7 = vadd.f32 %v3716_v16, %v3715_v0 }
0x1dca   :  { %vm3718_vm14 = vcmp.eq.f32.partialorder %v3717_v7, 0.0 }
0x1dcb   :  { %v3719_v43 = vsel %vm3718_vm14, 1.0, %v3717_v7 }
0x1dcc   :  { %4803 = vrcp.f32 %v3719_v43  ;;  %v3731_v27 = vand.u32 2147483648, %v3719_v43  ;;  %v3729_v28 = vand.u32 2147483647, %v3719_v43  ;;  %vm3725_vm15 = vweird.f32 %v3719_v43 }
0x1dce   :  { %v3732_v18 = vor.u32 1.1754944e-38, %v3731_v27  ;;  %vm3730_vm3 = vcmp.eq.f32.partialorder %v3729_v28, 8.507059e+37 }
0x1dd2   :  { %v4804_v32 = vpop.eup %4803 }
0x1dd3   :  { %v3721_v23 = vmul.f32 %v4804_v32, %v3719_v43  ;;  %vm3726_vm1 = vweird.f32 %v4804_v32 }
0x1dd4   :  { %vm3727_vm5 = vmor %vm3725_vm15, %vm3726_vm1 }
0x1dd5   :  { %v3722_v8 = vsub.f32 1.0, %v3721_v23 }
0x1dd7   :  { %v3723_v29 = vmul.f32 %v4804_v32, %v3722_v8 }
0x1dd9   :  { %v3724_v58 = vadd.f32 %v4804_v32, %v3723_v29 }
0x1ddb   :  { %v3728_v44 = vsel %vm3727_vm5, %v4804_v32, %v3724_v58 }
0x1ddc   :  { %v3733_v38 = vsel %vm3730_vm3, %v3732_v18, %v3728_v44  ;;  %v6345_v44 = vpop.f32.mrf.mxu2 }
0x1ddd   :  { %v3734_v15 = vmul.f32 %v3733_v38, %v3710_v60 }
0x1ddf   :  { %v3749_v50 = vperm.slane %v3734_v15, 2  ;;  %v3742_v54 = vperm.slane %v3734_v15, 1  ;;  %v3735_v33 = vperm.slane %v3734_v15, 0  ;;  %v3756_v12 = vperm.slane %v3734_v15, 3 }
0x1de0   :  { %v3763_v4 = vperm.slane %v3734_v15, 4  ;;  %v3770_v17 = vperm.slane %v3734_v15, 5  ;;  %v3777_v26 = vperm.slane %v3734_v15, 6  ;;  %v3784_v53 = vperm.slane %v3734_v15, 7 }
0x1de1   :  { %3754 = vperm.xlu0 %4693, %v3749_v50   ;;  %3747 = vperm.xlu2 %4692, %v3742_v54   ;;  %v4879_v54 = vld [vmem:[%s6550_s4 + $0x8] sm:$0xff] }
0x1de2   :  { %3740 = vperm.xlu1 %4687, %v3735_v33   ;;  %v4880_v33 = vld [vmem:[%s6550_s4] sm:$0xff] }
0x1de4   :  { %v3861_v38 = vpop.f32.mrf.mxu2 }
0x1de9   :  { %3761 = vperm.xlu2 %4692, %v3756_v12   ;;  %4695 = vset.pattern.permute.xlu0 %v4889_v25  ;;  %v4881_v12 = vld [vmem:[%s6552_s9 + $0x8] sm:$0xff] }
0x1dea   :  { %3768 = vperm.xlu1 %4687, %v3763_v4   ;;  %v4882_v4 = vld [vmem:[%s6552_s9] sm:$0xff] }
0x1df1   :  { %3775 = vperm.xlu2 %4692, %v3770_v17   ;;  %v3567_v17 = vpop.f32.mrf.mxu3 }
0x1df2   :  { %3782 = vperm.xlu1 %4687, %v3777_v26  }
0x1df9   :  { %3789 = vperm.xlu2 %4692, %v3784_v53  }
0x1dfa   :  { %3932 = vrot.lane.b32.xlu1 %v6310_v45, %s4890_s19 }
0x1e01   :  { %4694 = vset.pattern.permute.xlu2 %v4889_v25 }
0x1e0b   :  { %92 = vmax.xlane.f32.xlu0 %v91_v41 }
0x1e1f   :  { %3956 = vperm.xlu0 %4695, %v3953_v14  }
0x1e27   :  { %3607 = vrot.lane.b32.xlu0 %v6278_v46, %s4892_s27 }
0x1e28   :  { %4697 = vset.pattern.permute.xlu0 %v4977_v9 }
0x1e3b   :  { %v3748_v56 = vpop.permute.xlu2 %3747 }
0x1e3c   :  { %v3792_v20 = vmul.f32 %v3748_v56, %v6262_v13 }
0x1e3e   :  { %v3800_v59 = vsel %vm47_vm10, %v3792_v20, 0.0 }
0x1e43   :  { %v3762_v39 = vpop.permute.xlu2 %3761 }
0x1e44   :  { %v3794_v46 = vmul.f32 %v3762_v39, %v6253_v21 }
0x1e46   :  { %v3804_v16 = vsel %vm47_vm10, %v3794_v46, 0.0 }
0x1e4b   :  { %v3776_v6 = vpop.permute.xlu2 %3775 }
0x1e4c   :  { %v3796_v43 = vmul.f32 %v3776_v6, %v6276_v31  ;;  %v6347_v31 = vpop.f32.mrf.mxu1 }
0x1e4e   :  { %v3808_v8 = vsel %vm47_vm10, %v3796_v43, 0.0 }
0x1e53   :  { %v3755_v42 = vpop.permute.xlu0 %3754 }
0x1e54   :  { %v3741_v57 = vpop.permute.xlu1 %3740  ;;  %v3793_v30 = vmul.f32 %v3755_v42, %v6245_v52  ;;  %v3790_v52 = vpop.permute.xlu2 %3789 }
0x1e55   :  { %v3791_v34 = vmul.f32 %v3741_v57, %v6247_v2  ;;  %v3798_v21 = vmul.f32 %v3790_v52, %v6269_v37 }
0x1e56   :  { %v3802_v19 = vsel %vm47_vm10, %v3793_v30, 0.0 }
0x1e57   :  { %v3799_v60 = vsel %vm47_vm10, %v3791_v34, 0.0  ;;  %v3812_v58 = vsel %vm47_vm10, %v3798_v21, 0.0 }
0x1e58   :  { %v3801_v22 = vadd.f32 %v3800_v59, %v3799_v60 }
0x1e5a   :  { %v3803_v35 = vadd.f32 %v3802_v19, %v3801_v22 }
0x1e5c   :  { %v3769_v0 = vpop.permute.xlu1 %3768  ;;  %v3805_v7 = vadd.f32 %v3804_v16, %v3803_v35 }
0x1e5d   :  { %v3795_v13 = vmul.f32 %v3769_v0, %v6266_v1 }
0x1e5f   :  { %v3806_v2 = vsel %vm47_vm10, %v3795_v13, 0.0 }
0x1e60   :  { %v3807_v32 = vadd.f32 %v3806_v2, %v3805_v7 }
0x1e62   :  { %v3809_v29 = vadd.f32 %v3808_v8, %v3807_v32 }
0x1e64   :  { %v3783_v23 = vpop.permute.xlu1 %3782 }
0x1e65   :  { %v3797_v27 = vmul.f32 %v3783_v23, %v6258_v24  ;;  %v6352_v24 = vld [vmem:[%s6557_s11] ss:$0 sm:$0xff] }
0x1e67   :  { %v3810_v28 = vsel %vm47_vm10, %v3797_v27, 0.0 }
0x1e68   :  { %v3811_v1 = vadd.f32 %v3810_v28, %v3809_v29 }
0x1e6a   :  { %v3813_v18 = vadd.f32 %v3812_v58, %v3811_v1 }
0x1e6c   :  { %4639 = vmatmul.msk.f32.vlgmr.msra.gmra.mxu1 %vm56_vm9, %v3813_v18  ;;  %v3933_v19 = vpop.permute.xlu1 %3932 }
0x1e7e   :  { %v93_v26 = vpop.xlane.xlu0 %92 }
0x1e7f   :  { %vm101_vm14 = vcmp.eq.f32.partialorder %v66_v40, %v93_v26 }
0x1e80   :  { %v109_v36 = vsel %vm101_vm14, %v4973_v3, 2 }
0x1e81   :  { %v215_v14 = vsel %vm69_vm0, %v109_v36, 2147483647 }
0x1e82   :  { %v217_v39 = vshra.s32 %v215_v14, 16  ;;  %v216_v7 = vand.u32 65535, %v215_v14 }
0x1e84   :  { %v219_v20 = vcvt.s32.f32 %v217_v39  ;;  %v218_v52 = vcvt.s32.f32 %v216_v7 }
0x1e86   :  { %220 = vmin.xlane.f32.xlu1 %v219_v20 }
0x1e91   :  { %v3957_v39 = vpop.permute.xlu0 %3956 }
0x1ee9   :  { %v3841_v15 = vpop.f32.mrf.mxu1 }
0x1eea   :  { %v3862_v50 = vadd.f32 %v3861_v38, %v3841_v15 }
0x1eec   :  { %v3864_v37 = vadd.f32 %v6352_v24, %v3862_v50 }
0x1eee   :  { %4641 = vmatpush.msk.msra.mxu3 %vm712_vm4, %v3864_v37 }
0x1eef   :  { %4642 = vmatmul.msk.f32.vlgmr.msra.gmra.mxu3 %vm539_vm2, %v5190_v47 }
0x1ef0   :  { %4042 = vmatpush.msrb.mxu3 %v4879_v54 }
0x1ef2   :  { %4043 = vmatpush.msrb.mxu3 %v4880_v33  ;;  %v3544_v33 = vadd.f32 %v6345_v44, %v6347_v31 }
0x1ef4   :  { %4363 = vmatpush.msra.mxu3 %v4881_v12 }
0x1ef6   :  { %4364 = vmatpush.msra.mxu3 %v4882_v4  ;;  %v6394_v4 = vld [vmem:[%s6556_s6] ss:$0 sm:$0xff] }
0x1ef9   :  { %v221_v43 = vpop.xlane.xlu1 %220 }
0x1efa   :  { %vm222_vm3 = vcmp.eq.f32.partialorder %v219_v20, %v221_v43  ;;  %v227_v38 = vcvt.f32.s32 %v221_v43 }
0x1efb   :  { %v223_v32 = vsel %vm222_vm3, %v218_v52, inf  ;;  %vm6580_vm3 = vcmask 1047559  }
0x1efc   :  { %v228_v15 = vshll.u32 %v227_v38, 16 }
0x1f72   :  { %v3885_v53 = vpop.f32.mrf.mxu3 }
0x1f73   :  { %v3911_v41 = vadd.f32 %v6310_v45, %v3885_v53 }
0x1f75   :  { %v4644_v56 = vmul.f32 -1.442695, %v3911_v41 }
0x1f77   :  { %4805 = vpow2.f32 %v4644_v56 }
0x1f7d   :  { %v4806_v42 = vpop.eup %4805 }
0x1f7e   :  { %v3915_v57 = vadd.f32 1.0, %v4806_v42  ;;  %v3959_v42 = vmul.f32 %v3957_v39, %v6202_v55 }
0x1f80   :  { %4807 = vrcp.f32 %v3915_v57  ;;  %v3927_v60 = vand.u32 2147483648, %v3915_v57  ;;  %v3925_v6 = vand.u32 2147483647, %v3915_v57  ;;  %vm3921_vm15 = vweird.f32 %v3915_v57 }
0x1f82   :  { %v3928_v45 = vor.u32 1.1754944e-38, %v3927_v60  ;;  %vm3926_vm0 = vcmp.eq.f32.partialorder %v3925_v6, 8.507059e+37 }
0x1f86   :  { %v4808_v34 = vpop.eup %4807 }
0x1f87   :  { %v3917_v59 = vmul.f32 %v4808_v34, %v3915_v57  ;;  %vm3922_vm1 = vweird.f32 %v4808_v34 }
0x1f88   :  { %vm3923_vm5 = vmor %vm3921_vm15, %vm3922_vm1 }
0x1f89   :  { %v3918_v30 = vsub.f32 1.0, %v3917_v59 }
0x1f8b   :  { %v3919_v40 = vmul.f32 %v4808_v34, %v3918_v30 }
0x1f8d   :  { %v3920_v22 = vadd.f32 %v4808_v34, %v3919_v40 }
0x1f8f   :  { %v3924_v46 = vsel %vm3923_vm5, %v4808_v34, %v3920_v22 }
0x1f90   :  { %v3929_v35 = vsel %vm3926_vm0, %v3928_v45, %v3924_v46  ;;  %vm6579_vm0 = vcmask 1046534  }
0x1f91   :  { %v3935_v0 = vmul.f32 %v3933_v19, %v3929_v35  ;;  %v3942_v21 = vsub.f32 1.0, %v3929_v35 }
0x1f93   :  { %3937 = vrot.lane.b32.xlu2 %v3935_v0, %s4891_s26 }
0x1f9b   :  { %3948 = vrot.lane.b32.xlu2 %v6202_v55, %s4892_s27 }
0x1fed   :  { %v3938_v13 = vpop.permute.xlu2 %3937 }
0x1fee   :  { %v3940_v16 = vadd.f32 %v3938_v13, %v3885_v53 }
0x1ff0   :  { %4809 = vtanh.f32 %v3940_v16  ;;  %v6435_v16 = vld [vmem:[#allocation2] sm:$0xf] }
0x1ff5   :  { %v3949_v23 = vpop.permute.xlu2 %3948 }
0x1ff6   :  { %v4810_v2 = vpop.eup %4809  ;;  %v3951_v29 = vmul.f32 %v3949_v23, %v3929_v35  ;;  %v6443_v23 = vld [vmem:[#allocation2 + $0xc] sm:$0xf] }
0x1ff7   :  { %3944 = vrot.lane.b32.xlu2 %v4810_v2, %s4893_s28  ;;  %v6437_v2 = vld [vmem:[#allocation2 + $0x8] sm:$0xf] }
0x1fff   :  { %3962 = vperm.xlu2 %4694, %v6322_v62   ;;  %v6383_v62 = vld [vmem:[%s6547_s7] ss:$0 sm:$0xff] }
0x2000   :  { %v3568_v18 = vadd.f32 %v6383_v62, %v3567_v17  ;;  %v3546_v17 = vadd.f32 %v6394_v4, %v3544_v33 }
0x2002   :  { %v3570_v36 = vadd.f32 %v3568_v18, %v3546_v17 }
0x2004   :  { %v4636_v53 = vmul.f32 -1.442695, %v3570_v36 }
0x2006   :  { %4811 = vpow2.f32 %v4636_v53 }
0x2007   :  { %4696 = vset.pattern.permute.xlu2 %v4977_v9 }
0x200c   :  { %v4812_v41 = vpop.eup %4811 }
0x200d   :  { %v3574_v44 = vadd.f32 1.0, %v4812_v41 }
0x200f   :  { %4813 = vrcp.f32 %v3574_v44  ;;  %v3586_v30 = vand.u32 2147483648, %v3574_v44  ;;  %vm3580_vm1 = vweird.f32 %v3574_v44  ;;  %v3584_v60 = vand.u32 2147483647, %v3574_v44 }
0x2011   :  { %v3587_v6 = vor.u32 1.1754944e-38, %v3586_v30  ;;  %vm3585_vm5 = vcmp.eq.f32.partialorder %v3584_v60, 8.507059e+37 }
0x2015   :  { %v4814_v31 = vpop.eup %4813 }
0x2016   :  { %v3576_v14 = vmul.f32 %v4814_v31, %v3574_v44 }
0x2018   :  { %v3577_v56 = vsub.f32 1.0, %v3576_v14 }
0x201a   :  { %v3578_v20 = vmul.f32 %v4814_v31, %v3577_v56 }
0x201c   :  { %v3579_v34 = vadd.f32 %v4814_v31, %v3578_v20 }
0x2028   :  { %224 = vmin.xlane.f32.xlu2 %v223_v32 }
0x2051   :  { %v3945_v8 = vpop.permute.xlu2 %3944 }
0x2052   :  { %v3947_v27 = vmul.f32 %v3945_v8, %v3942_v21  ;;  %v6445_v8 = vld [vmem:[#allocation2 + $0x14] sm:$0xf] }
0x2054   :  { %v3952_v28 = vadd.f32 %v3951_v29, %v3947_v27 }
0x2059   :  { %v3963_v1 = vpop.permute.xlu2 %3962 }
0x205a   :  { %v3965_v58 = vmul.f32 %v3963_v1, %v3952_v28  ;;  %v3608_v1 = vpop.permute.xlu0 %3607 }
0x205c   :  { %3967 = vrot.lane.b32.xlu1 %v3965_v58, %s4893_s28 }
0x2064   :  { %3591 = vrot.lane.b32.xlu1 %v3568_v18, %s4890_s19 }
0x209b   :  { %v225_v50 = vpop.xlane.xlu2 %224 }
0x209c   :  { %v226_v37 = vcvt.f32.s32 %v225_v50 }
0x209e   :  { %v229_v54 = vadd.s32 %v228_v15, %v226_v37  ;;  %v6452_v37 = vld [vmem:[#allocation2 + $0x4] sm:$0xf] }
0x20a0   :  { %v240_v12 = vadd.s32 %v5028_v61, %v229_v54  ;;  %v4647_v61 = vld [vmem:[%s6549_s0 + $0x1c] sm:$0xf] }
0x20a1   :  { %4651 = vmatmul.msk.f32.vlgmr.msra.gmra.mxu0 %vm56_vm9, %v4647_v61 }
0x20a2   :  { %vm248_vm14 = vcmp.eq.s32.totalorder %v4973_v3, %v240_v12  ;;  %v6456_v12 = vld [vmem:[#allocation2 + $0x10] sm:$0xf] }
0x20a3   :  { %v4530_v26 = vsel %vm248_vm14, 1.0, %v4888_v51 }
0x20a4   :  { %273 = vst.msk [vmem:[#allocation5 + $0x1c] sm:$0xf] %vm265_vm11, %v4530_v26  ;;  %vm3581_vm11 = vweird.f32 %v4814_v31  ;;  %v6459_v26 = vld [vmem:[#allocation2 + $0x1c] sm:$0xf] }
0x20a5   :  { %vm3582_vm15 = vmor %vm3580_vm1, %vm3581_vm11 }
0x20a6   :  { %v3583_v40 = vsel %vm3582_vm15, %v4814_v31, %v3579_v34 }
0x20a7   :  { %v3588_v55 = vsel %vm3585_vm5, %v3587_v6, %v3583_v40 }
0x20a8   :  { %v3601_v58 = vsub.f32 1.0, %v3588_v55  ;;  %v3610_v38 = vmul.f32 %v3608_v1, %v3588_v55 }
0x20a9   :  { %4657 = vmatmul.msk.f32.vlgmr.msrb.gmra.mxu0 %vm56_vm9, %v4647_v61 }
0x20ab   :  { %v6414_v19 = vld [vmem:[#allocation5 + $0x1c] sm:$0xf] }
0x20ce   :  { %v3968_v57 = vpop.permute.xlu1 %3967 }
0x20cf   :  { %v3970_v59 = vadd.f32 %v3968_v57, %v3959_v42 }
0x20d1   :  { %3971 = vst.msk [vmem:[#allocation3] sm:$0xff] %vm56_vm9, %v3970_v59  ;;  %3987 = vmatpush.msrb.mxu1 %v3970_v59 }
0x20d2   :  { %4645 = vmatmul.msk.f32.vlgmr.msrb.gmra.mxu1 %vm304_vm13, %v6206_v63 }
0x20d3   :  { %4089 = vmatpush.msra.mxu1 %v6193_v49  ;;  %v4885_v49 = vld [vmem:[%s6554_s10 + $0x8] sm:$0xff] }
0x20d5   :  { %4090 = vmatpush.msra.mxu1 %v6199_v10  ;;  %v4886_v10 = vld [vmem:[%s6554_s10] sm:$0xff] }
0x20d6   :  { %v3592_v22 = vpop.permute.xlu1 %3591 }
0x20d7   :  { %v3594_v45 = vmul.f32 %v3592_v22, %v3588_v55 }
0x20d8   :  { %v6410_v46 = vld [vmem:[#allocation3] sm:$0xff] }
0x20d9   :  { %4020 = vmatpush.msrb.mxu2 %v6410_v46  ;;  %3596 = vrot.lane.b32.xlu2 %v3594_v45, %s4891_s26 }
0x20da   :  { %4649 = vmatmul.msk.f32.vlgmr.msrb.gmra.mxu2 %vm304_vm13, %v6414_v19 }
0x20db   :  { %4159 = vmatpush.msra.mxu2 %v6213_v11 }
0x20dd   :  { %4160 = vmatpush.msra.mxu2 %v6219_v5 }
0x20df   :  { %4430 = vmatpush.msrb.mxu2 %v4885_v49 }
0x20e1   :  { %4431 = vmatpush.msrb.mxu2 %v4886_v10 }
0x20e2   :  { %4654 = vmatmul.msk.f32.vlgmr.msra.gmra.mxu2 %vm56_vm9, %v4647_v61 }
0x20ea   :  { %4660 = vmatmul.msk.f32.vlgmr.msrb.gmra.mxu2 %vm56_vm9, %v6410_v46 }
0x2133   :  { %v3597_v63 = vpop.permute.xlu2 %3596 }
0x2134   :  { %v3599_v35 = vadd.f32 %v3597_v63, %v3546_v17 }
0x2136   :  { %4815 = vtanh.f32 %v3599_v35 }
0x213c   :  { %v4816_v11 = vpop.eup %4815 }
0x213d   :  { %3603 = vrot.lane.b32.xlu1 %v4816_v11, %s4893_s28 }
0x214f   :  { %v3989_v5 = vpop.f32.mrf.mxu1 }
0x2150   :  { %4646 = vst.msk [vmem:[%s6559_s14 + $0x18] sm:$0xf] %vm47_vm10, %v3989_v5 }
0x215d   :  { %v4022_v0 = vpop.f32.mrf.mxu2 }
0x215e   :  { %4650 = vmatmul.msk.f32.vlgmr.msrb.gmra.mxu3 %vm56_vm9, %v4022_v0 }
0x2165   :  { %v4162_v13 = vpop.f32.mrf.mxu2 }
0x2166   :  { %v4165_v7 = vmul.f32 %v4162_v13, %v6435_v16  ;;  %v4167_v43 = vmul.f32 %v4162_v13, %v6437_v2  ;;  %v4168_v21 = vmul.f32 %v4162_v13, %v6443_v23  ;;  %v4170_v27 = vmul.f32 %v4162_v13, %v6445_v8 }
0x2167   :  { %v4166_v54 = vmul.f32 %v4162_v13, %v6452_v37  ;;  %v4169_v17 = vmul.f32 %v4162_v13, %v6456_v12  ;;  %v4172_v53 = vmul.f32 %v4162_v13, %v6459_v26 }
0x2168   :  { %v4173_v52 = vsel %vm47_vm10, %v4165_v7, 0.0  ;;  %v4179_v32 = vsel %vm47_vm10, %v4167_v43, 0.0  ;;  %v4182_v29 = vsel %vm47_vm10, %v4168_v21, 0.0  ;;  %v4188_v28 = vsel %vm47_vm10, %v4170_v27, 0.0 }
0x2169   :  { %4174 = vadd.xlane.f32.xlu0 %v4173_v52  ;;  %4180 = vadd.xlane.f32.xlu2 %v4179_v32  ;;  %v4176_v33 = vsel %vm47_vm10, %v4166_v54, 0.0  ;;  %v4185_v36 = vsel %vm47_vm10, %v4169_v17, 0.0  ;;  %v4194_v41 = vsel %vm47_vm10, %v4172_v53, 0.0 }
0x2171   :  { %4183 = vadd.xlane.f32.xlu0 %v4182_v29  ;;  %4189 = vadd.xlane.f32.xlu2 %v4188_v28 }
0x21af   :  { %v3604_v18 = vpop.permute.xlu1 %3603 }
0x21b0   :  { %v3606_v15 = vmul.f32 %v3604_v18, %v3601_v58 }
0x21b2   :  { %v3611_v50 = vadd.f32 %v3610_v38, %v3606_v15 }
0x21b4   :  { %3815 = vrot.lane.b32.xlu1 %v3611_v50, %s4893_s28 }
0x21dc   :  { %v4175_v20 = vpop.xlane.xlu0 %4174  ;;  %v4181_v42 = vpop.xlane.xlu2 %4180 }
0x21dd   :  { %v4206_v34 = vperm.slane %v4175_v20, %v4973_v3  ;;  %v4208_v40 = vperm.slane %v4181_v42, %v4973_v3 }
0x21de   :  { %4177 = vadd.xlane.f32.xlu1 %v4176_v33 }
0x21e4   :  { %v4184_v30 = vpop.xlane.xlu0 %4183  ;;  %v4190_v45 = vpop.xlane.xlu2 %4189 }
0x21e5   :  { %v4209_v22 = vperm.slane %v4184_v30, %v4973_v3  ;;  %v4211_v35 = vperm.slane %v4190_v45, %v4973_v3 }
0x21e6   :  { %4186 = vadd.xlane.f32.xlu1 %v4185_v36 }
0x21ee   :  { %4195 = vadd.xlane.f32.xlu1 %v4194_v41 }
0x2226   :  { %v3816_v44 = vpop.permute.xlu1 %3815 }
0x2227   :  { %3819 = vst.msk [vmem:[#allocation2 + $0x18] sm:$0xf] %vm47_vm10, %v3816_v44 }
0x2228   :  { %3820 = vst.msk [vmem:[#allocation4] sm:$0xf] %vm47_vm10, %v3816_v44 }
0x222e   :  { %v6466_v61 = vld [vmem:[#allocation2 + $0x18] sm:$0xf] }
0x222f   :  { %v6468_v31 = vld [vmem:[#allocation4] sm:$0xf]  ;;  %v4171_v14 = vmul.f32 %v4162_v13, %v6466_v61 }
0x2230   :  { %4652 = vmatmul.msk.f32.vlgmr.msra.gmra.mxu1 %vm56_vm9, %v6468_v31 }
0x2231   :  { %v4191_v56 = vsel %vm47_vm10, %v4171_v14, 0.0 }
0x2232   :  { %4192 = vadd.xlane.f32.xlu0 %v4191_v56 }
0x2251   :  { %v4178_v39 = vpop.xlane.xlu1 %4177 }
0x2252   :  { %v4207_v57 = vperm.slane %v4178_v39, %v4973_v3 }
0x2254   :  { %v4214_v60 = vsel %vm523_vm6, %v4207_v57, %v4206_v34  ;;  %vm4197_vm6 = vcmp.lt.s32.totalorder %v4977_v9, 7 }
0x2255   :  { %v4215_v6 = vsel %vm525_vm7, %v4208_v40, %v4214_v60  ;;  %vm6578_vm7 = vcmask 1045509  }
0x2256   :  { %v4216_v49 = vsel %vm527_vm8, %v4209_v22, %v4215_v6  ;;  %v4433_v22 = vpop.f32.mrf.mxu2 }
0x2257   :  { %v4434_v45 = vadd.f32 %v6307_v48, %v4433_v22 }
0x2259   :  { %v4187_v59 = vpop.xlane.xlu1 %4186 }
0x225a   :  { %v4210_v55 = vperm.slane %v4187_v59, %v4973_v3 }
0x225c   :  { %v4217_v10 = vsel %vm529_vm12, %v4210_v55, %v4216_v49 }
0x225d   :  { %v4218_v13 = vsel %vm6578_vm7, %v4211_v35, %v4217_v10 }
0x2261   :  { %v4196_v63 = vpop.xlane.xlu1 %4195 }
0x2262   :  { %v4213_v0 = vperm.slane %v4196_v63, %v4973_v3 }
0x22a5   :  { %v4193_v11 = vpop.xlane.xlu0 %4192 }
0x22a6   :  { %v4212_v5 = vperm.slane %v4193_v11, %v4973_v3  ;;  %v4655_v3 = vsel %vm4197_vm6, 1.0, %v4888_v51 }
0x22a8   :  { %v4219_v7 = vsel %vm6579_vm0, %v4212_v5, %v4218_v13 }
0x22a9   :  { %v4220_v43 = vsel %vm6580_vm3, %v4213_v0, %v4219_v7 }
0x22aa   :  { %v4222_v52 = vsel %vm4197_vm6, %v4220_v43, -1e+30 }
0x22ab   :  { %v4223_v32 = vsel %vm539_vm2, %v4222_v52, -inf }
0x22ac   :  { %v4224_v21 = vrot.slane %v4223_v32, 4 }
0x22ae   :  { %v4225_v27 = vmax.f32 %v4223_v32, %v4224_v21 }
0x22b0   :  { %v4226_v29 = vrot.slane %v4225_v27, 2 }
0x22b2   :  { %v4227_v28 = vmax.f32 %v4225_v27, %v4226_v29 }
0x22b4   :  { %v4228_v1 = vrot.slane %v4227_v28, 1 }
0x22b6   :  { %v4229_v58 = vmax.f32 %v4227_v28, %v4228_v1 }
0x22b8   :  { %v4230_v18 = vsub.f32 %v4222_v52, %v4229_v58 }
0x22ba   :  { %v4231_v38 = vmul.f32 1.442695, %v4230_v18 }
0x22bc   :  { %4817 = vpow2.f32 %v4231_v38 }
0x22c2   :  { %v4818_v9 = vpop.eup %4817 }
0x22c3   :  { %v4235_v15 = vmul.f32 %v4818_v9, %v4655_v3 }
0x22c5   :  { %v4236_v50 = vsel %vm539_vm2, %v4235_v15, 0.0 }
0x22c6   :  { %v4237_v54 = vrot.slane %v4236_v50, 4 }
0x22c8   :  { %v4238_v33 = vadd.f32 %v4237_v54, %v4236_v50 }
0x22ca   :  { %v4239_v17 = vrot.slane %v4238_v33, 2 }
0x22cc   :  { %v4240_v36 = vadd.f32 %v4239_v17, %v4238_v33 }
0x22ce   :  { %v4241_v53 = vrot.slane %v4240_v36, 1 }
0x22d0   :  { %v4242_v41 = vadd.f32 %v4241_v53, %v4240_v36 }
0x22d2   :  { %vm4243_vm8 = vcmp.eq.f32.partialorder %v4242_v41, 0.0 }
0x22d3   :  { %v4244_v44 = vsel %vm4243_vm8, 1.0, %v4242_v41  ;;  %v4068_v41 = vpop.f32.mrf.mxu0 }
0x22d4   :  { %4819 = vrcp.f32 %v4244_v44  ;;  %v4256_v20 = vand.u32 2147483648, %v4244_v44  ;;  %v4254_v51 = vand.u32 2147483647, %v4244_v44  ;;  %vm4250_vm14 = vweird.f32 %v4244_v44 }
0x22d6   :  { %v4257_v34 = vor.u32 1.1754944e-38, %v4256_v20  ;;  %vm4255_vm1 = vcmp.eq.f32.partialorder %v4254_v51, 8.507059e+37 }
0x22da   :  { %v4820_v14 = vpop.eup %4819 }
0x22db   :  { %v4246_v56 = vmul.f32 %v4820_v14, %v4244_v44  ;;  %vm4251_vm12 = vweird.f32 %v4820_v14  ;;  %v4386_v44 = vpop.f32.mrf.mxu0 }
0x22dc   :  { %vm4252_vm11 = vmor %vm4250_vm14, %vm4251_vm12 }
0x22dd   :  { %v4247_v39 = vsub.f32 1.0, %v4246_v56 }
0x22df   :  { %v4248_v42 = vmul.f32 %v4820_v14, %v4247_v39 }
0x22e1   :  { %v4249_v57 = vadd.f32 %v4820_v14, %v4248_v42 }
0x22e3   :  { %v4253_v59 = vsel %vm4252_vm11, %v4820_v14, %v4249_v57 }
0x22e4   :  { %v4258_v30 = vsel %vm4255_vm1, %v4257_v34, %v4253_v59 }
0x22e5   :  { %v4259_v60 = vmul.f32 %v4258_v30, %v4235_v15 }
0x22e7   :  { %v4274_v40 = vperm.slane %v4259_v60, 2  ;;  %v4267_v6 = vperm.slane %v4259_v60, 1  ;;  %v4260_v55 = vperm.slane %v4259_v60, 0  ;;  %v4288_v49 = vperm.slane %v4259_v60, 4 }
0x22e8   :  { %v4281_v10 = vperm.slane %v4259_v60, 3  ;;  %v4302_v63 = vperm.slane %v4259_v60, 6  ;;  %v4295_v35 = vperm.slane %v4259_v60, 5  ;;  %v4309_v11 = vperm.slane %v4259_v60, 7 }
0x22e9   :  { %4279 = vperm.xlu1 %4687, %v4274_v40   ;;  %4272 = vperm.xlu0 %4697, %v4267_v6  }
0x22ea   :  { %4265 = vperm.xlu2 %4696, %v4260_v55  }
0x22f1   :  { %4293 = vperm.xlu1 %4687, %v4288_v49   ;;  %4457 = vrot.lane.b32.xlu0 %v4434_v45, %s4890_s19 }
0x22f2   :  { %4286 = vperm.xlu2 %4696, %v4281_v10   ;;  %4700 = vset.pattern.permute.xlu0 %v4889_v25  ;;  %v4648_v10 = vld [vmem:[%s6555_s2 + $0x38] sm:$0xff] }
0x22f9   :  { %4307 = vperm.xlu1 %4687, %v4302_v63   ;;  %4473 = vrot.lane.b32.xlu0 %v6410_v46, %s4892_s27 }
0x22fa   :  { %4300 = vperm.xlu2 %4696, %v4295_v35  }
0x2301   :  { %4698 = vset.pattern.permute.xlu1 %v4889_v25 }
0x2302   :  { %4314 = vperm.xlu2 %4696, %v4309_v11  }
0x230a   :  { %4699 = vset.pattern.permute.xlu2 %v4889_v25 }
0x2344   :  { %v4266_v48 = vpop.permute.xlu2 %4265 }
0x2345   :  { %v4316_v0 = vmul.f32 %v4266_v48, %v6435_v16 }
0x2347   :  { %v4324_v52 = vsel %vm47_vm10, %v4316_v0, 0.0 }
0x234c   :  { %v4287_v5 = vpop.permute.xlu2 %4286 }
0x234d   :  { %v4319_v28 = vmul.f32 %v4287_v5, %v6443_v23 }
0x234f   :  { %v4329_v18 = vsel %vm47_vm10, %v4319_v28, 0.0 }
0x2354   :  { %v4301_v27 = vpop.permute.xlu2 %4300 }
0x2355   :  { %v4321_v3 = vmul.f32 %v4301_v27, %v6445_v8  ;;  %v4045_v8 = vpop.f32.mrf.mxu3 }
0x2356   :  { %v4069_v35 = vadd.f32 %v4068_v41, %v4045_v8 }
0x2357   :  { %v4333_v50 = vsel %vm47_vm10, %v4321_v3, 0.0 }
0x2358   :  { %v4071_v11 = vadd.f32 %v6394_v4, %v4069_v35 }
0x235b   :  { %v4280_v13 = vpop.permute.xlu1 %4279  ;;  %v4273_v7 = vpop.permute.xlu0 %4272 }
0x235c   :  { %v4317_v43 = vmul.f32 %v4273_v7, %v6452_v37  ;;  %v4318_v32 = vmul.f32 %v4280_v13, %v6437_v2  ;;  %v4315_v2 = vpop.permute.xlu2 %4314 }
0x235d   :  { %v4323_v23 = vmul.f32 %v4315_v2, %v6459_v26  ;;  %v4092_v26 = vpop.f32.mrf.mxu1 }
0x235e   :  { %v4325_v21 = vsel %vm47_vm10, %v4317_v43, 0.0  ;;  %v4327_v25 = vsel %vm47_vm10, %v4318_v32, 0.0  ;;  %v4093_v63 = vadd.f32 %v6383_v62, %v4092_v26 }
0x235f   :  { %v4326_v29 = vadd.f32 %v4325_v21, %v4324_v52  ;;  %v4337_v36 = vsel %vm47_vm10, %v4323_v23, 0.0 }
0x2360   :  { %v4095_v48 = vadd.f32 %v4093_v63, %v4071_v11 }
0x2361   :  { %v4328_v1 = vadd.f32 %v4327_v25, %v4326_v29  ;;  %v4478_v29 = vsub.f32 1.0, %v4648_v10 }
0x2362   :  { %v4653_v5 = vmul.f32 -1.442695, %v4095_v48 }
0x2363   :  { %v4294_v58 = vpop.permute.xlu1 %4293  ;;  %v4330_v38 = vadd.f32 %v4329_v18, %v4328_v1  ;;  %v4458_v22 = vpop.permute.xlu0 %4457 }
0x2364   :  { %v4320_v16 = vmul.f32 %v4294_v58, %v6456_v12 }
0x2366   :  { %v4331_v37 = vsel %vm47_vm10, %v4320_v16, 0.0 }
0x2367   :  { %v4332_v9 = vadd.f32 %v4331_v37, %v4330_v38 }
0x2369   :  { %v4334_v33 = vadd.f32 %v4333_v50, %v4332_v9 }
0x236b   :  { %v4308_v15 = vpop.permute.xlu1 %4307  ;;  %v4474_v3 = vpop.permute.xlu0 %4473 }
0x236c   :  { %v4322_v54 = vmul.f32 %v4308_v15, %v6466_v61 }
0x236e   :  { %v4335_v17 = vsel %vm47_vm10, %v4322_v54, 0.0 }
0x236f   :  { %v4336_v12 = vadd.f32 %v4335_v17, %v4334_v33 }
0x2371   :  { %v4338_v53 = vadd.f32 %v4337_v36, %v4336_v12 }
0x2373   :  { %4656 = vmatmul.msk.f32.vlgmr.msra.gmra.mxu3 %vm56_vm9, %v4338_v53 }
0x23f6   :  { %v4366_v14 = vpop.f32.mrf.mxu3 }
0x23f7   :  { %v4387_v56 = vadd.f32 %v4386_v44, %v4366_v14 }
0x23f9   :  { %v4389_v39 = vadd.f32 %v6352_v24, %v4387_v56 }
0x23fb   :  { %4658 = vmatpush.msk.msrb.mxu1 %vm712_vm4, %v4389_v39 }
0x23fc   :  { %4659 = vmatmul.msk.f32.vlgmr.msrb.gmra.mxu1 %vm539_vm2, %v5190_v47 }
0x2479   :  { %v4410_v61 = vpop.f32.mrf.mxu1 }
0x247a   :  { %v4436_v20 = vadd.f32 %v4434_v45, %v4410_v61 }
0x247c   :  { %v4661_v42 = vmul.f32 -1.442695, %v4436_v20 }
0x247e   :  { %4821 = vpow2.f32 %v4661_v42 }
0x2484   :  { %v4822_v51 = vpop.eup %4821 }
0x2485   :  { %v4440_v57 = vadd.f32 1.0, %v4822_v51 }
0x2487   :  { %4823 = vrcp.f32 %v4440_v57  ;;  %v4452_v60 = vand.u32 2147483648, %v4440_v57  ;;  %v4450_v24 = vand.u32 2147483647, %v4440_v57  ;;  %vm4446_vm4 = vweird.f32 %v4440_v57 }
0x2488   :  { %4825 = vpow2.f32 %v4653_v5 }
0x2489   :  { %v4453_v55 = vor.u32 1.1754944e-38, %v4452_v60  ;;  %vm4451_vm2 = vcmp.eq.f32.partialorder %v4450_v24, 8.507059e+37 }
0x248d   :  { %v4824_v34 = vpop.eup %4823 }
0x248e   :  { %v4442_v59 = vmul.f32 %v4824_v34, %v4440_v57  ;;  %vm4447_vm15 = vweird.f32 %v4824_v34  ;;  %v4826_v0 = vpop.eup %4825 }
0x248f   :  { %vm4448_vm5 = vmor %vm4446_vm4, %vm4447_vm15  ;;  %v4099_v13 = vadd.f32 1.0, %v4826_v0 }
0x2490   :  { %v4443_v30 = vsub.f32 1.0, %v4442_v59 }
0x2491   :  { %4827 = vrcp.f32 %v4099_v13  ;;  %v4111_v4 = vand.u32 2147483648, %v4099_v13  ;;  %vm4105_vm7 = vweird.f32 %v4099_v13  ;;  %v4109_v25 = vand.u32 2147483647, %v4099_v13 }
0x2492   :  { %v4444_v40 = vmul.f32 %v4824_v34, %v4443_v30 }
0x2493   :  { %v4112_v58 = vor.u32 1.1754944e-38, %v4111_v4  ;;  %vm4110_vm3 = vcmp.eq.f32.partialorder %v4109_v25, 8.507059e+37 }
0x2494   :  { %v4445_v6 = vadd.f32 %v4824_v34, %v4444_v40 }
0x2496   :  { %v4449_v47 = vsel %vm4448_vm5, %v4824_v34, %v4445_v6 }
0x2497   :  { %v4454_v45 = vsel %vm4451_vm2, %v4453_v55, %v4449_v47  ;;  %v4828_v43 = vpop.eup %4827 }
0x2498   :  { %v4460_v49 = vmul.f32 %v4458_v22, %v4454_v45  ;;  %v4101_v32 = vmul.f32 %v4828_v43, %v4099_v13  ;;  %vm4106_vm6 = vweird.f32 %v4828_v43  ;;  %v4467_v38 = vsub.f32 1.0, %v4454_v45 }
0x2499   :  { %vm4107_vm0 = vmor %vm4105_vm7, %vm4106_vm6  ;;  %v4476_v9 = vmul.f32 %v4474_v3, %v4454_v45 }
0x249a   :  { %4462 = vrot.lane.b32.xlu1 %v4460_v49, %s4891_s26  ;;  %v4102_v62 = vsub.f32 1.0, %v4101_v32 }
0x24a2   :  { %4487 = vperm.xlu1 %4698, %v4648_v10  }
0x24aa   :  { %4116 = vrot.lane.b32.xlu1 %v4093_v63, %s4890_s19 }
0x24b2   :  { %4132 = vrot.lane.b32.xlu1 %v6468_v31, %s4892_s27  ;;  %v4103_v31 = vmul.f32 %v4828_v43, %v4102_v62 }
0x24b4   :  { %v4104_v28 = vadd.f32 %v4828_v43, %v4103_v31 }
0x24b6   :  { %v4108_v1 = vsel %vm4107_vm0, %v4828_v43, %v4104_v28 }
0x24b7   :  { %v4113_v18 = vsel %vm4110_vm3, %v4112_v58, %v4108_v1 }
0x24b8   :  { %v4126_v44 = vsub.f32 1.0, %v4113_v18 }
0x250c   :  { %v4463_v7 = vpop.permute.xlu1 %4462 }
0x250d   :  { %v4465_v52 = vadd.f32 %v4463_v7, %v4410_v61 }
0x250f   :  { %4829 = vtanh.f32 %v4465_v52 }
0x2514   :  { %v4488_v27 = vpop.permute.xlu1 %4487 }
0x2515   :  { %v4830_v21 = vpop.eup %4829 }
0x2516   :  { %4469 = vrot.lane.b32.xlu2 %v4830_v21, %s4893_s28 }
0x251c   :  { %v4117_v16 = vpop.permute.xlu1 %4116 }
0x251d   :  { %v4119_v37 = vmul.f32 %v4117_v16, %v4113_v18 }
0x251e   :  { %4481 = vperm.xlu2 %4699, %v4478_v29  }
0x2524   :  { %v4133_v8 = vpop.permute.xlu1 %4132 }
0x2525   :  { %v4135_v56 = vmul.f32 %v4133_v8, %v4113_v18 }
0x2526   :  { %4121 = vrot.lane.b32.xlu2 %v4119_v37, %s4891_s26 }
0x2570   :  { %v4470_v2 = vpop.permute.xlu2 %4469 }
0x2571   :  { %v4472_v15 = vmul.f32 %v4470_v2, %v4467_v38 }
0x2573   :  { %v4477_v50 = vadd.f32 %v4476_v9, %v4472_v15 }
0x2575   :  { %v4490_v23 = vmul.f32 %v4488_v27, %v4477_v50 }
0x2577   :  { %4492 = vrot.lane.b32.xlu0 %v4490_v23, %s4893_s28 }
0x2578   :  { %v4482_v54 = vpop.permute.xlu2 %4481 }
0x2579   :  { %v4484_v36 = vmul.f32 %v4482_v54, %v6410_v46 }
0x2580   :  { %v4122_v33 = vpop.permute.xlu2 %4121 }
0x2581   :  { %v4124_v17 = vadd.f32 %v4122_v33, %v4071_v11 }
0x2583   :  { %4831 = vtanh.f32 %v4124_v17 }
0x2589   :  { %v4832_v12 = vpop.eup %4831 }
0x258a   :  { %4128 = vrot.lane.b32.xlu0 %v4832_v12, %s4893_s28 }
0x25e9   :  { %v4493_v53 = vpop.permute.xlu0 %4492 }
0x25ea   :  { %v4495_v41 = vadd.f32 %v4493_v53, %v4484_v36 }
0x25ec   :  { %4496 = vst.msk [vmem:[#allocation3] sm:$0xff] %vm56_vm9, %v4495_v41  ;;  %4512 = vmatpush.msrb.mxu3 %v4495_v41 }
0x25ed   :  { %4662 = vmatmul.msk.f32.vlgmr.msrb.gmra.mxu3 %vm304_vm13, %v6414_v19 }
0x25fc   :  { %v4129_v14 = vpop.permute.xlu0 %4128 }
0x25fd   :  { %v4131_v39 = vmul.f32 %v4129_v14, %v4126_v44 }
0x25ff   :  { %v4136_v26 = vadd.f32 %v4135_v56, %v4131_v39 }
0x2601   :  { %4340 = vrot.lane.b32.xlu2 %v4136_v26, %s4893_s28 }
0x265b   :  { %v4341_v61 = vpop.permute.xlu2 %4340 }
0x265c   :  { %4344 = vst.msk [vmem:[#allocation2 + $0x1c] sm:$0xf] %vm47_vm10, %v4341_v61 }
0x265d   :  { %4345 = vst.msk [vmem:[#allocation4] sm:$0xf] %vm47_vm10, %v4341_v61 }
0x2670   :  { %v4514_v46 = vpop.f32.mrf.mxu3 }
0x2671   :  { %4663 = vst.msk [vmem:[%s6559_s14 + $0x1c] sm:$0xf] %vm47_vm10, %v4514_v46 }

</bundles_post_ra>
